<compile_context>
chip_gen: v5e
topology: v5e:2x2
jax: 0.10.0
libtpu: 0.0.40
codegen_flags: <defaults>
</compile_context>

<pallas_src>
import jax
import jax.numpy as jnp
from jax.experimental import pallas as pl
from jax.experimental.pallas import tpu as pltpu

EPS = 1e-5
LANES = 128


def _round_up(x, m):
    return (x + m - 1) // m * m


def _compiler_params(step_bytes):
    """Per-step blocks are double buffered; leave slack for the in-kernel f32
    working set.  Clamp to a value safe on every generation (v5e default
    scoped limit is only 16 MiB; v7x has 64 MiB physical per TensorCore)."""
    limit = int(min(max(2 * step_bytes + (8 << 20), 32 << 20), 48 << 20))
    return pltpu.CompilerParams(
        dimension_semantics=("parallel", "parallel"),
        vmem_limit_bytes=limit)


# ---------------------------------------------------------------------------
# In-kernel helpers
# ---------------------------------------------------------------------------
def _accumulate_taps(planes, w_ref, m_not_last, m_not_first, W):
    """27 shifted-tap matmuls of a 3x3x3 SAME conv, f32 accumulation.

    planes      : 3 f32 (H*W, C) planes for D-offset -1/0/+1 (already zeroed
                  at the D boundary by the caller).
    w_ref       : (27, C, Cp) bf16 per-tap weight matrices, tap order (kd,kh,kw).
    m_not_last  : (H*W, 1) f32, 0.0 where w == W-1   (used for kw offset -1)
    m_not_first : (H*W, 1) f32, 0.0 where w == 0     (used for kw offset +1)

    A plane is zero-extended by W+1 rows on both ends; tap (oh, ow) is the
    static row window starting at (W+1) + oh*W + ow.  Rows that would wrap
    around the W boundary are zeroed via the masks.  Everything is rank-2.
    """
    HW, C = planes[0].shape
    Cp = w_ref.shape[-1]
    zpad = jnp.zeros((W + 1, C), jnp.float32)
    acc = jnp.zeros((HW, Cp), jnp.float32)
    for kd, plane in enumerate(planes):
        for ow in (-1, 0, 1):
            if ow == -1:
                p = plane * m_not_last
            elif ow == 1:
                p = plane * m_not_first
            else:
                p = plane
            ext = jnp.concatenate([zpad, p, zpad], axis=0)
            for oh in (-1, 0, 1):
                start = (W + 1) + oh * W + ow
                tap = ext[start:start + HW, :].astype(jnp.bfloat16)
                idx = (kd * 3 + (oh + 1)) * 3 + (ow + 1)
                acc = acc + jnp.dot(tap, w_ref[idx],
                                    preferred_element_type=jnp.float32)
    return acc


def _emit_stats(s_ref, acc):
    # Per-plane column sum / sum-of-squares from the f32 accumulator (before
    # the bf16 cast of the stored activation); reduced to global batch
    # statistics in plain JAX between the pallas_calls.
    s_ref[0, 0, 0:1, :] = jnp.sum(acc, axis=0, keepdims=True)
    s_ref[0, 0, 1:2, :] = jnp.sum(acc * acc, axis=0, keepdims=True)


def _d_halo_masks():
    d = pl.program_id(1)
    nd = pl.num_programs(1)
    vm = (d > 0).astype(jnp.float32)        # lower D-halo plane valid?
    vp = (d < nd - 1).astype(jnp.float32)   # upper D-halo plane valid?
    return vm, vp


# ---------------------------------------------------------------------------
# Kernels
# ---------------------------------------------------------------------------
def _make_conv1_kernel(W):
    def kernel(xm_ref, x0_ref, xp_ref, w_ref, ml_ref, mf_ref, y_ref, s_ref):
        vm, vp = _d_halo_masks()
        planes = (xm_ref[0, 0].astype(jnp.float32) * vm,
                  x0_ref[0, 0].astype(jnp.float32),
                  xp_ref[0, 0].astype(jnp.float32) * vp)
        acc = _accumulate_taps(planes, w_ref, ml_ref[...], mf_ref[...], W)
        y_ref[0, 0] = acc.astype(y_ref.dtype)
        _emit_stats(s_ref, acc)
    return kernel


def _make_conv2_kernel(W):
    def kernel(ym_ref, y0_ref, yp_ref, w_ref, sc_ref, sh_ref,
               ml_ref, mf_ref, y_ref, s_ref):
        vm, vp = _d_halo_masks()
        scale = sc_ref[...]
        shift = sh_ref[...]

        def act(ref, valid):
            # Fused BN1 + ReLU on the raw bf16 conv1 output (saves a full HBM
            # read+write pass); the D-halo mask zeroes the plane *after* the
            # activation, matching zero padding of the activation.
            a = jnp.maximum(ref[0, 0].astype(jnp.float32) * scale + shift, 0.0)
            return a * valid

        planes = (act(ym_ref, vm), act(y0_ref, 1.0), act(yp_ref, vp))
        acc = _accumulate_taps(planes, w_ref, ml_ref[...], mf_ref[...], W)
        y_ref[0, 0] = acc.astype(y_ref.dtype)
        _emit_stats(s_ref, acc)
    return kernel


def _bn_skip_relu_kernel(y_ref, x_ref, wsk_ref, sc_ref, sh_ref, o_ref):
    # BN2 (scale/shift, bsk folded into shift) + 1x1x1 skip conv + add + ReLU.
    bn = y_ref[0, 0].astype(jnp.float32) * sc_ref[...] + sh_ref[...]
    skip = jnp.dot(x_ref[0, 0], wsk_ref[...], preferred_element_type=jnp.float32)
    o_ref[0, 0] = jnp.maximum(bn + skip, 0.0).astype(o_ref.dtype)


# ---------------------------------------------------------------------------
# pallas_call wrappers
# ---------------------------------------------------------------------------
def _conv1_call(x, w, masks, W):
    N, D, HW, Cin = x.shape
    Cp = w.shape[-1]
    ml, mf = masks
    est = (3 * HW * Cin * 2 + 27 * Cin * Cp * 2 + HW * Cp * 2
           + 2 * Cp * 4 + 8 * HW * Cp * 4)
    return pl.pallas_call(
        _make_conv1_kernel(W),
        out_shape=(jax.ShapeDtypeStruct((N, D, HW, Cp), jnp.bfloat16),
                   jax.ShapeDtypeStruct((N, D, 2, Cp), jnp.float32)),
        grid=(N, D),
        in_specs=[
            pl.BlockSpec((1, 1, HW, Cin),
                         lambda n, d: (n, jnp.maximum(d - 1, 0), 0, 0)),
            pl.BlockSpec((1, 1, HW, Cin), lambda n, d: (n, d, 0, 0)),
            pl.BlockSpec((1, 1, HW, Cin),
                         lambda n, d: (n, jnp.minimum(d + 1, D - 1), 0, 0)),
            pl.BlockSpec((27, Cin, Cp), lambda n, d: (0, 0, 0)),
            pl.BlockSpec((HW, 1), lambda n, d: (0, 0)),
            pl.BlockSpec((HW, 1), lambda n, d: (0, 0)),
        ],
        out_specs=(
            pl.BlockSpec((1, 1, HW, Cp), lambda n, d: (n, d, 0, 0)),
            pl.BlockSpec((1, 1, 2, Cp), lambda n, d: (n, d, 0, 0)),
        ),
        compiler_params=_compiler_params(est),
    )(x, x, x, w, ml, mf)


def _conv2_call(y1, w, scale, shift, masks, W):
    N, D, HW, Cp = y1.shape
    ml, mf = masks
    est = (3 * HW * Cp * 2 + 27 * Cp * Cp * 2 + HW * Cp * 2
           + 4 * Cp * 4 + 8 * HW * Cp * 4)
    return pl.pallas_call(
        _make_conv2_kernel(W),
        out_shape=(jax.ShapeDtypeStruct((N, D, HW, Cp), jnp.bfloat16),
                   jax.ShapeDtypeStruct((N, D, 2, Cp), jnp.float32)),
        grid=(N, D),
        in_specs=[
            pl.BlockSpec((1, 1, HW, Cp),
                         lambda n, d: (n, jnp.maximum(d - 1, 0), 0, 0)),
            pl.BlockSpec((1, 1, HW, Cp), lambda n, d: (n, d, 0, 0)),
            pl.BlockSpec((1, 1, HW, Cp),
                         lambda n, d: (n, jnp.minimum(d + 1, D - 1), 0, 0)),
            pl.BlockSpec((27, Cp, Cp), lambda n, d: (0, 0, 0)),
            pl.BlockSpec((1, Cp), lambda n, d: (0, 0)),
            pl.BlockSpec((1, Cp), lambda n, d: (0, 0)),
            pl.BlockSpec((HW, 1), lambda n, d: (0, 0)),
            pl.BlockSpec((HW, 1), lambda n, d: (0, 0)),
        ],
        out_specs=(
            pl.BlockSpec((1, 1, HW, Cp), lambda n, d: (n, d, 0, 0)),
            pl.BlockSpec((1, 1, 2, Cp), lambda n, d: (n, d, 0, 0)),
        ),
        compiler_params=_compiler_params(est),
    )(y1, y1, y1, w, scale, shift, ml, mf)


def _bn_skip_relu_call(y2, x, wsk, scale, shift):
    N, D, HW, Cp = y2.shape
    Cin = x.shape[-1]
    est = HW * Cp * 2 + HW * Cin * 2 + Cin * Cp * 2 + 2 * Cp * 4 + 3 * HW * Cp * 4
    return pl.pallas_call(
        _bn_skip_relu_kernel,
        out_shape=jax.ShapeDtypeStruct((N, D, HW, Cp), jnp.float32),
        grid=(N, D),
        in_specs=[
            pl.BlockSpec((1, 1, HW, Cp), lambda n, d: (n, d, 0, 0)),
            pl.BlockSpec((1, 1, HW, Cin), lambda n, d: (n, d, 0, 0)),
            pl.BlockSpec((Cin, Cp), lambda n, d: (0, 0)),
            pl.BlockSpec((1, Cp), lambda n, d: (0, 0)),
            pl.BlockSpec((1, Cp), lambda n, d: (0, 0)),
        ],
        out_specs=pl.BlockSpec((1, 1, HW, Cp), lambda n, d: (n, d, 0, 0)),
        compiler_params=_compiler_params(est),
    )(y2, x, wsk, scale, shift)


# ---------------------------------------------------------------------------
# JAX glue (stat finalization / layout)
# ---------------------------------------------------------------------------
def _bn_scale_shift(stats, gamma, beta, count, cp, extra_shift=None):
    """Fold global batch stats + gamma/beta (and optionally a post-BN bias)
    into one scale/shift pair (f32).  Padded channel lanes stay exactly 0."""
    s = jnp.sum(stats, axis=(0, 1))                      # (2, Cp) global sums
    mean = s[0] / count
    var = jnp.maximum(s[1] / count - mean * mean, 0.0)   # biased variance
    inv = jax.lax.rsqrt(var + EPS)

    def pad(v):
        return jnp.pad(v.astype(jnp.float32), (0, cp - v.shape[0]))

    scale = pad(gamma) * inv
    shift = pad(beta) - mean * scale
    if extra_shift is not None:
        shift = shift + pad(extra_shift)
    return scale.reshape(1, cp), shift.reshape(1, cp)


def residual_block_3d(x_ncdhw, params):
    """Forward pass of ResidualBlock3D (kernel_size=3, stride=1, Cin != Cout).

    BatchNorm uses training-mode batch statistics (what a freshly constructed
    PyTorch module computes in forward()).  Conv biases b1/b2 are dropped in
    the kernels: a per-channel bias added before training-mode BN cancels
    exactly under mean subtraction.  The skip bias is folded into shift2.
    """
    N, Cin, D, H, W = x_ncdhw.shape
    Cout = params["w1"].shape[0]
    HW = H * W
    Cp = _round_up(Cout, LANES)        # lane-dense output channels
    count = N * D * HW                 # elements per channel for BN stats

    # channel-last (N, D, H*W, C) layout; matmul operands are bf16.
    x_l = jnp.transpose(x_ncdhw, (0, 2, 3, 4, 1)).reshape(N, D, HW, Cin)
    x_l = x_l.astype(jnp.bfloat16)

    # per-tap weight matrices, tap order (kd, kh, kw); channels padded to Cp.
    w1 = jnp.transpose(params["w1"], (2, 3, 4, 1, 0)).reshape(27, Cin, Cout)
    w1 = jnp.pad(w1, ((0, 0), (0, 0), (0, Cp - Cout))).astype(jnp.bfloat16)
    w2 = jnp.transpose(params["w2"], (2, 3, 4, 1, 0)).reshape(27, Cout, Cout)
    w2 = jnp.pad(w2, ((0, 0), (0, Cp - Cout), (0, Cp - Cout))).astype(jnp.bfloat16)
    wsk = jnp.pad(params["wsk"].reshape(Cout, Cin).T,
                  ((0, 0), (0, Cp - Cout))).astype(jnp.bfloat16)

    # static W-boundary row masks for the in-kernel shifted taps.
    wpos = jnp.arange(HW, dtype=jnp.int32) % W
    m_not_last = (wpos != W - 1).astype(jnp.float32).reshape(HW, 1)
    m_not_first = (wpos != 0).astype(jnp.float32).reshape(HW, 1)
    masks = (m_not_last, m_not_first)

    # pass 1: conv1 (in-kernel 27-tap gather) + per-plane column stats
    y1_raw, st1 = _conv1_call(x_l, w1, masks, W)
    scale1, shift1 = _bn_scale_shift(st1, params["g1"], params["beta1"],
                                     count, Cp)

    # pass 2: conv2 with BN1+ReLU fused onto its input taps, + stats
    y2_raw, st2 = _conv2_call(y1_raw, w2, scale1, shift1, masks, W)
    scale2, shift2 = _bn_scale_shift(st2, params["g2"], params["beta2"],
                                     count, Cp, extra_shift=params["bsk"])

    # pass 3: BN2 + 1x1x1 skip conv + add + ReLU
    out = _bn_skip_relu_call(y2_raw, x_l, wsk, scale2, shift2)
    out = out[..., :Cout].reshape(N, D, H, W, Cout)
    return jnp.transpose(out, (0, 4, 1, 2, 3))           # back to NCDHW


# ---------------------------------------------------------------------------
# Pure-JAX f32 reference (PyTorch forward semantics, incl. conv biases)
# ---------------------------------------------------------------------------
def _reference(x, params):
    def conv(x, w, b):
        y = jax.lax.conv_general_dilated(
            x, w, (1, 1, 1), "SAME",
            dimension_numbers=("NCDHW", "OIDHW", "NCDHW"))
        return y + b.reshape(1, -1, 1, 1, 1)

    def bn(x, g, beta):
        mean = jnp.mean(x, axis=(0, 2, 3, 4), keepdims=True)
        var = jnp.mean((x - mean) ** 2, axis=(0, 2, 3, 4), keepdims=True)
        return ((x - mean) * jax.lax.rsqrt(var + EPS)
                * g.reshape(1, -1, 1, 1, 1) + beta.reshape(1, -1, 1, 1, 1))

    identity = conv(x, params["wsk"], params["bsk"])
    out = jnp.maximum(bn(conv(x, params["w1"], params["b1"]),
                         params["g1"], params["beta1"]), 0.0)
    out = bn(conv(out, params["w2"], params["b2"]), params["g2"], params["beta2"])
    return jnp.maximum(out + identity, 0.0)


# ---------------------------------------------------------------------------
if __name__ == "__main__":
    key = jax.random.PRNGKey(0)
    ks = jax.random.split(key, 12)
    N, Cin, Cout, D, H, W = 2, 4, 8, 8, 8, 8

    params = dict(
        w1=0.1 * jax.random.normal(ks[0], (Cout, Cin, 3, 3, 3), jnp.float32),
        b1=0.1 * jax.random.normal(ks[1], (Cout,), jnp.float32),
        g1=1.0 + 0.1 * jax.random.normal(ks[2], (Cout,), jnp.float32),
        beta1=0.1 * jax.random.normal(ks[3], (Cout,), jnp.float32),
        w2=0.1 * jax.random.normal(ks[4], (Cout, Cout, 3, 3, 3), jnp.float32),
        b2=0.1 * jax.random.normal(ks[5], (Cout,), jnp.float32),
        g2=1.0 + 0.1 * jax.random.normal(ks[6], (Cout,), jnp.float32),
        beta2=0.1 * jax.random.normal(ks[7], (Cout,), jnp.float32),
        wsk=0.1 * jax.random.normal(ks[8], (Cout, Cin, 1, 1, 1), jnp.float32),
        bsk=0.1 * jax.random.normal(ks[9], (Cout,), jnp.float32),
    )
    x = jax.random.normal(ks[11], (N, Cin, D, H, W), jnp.float32)

    out = jax.jit(residual_block_3d)(x, params)
    out = jax.block_until_ready(out)

    ref = _reference(x, params)
    assert out.shape == ref.shape == (N, Cout, D, H, W)
    # bf16 MXU operands + bf16 intermediates through two convs and two BNs ->
    # relaxed but meaningful tolerances vs the f32 reference.
    max_err = float(jnp.max(jnp.abs(out - ref)))
    mean_err = float(jnp.mean(jnp.abs(out - ref)))
    if max_err > 1e-1 or mean_err > 2.5e-2:
        raise AssertionError(
            f"Pallas result mismatch, max abs err = {max_err}, mean = {mean_err}")

    print("KERNEL_OK")
</pallas_src>

<mosaic_0001>
module attributes {stable_mosaic.version = 11 : i64} {
  func.func @kernel(%arg0: i32, %arg1: i32, %arg2: memref<1x1x64x4xbf16, #tpu.memory_space<vmem>>, %arg3: memref<1x1x64x4xbf16, #tpu.memory_space<vmem>>, %arg4: memref<1x1x64x4xbf16, #tpu.memory_space<vmem>>, %arg5: memref<27x4x128xbf16, #tpu.memory_space<vmem>>, %arg6: memref<64x1xf32, #tpu.memory_space<vmem>>, %arg7: memref<64x1xf32, #tpu.memory_space<vmem>>, %arg8: memref<1x1x64x128xbf16, #tpu.memory_space<vmem>>, %arg9: memref<1x1x2x128xf32, #tpu.memory_space<vmem>>) attributes {dimension_semantics = [#tpu.dimension_semantics<parallel>, #tpu.dimension_semantics<parallel>], iteration_bounds = array<i64: 2, 8>, scalar_prefetch = 0 : i64, scratch_operands = 0 : i64, tpu.core_type = #tpu.core_type<tc>, window_params = [{transform_indices = @transform_0, window_bounds = array<i64: 1, 1, 64, 4>}, {transform_indices = @transform_1, window_bounds = array<i64: 1, 1, 64, 4>}, {transform_indices = @transform_2, window_bounds = array<i64: 1, 1, 64, 4>}, {pipeline_mode = #tpu.pipeline_mode<synchronous>, transform_indices = @transform_3, window_bounds = array<i64: 27, 4, 128>}, {pipeline_mode = #tpu.pipeline_mode<synchronous>, transform_indices = @transform_4, window_bounds = array<i64: 64, 1>}, {pipeline_mode = #tpu.pipeline_mode<synchronous>, transform_indices = @transform_5, window_bounds = array<i64: 64, 1>}, {transform_indices = @transform_6, window_bounds = array<i64: 1, 1, 64, 128>}, {transform_indices = @transform_7, window_bounds = array<i64: 1, 1, 2, 128>}]} {
    %c0_i32 = arith.constant 0 : i32
    %0 = arith.cmpi sgt, %arg1, %c0_i32 : i32
    %1 = arith.extui %0 : i1 to i32
    %2 = arith.sitofp %1 : i32 to f32
    %c7_i32 = arith.constant 7 : i32
    %3 = arith.cmpi slt, %arg1, %c7_i32 : i32
    %4 = arith.extui %3 : i1 to i32
    %5 = arith.sitofp %4 : i32 to f32
    %c0 = arith.constant 0 : index
    %c0_0 = arith.constant 0 : index
    %c0_1 = arith.constant 0 : index
    %c0_2 = arith.constant 0 : index
    %6 = vector.load %arg2[%c0, %c0_0, %c0_1, %c0_2] : memref<1x1x64x4xbf16, #tpu.memory_space<vmem>>, vector<1x1x64x4xbf16>
    %7 = vector.shape_cast %6 : vector<1x1x64x4xbf16> to vector<64x4xbf16>
    %8 = arith.extf %7 : vector<64x4xbf16> to vector<64x4xf32>
    %9 = vector.broadcast %2 : f32 to vector<64x4xf32>
    %10 = arith.mulf %8, %9 : vector<64x4xf32>
    %c0_3 = arith.constant 0 : index
    %c0_4 = arith.constant 0 : index
    %c0_5 = arith.constant 0 : index
    %c0_6 = arith.constant 0 : index
    %11 = vector.load %arg3[%c0_3, %c0_4, %c0_5, %c0_6] : memref<1x1x64x4xbf16, #tpu.memory_space<vmem>>, vector<1x1x64x4xbf16>
    %12 = vector.shape_cast %11 : vector<1x1x64x4xbf16> to vector<64x4xbf16>
    %13 = arith.extf %12 : vector<64x4xbf16> to vector<64x4xf32>
    %c0_7 = arith.constant 0 : index
    %c0_8 = arith.constant 0 : index
    %c0_9 = arith.constant 0 : index
    %c0_10 = arith.constant 0 : index
    %14 = vector.load %arg4[%c0_7, %c0_8, %c0_9, %c0_10] : memref<1x1x64x4xbf16, #tpu.memory_space<vmem>>, vector<1x1x64x4xbf16>
    %15 = vector.shape_cast %14 : vector<1x1x64x4xbf16> to vector<64x4xbf16>
    %16 = arith.extf %15 : vector<64x4xbf16> to vector<64x4xf32>
    %17 = vector.broadcast %5 : f32 to vector<64x4xf32>
    %18 = arith.mulf %16, %17 : vector<64x4xf32>
    %c0_11 = arith.constant 0 : index
    %c0_12 = arith.constant 0 : index
    %19 = vector.load %arg6[%c0_11, %c0_12] : memref<64x1xf32, #tpu.memory_space<vmem>>, vector<64x1xf32>
    %c0_13 = arith.constant 0 : index
    %c0_14 = arith.constant 0 : index
    %20 = vector.load %arg7[%c0_13, %c0_14] : memref<64x1xf32, #tpu.memory_space<vmem>>, vector<64x1xf32>
    %cst = arith.constant 0.000000e+00 : f32
    %21 = vector.broadcast %cst : f32 to vector<9x4xf32>
    %cst_15 = arith.constant 0.000000e+00 : f32
    %22 = vector.broadcast %cst_15 : f32 to vector<64x128xf32>
    %23 = vector.broadcast %19 : vector<64x1xf32> to vector<64x4xf32>
    %24 = arith.mulf %10, %23 : vector<64x4xf32>
    %25 = tpu.concatenate %21, %24, %21 in 0 : vector<9x4xf32>, vector<64x4xf32>, vector<9x4xf32> -> vector<82x4xf32>
    %26 = vector.extract_strided_slice %25 {offsets = [0, 0], sizes = [64, 4], strides = [1, 1]} : vector<82x4xf32> to vector<64x4xf32>
    %27 = arith.truncf %26 : vector<64x4xf32> to vector<64x4xbf16>
    %c0_16 = arith.constant 0 : index
    %c0_17 = arith.constant 0 : index
    %c0_18 = arith.constant 0 : index
    %28 = vector.load %arg5[%c0_16, %c0_17, %c0_18] : memref<27x4x128xbf16, #tpu.memory_space<vmem>>, vector<1x4x128xbf16>
    %29 = vector.shape_cast %28 : vector<1x4x128xbf16> to vector<4x128xbf16>
    %cst_19 = arith.constant dense<0.000000e+00> : vector<64x128xf32>
    %30 = tpu.matmul %27, %29, %cst_19 {dimension_numbers = #tpu.dot_dimension_numbers<[1], [0], [0], [1], [0, 0, 1, 1], [], []>} : vector<64x4xbf16>, vector<4x128xbf16>, vector<64x128xf32> -> vector<64x128xf32>
    %31 = arith.addf %22, %30 : vector<64x128xf32>
    %32 = vector.extract_strided_slice %25 {offsets = [8, 0], sizes = [64, 4], strides = [1, 1]} : vector<82x4xf32> to vector<64x4xf32>
    %33 = arith.truncf %32 : vector<64x4xf32> to vector<64x4xbf16>
    %c3 = arith.constant 3 : index
    %c0_20 = arith.constant 0 : index
    %c0_21 = arith.constant 0 : index
    %34 = vector.load %arg5[%c3, %c0_20, %c0_21] : memref<27x4x128xbf16, #tpu.memory_space<vmem>>, vector<1x4x128xbf16>
    %35 = vector.shape_cast %34 : vector<1x4x128xbf16> to vector<4x128xbf16>
    %cst_22 = arith.constant dense<0.000000e+00> : vector<64x128xf32>
    %36 = tpu.matmul %33, %35, %cst_22 {dimension_numbers = #tpu.dot_dimension_numbers<[1], [0], [0], [1], [0, 0, 1, 1], [], []>} : vector<64x4xbf16>, vector<4x128xbf16>, vector<64x128xf32> -> vector<64x128xf32>
    %37 = arith.addf %31, %36 : vector<64x128xf32>
    %38 = vector.extract_strided_slice %25 {offsets = [16, 0], sizes = [64, 4], strides = [1, 1]} : vector<82x4xf32> to vector<64x4xf32>
    %39 = arith.truncf %38 : vector<64x4xf32> to vector<64x4xbf16>
    %c6 = arith.constant 6 : index
    %c0_23 = arith.constant 0 : index
    %c0_24 = arith.constant 0 : index
    %40 = vector.load %arg5[%c6, %c0_23, %c0_24] : memref<27x4x128xbf16, #tpu.memory_space<vmem>>, vector<1x4x128xbf16>
    %41 = vector.shape_cast %40 : vector<1x4x128xbf16> to vector<4x128xbf16>
    %cst_25 = arith.constant dense<0.000000e+00> : vector<64x128xf32>
    %42 = tpu.matmul %39, %41, %cst_25 {dimension_numbers = #tpu.dot_dimension_numbers<[1], [0], [0], [1], [0, 0, 1, 1], [], []>} : vector<64x4xbf16>, vector<4x128xbf16>, vector<64x128xf32> -> vector<64x128xf32>
    %43 = arith.addf %37, %42 : vector<64x128xf32>
    %44 = tpu.concatenate %21, %10, %21 in 0 : vector<9x4xf32>, vector<64x4xf32>, vector<9x4xf32> -> vector<82x4xf32>
    %45 = vector.extract_strided_slice %44 {offsets = [1, 0], sizes = [64, 4], strides = [1, 1]} : vector<82x4xf32> to vector<64x4xf32>
    %46 = arith.truncf %45 : vector<64x4xf32> to vector<64x4xbf16>
    %c1 = arith.constant 1 : index
    %c0_26 = arith.constant 0 : index
    %c0_27 = arith.constant 0 : index
    %47 = vector.load %arg5[%c1, %c0_26, %c0_27] : memref<27x4x128xbf16, #tpu.memory_space<vmem>>, vector<1x4x128xbf16>
    %48 = vector.shape_cast %47 : vector<1x4x128xbf16> to vector<4x128xbf16>
    %cst_28 = arith.constant dense<0.000000e+00> : vector<64x128xf32>
    %49 = tpu.matmul %46, %48, %cst_28 {dimension_numbers = #tpu.dot_dimension_numbers<[1], [0], [0], [1], [0, 0, 1, 1], [], []>} : vector<64x4xbf16>, vector<4x128xbf16>, vector<64x128xf32> -> vector<64x128xf32>
    %50 = arith.addf %43, %49 : vector<64x128xf32>
    %51 = vector.extract_strided_slice %44 {offsets = [9, 0], sizes = [64, 4], strides = [1, 1]} : vector<82x4xf32> to vector<64x4xf32>
    %52 = arith.truncf %51 : vector<64x4xf32> to vector<64x4xbf16>
    %c4 = arith.constant 4 : index
    %c0_29 = arith.constant 0 : index
    %c0_30 = arith.constant 0 : index
    %53 = vector.load %arg5[%c4, %c0_29, %c0_30] : memref<27x4x128xbf16, #tpu.memory_space<vmem>>, vector<1x4x128xbf16>
    %54 = vector.shape_cast %53 : vector<1x4x128xbf16> to vector<4x128xbf16>
    %cst_31 = arith.constant dense<0.000000e+00> : vector<64x128xf32>
    %55 = tpu.matmul %52, %54, %cst_31 {dimension_numbers = #tpu.dot_dimension_numbers<[1], [0], [0], [1], [0, 0, 1, 1], [], []>} : vector<64x4xbf16>, vector<4x128xbf16>, vector<64x128xf32> -> vector<64x128xf32>
    %56 = arith.addf %50, %55 : vector<64x128xf32>
    %57 = vector.extract_strided_slice %44 {offsets = [17, 0], sizes = [64, 4], strides = [1, 1]} : vector<82x4xf32> to vector<64x4xf32>
    %58 = arith.truncf %57 : vector<64x4xf32> to vector<64x4xbf16>
    %c7 = arith.constant 7 : index
    %c0_32 = arith.constant 0 : index
    %c0_33 = arith.constant 0 : index
    %59 = vector.load %arg5[%c7, %c0_32, %c0_33] : memref<27x4x128xbf16, #tpu.memory_space<vmem>>, vector<1x4x128xbf16>
    %60 = vector.shape_cast %59 : vector<1x4x128xbf16> to vector<4x128xbf16>
    %cst_34 = arith.constant dense<0.000000e+00> : vector<64x128xf32>
    %61 = tpu.matmul %58, %60, %cst_34 {dimension_numbers = #tpu.dot_dimension_numbers<[1], [0], [0], [1], [0, 0, 1, 1], [], []>} : vector<64x4xbf16>, vector<4x128xbf16>, vector<64x128xf32> -> vector<64x128xf32>
    %62 = arith.addf %56, %61 : vector<64x128xf32>
    %63 = vector.broadcast %20 : vector<64x1xf32> to vector<64x4xf32>
    %64 = arith.mulf %10, %63 : vector<64x4xf32>
    %65 = tpu.concatenate %21, %64, %21 in 0 : vector<9x4xf32>, vector<64x4xf32>, vector<9x4xf32> -> vector<82x4xf32>
    %66 = vector.extract_strided_slice %65 {offsets = [2, 0], sizes = [64, 4], strides = [1, 1]} : vector<82x4xf32> to vector<64x4xf32>
    %67 = arith.truncf %66 : vector<64x4xf32> to vector<64x4xbf16>
    %c2 = arith.constant 2 : index
    %c0_35 = arith.constant 0 : index
    %c0_36 = arith.constant 0 : index
    %68 = vector.load %arg5[%c2, %c0_35, %c0_36] : memref<27x4x128xbf16, #tpu.memory_space<vmem>>, vector<1x4x128xbf16>
    %69 = vector.shape_cast %68 : vector<1x4x128xbf16> to vector<4x128xbf16>
    %cst_37 = arith.constant dense<0.000000e+00> : vector<64x128xf32>
    %70 = tpu.matmul %67, %69, %cst_37 {dimension_numbers = #tpu.dot_dimension_numbers<[1], [0], [0], [1], [0, 0, 1, 1], [], []>} : vector<64x4xbf16>, vector<4x128xbf16>, vector<64x128xf32> -> vector<64x128xf32>
    %71 = arith.addf %62, %70 : vector<64x128xf32>
    %72 = vector.extract_strided_slice %65 {offsets = [10, 0], sizes = [64, 4], strides = [1, 1]} : vector<82x4xf32> to vector<64x4xf32>
    %73 = arith.truncf %72 : vector<64x4xf32> to vector<64x4xbf16>
    %c5 = arith.constant 5 : index
    %c0_38 = arith.constant 0 : index
    %c0_39 = arith.constant 0 : index
    %74 = vector.load %arg5[%c5, %c0_38, %c0_39] : memref<27x4x128xbf16, #tpu.memory_space<vmem>>, vector<1x4x128xbf16>
    %75 = vector.shape_cast %74 : vector<1x4x128xbf16> to vector<4x128xbf16>
    %cst_40 = arith.constant dense<0.000000e+00> : vector<64x128xf32>
    %76 = tpu.matmul %73, %75, %cst_40 {dimension_numbers = #tpu.dot_dimension_numbers<[1], [0], [0], [1], [0, 0, 1, 1], [], []>} : vector<64x4xbf16>, vector<4x128xbf16>, vector<64x128xf32> -> vector<64x128xf32>
    %77 = arith.addf %71, %76 : vector<64x128xf32>
    %78 = vector.extract_strided_slice %65 {offsets = [18, 0], sizes = [64, 4], strides = [1, 1]} : vector<82x4xf32> to vector<64x4xf32>
    %79 = arith.truncf %78 : vector<64x4xf32> to vector<64x4xbf16>
    %c8 = arith.constant 8 : index
    %c0_41 = arith.constant 0 : index
    %c0_42 = arith.constant 0 : index
    %80 = vector.load %arg5[%c8, %c0_41, %c0_42] : memref<27x4x128xbf16, #tpu.memory_space<vmem>>, vector<1x4x128xbf16>
    %81 = vector.shape_cast %80 : vector<1x4x128xbf16> to vector<4x128xbf16>
    %cst_43 = arith.constant dense<0.000000e+00> : vector<64x128xf32>
    %82 = tpu.matmul %79, %81, %cst_43 {dimension_numbers = #tpu.dot_dimension_numbers<[1], [0], [0], [1], [0, 0, 1, 1], [], []>} : vector<64x4xbf16>, vector<4x128xbf16>, vector<64x128xf32> -> vector<64x128xf32>
    %83 = arith.addf %77, %82 : vector<64x128xf32>
    %84 = vector.broadcast %19 : vector<64x1xf32> to vector<64x4xf32>
    %85 = arith.mulf %13, %84 : vector<64x4xf32>
    %86 = tpu.concatenate %21, %85, %21 in 0 : vector<9x4xf32>, vector<64x4xf32>, vector<9x4xf32> -> vector<82x4xf32>
    %87 = vector.extract_strided_slice %86 {offsets = [0, 0], sizes = [64, 4], strides = [1, 1]} : vector<82x4xf32> to vector<64x4xf32>
    %88 = arith.truncf %87 : vector<64x4xf32> to vector<64x4xbf16>
    %c9 = arith.constant 9 : index
    %c0_44 = arith.constant 0 : index
    %c0_45 = arith.constant 0 : index
    %89 = vector.load %arg5[%c9, %c0_44, %c0_45] : memref<27x4x128xbf16, #tpu.memory_space<vmem>>, vector<1x4x128xbf16>
    %90 = vector.shape_cast %89 : vector<1x4x128xbf16> to vector<4x128xbf16>
    %cst_46 = arith.constant dense<0.000000e+00> : vector<64x128xf32>
    %91 = tpu.matmul %88, %90, %cst_46 {dimension_numbers = #tpu.dot_dimension_numbers<[1], [0], [0], [1], [0, 0, 1, 1], [], []>} : vector<64x4xbf16>, vector<4x128xbf16>, vector<64x128xf32> -> vector<64x128xf32>
    %92 = arith.addf %83, %91 : vector<64x128xf32>
    %93 = vector.extract_strided_slice %86 {offsets = [8, 0], sizes = [64, 4], strides = [1, 1]} : vector<82x4xf32> to vector<64x4xf32>
    %94 = arith.truncf %93 : vector<64x4xf32> to vector<64x4xbf16>
    %c12 = arith.constant 12 : index
    %c0_47 = arith.constant 0 : index
    %c0_48 = arith.constant 0 : index
    %95 = vector.load %arg5[%c12, %c0_47, %c0_48] : memref<27x4x128xbf16, #tpu.memory_space<vmem>>, vector<1x4x128xbf16>
    %96 = vector.shape_cast %95 : vector<1x4x128xbf16> to vector<4x128xbf16>
    %cst_49 = arith.constant dense<0.000000e+00> : vector<64x128xf32>
    %97 = tpu.matmul %94, %96, %cst_49 {dimension_numbers = #tpu.dot_dimension_numbers<[1], [0], [0], [1], [0, 0, 1, 1], [], []>} : vector<64x4xbf16>, vector<4x128xbf16>, vector<64x128xf32> -> vector<64x128xf32>
    %98 = arith.addf %92, %97 : vector<64x128xf32>
    %99 = vector.extract_strided_slice %86 {offsets = [16, 0], sizes = [64, 4], strides = [1, 1]} : vector<82x4xf32> to vector<64x4xf32>
    %100 = arith.truncf %99 : vector<64x4xf32> to vector<64x4xbf16>
    %c15 = arith.constant 15 : index
    %c0_50 = arith.constant 0 : index
    %c0_51 = arith.constant 0 : index
    %101 = vector.load %arg5[%c15, %c0_50, %c0_51] : memref<27x4x128xbf16, #tpu.memory_space<vmem>>, vector<1x4x128xbf16>
    %102 = vector.shape_cast %101 : vector<1x4x128xbf16> to vector<4x128xbf16>
    %cst_52 = arith.constant dense<0.000000e+00> : vector<64x128xf32>
    %103 = tpu.matmul %100, %102, %cst_52 {dimension_numbers = #tpu.dot_dimension_numbers<[1], [0], [0], [1], [0, 0, 1, 1], [], []>} : vector<64x4xbf16>, vector<4x128xbf16>, vector<64x128xf32> -> vector<64x128xf32>
    %104 = arith.addf %98, %103 : vector<64x128xf32>
    %105 = tpu.concatenate %21, %13, %21 in 0 : vector<9x4xf32>, vector<64x4xf32>, vector<9x4xf32> -> vector<82x4xf32>
    %106 = vector.extract_strided_slice %105 {offsets = [1, 0], sizes = [64, 4], strides = [1, 1]} : vector<82x4xf32> to vector<64x4xf32>
    %107 = arith.truncf %106 : vector<64x4xf32> to vector<64x4xbf16>
    %c10 = arith.constant 10 : index
    %c0_53 = arith.constant 0 : index
    %c0_54 = arith.constant 0 : index
    %108 = vector.load %arg5[%c10, %c0_53, %c0_54] : memref<27x4x128xbf16, #tpu.memory_space<vmem>>, vector<1x4x128xbf16>
    %109 = vector.shape_cast %108 : vector<1x4x128xbf16> to vector<4x128xbf16>
    %cst_55 = arith.constant dense<0.000000e+00> : vector<64x128xf32>
    %110 = tpu.matmul %107, %109, %cst_55 {dimension_numbers = #tpu.dot_dimension_numbers<[1], [0], [0], [1], [0, 0, 1, 1], [], []>} : vector<64x4xbf16>, vector<4x128xbf16>, vector<64x128xf32> -> vector<64x128xf32>
    %111 = arith.addf %104, %110 : vector<64x128xf32>
    %112 = vector.extract_strided_slice %105 {offsets = [9, 0], sizes = [64, 4], strides = [1, 1]} : vector<82x4xf32> to vector<64x4xf32>
    %113 = arith.truncf %112 : vector<64x4xf32> to vector<64x4xbf16>
    %c13 = arith.constant 13 : index
    %c0_56 = arith.constant 0 : index
    %c0_57 = arith.constant 0 : index
    %114 = vector.load %arg5[%c13, %c0_56, %c0_57] : memref<27x4x128xbf16, #tpu.memory_space<vmem>>, vector<1x4x128xbf16>
    %115 = vector.shape_cast %114 : vector<1x4x128xbf16> to vector<4x128xbf16>
    %cst_58 = arith.constant dense<0.000000e+00> : vector<64x128xf32>
    %116 = tpu.matmul %113, %115, %cst_58 {dimension_numbers = #tpu.dot_dimension_numbers<[1], [0], [0], [1], [0, 0, 1, 1], [], []>} : vector<64x4xbf16>, vector<4x128xbf16>, vector<64x128xf32> -> vector<64x128xf32>
    %117 = arith.addf %111, %116 : vector<64x128xf32>
    %118 = vector.extract_strided_slice %105 {offsets = [17, 0], sizes = [64, 4], strides = [1, 1]} : vector<82x4xf32> to vector<64x4xf32>
    %119 = arith.truncf %118 : vector<64x4xf32> to vector<64x4xbf16>
    %c16 = arith.constant 16 : index
    %c0_59 = arith.constant 0 : index
    %c0_60 = arith.constant 0 : index
    %120 = vector.load %arg5[%c16, %c0_59, %c0_60] : memref<27x4x128xbf16, #tpu.memory_space<vmem>>, vector<1x4x128xbf16>
    %121 = vector.shape_cast %120 : vector<1x4x128xbf16> to vector<4x128xbf16>
    %cst_61 = arith.constant dense<0.000000e+00> : vector<64x128xf32>
    %122 = tpu.matmul %119, %121, %cst_61 {dimension_numbers = #tpu.dot_dimension_numbers<[1], [0], [0], [1], [0, 0, 1, 1], [], []>} : vector<64x4xbf16>, vector<4x128xbf16>, vector<64x128xf32> -> vector<64x128xf32>
    %123 = arith.addf %117, %122 : vector<64x128xf32>
    %124 = vector.broadcast %20 : vector<64x1xf32> to vector<64x4xf32>
    %125 = arith.mulf %13, %124 : vector<64x4xf32>
    %126 = tpu.concatenate %21, %125, %21 in 0 : vector<9x4xf32>, vector<64x4xf32>, vector<9x4xf32> -> vector<82x4xf32>
    %127 = vector.extract_strided_slice %126 {offsets = [2, 0], sizes = [64, 4], strides = [1, 1]} : vector<82x4xf32> to vector<64x4xf32>
    %128 = arith.truncf %127 : vector<64x4xf32> to vector<64x4xbf16>
    %c11 = arith.constant 11 : index
    %c0_62 = arith.constant 0 : index
    %c0_63 = arith.constant 0 : index
    %129 = vector.load %arg5[%c11, %c0_62, %c0_63] : memref<27x4x128xbf16, #tpu.memory_space<vmem>>, vector<1x4x128xbf16>
    %130 = vector.shape_cast %129 : vector<1x4x128xbf16> to vector<4x128xbf16>
    %cst_64 = arith.constant dense<0.000000e+00> : vector<64x128xf32>
    %131 = tpu.matmul %128, %130, %cst_64 {dimension_numbers = #tpu.dot_dimension_numbers<[1], [0], [0], [1], [0, 0, 1, 1], [], []>} : vector<64x4xbf16>, vector<4x128xbf16>, vector<64x128xf32> -> vector<64x128xf32>
    %132 = arith.addf %123, %131 : vector<64x128xf32>
    %133 = vector.extract_strided_slice %126 {offsets = [10, 0], sizes = [64, 4], strides = [1, 1]} : vector<82x4xf32> to vector<64x4xf32>
    %134 = arith.truncf %133 : vector<64x4xf32> to vector<64x4xbf16>
    %c14 = arith.constant 14 : index
    %c0_65 = arith.constant 0 : index
    %c0_66 = arith.constant 0 : index
    %135 = vector.load %arg5[%c14, %c0_65, %c0_66] : memref<27x4x128xbf16, #tpu.memory_space<vmem>>, vector<1x4x128xbf16>
    %136 = vector.shape_cast %135 : vector<1x4x128xbf16> to vector<4x128xbf16>
    %cst_67 = arith.constant dense<0.000000e+00> : vector<64x128xf32>
    %137 = tpu.matmul %134, %136, %cst_67 {dimension_numbers = #tpu.dot_dimension_numbers<[1], [0], [0], [1], [0, 0, 1, 1], [], []>} : vector<64x4xbf16>, vector<4x128xbf16>, vector<64x128xf32> -> vector<64x128xf32>
    %138 = arith.addf %132, %137 : vector<64x128xf32>
    %139 = vector.extract_strided_slice %126 {offsets = [18, 0], sizes = [64, 4], strides = [1, 1]} : vector<82x4xf32> to vector<64x4xf32>
    %140 = arith.truncf %139 : vector<64x4xf32> to vector<64x4xbf16>
    %c17 = arith.constant 17 : index
    %c0_68 = arith.constant 0 : index
    %c0_69 = arith.constant 0 : index
    %141 = vector.load %arg5[%c17, %c0_68, %c0_69] : memref<27x4x128xbf16, #tpu.memory_space<vmem>>, vector<1x4x128xbf16>
    %142 = vector.shape_cast %141 : vector<1x4x128xbf16> to vector<4x128xbf16>
    %cst_70 = arith.constant dense<0.000000e+00> : vector<64x128xf32>
    %143 = tpu.matmul %140, %142, %cst_70 {dimension_numbers = #tpu.dot_dimension_numbers<[1], [0], [0], [1], [0, 0, 1, 1], [], []>} : vector<64x4xbf16>, vector<4x128xbf16>, vector<64x128xf32> -> vector<64x128xf32>
    %144 = arith.addf %138, %143 : vector<64x128xf32>
    %145 = vector.broadcast %19 : vector<64x1xf32> to vector<64x4xf32>
    %146 = arith.mulf %18, %145 : vector<64x4xf32>
    %147 = tpu.concatenate %21, %146, %21 in 0 : vector<9x4xf32>, vector<64x4xf32>, vector<9x4xf32> -> vector<82x4xf32>
    %148 = vector.extract_strided_slice %147 {offsets = [0, 0], sizes = [64, 4], strides = [1, 1]} : vector<82x4xf32> to vector<64x4xf32>
    %149 = arith.truncf %148 : vector<64x4xf32> to vector<64x4xbf16>
    %c18 = arith.constant 18 : index
    %c0_71 = arith.constant 0 : index
    %c0_72 = arith.constant 0 : index
    %150 = vector.load %arg5[%c18, %c0_71, %c0_72] : memref<27x4x128xbf16, #tpu.memory_space<vmem>>, vector<1x4x128xbf16>
    %151 = vector.shape_cast %150 : vector<1x4x128xbf16> to vector<4x128xbf16>
    %cst_73 = arith.constant dense<0.000000e+00> : vector<64x128xf32>
    %152 = tpu.matmul %149, %151, %cst_73 {dimension_numbers = #tpu.dot_dimension_numbers<[1], [0], [0], [1], [0, 0, 1, 1], [], []>} : vector<64x4xbf16>, vector<4x128xbf16>, vector<64x128xf32> -> vector<64x128xf32>
    %153 = arith.addf %144, %152 : vector<64x128xf32>
    %154 = vector.extract_strided_slice %147 {offsets = [8, 0], sizes = [64, 4], strides = [1, 1]} : vector<82x4xf32> to vector<64x4xf32>
    %155 = arith.truncf %154 : vector<64x4xf32> to vector<64x4xbf16>
    %c21 = arith.constant 21 : index
    %c0_74 = arith.constant 0 : index
    %c0_75 = arith.constant 0 : index
    %156 = vector.load %arg5[%c21, %c0_74, %c0_75] : memref<27x4x128xbf16, #tpu.memory_space<vmem>>, vector<1x4x128xbf16>
    %157 = vector.shape_cast %156 : vector<1x4x128xbf16> to vector<4x128xbf16>
    %cst_76 = arith.constant dense<0.000000e+00> : vector<64x128xf32>
    %158 = tpu.matmul %155, %157, %cst_76 {dimension_numbers = #tpu.dot_dimension_numbers<[1], [0], [0], [1], [0, 0, 1, 1], [], []>} : vector<64x4xbf16>, vector<4x128xbf16>, vector<64x128xf32> -> vector<64x128xf32>
    %159 = arith.addf %153, %158 : vector<64x128xf32>
    %160 = vector.extract_strided_slice %147 {offsets = [16, 0], sizes = [64, 4], strides = [1, 1]} : vector<82x4xf32> to vector<64x4xf32>
    %161 = arith.truncf %160 : vector<64x4xf32> to vector<64x4xbf16>
    %c24 = arith.constant 24 : index
    %c0_77 = arith.constant 0 : index
    %c0_78 = arith.constant 0 : index
    %162 = vector.load %arg5[%c24, %c0_77, %c0_78] : memref<27x4x128xbf16, #tpu.memory_space<vmem>>, vector<1x4x128xbf16>
    %163 = vector.shape_cast %162 : vector<1x4x128xbf16> to vector<4x128xbf16>
    %cst_79 = arith.constant dense<0.000000e+00> : vector<64x128xf32>
    %164 = tpu.matmul %161, %163, %cst_79 {dimension_numbers = #tpu.dot_dimension_numbers<[1], [0], [0], [1], [0, 0, 1, 1], [], []>} : vector<64x4xbf16>, vector<4x128xbf16>, vector<64x128xf32> -> vector<64x128xf32>
    %165 = arith.addf %159, %164 : vector<64x128xf32>
    %166 = tpu.concatenate %21, %18, %21 in 0 : vector<9x4xf32>, vector<64x4xf32>, vector<9x4xf32> -> vector<82x4xf32>
    %167 = vector.extract_strided_slice %166 {offsets = [1, 0], sizes = [64, 4], strides = [1, 1]} : vector<82x4xf32> to vector<64x4xf32>
    %168 = arith.truncf %167 : vector<64x4xf32> to vector<64x4xbf16>
    %c19 = arith.constant 19 : index
    %c0_80 = arith.constant 0 : index
    %c0_81 = arith.constant 0 : index
    %169 = vector.load %arg5[%c19, %c0_80, %c0_81] : memref<27x4x128xbf16, #tpu.memory_space<vmem>>, vector<1x4x128xbf16>
    %170 = vector.shape_cast %169 : vector<1x4x128xbf16> to vector<4x128xbf16>
    %cst_82 = arith.constant dense<0.000000e+00> : vector<64x128xf32>
    %171 = tpu.matmul %168, %170, %cst_82 {dimension_numbers = #tpu.dot_dimension_numbers<[1], [0], [0], [1], [0, 0, 1, 1], [], []>} : vector<64x4xbf16>, vector<4x128xbf16>, vector<64x128xf32> -> vector<64x128xf32>
    %172 = arith.addf %165, %171 : vector<64x128xf32>
    %173 = vector.extract_strided_slice %166 {offsets = [9, 0], sizes = [64, 4], strides = [1, 1]} : vector<82x4xf32> to vector<64x4xf32>
    %174 = arith.truncf %173 : vector<64x4xf32> to vector<64x4xbf16>
    %c22 = arith.constant 22 : index
    %c0_83 = arith.constant 0 : index
    %c0_84 = arith.constant 0 : index
    %175 = vector.load %arg5[%c22, %c0_83, %c0_84] : memref<27x4x128xbf16, #tpu.memory_space<vmem>>, vector<1x4x128xbf16>
    %176 = vector.shape_cast %175 : vector<1x4x128xbf16> to vector<4x128xbf16>
    %cst_85 = arith.constant dense<0.000000e+00> : vector<64x128xf32>
    %177 = tpu.matmul %174, %176, %cst_85 {dimension_numbers = #tpu.dot_dimension_numbers<[1], [0], [0], [1], [0, 0, 1, 1], [], []>} : vector<64x4xbf16>, vector<4x128xbf16>, vector<64x128xf32> -> vector<64x128xf32>
    %178 = arith.addf %172, %177 : vector<64x128xf32>
    %179 = vector.extract_strided_slice %166 {offsets = [17, 0], sizes = [64, 4], strides = [1, 1]} : vector<82x4xf32> to vector<64x4xf32>
    %180 = arith.truncf %179 : vector<64x4xf32> to vector<64x4xbf16>
    %c25 = arith.constant 25 : index
    %c0_86 = arith.constant 0 : index
    %c0_87 = arith.constant 0 : index
    %181 = vector.load %arg5[%c25, %c0_86, %c0_87] : memref<27x4x128xbf16, #tpu.memory_space<vmem>>, vector<1x4x128xbf16>
    %182 = vector.shape_cast %181 : vector<1x4x128xbf16> to vector<4x128xbf16>
    %cst_88 = arith.constant dense<0.000000e+00> : vector<64x128xf32>
    %183 = tpu.matmul %180, %182, %cst_88 {dimension_numbers = #tpu.dot_dimension_numbers<[1], [0], [0], [1], [0, 0, 1, 1], [], []>} : vector<64x4xbf16>, vector<4x128xbf16>, vector<64x128xf32> -> vector<64x128xf32>
    %184 = arith.addf %178, %183 : vector<64x128xf32>
    %185 = vector.broadcast %20 : vector<64x1xf32> to vector<64x4xf32>
    %186 = arith.mulf %18, %185 : vector<64x4xf32>
    %187 = tpu.concatenate %21, %186, %21 in 0 : vector<9x4xf32>, vector<64x4xf32>, vector<9x4xf32> -> vector<82x4xf32>
    %188 = vector.extract_strided_slice %187 {offsets = [2, 0], sizes = [64, 4], strides = [1, 1]} : vector<82x4xf32> to vector<64x4xf32>
    %189 = arith.truncf %188 : vector<64x4xf32> to vector<64x4xbf16>
    %c20 = arith.constant 20 : index
    %c0_89 = arith.constant 0 : index
    %c0_90 = arith.constant 0 : index
    %190 = vector.load %arg5[%c20, %c0_89, %c0_90] : memref<27x4x128xbf16, #tpu.memory_space<vmem>>, vector<1x4x128xbf16>
    %191 = vector.shape_cast %190 : vector<1x4x128xbf16> to vector<4x128xbf16>
    %cst_91 = arith.constant dense<0.000000e+00> : vector<64x128xf32>
    %192 = tpu.matmul %189, %191, %cst_91 {dimension_numbers = #tpu.dot_dimension_numbers<[1], [0], [0], [1], [0, 0, 1, 1], [], []>} : vector<64x4xbf16>, vector<4x128xbf16>, vector<64x128xf32> -> vector<64x128xf32>
    %193 = arith.addf %184, %192 : vector<64x128xf32>
    %194 = vector.extract_strided_slice %187 {offsets = [10, 0], sizes = [64, 4], strides = [1, 1]} : vector<82x4xf32> to vector<64x4xf32>
    %195 = arith.truncf %194 : vector<64x4xf32> to vector<64x4xbf16>
    %c23 = arith.constant 23 : index
    %c0_92 = arith.constant 0 : index
    %c0_93 = arith.constant 0 : index
    %196 = vector.load %arg5[%c23, %c0_92, %c0_93] : memref<27x4x128xbf16, #tpu.memory_space<vmem>>, vector<1x4x128xbf16>
    %197 = vector.shape_cast %196 : vector<1x4x128xbf16> to vector<4x128xbf16>
    %cst_94 = arith.constant dense<0.000000e+00> : vector<64x128xf32>
    %198 = tpu.matmul %195, %197, %cst_94 {dimension_numbers = #tpu.dot_dimension_numbers<[1], [0], [0], [1], [0, 0, 1, 1], [], []>} : vector<64x4xbf16>, vector<4x128xbf16>, vector<64x128xf32> -> vector<64x128xf32>
    %199 = arith.addf %193, %198 : vector<64x128xf32>
    %200 = vector.extract_strided_slice %187 {offsets = [18, 0], sizes = [64, 4], strides = [1, 1]} : vector<82x4xf32> to vector<64x4xf32>
    %201 = arith.truncf %200 : vector<64x4xf32> to vector<64x4xbf16>
    %c26 = arith.constant 26 : index
    %c0_95 = arith.constant 0 : index
    %c0_96 = arith.constant 0 : index
    %202 = vector.load %arg5[%c26, %c0_95, %c0_96] : memref<27x4x128xbf16, #tpu.memory_space<vmem>>, vector<1x4x128xbf16>
    %203 = vector.shape_cast %202 : vector<1x4x128xbf16> to vector<4x128xbf16>
    %cst_97 = arith.constant dense<0.000000e+00> : vector<64x128xf32>
    %204 = tpu.matmul %201, %203, %cst_97 {dimension_numbers = #tpu.dot_dimension_numbers<[1], [0], [0], [1], [0, 0, 1, 1], [], []>} : vector<64x4xbf16>, vector<4x128xbf16>, vector<64x128xf32> -> vector<64x128xf32>
    %205 = arith.addf %199, %204 : vector<64x128xf32>
    %206 = arith.truncf %205 : vector<64x128xf32> to vector<64x128xbf16>
    %c0_98 = arith.constant 0 : index
    %c0_99 = arith.constant 0 : index
    %c0_100 = arith.constant 0 : index
    %c0_101 = arith.constant 0 : index
    %207 = vector.load %arg8[%c0_98, %c0_99, %c0_100, %c0_101] : memref<1x1x64x128xbf16, #tpu.memory_space<vmem>>, vector<1x1x64x128xbf16>
    %208 = vector.shape_cast %207 : vector<1x1x64x128xbf16> to vector<64x128xbf16>
    %209 = vector.shape_cast %206 : vector<64x128xbf16> to vector<1x1x64x128xbf16>
    tpu.vector_store %arg8[%c0_98, %c0_99, %c0_100, %c0_101], %209 {strides = array<i32>} : memref<1x1x64x128xbf16, #tpu.memory_space<vmem>>, vector<1x1x64x128xbf16>,
    %cst_102 = arith.constant dense<0.000000e+00> : vector<128xf32>
    %210 = vector.multi_reduction <add>, %205, %cst_102 [0] : vector<64x128xf32> to vector<128xf32>
    %211 = vector.shape_cast %210 : vector<128xf32> to vector<1x128xf32>
    %c0_103 = arith.constant 0 : index
    %c0_104 = arith.constant 0 : index
    %c0_105 = arith.constant 0 : index
    %c0_106 = arith.constant 0 : index
    %212 = vector.load %arg9[%c0_103, %c0_104, %c0_105, %c0_106] : memref<1x1x2x128xf32, #tpu.memory_space<vmem>>, vector<1x1x1x128xf32>
    %213 = vector.shape_cast %212 : vector<1x1x1x128xf32> to vector<1x128xf32>
    %214 = vector.shape_cast %211 : vector<1x128xf32> to vector<1x1x1x128xf32>
    tpu.vector_store %arg9[%c0_103, %c0_104, %c0_105, %c0_106], %214 {strides = array<i32>} : memref<1x1x2x128xf32, #tpu.memory_space<vmem>>, vector<1x1x1x128xf32>,
    %215 = arith.mulf %205, %205 : vector<64x128xf32>
    %cst_107 = arith.constant dense<0.000000e+00> : vector<128xf32>
    %216 = vector.multi_reduction <add>, %215, %cst_107 [0] : vector<64x128xf32> to vector<128xf32>
    %217 = vector.shape_cast %216 : vector<128xf32> to vector<1x128xf32>
    %c0_108 = arith.constant 0 : index
    %c0_109 = arith.constant 0 : index
    %c1_110 = arith.constant 1 : index
    %c0_111 = arith.constant 0 : index
    %218 = vector.load %arg9[%c0_108, %c0_109, %c1_110, %c0_111] : memref<1x1x2x128xf32, #tpu.memory_space<vmem>>, vector<1x1x1x128xf32>
    %219 = vector.shape_cast %218 : vector<1x1x1x128xf32> to vector<1x128xf32>
    %220 = vector.shape_cast %217 : vector<1x128xf32> to vector<1x1x1x128xf32>
    tpu.vector_store %arg9[%c0_108, %c0_109, %c1_110, %c0_111], %220 {strides = array<i32>} : memref<1x1x2x128xf32, #tpu.memory_space<vmem>>, vector<1x1x1x128xf32>,
    return
  }
  func.func @transform_0(%arg0: i32, %arg1: i32) -> (i32, i32, i32, i32) {
    %c1_i32 = arith.constant 1 : i32
    %0 = arith.subi %arg1, %c1_i32 : i32
    %c0_i32 = arith.constant 0 : i32
    %1 = arith.maxsi %0, %c0_i32 : i32
    %c0_i32_0 = arith.constant 0 : i32
    %c0_i32_1 = arith.constant 0 : i32
    %c0_i32_2 = arith.constant 0 : i32
    return %arg0, %1, %c0_i32_0, %c0_i32_1 : i32, i32, i32, i32
  }
  func.func @transform_1(%arg0: i32, %arg1: i32) -> (i32, i32, i32, i32) {
    %c0_i32 = arith.constant 0 : i32
    %c0_i32_0 = arith.constant 0 : i32
    %c0_i32_1 = arith.constant 0 : i32
    return %arg0, %arg1, %c0_i32, %c0_i32_0 : i32, i32, i32, i32
  }
  func.func @transform_2(%arg0: i32, %arg1: i32) -> (i32, i32, i32, i32) {
    %c1_i32 = arith.constant 1 : i32
    %0 = arith.addi %arg1, %c1_i32 : i32
    %c7_i32 = arith.constant 7 : i32
    %1 = arith.minsi %0, %c7_i32 : i32
    %c0_i32 = arith.constant 0 : i32
    %c0_i32_0 = arith.constant 0 : i32
    %c0_i32_1 = arith.constant 0 : i32
    return %arg0, %1, %c0_i32, %c0_i32_0 : i32, i32, i32, i32
  }
  func.func @transform_3(%arg0: i32, %arg1: i32) -> (i32, i32, i32) {
    %c0_i32 = arith.constant 0 : i32
    %c0_i32_0 = arith.constant 0 : i32
    %c0_i32_1 = arith.constant 0 : i32
    %c0_i32_2 = arith.constant 0 : i32
    return %c0_i32, %c0_i32_0, %c0_i32_1 : i32, i32, i32
  }
  func.func @transform_4(%arg0: i32, %arg1: i32) -> (i32, i32) {
    %c0_i32 = arith.constant 0 : i32
    %c0_i32_0 = arith.constant 0 : i32
    %c0_i32_1 = arith.constant 0 : i32
    return %c0_i32, %c0_i32_0 : i32, i32
  }
  func.func @transform_5(%arg0: i32, %arg1: i32) -> (i32, i32) {
    %c0_i32 = arith.constant 0 : i32
    %c0_i32_0 = arith.constant 0 : i32
    %c0_i32_1 = arith.constant 0 : i32
    return %c0_i32, %c0_i32_0 : i32, i32
  }
  func.func @transform_6(%arg0: i32, %arg1: i32) -> (i32, i32, i32, i32) {
    %c0_i32 = arith.constant 0 : i32
    %c0_i32_0 = arith.constant 0 : i32
    %c0_i32_1 = arith.constant 0 : i32
    return %arg0, %arg1, %c0_i32, %c0_i32_0 : i32, i32, i32, i32
  }
  func.func @transform_7(%arg0: i32, %arg1: i32) -> (i32, i32, i32, i32) {
    %c0_i32 = arith.constant 0 : i32
    %c0_i32_0 = arith.constant 0 : i32
    %c0_i32_1 = arith.constant 0 : i32
    return %arg0, %arg1, %c0_i32, %c0_i32_0 : i32, i32, i32, i32
  }
}

module attributes {stable_mosaic.version = 11 : i64} {
  func.func @kernel(%arg0: i32, %arg1: i32, %arg2: memref<1x1x64x128xbf16, #tpu.memory_space<vmem>>, %arg3: memref<1x1x64x128xbf16, #tpu.memory_space<vmem>>, %arg4: memref<1x1x64x128xbf16, #tpu.memory_space<vmem>>, %arg5: memref<27x128x128xbf16, #tpu.memory_space<vmem>>, %arg6: memref<1x128xf32, #tpu.memory_space<vmem>>, %arg7: memref<1x128xf32, #tpu.memory_space<vmem>>, %arg8: memref<64x1xf32, #tpu.memory_space<vmem>>, %arg9: memref<64x1xf32, #tpu.memory_space<vmem>>, %arg10: memref<1x1x64x128xbf16, #tpu.memory_space<vmem>>, %arg11: memref<1x1x2x128xf32, #tpu.memory_space<vmem>>) attributes {dimension_semantics = [#tpu.dimension_semantics<parallel>, #tpu.dimension_semantics<parallel>], iteration_bounds = array<i64: 2, 8>, scalar_prefetch = 0 : i64, scratch_operands = 0 : i64, tpu.core_type = #tpu.core_type<tc>, window_params = [{transform_indices = @transform_0, window_bounds = array<i64: 1, 1, 64, 128>}, {transform_indices = @transform_1, window_bounds = array<i64: 1, 1, 64, 128>}, {transform_indices = @transform_2, window_bounds = array<i64: 1, 1, 64, 128>}, {pipeline_mode = #tpu.pipeline_mode<synchronous>, transform_indices = @transform_3, window_bounds = array<i64: 27, 128, 128>}, {pipeline_mode = #tpu.pipeline_mode<synchronous>, transform_indices = @transform_4, window_bounds = array<i64: 1, 128>}, {pipeline_mode = #tpu.pipeline_mode<synchronous>, transform_indices = @transform_5, window_bounds = array<i64: 1, 128>}, {pipeline_mode = #tpu.pipeline_mode<synchronous>, transform_indices = @transform_6, window_bounds = array<i64: 64, 1>}, {pipeline_mode = #tpu.pipeline_mode<synchronous>, transform_indices = @transform_7, window_bounds = array<i64: 64, 1>}, {transform_indices = @transform_8, window_bounds = array<i64: 1, 1, 64, 128>}, {transform_indices = @transform_9, window_bounds = array<i64: 1, 1, 2, 128>}]} {
    %c0_i32 = arith.constant 0 : i32
    %0 = arith.cmpi sgt, %arg1, %c0_i32 : i32
    %1 = arith.extui %0 : i1 to i32
    %2 = arith.sitofp %1 : i32 to f32
    %c7_i32 = arith.constant 7 : i32
    %3 = arith.cmpi slt, %arg1, %c7_i32 : i32
    %4 = arith.extui %3 : i1 to i32
    %5 = arith.sitofp %4 : i32 to f32
    %c0 = arith.constant 0 : index
    %c0_0 = arith.constant 0 : index
    %6 = vector.load %arg6[%c0, %c0_0] : memref<1x128xf32, #tpu.memory_space<vmem>>, vector<1x128xf32>
    %c0_1 = arith.constant 0 : index
    %c0_2 = arith.constant 0 : index
    %7 = vector.load %arg7[%c0_1, %c0_2] : memref<1x128xf32, #tpu.memory_space<vmem>>, vector<1x128xf32>
    %c0_3 = arith.constant 0 : index
    %c0_4 = arith.constant 0 : index
    %c0_5 = arith.constant 0 : index
    %c0_6 = arith.constant 0 : index
    %8 = vector.load %arg2[%c0_3, %c0_4, %c0_5, %c0_6] : memref<1x1x64x128xbf16, #tpu.memory_space<vmem>>, vector<1x1x64x128xbf16>
    %9 = vector.shape_cast %8 : vector<1x1x64x128xbf16> to vector<64x128xbf16>
    %10 = arith.extf %9 : vector<64x128xbf16> to vector<64x128xf32>
    %11 = vector.broadcast %6 : vector<1x128xf32> to vector<64x128xf32>
    %12 = arith.mulf %10, %11 : vector<64x128xf32>
    %13 = vector.broadcast %7 : vector<1x128xf32> to vector<64x128xf32>
    %14 = arith.addf %12, %13 : vector<64x128xf32>
    %cst = arith.constant 0.000000e+00 : f32
    %15 = vector.broadcast %cst : f32 to vector<64x128xf32>
    %16 = arith.maximumf %14, %15 : vector<64x128xf32>
    %17 = vector.broadcast %2 : f32 to vector<64x128xf32>
    %18 = arith.mulf %16, %17 : vector<64x128xf32>
    %c0_7 = arith.constant 0 : index
    %c0_8 = arith.constant 0 : index
    %c0_9 = arith.constant 0 : index
    %c0_10 = arith.constant 0 : index
    %19 = vector.load %arg3[%c0_7, %c0_8, %c0_9, %c0_10] : memref<1x1x64x128xbf16, #tpu.memory_space<vmem>>, vector<1x1x64x128xbf16>
    %20 = vector.shape_cast %19 : vector<1x1x64x128xbf16> to vector<64x128xbf16>
    %21 = arith.extf %20 : vector<64x128xbf16> to vector<64x128xf32>
    %22 = vector.broadcast %6 : vector<1x128xf32> to vector<64x128xf32>
    %23 = arith.mulf %21, %22 : vector<64x128xf32>
    %24 = vector.broadcast %7 : vector<1x128xf32> to vector<64x128xf32>
    %25 = arith.addf %23, %24 : vector<64x128xf32>
    %cst_11 = arith.constant 0.000000e+00 : f32
    %26 = vector.broadcast %cst_11 : f32 to vector<64x128xf32>
    %27 = arith.maximumf %25, %26 : vector<64x128xf32>
    %cst_12 = arith.constant 1.000000e+00 : f32
    %28 = vector.broadcast %cst_12 : f32 to vector<64x128xf32>
    %29 = arith.mulf %27, %28 : vector<64x128xf32>
    %c0_13 = arith.constant 0 : index
    %c0_14 = arith.constant 0 : index
    %c0_15 = arith.constant 0 : index
    %c0_16 = arith.constant 0 : index
    %30 = vector.load %arg4[%c0_13, %c0_14, %c0_15, %c0_16] : memref<1x1x64x128xbf16, #tpu.memory_space<vmem>>, vector<1x1x64x128xbf16>
    %31 = vector.shape_cast %30 : vector<1x1x64x128xbf16> to vector<64x128xbf16>
    %32 = arith.extf %31 : vector<64x128xbf16> to vector<64x128xf32>
    %33 = vector.broadcast %6 : vector<1x128xf32> to vector<64x128xf32>
    %34 = arith.mulf %32, %33 : vector<64x128xf32>
    %35 = vector.broadcast %7 : vector<1x128xf32> to vector<64x128xf32>
    %36 = arith.addf %34, %35 : vector<64x128xf32>
    %cst_17 = arith.constant 0.000000e+00 : f32
    %37 = vector.broadcast %cst_17 : f32 to vector<64x128xf32>
    %38 = arith.maximumf %36, %37 : vector<64x128xf32>
    %39 = vector.broadcast %5 : f32 to vector<64x128xf32>
    %40 = arith.mulf %38, %39 : vector<64x128xf32>
    %c0_18 = arith.constant 0 : index
    %c0_19 = arith.constant 0 : index
    %41 = vector.load %arg8[%c0_18, %c0_19] : memref<64x1xf32, #tpu.memory_space<vmem>>, vector<64x1xf32>
    %c0_20 = arith.constant 0 : index
    %c0_21 = arith.constant 0 : index
    %42 = vector.load %arg9[%c0_20, %c0_21] : memref<64x1xf32, #tpu.memory_space<vmem>>, vector<64x1xf32>
    %cst_22 = arith.constant 0.000000e+00 : f32
    %43 = vector.broadcast %cst_22 : f32 to vector<9x128xf32>
    %cst_23 = arith.constant 0.000000e+00 : f32
    %44 = vector.broadcast %cst_23 : f32 to vector<64x128xf32>
    %45 = vector.broadcast %41 : vector<64x1xf32> to vector<64x128xf32>
    %46 = arith.mulf %18, %45 : vector<64x128xf32>
    %47 = tpu.concatenate %43, %46, %43 in 0 : vector<9x128xf32>, vector<64x128xf32>, vector<9x128xf32> -> vector<82x128xf32>
    %48 = vector.extract_strided_slice %47 {offsets = [0, 0], sizes = [64, 128], strides = [1, 1]} : vector<82x128xf32> to vector<64x128xf32>
    %49 = arith.truncf %48 : vector<64x128xf32> to vector<64x128xbf16>
    %c0_24 = arith.constant 0 : index
    %c0_25 = arith.constant 0 : index
    %c0_26 = arith.constant 0 : index
    %50 = vector.load %arg5[%c0_24, %c0_25, %c0_26] : memref<27x128x128xbf16, #tpu.memory_space<vmem>>, vector<1x128x128xbf16>
    %51 = vector.shape_cast %50 : vector<1x128x128xbf16> to vector<128x128xbf16>
    %cst_27 = arith.constant dense<0.000000e+00> : vector<64x128xf32>
    %52 = tpu.matmul %49, %51, %cst_27 {dimension_numbers = #tpu.dot_dimension_numbers<[1], [0], [0], [1], [0, 0, 1, 1], [], []>} : vector<64x128xbf16>, vector<128x128xbf16>, vector<64x128xf32> -> vector<64x128xf32>
    %53 = arith.addf %44, %52 : vector<64x128xf32>
    %54 = vector.extract_strided_slice %47 {offsets = [8, 0], sizes = [64, 128], strides = [1, 1]} : vector<82x128xf32> to vector<64x128xf32>
    %55 = arith.truncf %54 : vector<64x128xf32> to vector<64x128xbf16>
    %c3 = arith.constant 3 : index
    %c0_28 = arith.constant 0 : index
    %c0_29 = arith.constant 0 : index
    %56 = vector.load %arg5[%c3, %c0_28, %c0_29] : memref<27x128x128xbf16, #tpu.memory_space<vmem>>, vector<1x128x128xbf16>
    %57 = vector.shape_cast %56 : vector<1x128x128xbf16> to vector<128x128xbf16>
    %cst_30 = arith.constant dense<0.000000e+00> : vector<64x128xf32>
    %58 = tpu.matmul %55, %57, %cst_30 {dimension_numbers = #tpu.dot_dimension_numbers<[1], [0], [0], [1], [0, 0, 1, 1], [], []>} : vector<64x128xbf16>, vector<128x128xbf16>, vector<64x128xf32> -> vector<64x128xf32>
    %59 = arith.addf %53, %58 : vector<64x128xf32>
    %60 = vector.extract_strided_slice %47 {offsets = [16, 0], sizes = [64, 128], strides = [1, 1]} : vector<82x128xf32> to vector<64x128xf32>
    %61 = arith.truncf %60 : vector<64x128xf32> to vector<64x128xbf16>
    %c6 = arith.constant 6 : index
    %c0_31 = arith.constant 0 : index
    %c0_32 = arith.constant 0 : index
    %62 = vector.load %arg5[%c6, %c0_31, %c0_32] : memref<27x128x128xbf16, #tpu.memory_space<vmem>>, vector<1x128x128xbf16>
    %63 = vector.shape_cast %62 : vector<1x128x128xbf16> to vector<128x128xbf16>
    %cst_33 = arith.constant dense<0.000000e+00> : vector<64x128xf32>
    %64 = tpu.matmul %61, %63, %cst_33 {dimension_numbers = #tpu.dot_dimension_numbers<[1], [0], [0], [1], [0, 0, 1, 1], [], []>} : vector<64x128xbf16>, vector<128x128xbf16>, vector<64x128xf32> -> vector<64x128xf32>
    %65 = arith.addf %59, %64 : vector<64x128xf32>
    %66 = tpu.concatenate %43, %18, %43 in 0 : vector<9x128xf32>, vector<64x128xf32>, vector<9x128xf32> -> vector<82x128xf32>
    %67 = vector.extract_strided_slice %66 {offsets = [1, 0], sizes = [64, 128], strides = [1, 1]} : vector<82x128xf32> to vector<64x128xf32>
    %68 = arith.truncf %67 : vector<64x128xf32> to vector<64x128xbf16>
    %c1 = arith.constant 1 : index
    %c0_34 = arith.constant 0 : index
    %c0_35 = arith.constant 0 : index
    %69 = vector.load %arg5[%c1, %c0_34, %c0_35] : memref<27x128x128xbf16, #tpu.memory_space<vmem>>, vector<1x128x128xbf16>
    %70 = vector.shape_cast %69 : vector<1x128x128xbf16> to vector<128x128xbf16>
    %cst_36 = arith.constant dense<0.000000e+00> : vector<64x128xf32>
    %71 = tpu.matmul %68, %70, %cst_36 {dimension_numbers = #tpu.dot_dimension_numbers<[1], [0], [0], [1], [0, 0, 1, 1], [], []>} : vector<64x128xbf16>, vector<128x128xbf16>, vector<64x128xf32> -> vector<64x128xf32>
    %72 = arith.addf %65, %71 : vector<64x128xf32>
    %73 = vector.extract_strided_slice %66 {offsets = [9, 0], sizes = [64, 128], strides = [1, 1]} : vector<82x128xf32> to vector<64x128xf32>
    %74 = arith.truncf %73 : vector<64x128xf32> to vector<64x128xbf16>
    %c4 = arith.constant 4 : index
    %c0_37 = arith.constant 0 : index
    %c0_38 = arith.constant 0 : index
    %75 = vector.load %arg5[%c4, %c0_37, %c0_38] : memref<27x128x128xbf16, #tpu.memory_space<vmem>>, vector<1x128x128xbf16>
    %76 = vector.shape_cast %75 : vector<1x128x128xbf16> to vector<128x128xbf16>
    %cst_39 = arith.constant dense<0.000000e+00> : vector<64x128xf32>
    %77 = tpu.matmul %74, %76, %cst_39 {dimension_numbers = #tpu.dot_dimension_numbers<[1], [0], [0], [1], [0, 0, 1, 1], [], []>} : vector<64x128xbf16>, vector<128x128xbf16>, vector<64x128xf32> -> vector<64x128xf32>
    %78 = arith.addf %72, %77 : vector<64x128xf32>
    %79 = vector.extract_strided_slice %66 {offsets = [17, 0], sizes = [64, 128], strides = [1, 1]} : vector<82x128xf32> to vector<64x128xf32>
    %80 = arith.truncf %79 : vector<64x128xf32> to vector<64x128xbf16>
    %c7 = arith.constant 7 : index
    %c0_40 = arith.constant 0 : index
    %c0_41 = arith.constant 0 : index
    %81 = vector.load %arg5[%c7, %c0_40, %c0_41] : memref<27x128x128xbf16, #tpu.memory_space<vmem>>, vector<1x128x128xbf16>
    %82 = vector.shape_cast %81 : vector<1x128x128xbf16> to vector<128x128xbf16>
    %cst_42 = arith.constant dense<0.000000e+00> : vector<64x128xf32>
    %83 = tpu.matmul %80, %82, %cst_42 {dimension_numbers = #tpu.dot_dimension_numbers<[1], [0], [0], [1], [0, 0, 1, 1], [], []>} : vector<64x128xbf16>, vector<128x128xbf16>, vector<64x128xf32> -> vector<64x128xf32>
    %84 = arith.addf %78, %83 : vector<64x128xf32>
    %85 = vector.broadcast %42 : vector<64x1xf32> to vector<64x128xf32>
    %86 = arith.mulf %18, %85 : vector<64x128xf32>
    %87 = tpu.concatenate %43, %86, %43 in 0 : vector<9x128xf32>, vector<64x128xf32>, vector<9x128xf32> -> vector<82x128xf32>
    %88 = vector.extract_strided_slice %87 {offsets = [2, 0], sizes = [64, 128], strides = [1, 1]} : vector<82x128xf32> to vector<64x128xf32>
    %89 = arith.truncf %88 : vector<64x128xf32> to vector<64x128xbf16>
    %c2 = arith.constant 2 : index
    %c0_43 = arith.constant 0 : index
    %c0_44 = arith.constant 0 : index
    %90 = vector.load %arg5[%c2, %c0_43, %c0_44] : memref<27x128x128xbf16, #tpu.memory_space<vmem>>, vector<1x128x128xbf16>
    %91 = vector.shape_cast %90 : vector<1x128x128xbf16> to vector<128x128xbf16>
    %cst_45 = arith.constant dense<0.000000e+00> : vector<64x128xf32>
    %92 = tpu.matmul %89, %91, %cst_45 {dimension_numbers = #tpu.dot_dimension_numbers<[1], [0], [0], [1], [0, 0, 1, 1], [], []>} : vector<64x128xbf16>, vector<128x128xbf16>, vector<64x128xf32> -> vector<64x128xf32>
    %93 = arith.addf %84, %92 : vector<64x128xf32>
    %94 = vector.extract_strided_slice %87 {offsets = [10, 0], sizes = [64, 128], strides = [1, 1]} : vector<82x128xf32> to vector<64x128xf32>
    %95 = arith.truncf %94 : vector<64x128xf32> to vector<64x128xbf16>
    %c5 = arith.constant 5 : index
    %c0_46 = arith.constant 0 : index
    %c0_47 = arith.constant 0 : index
    %96 = vector.load %arg5[%c5, %c0_46, %c0_47] : memref<27x128x128xbf16, #tpu.memory_space<vmem>>, vector<1x128x128xbf16>
    %97 = vector.shape_cast %96 : vector<1x128x128xbf16> to vector<128x128xbf16>
    %cst_48 = arith.constant dense<0.000000e+00> : vector<64x128xf32>
    %98 = tpu.matmul %95, %97, %cst_48 {dimension_numbers = #tpu.dot_dimension_numbers<[1], [0], [0], [1], [0, 0, 1, 1], [], []>} : vector<64x128xbf16>, vector<128x128xbf16>, vector<64x128xf32> -> vector<64x128xf32>
    %99 = arith.addf %93, %98 : vector<64x128xf32>
    %100 = vector.extract_strided_slice %87 {offsets = [18, 0], sizes = [64, 128], strides = [1, 1]} : vector<82x128xf32> to vector<64x128xf32>
    %101 = arith.truncf %100 : vector<64x128xf32> to vector<64x128xbf16>
    %c8 = arith.constant 8 : index
    %c0_49 = arith.constant 0 : index
    %c0_50 = arith.constant 0 : index
    %102 = vector.load %arg5[%c8, %c0_49, %c0_50] : memref<27x128x128xbf16, #tpu.memory_space<vmem>>, vector<1x128x128xbf16>
    %103 = vector.shape_cast %102 : vector<1x128x128xbf16> to vector<128x128xbf16>
    %cst_51 = arith.constant dense<0.000000e+00> : vector<64x128xf32>
    %104 = tpu.matmul %101, %103, %cst_51 {dimension_numbers = #tpu.dot_dimension_numbers<[1], [0], [0], [1], [0, 0, 1, 1], [], []>} : vector<64x128xbf16>, vector<128x128xbf16>, vector<64x128xf32> -> vector<64x128xf32>
    %105 = arith.addf %99, %104 : vector<64x128xf32>
    %106 = vector.broadcast %41 : vector<64x1xf32> to vector<64x128xf32>
    %107 = arith.mulf %29, %106 : vector<64x128xf32>
    %108 = tpu.concatenate %43, %107, %43 in 0 : vector<9x128xf32>, vector<64x128xf32>, vector<9x128xf32> -> vector<82x128xf32>
    %109 = vector.extract_strided_slice %108 {offsets = [0, 0], sizes = [64, 128], strides = [1, 1]} : vector<82x128xf32> to vector<64x128xf32>
    %110 = arith.truncf %109 : vector<64x128xf32> to vector<64x128xbf16>
    %c9 = arith.constant 9 : index
    %c0_52 = arith.constant 0 : index
    %c0_53 = arith.constant 0 : index
    %111 = vector.load %arg5[%c9, %c0_52, %c0_53] : memref<27x128x128xbf16, #tpu.memory_space<vmem>>, vector<1x128x128xbf16>
    %112 = vector.shape_cast %111 : vector<1x128x128xbf16> to vector<128x128xbf16>
    %cst_54 = arith.constant dense<0.000000e+00> : vector<64x128xf32>
    %113 = tpu.matmul %110, %112, %cst_54 {dimension_numbers = #tpu.dot_dimension_numbers<[1], [0], [0], [1], [0, 0, 1, 1], [], []>} : vector<64x128xbf16>, vector<128x128xbf16>, vector<64x128xf32> -> vector<64x128xf32>
    %114 = arith.addf %105, %113 : vector<64x128xf32>
    %115 = vector.extract_strided_slice %108 {offsets = [8, 0], sizes = [64, 128], strides = [1, 1]} : vector<82x128xf32> to vector<64x128xf32>
    %116 = arith.truncf %115 : vector<64x128xf32> to vector<64x128xbf16>
    %c12 = arith.constant 12 : index
    %c0_55 = arith.constant 0 : index
    %c0_56 = arith.constant 0 : index
    %117 = vector.load %arg5[%c12, %c0_55, %c0_56] : memref<27x128x128xbf16, #tpu.memory_space<vmem>>, vector<1x128x128xbf16>
    %118 = vector.shape_cast %117 : vector<1x128x128xbf16> to vector<128x128xbf16>
    %cst_57 = arith.constant dense<0.000000e+00> : vector<64x128xf32>
    %119 = tpu.matmul %116, %118, %cst_57 {dimension_numbers = #tpu.dot_dimension_numbers<[1], [0], [0], [1], [0, 0, 1, 1], [], []>} : vector<64x128xbf16>, vector<128x128xbf16>, vector<64x128xf32> -> vector<64x128xf32>
    %120 = arith.addf %114, %119 : vector<64x128xf32>
    %121 = vector.extract_strided_slice %108 {offsets = [16, 0], sizes = [64, 128], strides = [1, 1]} : vector<82x128xf32> to vector<64x128xf32>
    %122 = arith.truncf %121 : vector<64x128xf32> to vector<64x128xbf16>
    %c15 = arith.constant 15 : index
    %c0_58 = arith.constant 0 : index
    %c0_59 = arith.constant 0 : index
    %123 = vector.load %arg5[%c15, %c0_58, %c0_59] : memref<27x128x128xbf16, #tpu.memory_space<vmem>>, vector<1x128x128xbf16>
    %124 = vector.shape_cast %123 : vector<1x128x128xbf16> to vector<128x128xbf16>
    %cst_60 = arith.constant dense<0.000000e+00> : vector<64x128xf32>
    %125 = tpu.matmul %122, %124, %cst_60 {dimension_numbers = #tpu.dot_dimension_numbers<[1], [0], [0], [1], [0, 0, 1, 1], [], []>} : vector<64x128xbf16>, vector<128x128xbf16>, vector<64x128xf32> -> vector<64x128xf32>
    %126 = arith.addf %120, %125 : vector<64x128xf32>
    %127 = tpu.concatenate %43, %29, %43 in 0 : vector<9x128xf32>, vector<64x128xf32>, vector<9x128xf32> -> vector<82x128xf32>
    %128 = vector.extract_strided_slice %127 {offsets = [1, 0], sizes = [64, 128], strides = [1, 1]} : vector<82x128xf32> to vector<64x128xf32>
    %129 = arith.truncf %128 : vector<64x128xf32> to vector<64x128xbf16>
    %c10 = arith.constant 10 : index
    %c0_61 = arith.constant 0 : index
    %c0_62 = arith.constant 0 : index
    %130 = vector.load %arg5[%c10, %c0_61, %c0_62] : memref<27x128x128xbf16, #tpu.memory_space<vmem>>, vector<1x128x128xbf16>
    %131 = vector.shape_cast %130 : vector<1x128x128xbf16> to vector<128x128xbf16>
    %cst_63 = arith.constant dense<0.000000e+00> : vector<64x128xf32>
    %132 = tpu.matmul %129, %131, %cst_63 {dimension_numbers = #tpu.dot_dimension_numbers<[1], [0], [0], [1], [0, 0, 1, 1], [], []>} : vector<64x128xbf16>, vector<128x128xbf16>, vector<64x128xf32> -> vector<64x128xf32>
    %133 = arith.addf %126, %132 : vector<64x128xf32>
    %134 = vector.extract_strided_slice %127 {offsets = [9, 0], sizes = [64, 128], strides = [1, 1]} : vector<82x128xf32> to vector<64x128xf32>
    %135 = arith.truncf %134 : vector<64x128xf32> to vector<64x128xbf16>
    %c13 = arith.constant 13 : index
    %c0_64 = arith.constant 0 : index
    %c0_65 = arith.constant 0 : index
    %136 = vector.load %arg5[%c13, %c0_64, %c0_65] : memref<27x128x128xbf16, #tpu.memory_space<vmem>>, vector<1x128x128xbf16>
    %137 = vector.shape_cast %136 : vector<1x128x128xbf16> to vector<128x128xbf16>
    %cst_66 = arith.constant dense<0.000000e+00> : vector<64x128xf32>
    %138 = tpu.matmul %135, %137, %cst_66 {dimension_numbers = #tpu.dot_dimension_numbers<[1], [0], [0], [1], [0, 0, 1, 1], [], []>} : vector<64x128xbf16>, vector<128x128xbf16>, vector<64x128xf32> -> vector<64x128xf32>
    %139 = arith.addf %133, %138 : vector<64x128xf32>
    %140 = vector.extract_strided_slice %127 {offsets = [17, 0], sizes = [64, 128], strides = [1, 1]} : vector<82x128xf32> to vector<64x128xf32>
    %141 = arith.truncf %140 : vector<64x128xf32> to vector<64x128xbf16>
    %c16 = arith.constant 16 : index
    %c0_67 = arith.constant 0 : index
    %c0_68 = arith.constant 0 : index
    %142 = vector.load %arg5[%c16, %c0_67, %c0_68] : memref<27x128x128xbf16, #tpu.memory_space<vmem>>, vector<1x128x128xbf16>
    %143 = vector.shape_cast %142 : vector<1x128x128xbf16> to vector<128x128xbf16>
    %cst_69 = arith.constant dense<0.000000e+00> : vector<64x128xf32>
    %144 = tpu.matmul %141, %143, %cst_69 {dimension_numbers = #tpu.dot_dimension_numbers<[1], [0], [0], [1], [0, 0, 1, 1], [], []>} : vector<64x128xbf16>, vector<128x128xbf16>, vector<64x128xf32> -> vector<64x128xf32>
    %145 = arith.addf %139, %144 : vector<64x128xf32>
    %146 = vector.broadcast %42 : vector<64x1xf32> to vector<64x128xf32>
    %147 = arith.mulf %29, %146 : vector<64x128xf32>
    %148 = tpu.concatenate %43, %147, %43 in 0 : vector<9x128xf32>, vector<64x128xf32>, vector<9x128xf32> -> vector<82x128xf32>
    %149 = vector.extract_strided_slice %148 {offsets = [2, 0], sizes = [64, 128], strides = [1, 1]} : vector<82x128xf32> to vector<64x128xf32>
    %150 = arith.truncf %149 : vector<64x128xf32> to vector<64x128xbf16>
    %c11 = arith.constant 11 : index
    %c0_70 = arith.constant 0 : index
    %c0_71 = arith.constant 0 : index
    %151 = vector.load %arg5[%c11, %c0_70, %c0_71] : memref<27x128x128xbf16, #tpu.memory_space<vmem>>, vector<1x128x128xbf16>
    %152 = vector.shape_cast %151 : vector<1x128x128xbf16> to vector<128x128xbf16>
    %cst_72 = arith.constant dense<0.000000e+00> : vector<64x128xf32>
    %153 = tpu.matmul %150, %152, %cst_72 {dimension_numbers = #tpu.dot_dimension_numbers<[1], [0], [0], [1], [0, 0, 1, 1], [], []>} : vector<64x128xbf16>, vector<128x128xbf16>, vector<64x128xf32> -> vector<64x128xf32>
    %154 = arith.addf %145, %153 : vector<64x128xf32>
    %155 = vector.extract_strided_slice %148 {offsets = [10, 0], sizes = [64, 128], strides = [1, 1]} : vector<82x128xf32> to vector<64x128xf32>
    %156 = arith.truncf %155 : vector<64x128xf32> to vector<64x128xbf16>
    %c14 = arith.constant 14 : index
    %c0_73 = arith.constant 0 : index
    %c0_74 = arith.constant 0 : index
    %157 = vector.load %arg5[%c14, %c0_73, %c0_74] : memref<27x128x128xbf16, #tpu.memory_space<vmem>>, vector<1x128x128xbf16>
    %158 = vector.shape_cast %157 : vector<1x128x128xbf16> to vector<128x128xbf16>
    %cst_75 = arith.constant dense<0.000000e+00> : vector<64x128xf32>
    %159 = tpu.matmul %156, %158, %cst_75 {dimension_numbers = #tpu.dot_dimension_numbers<[1], [0], [0], [1], [0, 0, 1, 1], [], []>} : vector<64x128xbf16>, vector<128x128xbf16>, vector<64x128xf32> -> vector<64x128xf32>
    %160 = arith.addf %154, %159 : vector<64x128xf32>
    %161 = vector.extract_strided_slice %148 {offsets = [18, 0], sizes = [64, 128], strides = [1, 1]} : vector<82x128xf32> to vector<64x128xf32>
    %162 = arith.truncf %161 : vector<64x128xf32> to vector<64x128xbf16>
    %c17 = arith.constant 17 : index
    %c0_76 = arith.constant 0 : index
    %c0_77 = arith.constant 0 : index
    %163 = vector.load %arg5[%c17, %c0_76, %c0_77] : memref<27x128x128xbf16, #tpu.memory_space<vmem>>, vector<1x128x128xbf16>
    %164 = vector.shape_cast %163 : vector<1x128x128xbf16> to vector<128x128xbf16>
    %cst_78 = arith.constant dense<0.000000e+00> : vector<64x128xf32>
    %165 = tpu.matmul %162, %164, %cst_78 {dimension_numbers = #tpu.dot_dimension_numbers<[1], [0], [0], [1], [0, 0, 1, 1], [], []>} : vector<64x128xbf16>, vector<128x128xbf16>, vector<64x128xf32> -> vector<64x128xf32>
    %166 = arith.addf %160, %165 : vector<64x128xf32>
    %167 = vector.broadcast %41 : vector<64x1xf32> to vector<64x128xf32>
    %168 = arith.mulf %40, %167 : vector<64x128xf32>
    %169 = tpu.concatenate %43, %168, %43 in 0 : vector<9x128xf32>, vector<64x128xf32>, vector<9x128xf32> -> vector<82x128xf32>
    %170 = vector.extract_strided_slice %169 {offsets = [0, 0], sizes = [64, 128], strides = [1, 1]} : vector<82x128xf32> to vector<64x128xf32>
    %171 = arith.truncf %170 : vector<64x128xf32> to vector<64x128xbf16>
    %c18 = arith.constant 18 : index
    %c0_79 = arith.constant 0 : index
    %c0_80 = arith.constant 0 : index
    %172 = vector.load %arg5[%c18, %c0_79, %c0_80] : memref<27x128x128xbf16, #tpu.memory_space<vmem>>, vector<1x128x128xbf16>
    %173 = vector.shape_cast %172 : vector<1x128x128xbf16> to vector<128x128xbf16>
    %cst_81 = arith.constant dense<0.000000e+00> : vector<64x128xf32>
    %174 = tpu.matmul %171, %173, %cst_81 {dimension_numbers = #tpu.dot_dimension_numbers<[1], [0], [0], [1], [0, 0, 1, 1], [], []>} : vector<64x128xbf16>, vector<128x128xbf16>, vector<64x128xf32> -> vector<64x128xf32>
    %175 = arith.addf %166, %174 : vector<64x128xf32>
    %176 = vector.extract_strided_slice %169 {offsets = [8, 0], sizes = [64, 128], strides = [1, 1]} : vector<82x128xf32> to vector<64x128xf32>
    %177 = arith.truncf %176 : vector<64x128xf32> to vector<64x128xbf16>
    %c21 = arith.constant 21 : index
    %c0_82 = arith.constant 0 : index
    %c0_83 = arith.constant 0 : index
    %178 = vector.load %arg5[%c21, %c0_82, %c0_83] : memref<27x128x128xbf16, #tpu.memory_space<vmem>>, vector<1x128x128xbf16>
    %179 = vector.shape_cast %178 : vector<1x128x128xbf16> to vector<128x128xbf16>
    %cst_84 = arith.constant dense<0.000000e+00> : vector<64x128xf32>
    %180 = tpu.matmul %177, %179, %cst_84 {dimension_numbers = #tpu.dot_dimension_numbers<[1], [0], [0], [1], [0, 0, 1, 1], [], []>} : vector<64x128xbf16>, vector<128x128xbf16>, vector<64x128xf32> -> vector<64x128xf32>
    %181 = arith.addf %175, %180 : vector<64x128xf32>
    %182 = vector.extract_strided_slice %169 {offsets = [16, 0], sizes = [64, 128], strides = [1, 1]} : vector<82x128xf32> to vector<64x128xf32>
    %183 = arith.truncf %182 : vector<64x128xf32> to vector<64x128xbf16>
    %c24 = arith.constant 24 : index
    %c0_85 = arith.constant 0 : index
    %c0_86 = arith.constant 0 : index
    %184 = vector.load %arg5[%c24, %c0_85, %c0_86] : memref<27x128x128xbf16, #tpu.memory_space<vmem>>, vector<1x128x128xbf16>
    %185 = vector.shape_cast %184 : vector<1x128x128xbf16> to vector<128x128xbf16>
    %cst_87 = arith.constant dense<0.000000e+00> : vector<64x128xf32>
    %186 = tpu.matmul %183, %185, %cst_87 {dimension_numbers = #tpu.dot_dimension_numbers<[1], [0], [0], [1], [0, 0, 1, 1], [], []>} : vector<64x128xbf16>, vector<128x128xbf16>, vector<64x128xf32> -> vector<64x128xf32>
    %187 = arith.addf %181, %186 : vector<64x128xf32>
    %188 = tpu.concatenate %43, %40, %43 in 0 : vector<9x128xf32>, vector<64x128xf32>, vector<9x128xf32> -> vector<82x128xf32>
    %189 = vector.extract_strided_slice %188 {offsets = [1, 0], sizes = [64, 128], strides = [1, 1]} : vector<82x128xf32> to vector<64x128xf32>
    %190 = arith.truncf %189 : vector<64x128xf32> to vector<64x128xbf16>
    %c19 = arith.constant 19 : index
    %c0_88 = arith.constant 0 : index
    %c0_89 = arith.constant 0 : index
    %191 = vector.load %arg5[%c19, %c0_88, %c0_89] : memref<27x128x128xbf16, #tpu.memory_space<vmem>>, vector<1x128x128xbf16>
    %192 = vector.shape_cast %191 : vector<1x128x128xbf16> to vector<128x128xbf16>
    %cst_90 = arith.constant dense<0.000000e+00> : vector<64x128xf32>
    %193 = tpu.matmul %190, %192, %cst_90 {dimension_numbers = #tpu.dot_dimension_numbers<[1], [0], [0], [1], [0, 0, 1, 1], [], []>} : vector<64x128xbf16>, vector<128x128xbf16>, vector<64x128xf32> -> vector<64x128xf32>
    %194 = arith.addf %187, %193 : vector<64x128xf32>
    %195 = vector.extract_strided_slice %188 {offsets = [9, 0], sizes = [64, 128], strides = [1, 1]} : vector<82x128xf32> to vector<64x128xf32>
    %196 = arith.truncf %195 : vector<64x128xf32> to vector<64x128xbf16>
    %c22 = arith.constant 22 : index
    %c0_91 = arith.constant 0 : index
    %c0_92 = arith.constant 0 : index
    %197 = vector.load %arg5[%c22, %c0_91, %c0_92] : memref<27x128x128xbf16, #tpu.memory_space<vmem>>, vector<1x128x128xbf16>
    %198 = vector.shape_cast %197 : vector<1x128x128xbf16> to vector<128x128xbf16>
    %cst_93 = arith.constant dense<0.000000e+00> : vector<64x128xf32>
    %199 = tpu.matmul %196, %198, %cst_93 {dimension_numbers = #tpu.dot_dimension_numbers<[1], [0], [0], [1], [0, 0, 1, 1], [], []>} : vector<64x128xbf16>, vector<128x128xbf16>, vector<64x128xf32> -> vector<64x128xf32>
    %200 = arith.addf %194, %199 : vector<64x128xf32>
    %201 = vector.extract_strided_slice %188 {offsets = [17, 0], sizes = [64, 128], strides = [1, 1]} : vector<82x128xf32> to vector<64x128xf32>
    %202 = arith.truncf %201 : vector<64x128xf32> to vector<64x128xbf16>
    %c25 = arith.constant 25 : index
    %c0_94 = arith.constant 0 : index
    %c0_95 = arith.constant 0 : index
    %203 = vector.load %arg5[%c25, %c0_94, %c0_95] : memref<27x128x128xbf16, #tpu.memory_space<vmem>>, vector<1x128x128xbf16>
    %204 = vector.shape_cast %203 : vector<1x128x128xbf16> to vector<128x128xbf16>
    %cst_96 = arith.constant dense<0.000000e+00> : vector<64x128xf32>
    %205 = tpu.matmul %202, %204, %cst_96 {dimension_numbers = #tpu.dot_dimension_numbers<[1], [0], [0], [1], [0, 0, 1, 1], [], []>} : vector<64x128xbf16>, vector<128x128xbf16>, vector<64x128xf32> -> vector<64x128xf32>
    %206 = arith.addf %200, %205 : vector<64x128xf32>
    %207 = vector.broadcast %42 : vector<64x1xf32> to vector<64x128xf32>
    %208 = arith.mulf %40, %207 : vector<64x128xf32>
    %209 = tpu.concatenate %43, %208, %43 in 0 : vector<9x128xf32>, vector<64x128xf32>, vector<9x128xf32> -> vector<82x128xf32>
    %210 = vector.extract_strided_slice %209 {offsets = [2, 0], sizes = [64, 128], strides = [1, 1]} : vector<82x128xf32> to vector<64x128xf32>
    %211 = arith.truncf %210 : vector<64x128xf32> to vector<64x128xbf16>
    %c20 = arith.constant 20 : index
    %c0_97 = arith.constant 0 : index
    %c0_98 = arith.constant 0 : index
    %212 = vector.load %arg5[%c20, %c0_97, %c0_98] : memref<27x128x128xbf16, #tpu.memory_space<vmem>>, vector<1x128x128xbf16>
    %213 = vector.shape_cast %212 : vector<1x128x128xbf16> to vector<128x128xbf16>
    %cst_99 = arith.constant dense<0.000000e+00> : vector<64x128xf32>
    %214 = tpu.matmul %211, %213, %cst_99 {dimension_numbers = #tpu.dot_dimension_numbers<[1], [0], [0], [1], [0, 0, 1, 1], [], []>} : vector<64x128xbf16>, vector<128x128xbf16>, vector<64x128xf32> -> vector<64x128xf32>
    %215 = arith.addf %206, %214 : vector<64x128xf32>
    %216 = vector.extract_strided_slice %209 {offsets = [10, 0], sizes = [64, 128], strides = [1, 1]} : vector<82x128xf32> to vector<64x128xf32>
    %217 = arith.truncf %216 : vector<64x128xf32> to vector<64x128xbf16>
    %c23 = arith.constant 23 : index
    %c0_100 = arith.constant 0 : index
    %c0_101 = arith.constant 0 : index
    %218 = vector.load %arg5[%c23, %c0_100, %c0_101] : memref<27x128x128xbf16, #tpu.memory_space<vmem>>, vector<1x128x128xbf16>
    %219 = vector.shape_cast %218 : vector<1x128x128xbf16> to vector<128x128xbf16>
    %cst_102 = arith.constant dense<0.000000e+00> : vector<64x128xf32>
    %220 = tpu.matmul %217, %219, %cst_102 {dimension_numbers = #tpu.dot_dimension_numbers<[1], [0], [0], [1], [0, 0, 1, 1], [], []>} : vector<64x128xbf16>, vector<128x128xbf16>, vector<64x128xf32> -> vector<64x128xf32>
    %221 = arith.addf %215, %220 : vector<64x128xf32>
    %222 = vector.extract_strided_slice %209 {offsets = [18, 0], sizes = [64, 128], strides = [1, 1]} : vector<82x128xf32> to vector<64x128xf32>
    %223 = arith.truncf %222 : vector<64x128xf32> to vector<64x128xbf16>
    %c26 = arith.constant 26 : index
    %c0_103 = arith.constant 0 : index
    %c0_104 = arith.constant 0 : index
    %224 = vector.load %arg5[%c26, %c0_103, %c0_104] : memref<27x128x128xbf16, #tpu.memory_space<vmem>>, vector<1x128x128xbf16>
    %225 = vector.shape_cast %224 : vector<1x128x128xbf16> to vector<128x128xbf16>
    %cst_105 = arith.constant dense<0.000000e+00> : vector<64x128xf32>
    %226 = tpu.matmul %223, %225, %cst_105 {dimension_numbers = #tpu.dot_dimension_numbers<[1], [0], [0], [1], [0, 0, 1, 1], [], []>} : vector<64x128xbf16>, vector<128x128xbf16>, vector<64x128xf32> -> vector<64x128xf32>
    %227 = arith.addf %221, %226 : vector<64x128xf32>
    %228 = arith.truncf %227 : vector<64x128xf32> to vector<64x128xbf16>
    %c0_106 = arith.constant 0 : index
    %c0_107 = arith.constant 0 : index
    %c0_108 = arith.constant 0 : index
    %c0_109 = arith.constant 0 : index
    %229 = vector.load %arg10[%c0_106, %c0_107, %c0_108, %c0_109] : memref<1x1x64x128xbf16, #tpu.memory_space<vmem>>, vector<1x1x64x128xbf16>
    %230 = vector.shape_cast %229 : vector<1x1x64x128xbf16> to vector<64x128xbf16>
    %231 = vector.shape_cast %228 : vector<64x128xbf16> to vector<1x1x64x128xbf16>
    tpu.vector_store %arg10[%c0_106, %c0_107, %c0_108, %c0_109], %231 {strides = array<i32>} : memref<1x1x64x128xbf16, #tpu.memory_space<vmem>>, vector<1x1x64x128xbf16>,
    %cst_110 = arith.constant dense<0.000000e+00> : vector<128xf32>
    %232 = vector.multi_reduction <add>, %227, %cst_110 [0] : vector<64x128xf32> to vector<128xf32>
    %233 = vector.shape_cast %232 : vector<128xf32> to vector<1x128xf32>
    %c0_111 = arith.constant 0 : index
    %c0_112 = arith.constant 0 : index
    %c0_113 = arith.constant 0 : index
    %c0_114 = arith.constant 0 : index
    %234 = vector.load %arg11[%c0_111, %c0_112, %c0_113, %c0_114] : memref<1x1x2x128xf32, #tpu.memory_space<vmem>>, vector<1x1x1x128xf32>
    %235 = vector.shape_cast %234 : vector<1x1x1x128xf32> to vector<1x128xf32>
    %236 = vector.shape_cast %233 : vector<1x128xf32> to vector<1x1x1x128xf32>
    tpu.vector_store %arg11[%c0_111, %c0_112, %c0_113, %c0_114], %236 {strides = array<i32>} : memref<1x1x2x128xf32, #tpu.memory_space<vmem>>, vector<1x1x1x128xf32>,
    %237 = arith.mulf %227, %227 : vector<64x128xf32>
    %cst_115 = arith.constant dense<0.000000e+00> : vector<128xf32>
    %238 = vector.multi_reduction <add>, %237, %cst_115 [0] : vector<64x128xf32> to vector<128xf32>
    %239 = vector.shape_cast %238 : vector<128xf32> to vector<1x128xf32>
    %c0_116 = arith.constant 0 : index
    %c0_117 = arith.constant 0 : index
    %c1_118 = arith.constant 1 : index
    %c0_119 = arith.constant 0 : index
    %240 = vector.load %arg11[%c0_116, %c0_117, %c1_118, %c0_119] : memref<1x1x2x128xf32, #tpu.memory_space<vmem>>, vector<1x1x1x128xf32>
    %241 = vector.shape_cast %240 : vector<1x1x1x128xf32> to vector<1x128xf32>
    %242 = vector.shape_cast %239 : vector<1x128xf32> to vector<1x1x1x128xf32>
    tpu.vector_store %arg11[%c0_116, %c0_117, %c1_118, %c0_119], %242 {strides = array<i32>} : memref<1x1x2x128xf32, #tpu.memory_space<vmem>>, vector<1x1x1x128xf32>,
    return
  }
  func.func @transform_0(%arg0: i32, %arg1: i32) -> (i32, i32, i32, i32) {
    %c1_i32 = arith.constant 1 : i32
    %0 = arith.subi %arg1, %c1_i32 : i32
    %c0_i32 = arith.constant 0 : i32
    %1 = arith.maxsi %0, %c0_i32 : i32
    %c0_i32_0 = arith.constant 0 : i32
    %c0_i32_1 = arith.constant 0 : i32
    %c0_i32_2 = arith.constant 0 : i32
    return %arg0, %1, %c0_i32_0, %c0_i32_1 : i32, i32, i32, i32
  }
  func.func @transform_1(%arg0: i32, %arg1: i32) -> (i32, i32, i32, i32) {
    %c0_i32 = arith.constant 0 : i32
    %c0_i32_0 = arith.constant 0 : i32
    %c0_i32_1 = arith.constant 0 : i32
    return %arg0, %arg1, %c0_i32, %c0_i32_0 : i32, i32, i32, i32
  }
  func.func @transform_2(%arg0: i32, %arg1: i32) -> (i32, i32, i32, i32) {
    %c1_i32 = arith.constant 1 : i32
    %0 = arith.addi %arg1, %c1_i32 : i32
    %c7_i32 = arith.constant 7 : i32
    %1 = arith.minsi %0, %c7_i32 : i32
    %c0_i32 = arith.constant 0 : i32
    %c0_i32_0 = arith.constant 0 : i32
    %c0_i32_1 = arith.constant 0 : i32
    return %arg0, %1, %c0_i32, %c0_i32_0 : i32, i32, i32, i32
  }
  func.func @transform_3(%arg0: i32, %arg1: i32) -> (i32, i32, i32) {
    %c0_i32 = arith.constant 0 : i32
    %c0_i32_0 = arith.constant 0 : i32
    %c0_i32_1 = arith.constant 0 : i32
    %c0_i32_2 = arith.constant 0 : i32
    return %c0_i32, %c0_i32_0, %c0_i32_1 : i32, i32, i32
  }
  func.func @transform_4(%arg0: i32, %arg1: i32) -> (i32, i32) {
    %c0_i32 = arith.constant 0 : i32
    %c0_i32_0 = arith.constant 0 : i32
    %c0_i32_1 = arith.constant 0 : i32
    return %c0_i32, %c0_i32_0 : i32, i32
  }
  func.func @transform_5(%arg0: i32, %arg1: i32) -> (i32, i32) {
    %c0_i32 = arith.constant 0 : i32
    %c0_i32_0 = arith.constant 0 : i32
    %c0_i32_1 = arith.constant 0 : i32
    return %c0_i32, %c0_i32_0 : i32, i32
  }
  func.func @transform_6(%arg0: i32, %arg1: i32) -> (i32, i32) {
    %c0_i32 = arith.constant 0 : i32
    %c0_i32_0 = arith.constant 0 : i32
    %c0_i32_1 = arith.constant 0 : i32
    return %c0_i32, %c0_i32_0 : i32, i32
  }
  func.func @transform_7(%arg0: i32, %arg1: i32) -> (i32, i32) {
    %c0_i32 = arith.constant 0 : i32
    %c0_i32_0 = arith.constant 0 : i32
    %c0_i32_1 = arith.constant 0 : i32
    return %c0_i32, %c0_i32_0 : i32, i32
  }
  func.func @transform_8(%arg0: i32, %arg1: i32) -> (i32, i32, i32, i32) {
    %c0_i32 = arith.constant 0 : i32
    %c0_i32_0 = arith.constant 0 : i32
    %c0_i32_1 = arith.constant 0 : i32
    return %arg0, %arg1, %c0_i32, %c0_i32_0 : i32, i32, i32, i32
  }
  func.func @transform_9(%arg0: i32, %arg1: i32) -> (i32, i32, i32, i32) {
    %c0_i32 = arith.constant 0 : i32
    %c0_i32_0 = arith.constant 0 : i32
    %c0_i32_1 = arith.constant 0 : i32
    return %arg0, %arg1, %c0_i32, %c0_i32_0 : i32, i32, i32, i32
  }
}

module attributes {stable_mosaic.version = 11 : i64} {
  func.func @_bn_skip_relu_kernel(%arg0: i32, %arg1: i32, %arg2: memref<1x1x64x128xbf16, #tpu.memory_space<vmem>>, %arg3: memref<1x1x64x4xbf16, #tpu.memory_space<vmem>>, %arg4: memref<4x128xbf16, #tpu.memory_space<vmem>>, %arg5: memref<1x128xf32, #tpu.memory_space<vmem>>, %arg6: memref<1x128xf32, #tpu.memory_space<vmem>>, %arg7: memref<1x1x64x128xf32, #tpu.memory_space<vmem>>) attributes {dimension_semantics = [#tpu.dimension_semantics<parallel>, #tpu.dimension_semantics<parallel>], iteration_bounds = array<i64: 2, 8>, scalar_prefetch = 0 : i64, scratch_operands = 0 : i64, tpu.core_type = #tpu.core_type<tc>, window_params = [{transform_indices = @transform_0, window_bounds = array<i64: 1, 1, 64, 128>}, {transform_indices = @transform_1, window_bounds = array<i64: 1, 1, 64, 4>}, {pipeline_mode = #tpu.pipeline_mode<synchronous>, transform_indices = @transform_2, window_bounds = array<i64: 4, 128>}, {pipeline_mode = #tpu.pipeline_mode<synchronous>, transform_indices = @transform_3, window_bounds = array<i64: 1, 128>}, {pipeline_mode = #tpu.pipeline_mode<synchronous>, transform_indices = @transform_4, window_bounds = array<i64: 1, 128>}, {transform_indices = @transform_5, window_bounds = array<i64: 1, 1, 64, 128>}]} {
    %c0 = arith.constant 0 : index
    %c0_0 = arith.constant 0 : index
    %c0_1 = arith.constant 0 : index
    %c0_2 = arith.constant 0 : index
    %0 = vector.load %arg2[%c0, %c0_0, %c0_1, %c0_2] : memref<1x1x64x128xbf16, #tpu.memory_space<vmem>>, vector<1x1x64x128xbf16>
    %1 = vector.shape_cast %0 : vector<1x1x64x128xbf16> to vector<64x128xbf16>
    %2 = arith.extf %1 : vector<64x128xbf16> to vector<64x128xf32>
    %c0_3 = arith.constant 0 : index
    %c0_4 = arith.constant 0 : index
    %3 = vector.load %arg5[%c0_3, %c0_4] : memref<1x128xf32, #tpu.memory_space<vmem>>, vector<1x128xf32>
    %4 = vector.broadcast %3 : vector<1x128xf32> to vector<64x128xf32>
    %5 = arith.mulf %2, %4 : vector<64x128xf32>
    %c0_5 = arith.constant 0 : index
    %c0_6 = arith.constant 0 : index
    %6 = vector.load %arg6[%c0_5, %c0_6] : memref<1x128xf32, #tpu.memory_space<vmem>>, vector<1x128xf32>
    %7 = vector.broadcast %6 : vector<1x128xf32> to vector<64x128xf32>
    %8 = arith.addf %5, %7 : vector<64x128xf32>
    %c0_7 = arith.constant 0 : index
    %c0_8 = arith.constant 0 : index
    %c0_9 = arith.constant 0 : index
    %c0_10 = arith.constant 0 : index
    %9 = vector.load %arg3[%c0_7, %c0_8, %c0_9, %c0_10] : memref<1x1x64x4xbf16, #tpu.memory_space<vmem>>, vector<1x1x64x4xbf16>
    %10 = vector.shape_cast %9 : vector<1x1x64x4xbf16> to vector<64x4xbf16>
    %c0_11 = arith.constant 0 : index
    %c0_12 = arith.constant 0 : index
    %11 = vector.load %arg4[%c0_11, %c0_12] : memref<4x128xbf16, #tpu.memory_space<vmem>>, vector<4x128xbf16>
    %cst = arith.constant dense<0.000000e+00> : vector<64x128xf32>
    %12 = tpu.matmul %10, %11, %cst {dimension_numbers = #tpu.dot_dimension_numbers<[1], [0], [0], [1], [0, 0, 1, 1], [], []>} : vector<64x4xbf16>, vector<4x128xbf16>, vector<64x128xf32> -> vector<64x128xf32>
    %13 = arith.addf %8, %12 : vector<64x128xf32>
    %cst_13 = arith.constant 0.000000e+00 : f32
    %14 = vector.broadcast %cst_13 : f32 to vector<64x128xf32>
    %15 = arith.maximumf %13, %14 : vector<64x128xf32>
    %c0_14 = arith.constant 0 : index
    %c0_15 = arith.constant 0 : index
    %c0_16 = arith.constant 0 : index
    %c0_17 = arith.constant 0 : index
    %16 = vector.load %arg7[%c0_14, %c0_15, %c0_16, %c0_17] : memref<1x1x64x128xf32, #tpu.memory_space<vmem>>, vector<1x1x64x128xf32>
    %17 = vector.shape_cast %16 : vector<1x1x64x128xf32> to vector<64x128xf32>
    %18 = vector.shape_cast %15 : vector<64x128xf32> to vector<1x1x64x128xf32>
    tpu.vector_store %arg7[%c0_14, %c0_15, %c0_16, %c0_17], %18 {strides = array<i32>} : memref<1x1x64x128xf32, #tpu.memory_space<vmem>>, vector<1x1x64x128xf32>,
    return
  }
  func.func @transform_0(%arg0: i32, %arg1: i32) -> (i32, i32, i32, i32) {
    %c0_i32 = arith.constant 0 : i32
    %c0_i32_0 = arith.constant 0 : i32
    %c0_i32_1 = arith.constant 0 : i32
    return %arg0, %arg1, %c0_i32, %c0_i32_0 : i32, i32, i32, i32
  }
  func.func @transform_1(%arg0: i32, %arg1: i32) -> (i32, i32, i32, i32) {
    %c0_i32 = arith.constant 0 : i32
    %c0_i32_0 = arith.constant 0 : i32
    %c0_i32_1 = arith.constant 0 : i32
    return %arg0, %arg1, %c0_i32, %c0_i32_0 : i32, i32, i32, i32
  }
  func.func @transform_2(%arg0: i32, %arg1: i32) -> (i32, i32) {
    %c0_i32 = arith.constant 0 : i32
    %c0_i32_0 = arith.constant 0 : i32
    %c0_i32_1 = arith.constant 0 : i32
    return %c0_i32, %c0_i32_0 : i32, i32
  }
  func.func @transform_3(%arg0: i32, %arg1: i32) -> (i32, i32) {
    %c0_i32 = arith.constant 0 : i32
    %c0_i32_0 = arith.constant 0 : i32
    %c0_i32_1 = arith.constant 0 : i32
    return %c0_i32, %c0_i32_0 : i32, i32
  }
  func.func @transform_4(%arg0: i32, %arg1: i32) -> (i32, i32) {
    %c0_i32 = arith.constant 0 : i32
    %c0_i32_0 = arith.constant 0 : i32
    %c0_i32_1 = arith.constant 0 : i32
    return %c0_i32, %c0_i32_0 : i32, i32
  }
  func.func @transform_5(%arg0: i32, %arg1: i32) -> (i32, i32, i32, i32) {
    %c0_i32 = arith.constant 0 : i32
    %c0_i32_0 = arith.constant 0 : i32
    %c0_i32_1 = arith.constant 0 : i32
    return %arg0, %arg1, %c0_i32, %c0_i32_0 : i32, i32, i32, i32
  }
}

</mosaic_0001>

<bundles_post_ra>
// kernel: residual_block_3d.5
= control target key start
LH: loop header
LB: loop body
LE: loop exit
PB: predicated region body
PF: predicated region fallthrough
CT: control target
= control target key end

     0   :  { %s725_s18 = smov 0   ;;  %s727_s19 = smov 0   ;;  %s802_s0 = inlined_call_operand.vmem [shape: bf16[2,8,64,128], index: 0, kind: input, shape index: {}]   ;;  %s803_s1 = inlined_call_operand.vmem [shape: bf16[2,8,64,4], index: 1, kind: input, shape index: {}]   ;;  %s804_s2 = inlined_call_operand.vmem [shape: bf16[4,128], index: 2, kind: input, shape index: {}]   ;;  %s805_s3 = inlined_call_operand.vmem [shape: f32[1,128], index: 3, kind: input, shape index: {}]   ;;  %s806_s4 = inlined_call_operand.vmem [shape: f32[1,128], index: 4, kind: input, shape index: {}]   ;;  %s807_s5 = inlined_call_operand.vmem [shape: f32[2,8,64,128], index: 5, kind: output, shape index: {}]  }
   0x1   :  { %s729_s20 = smov 0   ;;  %s731_s21 = smov 0  }
   0x2   :  { %s733_s22 = smov 0  }
   0x3 LB: > { %s24_s23 = sadd.s32 1, %s685_s20  ;;  %s27_s24 = sadd.s32 1, %s689_s21  ;;  %s693_s22 = sphi %s733_s22, %s15_s22   ;;  %s689_s21 = sphi %s731_s21, %s811_s21   ;;  %s685_s20 = sphi %s729_s20, %s810_s20   ;;  %s681_s19 = sphi %s727_s19, %s809_s19   ;;  %s677_s18 = sphi %s725_s18, %s808_s18  }
   0x4   : > { %p25_p0 = scmp.ge.s32.totalorder %s24_s23, 8  ;;  %p555_p1 = scmp.ge.s32.totalorder %s693_s22, 1 }
   0x5   : > { %p223_p2 = scmp.lt.s32.totalorder %s693_s22, 17 }
   0x6   : > { %s813_s23 = smov (%p25_p0, %s24_s23), 0  ;;  %s815_s24 = smov (!%p25_p0, %s27_s24), %s689_s21 }
   0x7   : > { %p224_p3 = pnand %p555_p1, %p223_p2  ;;  %p29_p4 = scmp.ge.s32.totalorder %s815_s24, 2 }
   0x8   : > { %p268_p5 = scmp.lt.s32.totalorder (!%p224_p3), %s681_s19, 1  ;;  %p270_p6 = scmp.lt.s32.totalorder (!%p224_p3), %s677_s18, 7 }
   0x9   : > { %s817_s24 = smov (%p29_p4, %s815_s24), 0  ;;  %227 = sbr.rel (%p224_p3) target bundleno = 167 (0xa7), region = 40 }
   0xe   : > { %v344_v0 = vld [vmem:[%s804_s2] sm:$0x3]  ;;  %vm378_vm0 = vcmask 1041408   ;;  %s819_s19 = smov (!%p268_p5, %s681_s19), 1  ;;  %s821_s18 = smov (!%p270_p6, %s677_s18), 7  ;;  %vm365_vm1 = vcmask 31744  }
   0xf   : > { %v380_v1 = vsel %vm378_vm0, %v344_v0, 0  ;;  %s557_s27 = sshll.u32 %s819_s19, 6  ;;  %s556_s28 = sshll.u32 %s821_s18, 3  ;;  %v653_v9 = vld [vmem:[%s805_s3] ss:$0 sm:$0xff] }
  0x10   : > { %389 = vmatpush.bf16.msra.mxu0 %v380_v1  ;;  %610 = vmatpush.bf16.msra.mxu1 %v380_v1  ;;  %s758_s29 = sadd.s32 %s557_s27, %s556_s28  ;;  %v654_v12 = vld [vmem:[%s806_s4] ss:$0 sm:$0xff] }
  0x11   : > { %611 = vmatpush.bf16.msra.mxu2 %v380_v1  ;;  %612 = vmatpush.bf16.msra.mxu3 %v380_v1  ;;  %s558_s30 = sshll.u32 %s758_s29, 2  ;;  %s564_s16 = sshll.u32 %s758_s29, 3 }
  0x12   : > { %s285_s8 = scalar_lea.vmem %s803_s1, %s558_s30  ;;  %s276_s11 = scalar_lea.vmem %s802_s0, %s558_s30 }
  0x13   : > { %v587_v2 = vld [vmem:[%s285_s8] sm:$0xff]  ;;  %v588_v3 = vld [vmem:[%s285_s8 + $0x8] sm:$0xff]  ;;  %v589_v4 = vld [vmem:[%s285_s8 + $0x10] sm:$0xff]  ;;  %s777_s19 = scalar_lea.vmem %s807_s5, %s564_s16 }
  0x14   : > { %v590_v5 = vld [vmem:[%s285_s8 + $0x18] sm:$0xff]  ;;  %581 = vmatmul.msk.bf16.vlgmr.msra.gmra.mxu0 %vm365_vm1, %v587_v2  ;;  %582 = vmatmul.msk.bf16.vlgmr.msra.gmra.mxu1 %vm365_vm1, %v588_v3  ;;  %v592_v6 = vld [vmem:[%s276_s11] sm:$0xff]   ;;  %v607_v7 = vld [vmem:[%s276_s11 + $0x8] sm:$0xff]  }
  0x15   : > { %583 = vmatmul.msk.bf16.vlgmr.msra.gmra.mxu2 %vm365_vm1, %v589_v4  ;;  %584 = vmatmul.msk.bf16.vlgmr.msra.gmra.mxu3 %vm365_vm1, %v590_v5  ;;  %v593_v8 = vunpack.c.l.bf16 %v592_v6  ;;  %v597_v10 = vunpack.c.l.bf16 %v607_v7  ;;  %v608_v14 = vld [vmem:[%s276_s11 + $0x10] sm:$0xff]   ;;  %v609_v15 = vld [vmem:[%s276_s11 + $0x18] sm:$0xff]   ;;  %v594_v20 = vunpack.c.h.bf16 %v592_v6  ;;  %v598_v21 = vunpack.c.h.bf16 %v607_v7 }
  0x16   : > { %v601_v16 = vunpack.c.l.bf16 %v608_v14  ;;  %v605_v17 = vunpack.c.l.bf16 %v609_v15  ;;  %v602_v34 = vunpack.c.h.bf16 %v608_v14  ;;  %v606_v35 = vunpack.c.h.bf16 %v609_v15 }
  0x17   : > { %v316_v11 = vmul.f32 %v653_v9, %v593_v8  ;;  %v318_v13 = vmul.f32 %v653_v9, %v597_v10  ;;  %v317_v28 = vmul.f32 %v653_v9, %v594_v20  ;;  %v319_v29 = vmul.f32 %v653_v9, %v598_v21 }
  0x18   : > { %v320_v24 = vmul.f32 %v653_v9, %v601_v16  ;;  %v322_v25 = vmul.f32 %v653_v9, %v605_v17  ;;  %v321_v44 = vmul.f32 %v653_v9, %v602_v34  ;;  %v323_v45 = vmul.f32 %v653_v9, %v606_v35 }
  0x19   : > { %v328_v18 = vadd.f32 %v654_v12, %v316_v11  ;;  %v330_v19 = vadd.f32 %v654_v12, %v318_v13  ;;  %v329_v36 = vadd.f32 %v654_v12, %v317_v28  ;;  %v331_v37 = vadd.f32 %v654_v12, %v319_v29 }
  0x1a   : > { %v332_v32 = vadd.f32 %v654_v12, %v320_v24  ;;  %v334_v33 = vadd.f32 %v654_v12, %v322_v25  ;;  %v333_v52 = vadd.f32 %v654_v12, %v321_v44  ;;  %v335_v53 = vadd.f32 %v654_v12, %v323_v45 }
  0x91   : > { %v391_v22 = vpop.f32.mrf.mxu0  ;;  %v396_v23 = vpop.f32.mrf.mxu1 }
  0x92   : > { %v411_v26 = vadd.f32 %v391_v22, %v328_v18  ;;  %v413_v27 = vadd.f32 %v396_v23, %v330_v19 }
  0x94   : > { %v419_v30 = vmax.f32 %v411_v26, 0.0  ;;  %v421_v31 = vmax.f32 %v413_v27, 0.0 }
  0x96   : > { %427 = vst [vmem:[%s777_s19] sm:$0xff] %v419_v30 }
  0x97   : > { %429 = vst [vmem:[%s777_s19 + $0x10] sm:$0xff] %v421_v31 }
  0x98   : > { %v401_v38 = vpop.f32.mrf.mxu2  ;;  %v406_v39 = vpop.f32.mrf.mxu3 }
  0x99   : > { %v415_v40 = vadd.f32 %v401_v38, %v332_v32  ;;  %v417_v41 = vadd.f32 %v406_v39, %v334_v33  ;;  %v393_v42 = vpop.f32.mrf.mxu0  ;;  %v398_v43 = vpop.f32.mrf.mxu1 }
  0x9a   : > { %v412_v46 = vadd.f32 %v393_v42, %v329_v36  ;;  %v414_v47 = vadd.f32 %v398_v43, %v331_v37 }
  0x9b   : > { %v423_v48 = vmax.f32 %v415_v40, 0.0  ;;  %v425_v49 = vmax.f32 %v417_v41, 0.0 }
  0x9c   : > { %v420_v50 = vmax.f32 %v412_v46, 0.0  ;;  %v422_v51 = vmax.f32 %v414_v47, 0.0 }
  0x9d   : > { %431 = vst [vmem:[%s777_s19 + $0x20] sm:$0xff] %v423_v48 }
  0x9e   : > { %433 = vst [vmem:[%s777_s19 + $0x30] sm:$0xff] %v425_v49 }
  0x9f   : > { %428 = vst [vmem:[%s777_s19 + $0x8] sm:$0xff] %v420_v50 }
  0xa0   : > { %430 = vst [vmem:[%s777_s19 + $0x18] sm:$0xff] %v422_v51  ;;  %v403_v54 = vpop.f32.mrf.mxu2  ;;  %v408_v55 = vpop.f32.mrf.mxu3 }
  0xa1   : > { %v416_v56 = vadd.f32 %v403_v54, %v333_v52  ;;  %v418_v57 = vadd.f32 %v408_v55, %v335_v53 }
  0xa3   : > { %v424_v58 = vmax.f32 %v416_v56, 0.0  ;;  %v426_v59 = vmax.f32 %v418_v57, 0.0 }
  0xa5   : > { %432 = vst [vmem:[%s777_s19 + $0x28] sm:$0xff] %v424_v58 }
  0xa6   : > { %434 = vst [vmem:[%s777_s19 + $0x38] sm:$0xff] %v426_v59 }
  0xa7 PF: > { %s15_s22 = sadd.s32 1, %s693_s22   ;;  %s808_s18 = smov %s685_s20 }
  0xa8   : > { %p12_p7 = scmp.ge.s32.totalorder %s15_s22, 18   ;;  %s809_s19 = smov %s689_s21 }
  0xa9   : > { %s810_s20 = smov %s813_s23  ;;  %s811_s21 = smov %s817_s24 }
  0xaa   :  { %14 = sbr.rel (!%p12_p7) target bundleno = 3 (0x3), region = 73 }

// kernel: residual_block_3d.3
= control target key start
LH: loop header
LB: loop body
LE: loop exit
PB: predicated region body
PF: predicated region fallthrough
CT: control target
= control target key end

     0   :  { %s3407_s24 = smov 0   ;;  %s3409_s25 = smov 0   ;;  %s4939_s0 = inlined_call_operand.vmem [shape: bf16[2,8,64,4], index: 0, kind: input, shape index: {}, may-alias: {0,1,2}]   ;;  %s4940_s1 = inlined_call_operand.vmem [shape: bf16[2,8,64,4], index: 1, kind: input, shape index: {}, may-alias: {0,1,2}]   ;;  %s4941_s2 = inlined_call_operand.vmem [shape: bf16[2,8,64,4], index: 2, kind: input, shape index: {}, may-alias: {0,1,2}]   ;;  %s4942_s3 = inlined_call_operand.vmem [shape: bf16[27,4,128], index: 3, kind: input, shape index: {}]   ;;  %s4943_s4 = inlined_call_operand.vmem [shape: f32[64,1], index: 4, kind: input, shape index: {}]   ;;  %s4944_s5 = inlined_call_operand.vmem [shape: f32[64,1], index: 5, kind: input, shape index: {}]   ;;  %s4945_s6 = inlined_call_operand.vmem [shape: bf16[2,8,64,128], index: 6, kind: output, shape index: {0}]   ;;  %s4946_s7 = inlined_call_operand.vmem [shape: f32[2,8,2,128], index: 7, kind: output, shape index: {1}]  }
   0x1   :  { %s3411_s26 = smov 0   ;;  %s3413_s27 = smov 0  }
   0x2   :  { %s3415_s28 = smov 0  }
   0x3 LB: > { %s27_s29 = sadd.s32 1, %s3354_s26  ;;  %s30_s30 = sadd.s32 1, %s3358_s27  ;;  %s3362_s28 = sphi %s3415_s28, %s18_s28   ;;  %s3358_s27 = sphi %s3413_s27, %s5170_s27   ;;  %s3354_s26 = sphi %s3411_s26, %s5169_s26   ;;  %s3350_s25 = sphi %s3409_s25, %s5168_s25   ;;  %s3346_s24 = sphi %s3407_s24, %s5167_s24  }
   0x4   : > { %p28_p0 = scmp.ge.s32.totalorder %s27_s29, 8  ;;  %p3033_p1 = scmp.ge.s32.totalorder %s3362_s28, 1 }
   0x5   : > { %p318_p2 = scmp.lt.s32.totalorder %s3362_s28, 17 }
   0x6   : > { %s5172_s29 = smov (%p28_p0, %s27_s29), 0  ;;  %s5174_s30 = smov (!%p28_p0, %s30_s30), %s3358_s27 }
   0x7   : > { %p319_p3 = pnand %p3033_p1, %p318_p2  ;;  %p32_p4 = scmp.ge.s32.totalorder %s5174_s30, 2 }
   0x9   : > { %s5176_s30 = smov (%p32_p4, %s5174_s30), 0  ;;  %322 = sbr.rel (%p319_p3) target bundleno = 727 (0x2d7), region = 44 }
   0xe   : > { %v522_v0 = vld [vmem:[%s4943_s4 + $0x18] sm:$0xff]  ;;  %v520_v1 = vld [vmem:[%s4943_s4 + $0x8] sm:$0xff]  ;;  %v4947_v2 = vmov 0   ;;  %v519_v3 = vld [vmem:[%s4943_s4] sm:$0xff]  ;;  %s414_s22 = sadd.s32 1, %s3346_s24  ;;  %p393_p6 = scmp.lt.s32.totalorder %s3350_s25, 1 }
   0xf   : > { %3322 = vset.pattern.permute.xlu1 %v4947_v2  ;;  %3321 = vset.pattern.permute.xlu0 %v4947_v2  ;;  %v523_v4 = vld [vmem:[%s4943_s4 + $0x20] sm:$0xff]  ;;  %v521_v5 = vld [vmem:[%s4943_s4 + $0x10] sm:$0xff]  ;;  %v524_v6 = vld [vmem:[%s4943_s4 + $0x28] sm:$0xff]  ;;  %p415_p5 = scmp.lt.s32.totalorder %s414_s22, 7  ;;  %p407_p7 = scmp.lt.s32.totalorder %s3346_s24, 7  ;;  %vm642_vm0 = vcmask 1041408  }
  0x10   : > { %552 = vperm.xlu1 %3322, %v522_v0   ;;  %542 = vperm.xlu0 %3321, %v520_v1   ;;  %v526_v7 = vld [vmem:[%s4943_s4 + $0x38] sm:$0xff]  ;;  %v525_v8 = vld [vmem:[%s4943_s4 + $0x30] sm:$0xff]  ;;  %v527_v9 = vld [vmem:[%s4944_s5] sm:$0xff]  ;;  %s5180_s25 = smov (!%p393_p6, %s3350_s25), 1  ;;  %s3034_s18 = sadd.s32 4294967295, %s3346_s24  ;;  %vm591_vm1 = vcmask 1040384  }
  0x11   : > { %3323 = vset.pattern.permute.xlu2 %v4947_v2  ;;  %v529_v10 = vld [vmem:[%s4944_s5 + $0x10] sm:$0xff]  ;;  %v528_v11 = vld [vmem:[%s4944_s5 + $0x8] sm:$0xff]  ;;  %v530_v12 = vld [vmem:[%s4944_s5 + $0x18] sm:$0xff]  ;;  %s5178_s22 = smov (!%p415_p5, %s414_s22), 7  ;;  %s3498_s9 = sshll.u32 %s5180_s25, 6  ;;  %vm629_vm2 = vcmask 31744  }
  0x12   : > { %537 = vperm.xlu2 %3323, %v519_v3   ;;  %v532_v13 = vld [vmem:[%s4944_s5 + $0x28] sm:$0xff]  ;;  %v531_v14 = vld [vmem:[%s4944_s5 + $0x20] sm:$0xff]  ;;  %v533_v15 = vld [vmem:[%s4944_s5 + $0x30] sm:$0xff]  ;;  %s5182_s22 = smov (!%p415_p5, %s5178_s22), 7  ;;  %p391_p8 = scmp.gt.s32.totalorder %s3034_s18, 0  ;;  %vm1147_vm4 = vcmask 1046528  }
  0x13   : > { %v534_v16 = vld [vmem:[%s4944_s5 + $0x38] sm:$0xff]  ;;  %s3049_s10 = sshll.u32 %s5182_s22, 3  ;;  %p3035_p9 = scmp.lt.s32.totalorder %s3034_s18, 7  ;;  %v3057_v29 = vld [vmem:[%s4942_s3 + $0x6] sm:$0x3] }
  0x14   : > { %s423_s11 = sadd.s32 %s3049_s10, %s3498_s9  ;;  %s5184_s18 = smov (!%p391_p8, %s3034_s18), 0  ;;  %v644_v30 = vsel %vm642_vm0, %v3057_v29, 0  ;;  %v622_v37 = vld [vmem:[%s4942_s3] sm:$0x3]  ;;  %v3066_v38 = vld [vmem:[%s4942_s3 + $0xc] sm:$0x3] }
  0x15   : > { %s451_s12 = scalar_select %p407_p7, 1, 0  ;;  %653 = vmatpush.bf16.msra.mxu0 %v644_v30  ;;  %3275 = vmatpush.bf16.msra.mxu3 %v644_v30  ;;  %v688_v39 = vsel %vm642_vm0, %v622_v37, 0  ;;  %v3556_v40 = vsel %vm642_vm0, %v3066_v38, 0  ;;  %v3071_v41 = vld [vmem:[%s4942_s3 + $0x2] sm:$0x3] }
  0x16   : > { %s3051_s13 = sshll.u32 %s423_s11, 2  ;;  %s5186_s18 = smov (!%p3035_p9, %s5184_s18), 7  ;;  %3276 = vmatpush.bf16.msra.mxu1 %v688_v39  ;;  %3277 = vmatpush.bf16.msra.mxu2 %v3556_v40  ;;  %v856_v43 = vsel %vm642_vm0, %v3071_v41, 0  ;;  %v3086_v53 = vld [vmem:[%s4942_s3 + $0x4] sm:$0x3] }
  0x17   : > { %s3507_s16 = scalar_lea.vmem %s4941_s2, %s3051_s13  ;;  %s452_s17 = scvt.s32.f32 %s451_s12  ;;  %v1170_v55 = vsel %vm642_vm0, %v3086_v53, 0  ;;  %v3076_v2 = vld [vmem:[%s4942_s3 + $0x8] sm:$0x3]  ;;  %vm806_vm3 = vsmask.f32 7424 }
  0x18   : > { %557 = vperm.xlu1 %3322, %v523_v4   ;;  %547 = vperm.xlu0 %3321, %v521_v5   ;;  %v3228_v17 = vld [vmem:[%s3507_s16] sm:$0xff]   ;;  %v3270_v21 = vld [vmem:[%s3507_s16 + $0x10] sm:$0xff]   ;;  %v3269_v26 = vld [vmem:[%s3507_s16 + $0x8] sm:$0xff]   ;;  %s3522_s19 = scalar_select %p407_p7, %s3346_s24, 7 }
  0x19   : > { %v3229_v18 = vunpack.c.l.bf16 %v3228_v17  ;;  %v510_v19 = vstv %s452_s17  ;;  %v3238_v22 = vunpack.c.h.bf16 %v3270_v21  ;;  %v3230_v24 = vunpack.c.h.bf16 %v3228_v17  ;;  %s3040_s20 = sshll.u32 %s5186_s18, 3  ;;  %p447_p10 = scmp.gt.s32.totalorder %s3346_s24, 0  ;;  %v3271_v42 = vld [vmem:[%s3507_s16 + $0x18] sm:$0xff]   ;;  %865 = vmatpush.bf16.msrb.mxu3 %v856_v43  ;;  %697 = vmatpush.bf16.msrb.mxu0 %v688_v39 }
  0x1a   : > { %562 = vperm.xlu2 %3323, %v524_v6   ;;  %v3234_v27 = vunpack.c.h.bf16 %v3269_v26  ;;  %v3237_v31 = vunpack.c.l.bf16 %v3270_v21  ;;  %v3233_v32 = vunpack.c.l.bf16 %v3269_v26  ;;  %s399_s23 = sadd.s32 %s3498_s9, %s3040_s20  ;;  %s3043_s8 = sshll.u32 %s3522_s19, 3  ;;  %v3242_v45 = vunpack.c.h.bf16 %v3271_v42  ;;  %1179 = vmatpush.bf16.msrb.mxu2 %v1170_v55 }
  0x1b   : > { %v3510_v20 = vmul.f32 %v3229_v18, %v510_v19  ;;  %v3514_v23 = vmul.f32 %v3238_v22, %v510_v19  ;;  %v3516_v25 = vmul.f32 %v3230_v24, %v510_v19  ;;  %s3042_s10 = sshll.u32 %s399_s23, 2  ;;  %s3538_s11 = sadd.s32 %s3043_s8, %s3498_s9  ;;  %v3241_v47 = vunpack.c.l.bf16 %v3271_v42  ;;  %v3081_v18 = vld [vmem:[%s4942_s3 + $0xe] sm:$0x3] }
  0x1c   : > { %v3524_v28 = vmul.f32 %v3234_v27, %v510_v19  ;;  %v3533_v33 = vmul.f32 %v3237_v31, %v510_v19  ;;  %v3535_v34 = vmul.f32 %v3233_v32, %v510_v19  ;;  %s448_s12 = scalar_select %p447_p10, 1, 0  ;;  %v3575_v49 = vmul.f32 %v3242_v45, %v510_v19 }
  0x1d   : > { %5003 = vst [vmem:[#allocation2_spill] sm:$0xff] %v3510_v20  ;;  %s3549_s24 = scalar_lea.vmem %s4939_s0, %s3042_s10  ;;  %s3045_s22 = sshll.u32 %s3538_s11, 2  ;;  %v3579_v51 = vmul.f32 %v3241_v47, %v510_v19  ;;  %v1014_v37 = vsel %vm642_vm0, %v3081_v18, 0 }
  0x1e   : > { %5004 = vst [vmem:[#allocation3_spill] sm:$0xff] %v3514_v23  ;;  %s449_s23 = scvt.s32.f32 %s448_s12  ;;  %v3196_v44 = vld [vmem:[%s3549_s24] sm:$0xff]   ;;  %s3571_s13 = scalar_lea.vmem %s4940_s1, %s3045_s22  ;;  %v3604_v63 = vld [vmem:[%s3549_s24 + $0x10] sm:$0xff]   ;;  %v3263_v0 = vld [vmem:[%s3549_s24 + $0x8] sm:$0xff]   ;;  %1023 = vmatpush.bf16.msrb.mxu1 %v1014_v37 }
  0x1f   : > { %5005 = vst [vmem:[#allocation4_spill] sm:$0xff] %v3516_v25  ;;  %v3197_v48 = vunpack.c.l.bf16 %v3196_v44  ;;  %v3212_v52 = vld [vmem:[%s3571_s13] sm:$0xff]   ;;  %v3198_v57 = vunpack.c.h.bf16 %v3196_v44  ;;  %v3202_v5 = vunpack.c.h.bf16 %v3263_v0  ;;  %v3266_v6 = vld [vmem:[%s3571_s13 + $0x8] sm:$0xff]   ;;  %v3265_v47 = vld [vmem:[%s3549_s24 + $0x18] sm:$0xff]   ;;  %s4898_s18 = scalar_lea.vmem %s4945_s6, %s3045_s22  ;;  %s3055_s11 = sshll.u32 %s5180_s25, 3 }
  0x20   : > { %572 = vperm.xlu1 %3322, %v526_v7   ;;  %567 = vperm.xlu0 %3321, %v525_v8   ;;  %5006 = vst [vmem:[#allocation5_spill] sm:$0xff] %v3524_v28  ;;  %v3577_v50 = vstv %s449_s23  ;;  %v3589_v56 = vunpack.c.l.bf16 %v3212_v52  ;;  %v3610_v3 = vunpack.c.h.bf16 %v3212_v52  ;;  %v3205_v7 = vunpack.c.l.bf16 %v3604_v63  ;;  %v3267_v52 = vld [vmem:[%s3571_s13 + $0x10] sm:$0xff]   ;;  %s443_s22 = sadd.s32 %s3055_s11, %s3522_s19 }
  0x21   : > { %5007 = vst [vmem:[#allocation6_spill] sm:$0xff] %v3533_v33  ;;  %v3586_v54 = vmul.f32 %v3197_v48, %v3577_v50  ;;  %v3608_v1 = vmul.f32 %v3198_v57, %v3577_v50  ;;  %v3630_v19 = vmul.f32 %v3202_v5, %v3577_v50  ;;  %v3660_v39 = vunpack.c.l.bf16 %v3266_v6  ;;  %s3056_s20 = sshll.u32 %s443_s22, 1 }
  0x22   : > { %1055 = vperm.xlu2 %3323, %v527_v9   ;;  %5008 = vst [vmem:[#allocation7_spill] sm:$0xff] %v3535_v34  ;;  %v3633_v22 = vmul.f32 %v3205_v7, %v3577_v50  ;;  %s445_s23 = scalar_lea.vmem %s4946_s7, %s3056_s20 }
  0x23   : > { %5010 = vst [vmem:[#allocation9_spill] sm:$0xff] %v3575_v49 }
  0x24   : > { %5011 = vst [vmem:[#allocation10_spill] sm:$0xff] %v3579_v51 }
  0x25   : > { %5012 = vst [vmem:[#allocation11_spill] sm:$0xff] %v3589_v56 }
  0x26   : > { %5013 = vst [vmem:[#allocation12_spill] sm:$0xff] %v3610_v3 }
  0x27   : > { %5017 = vst [vmem:[#allocation16_spill] sm:$0xff] %v3660_v39 }
  0x28   : > { %1065 = vperm.xlu1 %3322, %v529_v10   ;;  %1060 = vperm.xlu0 %3321, %v528_v11   ;;  %v3201_v11 = vunpack.c.l.bf16 %v3263_v0 }
  0x2a   : > { %1070 = vperm.xlu2 %3323, %v530_v12   ;;  %v3642_v29 = vmul.f32 %v3201_v11, %v3577_v50  ;;  %v3689_v11 = vunpack.c.l.bf16 %v3267_v52 }
  0x2c   : > { %5019 = vst [vmem:[#allocation18_spill] sm:$0xff] %v3689_v11 }
  0x30   : > { %1080 = vperm.xlu1 %3322, %v532_v13   ;;  %1075 = vperm.xlu0 %3321, %v531_v14   ;;  %v3618_v14 = vunpack.c.h.bf16 %v3266_v6 }
  0x32   : > { %1085 = vperm.xlu2 %3323, %v533_v15   ;;  %5014 = vst [vmem:[#allocation13_spill] sm:$0xff] %v3618_v14 }
  0x38   : > { %1090 = vperm.xlu0 %3321, %v534_v16  }
  0x6c   : > { %v538_v35 = vpop.permute.xlu2 %537 }
  0x6d   : > { %v3541_v36 = vmul.f32 %v538_v35, %v3510_v20  ;;  %v575_v59 = vmul.f32 %v538_v35, %v3586_v54  ;;  %v1337_v62 = vmul.f32 %v3589_v56, %v538_v35  ;;  %v3654_v35 = vld [vmem:[%s3571_s13 + $0x18] sm:$0xff]  }
  0x6e   : > { %v3669_v48 = vunpack.c.l.bf16 %v3654_v35 }
  0x6f   : > { %5009 = vst [vmem:[#allocation8_spill] sm:$0xff] %v3541_v36  ;;  %v592_v4 = vrot.slane %v575_v59, 7  ;;  %v1353_v8 = vrot.slane %v1337_v62, 7  ;;  %v3206_v59 = vunpack.c.h.bf16 %v3604_v63 }
  0x70   : > { %5018 = vst [vmem:[#allocation17_spill] sm:$0xff] %v3669_v48 }
  0x71   : > { %v3636_v24 = vsel %vm591_vm1, 0.0, %v592_v4  ;;  %v3639_v26 = vsel %vm591_vm1, 0.0, %v1353_v8  ;;  %v3707_v37 = vmul.f32 %v3206_v59, %v3577_v50 }
  0x72   : > { %5015 = vst [vmem:[#allocation14_spill] sm:$0xff] %v3639_v26 }
  0x74   : > { %v3573_v46 = vpop.permute.xlu2 %562 }
  0x7c   : > { %v3591_v58 = vpop.permute.xlu2 %1055 }
  0x7d   : > { %v3596_v60 = vmul.f32 %v3589_v56, %v3591_v58  ;;  %v3600_v61 = vmul.f32 %v3591_v58, %v3510_v20  ;;  %v3789_v56 = vmul.f32 %v3591_v58, %v3586_v54  ;;  %v3806_v58 = vmul.f32 %v3573_v46, %v3514_v23 }
  0x7f   : > { %5028 = vst [vmem:[#allocation24_spill] sm:$0xff] %v3806_v58 }
  0x82   : > { %v553_v9 = vpop.permute.xlu1 %552  ;;  %v543_v10 = vpop.permute.xlu0 %542 }
  0x83   : > { %v3615_v12 = vmul.f32 %v553_v9, %v3524_v28  ;;  %v576_v13 = vmul.f32 %v543_v10, %v3608_v1  ;;  %v1338_v15 = vmul.f32 %v3610_v3, %v543_v10  ;;  %v3622_v16 = vmul.f32 %v543_v10, %v3516_v25 }
  0x84   : > { %v3624_v17 = vpop.permute.xlu2 %1070  ;;  %v578_v42 = vmul.f32 %v553_v9, %v3630_v19  ;;  %v1340_v62 = vmul.f32 %v3618_v14, %v553_v9  ;;  %v3209_v10 = vunpack.c.l.bf16 %v3265_v47 }
  0x85   : > { %v593_v21 = vrot.slane %v576_v13, 7  ;;  %v1354_v27 = vrot.slane %v1338_v15, 7  ;;  %v3646_v30 = vmul.f32 %v3618_v14, %v3624_v17  ;;  %v3650_v31 = vmul.f32 %v3624_v17, %v3524_v28 }
  0x86   : > { %v597_v6 = vrot.slane %v578_v42, 7  ;;  %v5023_v28 = vrot.slane %v3586_v54, 7 }
  0x87   : > { %v594_v32 = vsel %vm591_vm1, %v592_v4, %v593_v21  ;;  %v3658_v38 = vsel %vm591_vm1, %v1353_v8, %v1354_v27 }
  0x88   : > { %5016 = vst [vmem:[#allocation15_spill] sm:$0xff] %v3658_v38  ;;  %v623_v41 = vpack.c.bf16 %v594_v32, %v3636_v24 }
  0x8a   : > { %v558_v44 = vpop.permute.xlu1 %557  ;;  %v548_v45 = vpop.permute.xlu0 %547  ;;  %3058 = vmatmul.msk.bf16.vlgmr.msra.gmra.mxu0 %vm629_vm2, %v623_v41  ;;  %v1358_v41 = vrot.slane %v1340_v62, 7  ;;  %v4955_v62 = vmov 0.0  }
  0x8b   : > { %v3673_v53 = vmul.f32 %v558_v44, %v3633_v22  ;;  %v3676_v55 = vmul.f32 %v558_v44, %v3533_v33  ;;  %v577_v57 = vmul.f32 %v548_v45, %v3642_v29  ;;  %735 = vmatpush.bf16.msra.mxu0 %v3556_v40  ;;  %v1339_v0 = vmul.f32 %v3660_v39, %v548_v45 }
  0x8c   : > { %v3684_v4 = vmul.f32 %v548_v45, %v3535_v34  ;;  %v3686_v5 = vpop.permute.xlu2 %1085 }
  0x8d   : > { %v4948_v7 = vrot.slane %v3673_v53, 7  ;;  %v595_v8 = vrot.slane %v577_v57, 7  ;;  %v1356_v13 = vrot.slane %v1339_v0, 7  ;;  %v3693_v40 = vmul.f32 %v3669_v48, %v3686_v5 }
  0x8e   : > { %v3697_v63 = vmul.f32 %v3686_v5, %v3579_v51  ;;  %v3712_v57 = vmul.f32 %v3209_v10, %v3577_v50  ;;  %v580_v10 = vmul.f32 %v3573_v46, %v3707_v37 }
  0x8f   : > { %v596_v9 = vsel %vm591_vm1, %v593_v21, %v595_v8  ;;  %v598_v15 = vsel %vm591_vm1, %v595_v8, %v597_v6  ;;  %v3704_v18 = vsel %vm591_vm1, %v597_v6, %v4948_v7  ;;  %v3718_v21 = vmul.f32 %v3689_v11, %v558_v44 }
  0x90   : > { %v624_v42 = vpack.c.bf16 %v598_v15, %v596_v9  ;;  %v3709_v45 = vpack.c.bf16 %v596_v9, %v594_v32  ;;  %v3715_v0 = vpack.c.bf16 %v3704_v18, %v598_v15  ;;  %v3728_v32 = vsel %vm591_vm1, %v1354_v27, %v1356_v13 }
  0x91   : > { %5020 = vst [vmem:[#allocation19_spill] sm:$0xff] %v3728_v32  ;;  %v3731_v59 = vsel %vm591_vm1, %v1356_v13, %v1358_v41  ;;  %v3748_v27 = vpack.c.bf16 %v3728_v32, %v3658_v38  ;;  %v3751_v15 = vunpack.c.h.bf16 %v3267_v52  ;;  %v3766_v52 = vsel %vm591_vm1, 0.0, %v5023_v28 }
  0x92   : > { %v3720_v8 = vpop.permute.xlu1 %572  ;;  %v3722_v6 = vpop.permute.xlu0 %567  ;;  %3059 = vmatmul.msk.bf16.vlgmr.msra.gmra.mxu3 %vm629_vm2, %v624_v42  ;;  %3063 = vmatmul.msk.bf16.vlgmr.msra.gmra.mxu1 %vm629_vm2, %v3709_v45  ;;  %v3210_v42 = vunpack.c.h.bf16 %v3265_v47  ;;  %v601_v14 = vrot.slane %v580_v10, 7 }
  0x93   : > { %v3736_v44 = vmul.f32 %v3720_v8, %v3575_v49  ;;  %3068 = vmatmul.msk.bf16.vlgmr.msra.gmra.mxu2 %vm629_vm2, %v3715_v0  ;;  %v3744_v9 = vmul.f32 %v3722_v6, %v3579_v51  ;;  %5021 = vst [vmem:[#allocation20_spill] sm:$0xff] %v3748_v27  ;;  %v3755_v43 = vmul.f32 %v3722_v6, %v3712_v57  ;;  %v951_v27 = vsel %vm642_vm0, %v3076_v2, 0 }
  0x94   : > { %5022 = vst [vmem:[#allocation21_spill] sm:$0xff] %v3751_v15  ;;  %v618_v51 = vpack.c.bf16 %v3636_v24, %v4955_v62  ;;  %v5024_v24 = vrot.slane %v3541_v36, 7  ;;  %v3781_v28 = vmul.f32 %v3751_v15, %v3573_v46  ;;  %v3784_v47 = vmul.f32 %v3210_v42, %v3577_v50 }
  0x95   : > { %v1839_v2 = vrot.slane %v3596_v60, 7  ;;  %v5027_v50 = vrot.slane %v3718_v21, 7  ;;  %v2566_v60 = vrot.slane %v3600_v61, 7  ;;  %v5029_v46 = vrot.slane %v3673_v53, 7 }
  0x96   : > { %v3777_v62 = vsel %vm591_vm1, 0.0, %v5024_v24  ;;  %5026 = vst [vmem:[#allocation23_spill] sm:$0xff] %v3784_v47  ;;  %v1844_v24 = vrot.slane %v3646_v30, 7  ;;  %v2571_v61 = vrot.slane %v3650_v31, 7  ;;  %v5030_v38 = vrot.slane %v3755_v43, 7 }
  0x97   : > { %5025 = vst [vmem:[#allocation22_spill] sm:$0xff] %v3777_v62  ;;  %v3802_v42 = vsel %vm591_vm1, %v1358_v41, %v5027_v50  ;;  %v602_v50 = vsel %vm591_vm1, %v5029_v46, %v601_v14  ;;  %v3832_v53 = vsel %vm591_vm1, 0.0, %v2566_v60  ;;  %v5036_v30 = vrot.slane %v3608_v1, 7 }
  0x98   : > { %v625_v31 = vpack.c.bf16 %v602_v50, %v3704_v18  ;;  %v5038_v62 = vmov 0.0  }
  0x9a   : > { %v3792_v13 = vpop.permute.xlu1 %1065  ;;  %v3794_v7 = vpop.permute.xlu0 %1060  ;;  %3062 = vmatmul.msk.bf16.vlgmr.msrb.gmra.mxu0 %vm629_vm2, %v618_v51 }
  0x9b   : > { %v1825_v20 = vmul.f32 %v3660_v39, %v3792_v13  ;;  %v2552_v51 = vmul.f32 %v3792_v13, %v3535_v34  ;;  %960 = vmatpush.bf16.msrb.mxu0 %v951_v27  ;;  %v1824_v10 = vmul.f32 %v3610_v3, %v3794_v7  ;;  %v2551_v41 = vmul.f32 %v3794_v7, %v3516_v25 }
  0x9c   : > { %v3825_v27 = vsel %vm591_vm1, %v601_v14, %v5030_v38  ;;  %v3829_v34 = vsel %vm591_vm1, 0.0, %v1839_v2 }
  0x9d   : > { %v1842_v32 = vrot.slane %v1825_v20, 7  ;;  %v2569_v39 = vrot.slane %v2552_v51, 7  ;;  %v1840_v3 = vrot.slane %v1824_v10, 7  ;;  %v2567_v25 = vrot.slane %v2551_v41, 7 }
  0x9e   : > { %v3851_v51 = vpack.c.bf16 %v3825_v27, %v602_v50  ;;  %v5037_v50 = vrot.slane %v3586_v54, 7  ;;  %v3904_v36 = vpack.c.bf16 %v3829_v34, %v5038_v62 }
  0x9f   : > { %v3835_v46 = vsel %vm591_vm1, %v1842_v32, %v1844_v24  ;;  %v3838_v20 = vsel %vm591_vm1, %v2569_v39, %v2571_v61  ;;  %v3842_v14 = vsel %vm591_vm1, %v1839_v2, %v1840_v3  ;;  %v3845_v38 = vsel %vm591_vm1, %v1840_v3, %v1842_v32 }
  0xa0   : > { %v3848_v10 = vsel %vm591_vm1, %v2566_v60, %v2567_v25  ;;  %v3860_v2 = vsel %vm591_vm1, %v2567_v25, %v2569_v39  ;;  %v5033_v3 = vrot.slane %v3789_v56, 7  ;;  %v3881_v25 = vunpack.c.h.bf16 %v3654_v35 }
  0xa1   : > { %5031 = vst [vmem:[#allocation25_spill] sm:$0xff] %v3848_v10  ;;  %v582_v39 = vmul.f32 %v3720_v8, %v3784_v47 }
  0xa2   : > { %5032 = vst [vmem:[#allocation26_spill] sm:$0xff] %v3860_v2  ;;  %v3865_v32 = vsel %vm591_vm1, 0.0, %v5033_v3  ;;  %v3873_v41 = vpop.permute.xlu1 %1080  ;;  %v3875_v18 = vpop.permute.xlu0 %1075  ;;  %3060 = vmatmul.msk.bf16.gmra.mxu3 %vm629_vm2, %v625_v31  ;;  %3064 = vmatmul.msk.bf16.gmra.mxu1 %vm629_vm2, %v3715_v0  ;;  %v775_v31 = vsel %vm591_vm1, %v5037_v50, %v5036_v30  ;;  %v1850_v50 = vrot.slane %v3693_v40, 7  ;;  %v5040_v2 = vrot.slane %v3642_v29, 7 }
  0xa3   : > { %5034 = vst [vmem:[#allocation27_spill] sm:$0xff] %v3865_v32  ;;  %3069 = vmatmul.msk.bf16.gmra.mxu2 %vm629_vm2, %v3851_v51  ;;  %v1828_v26 = vmul.f32 %v3751_v15, %v3873_v41  ;;  %v3900_v3 = vpack.c.bf16 %v3865_v32, %v5038_v62  ;;  %v2555_v54 = vmul.f32 %v3873_v41, %v3514_v23  ;;  %v605_v15 = vrot.slane %v582_v39, 7 }
  0xa4   : > { %5035 = vst [vmem:[#allocation28_spill] sm:$0xff] %v3881_v25  ;;  %v1827_v30 = vmul.f32 %v3689_v11, %v3875_v18  ;;  %v2554_v60 = vmul.f32 %v3875_v18, %v3533_v33  ;;  %v895_v35 = vpack.c.bf16 %v775_v31, %v3766_v52  ;;  %v2577_v32 = vrot.slane %v3697_v63, 7 }
  0xa5   : > { %v1848_v0 = vrot.slane %v1828_v26, 7  ;;  %v2575_v58 = vrot.slane %v2555_v54, 7  ;;  %v5041_v11 = vrot.slane %v3608_v1, 7  ;;  %v5042_v40 = vrot.slane %v3630_v19, 7 }
  0xa6   : > { %v1846_v47 = vrot.slane %v1827_v30, 7  ;;  %v2573_v23 = vrot.slane %v2554_v60, 7  ;;  %v5043_v33 = vmov %v5040_v2  ;;  %v3930_v63 = vpack.c.bf16 %v3832_v53, %v5038_v62 }
  0xa7   : > { %v3916_v10 = vsel %vm591_vm1, %v1848_v0, %v1850_v50  ;;  %v777_v26 = vsel %vm591_vm1, %v5041_v11, %v5040_v2  ;;  %v779_v39 = vsel %vm591_vm1, %v5043_v33, %v5042_v40  ;;  %v3933_v54 = vsel %vm591_vm1, %v2575_v58, %v2577_v32 }
  0xa8   : > { %5039 = vst [vmem:[#allocation29_spill] sm:$0xff] %v3916_v10  ;;  %v3936_v60 = vsel %vm591_vm1, %v1844_v24, %v1846_v47  ;;  %v3939_v30 = vsel %vm591_vm1, %v1846_v47, %v1848_v0  ;;  %v3944_v2 = vsel %vm591_vm1, %v2571_v61, %v2573_v23  ;;  %v3947_v33 = vsel %vm591_vm1, %v2573_v23, %v2575_v58 }
  0xa9   : > { %5044 = vst [vmem:[#allocation30_spill] sm:$0xff] %v3933_v54  ;;  %v905_v54 = vshll.u32 %v895_v35, 16  ;;  %v3959_v61 = vpack.c.bf16 %v779_v39, %v777_v26  ;;  %v5048_v11 = vrot.slane %v3755_v43, 7  ;;  %v1094_v58 = vmul.f32 %v3794_v7, %v3608_v1 }
  0xaa   : > { %5045 = vst [vmem:[#allocation31_spill] sm:$0xff] %v3939_v30  ;;  %v3949_v40 = vpop.permute.xlu0 %1090  ;;  %3067 = vmatmul.msk.bf16.vlgmr.msra.gmra.mxu0 %vm629_vm2, %v3709_v45  ;;  %v799_v30 = vpack.c.bf16 %v3766_v52, %v5038_v62  ;;  %v903_v23 = vshrl.u32 %v895_v35, 16  ;;  %v5049_v52 = vrot.slane %v3633_v22, 7 }
  0xab   : > { %5046 = vst [vmem:[#allocation32_spill] sm:$0xff] %v3944_v2  ;;  %v1830_v47 = vmul.f32 %v3881_v25, %v3949_v40  ;;  %v2557_v0 = vmul.f32 %v3949_v40, %v3575_v49  ;;  %v606_v45 = vsel %vm591_vm1, %v5048_v11, %v605_v15  ;;  %v3969_v2 = vpack.c.bf16 %v777_v26, %v775_v31 }
  0xac   : > { %5047 = vst [vmem:[#allocation33_spill] sm:$0xff] %v3947_v33  ;;  %v617_v33 = vsel %vm591_vm1, %v605_v15, 0.0  ;;  %v3973_v49 = vmul.f32 %v3792_v13, %v3642_v29  ;;  %v907_v43 = vrot.slane %v905_v54, 1  ;;  %v5050_v31 = vrot.slane %v3630_v19, 7 }
  0xad   : > { %v1852_v10 = vrot.slane %v1830_v47, 7  ;;  %v2579_v24 = vrot.slane %v2557_v0, 7  ;;  %v910_v47 = vshll.u32 %v3959_v61, 16  ;;  %v626_v7 = vpack.c.bf16 %v606_v45, %v3825_v27 }
  0xae   : > { %v781_v29 = vsel %vm591_vm1, %v5050_v31, %v5049_v52  ;;  %v719_v35 = vpack.c.bf16 %v617_v33, %v606_v45  ;;  %v810_v54 = vshll.u32 %v799_v30, 16  ;;  %v815_v0 = vshll.u32 %v3969_v2, 16  ;;  %v3106_v52 = vld [vmem:[%s4942_s3 + $0x18] sm:$0x3] }
  0xaf   : > { %v3978_v11 = vsel %vm591_vm1, %v1850_v50, %v1852_v10  ;;  %v3981_v15 = vsel %vm591_vm1, %v1852_v10, 0.0  ;;  %v3091_v10 = vld [vmem:[%s4942_s3 + $0xa] sm:$0x3]  ;;  %v3997_v50 = vsel %vm591_vm1, %v2577_v32, %v2579_v24  ;;  %v4000_v26 = vsel %vm591_vm1, %v2579_v24, 0.0 }
  0xb0   : > { %v4008_v27 = vmul.f32 %v3624_v17, %v3630_v19  ;;  %v4012_v33 = vmul.f32 %v3686_v5, %v3712_v57  ;;  %v4989_v32 = vrot.slane %v3973_v49, 7  ;;  %v4018_v24 = vpack.c.bf16 %v781_v29, %v779_v39  ;;  %v3096_v5 = vld [vmem:[%s4942_s3 + $0x10] sm:$0x3] }
  0xb1   : > { %v1110_v45 = vrot.slane %v1094_v58, 7  ;;  %v908_v17 = vor.u32 %v907_v43, %v903_v23  ;;  %v4023_v19 = vrot.slane %v910_v47, 1  ;;  %v1243_v39 = vsel %vm642_vm0, %v3091_v10, 0 }
  0xb2   : > { %3061 = vmatmul.msk.bf16.gmra.mxu3 %vm629_vm2, %v626_v7  ;;  %3065 = vmatmul.msk.bf16.gmra.mxu1 %vm629_vm2, %v3851_v51  ;;  %v3101_v7 = vld [vmem:[%s4942_s3 + $0x12] sm:$0x3]  ;;  %v4033_v51 = vmul.f32 %v3881_v25, %v3720_v8  ;;  %v1456_v58 = vsel %vm642_vm0, %v3106_v52, 0  ;;  %v4039_v23 = vmul.f32 %v3669_v48, %v3722_v6  ;;  %v808_v43 = vshrl.u32 %v799_v30, 16  ;;  %v5076_v48 = vld [vmem:[#allocation23_spill] sm:$0xff] }
  0xb3   : > { %3070 = vmatmul.msk.bf16.gmra.mxu2 %vm629_vm2, %v719_v35  ;;  %v812_v47 = vrot.slane %v810_v54, 1  ;;  %v817_v35 = vrot.slane %v815_v0, 1  ;;  %1252 = vmatpush.bf16.msra.mxu3 %v1243_v39  ;;  %v819_v31 = vshrl.u32 %v3969_v2, 16  ;;  %v823_v1 = vshll.u32 %v4018_v24, 16 }
  0xb4   : > { %1465 = vmatpush.bf16.msra.mxu2 %v1456_v58  ;;  %v1298_v8 = vsel %vm642_vm0, %v3096_v5, 0  ;;  %v1398_v13 = vsel %vm642_vm0, %v3101_v7, 0  ;;  %v5051_v52 = vrot.slane %v3789_v56, 7  ;;  %v4054_v30 = vsel %vm591_vm1, %v1110_v45, %v4989_v32 }
  0xb5   : > { %v913_v2 = vsel %vm806_vm3, %v908_v17, %v4023_v19  ;;  %1307 = vmatpush.bf16.msra.mxu0 %v1298_v8  ;;  %1407 = vmatpush.bf16.msra.mxu1 %v1398_v13  ;;  %v1366_v0 = vrot.slane %v4033_v51, 7  ;;  %v4988_v5 = vrot.slane %v3736_v44, 7  ;;  %v5052_v56 = vrot.slane %v3707_v37, 7 }
  0xb6   : > { %v4049_v6 = vsel %vm591_vm1, %v5051_v52, %v1110_v45  ;;  %v5053_v7 = vrot.slane %v3633_v22, 7  ;;  %v1114_v45 = vrot.slane %v4008_v27, 7  ;;  %v4069_v58 = vmul.f32 %v3873_v41, %v3707_v37 }
  0xb7   : > { %v4073_v13 = vmul.f32 %v3875_v18, %v3633_v22  ;;  %v813_v17 = vor.u32 %v812_v47, %v808_v43  ;;  %v821_v8 = vor.u32 %v819_v31, %v817_v35  ;;  %v825_v52 = vrot.slane %v823_v1, 1 }
  0xb8   : > { %v783_v39 = vsel %vm591_vm1, %v5053_v7, %v5052_v56  ;;  %v1136_v56 = vpack.c.bf16 %v4054_v30, %v4049_v6  ;;  %v2083_v27 = vrot.slane %v3684_v4, 7  ;;  %v1364_v7 = vrot.slane %v4039_v23, 7 }
  0xb9   : > { %v4082_v54 = vpack.c.bf16 %v783_v39, %v781_v29  ;;  %v4085_v22 = vsel %vm591_vm1, %v1366_v0, 0.0  ;;  %v4090_v18 = vsel %vm591_vm1, %v4988_v5, 0.0  ;;  %v5054_v4 = vpack.c.bf16 %v3845_v38, %v3842_v14 }
  0xba   : > { %3077 = vmatmul.msk.bf16.vlgmr.msrb.gmra.mxu0 %vm629_vm2, %v913_v2  ;;  %v818_v43 = vsel %vm806_vm3, %v813_v17, %v817_v35  ;;  %v4100_v47 = vsel %vm806_vm3, %v821_v8, %v825_v52  ;;  %v4102_v2 = vrot.slane %v1136_v56, 1  ;;  %v914_v5 = vshrl.u32 %v3959_v61, 16 }
  0xbb   : > { %v1878_v31 = vrot.slane %v5054_v4, 1  ;;  %v5055_v1 = vrot.slane %v3712_v57, 7  ;;  %v5056_v51 = vrot.slane %v3707_v37, 7  ;;  %v918_v4 = vshll.u32 %v4082_v54, 16 }
  0xbc   : > { %v4113_v32 = vpack.c.bf16 %v3802_v42, %v3731_v59  ;;  %v5057_v35 = vrot.slane %v3781_v28, 7  ;;  %v5058_v17 = vrot.slane %v3718_v21, 7  ;;  %v5060_v37 = vpack.c.bf16 %v3842_v14, %v3829_v34  ;;  %v5064_v28 = vld [vmem:[#allocation25_spill] sm:$0xff] }
  0xbd   : > { %v785_v10 = vsel %vm591_vm1, %v5056_v51, %v5055_v1  ;;  %v5061_v1 = vpack.c.bf16 %v3835_v46, %v3845_v38  ;;  %v5066_v29 = vpack.c.bf16 %v5064_v28, %v3832_v53  ;;  %v827_v38 = vshrl.u32 %v4018_v24, 16 }
  0xbe   : > { %v4120_v8 = vsel %vm591_vm1, %v5058_v17, %v5057_v35  ;;  %v5059_v61 = vmov %v5057_v35  ;;  %v1950_v51 = vrot.slane %v5060_v37, 1  ;;  %v5063_v35 = vld [vmem:[#allocation26_spill] sm:$0xff]  ;;  %v4145_v14 = vpack.c.bf16 %v785_v10, %v783_v39 }
  0xbf   : > { %v4125_v56 = vsel %vm591_vm1, %v5059_v61, %v1364_v7  ;;  %v1951_v23 = vrot.slane %v5061_v1, 1  ;;  %v5065_v17 = vpack.c.bf16 %v5063_v35, %v5064_v28  ;;  %v2677_v34 = vrot.slane %v5066_v29, 1 }
  0xc0   : > { %v4137_v21 = vpack.c.bf16 %v4125_v56, %v4120_v8  ;;  %v5067_v37 = vpack.c.bf16 %v3838_v20, %v5063_v35  ;;  %v5068_v41 = vpack.c.bf16 %v3936_v60, %v3835_v46  ;;  %v5069_v53 = vrot.slane %v3900_v3, 1 }
  0xc1   : > { %v2605_v61 = vrot.slane %v5065_v17, 1  ;;  %v5070_v24 = vrot.slane %v4073_v13, 7  ;;  %v5071_v35 = vrot.slane %v4012_v33, 7  ;;  %v5072_v46 = vrot.slane %v4069_v58, 7 }
  0xc2   : > { %5062 = vst [vmem:[#allocation34_spill] sm:$0xff] %v4137_v21  ;;  %v4151_v1 = vrot.slane %v5067_v37, 1  ;;  %v1880_v25 = vrot.slane %v5068_v41, 1  ;;  %3072 = vmatmul.msk.bf16.vlgmr.msrb.gmra.mxu3 %vm629_vm2, %v818_v43  ;;  %3082 = vmatmul.msk.bf16.vlgmr.msrb.gmra.mxu1 %vm629_vm2, %v4100_v47  ;;  %v1150_v39 = vsel %vm1147_vm4, %v5069_v53, %v4102_v2  ;;  %v5073_v43 = vld [vmem:[#allocation32_spill] sm:$0xff]  ;;  %v916_v3 = vor.u32 %v914_v5, %v4023_v19 }
  0xc3   : > { %v4166_v29 = vsel %vm591_vm1, %v1114_v45, %v5070_v24  ;;  %v4173_v41 = vsel %vm591_vm1, %v5072_v46, %v5071_v35  ;;  %v5074_v28 = vpack.c.bf16 %v5073_v43, %v3838_v20  ;;  %3087 = vmatmul.msk.bf16.vlgmr.msrb.gmra.mxu2 %vm629_vm2, %v1150_v39  ;;  %v920_v37 = vrot.slane %v918_v4, 1 }
  0xc4   : > { %v5075_v53 = vrot.slane %v3973_v49, 7  ;;  %v5077_v21 = vrot.slane %v5076_v48, 7  ;;  %v5078_v35 = vrot.slane %v3712_v57, 7  ;;  %v4195_v20 = vsel %vm591_vm1, %v1364_v7, %v1366_v0 }
  0xc5   : > { %v4178_v17 = vrot.slane %v5074_v28, 1  ;;  %v4198_v39 = vsel %vm1147_vm4, %v1950_v51, %v1951_v23  ;;  %v1942_v19 = vpack.c.bf16 %v3981_v15, %v3981_v15  ;;  %v829_v49 = vor.u32 %v827_v38, %v825_v52  ;;  %v5082_v38 = vld [vmem:[#allocation31_spill] sm:$0xff] }
  0xc6   : > { %v4185_v24 = vsel %vm591_vm1, %v5075_v53, %v1114_v45  ;;  %v4192_v46 = vsel %vm591_vm1, %v5078_v35, %v5077_v21  ;;  %v831_v5 = vshll.u32 %v4145_v14, 16  ;;  %v5079_v0 = vrot.slane %v3904_v36, 1  ;;  %v5083_v53 = vld [vmem:[#allocation29_spill] sm:$0xff]  ;;  %v5085_v36 = vld [vmem:[#allocation8_spill] sm:$0xff] }
  0xc7   : > { %v1137_v45 = vpack.c.bf16 %v4166_v29, %v4185_v24  ;;  %v4215_v51 = vsel %vm1147_vm4, %v1878_v31, %v1880_v25  ;;  %v921_v52 = vsel %vm806_vm3, %v916_v3, %v920_v37  ;;  %v4219_v21 = vpack.c.bf16 %v4192_v46, %v785_v10 }
  0xc8   : > { %v4212_v7 = vsel %vm1147_vm4, %v5079_v0, %v1878_v31  ;;  %5081 = vst [vmem:[#allocation25_spill] sm:$0xff] %v4215_v51  ;;  %v1940_v28 = vpack.c.bf16 %v5082_v38, %v3936_v60  ;;  %v1868_v35 = vpack.c.bf16 %v5083_v53, %v5082_v38  ;;  %v5084_v4 = vrot.slane %v3622_v16, 7 }
  0xc9   : > { %5080 = vst [vmem:[#allocation26_spill] sm:$0xff] %v4212_v7  ;;  %v5086_v57 = vrot.slane %v5085_v36, 7  ;;  %v5090_v10 = vrot.slane %v3615_v12, 7  ;;  %v5091_v60 = vrot.slane %v3676_v55, 7  ;;  %v4249_v36 = vrot.slane %v1137_v45, 1 }
  0xca   : > { %v5088_v31 = vmov %v5084_v4  ;;  %v1953_v16 = vrot.slane %v1940_v28, 1  ;;  %3078 = vmatmul.msk.bf16.gmra.mxu0 %vm629_vm2, %v921_v52  ;;  %v5095_v52 = vld [vmem:[#allocation24_spill] sm:$0xff]  ;;  %v5097_v28 = vrot.slane %v3676_v55, 7  ;;  %v1957_v55 = vrot.slane %v1942_v19, 1 }
  0xcb   : > { %v4230_v0 = vsel %vm591_vm1, %v5086_v57, %v5084_v4  ;;  %v4235_v3 = vsel %vm591_vm1, %v5088_v31, %v2083_v27  ;;  %v4240_v51 = vsel %vm591_vm1, %v2083_v27, %v5090_v10  ;;  %v5092_v38 = vmov %v5090_v10  ;;  %v5093_v10 = vld [vmem:[#allocation22_spill] sm:$0xff] }
  0xcc   : > { %5087 = vst [vmem:[#allocation32_spill] sm:$0xff] %v4230_v0  ;;  %v4247_v7 = vsel %vm591_vm1, %v5092_v38, %v5091_v60  ;;  %v922_v57 = vshrl.u32 %v4082_v54, 16  ;;  %v1882_v4 = vrot.slane %v1868_v35, 1  ;;  %v4253_v31 = vrot.slane %v831_v5, 1 }
  0xcd   : > { %5089 = vst [vmem:[#allocation23_spill] sm:$0xff] %v4235_v3  ;;  %v4257_v27 = vpack.c.bf16 %v4235_v3, %v4230_v0  ;;  %v4263_v60 = vpack.c.bf16 %v4247_v7, %v4240_v51  ;;  %v4266_v45 = vsel %vm1147_vm4, %v1951_v23, %v1953_v16  ;;  %v5096_v5 = vrot.slane %v5095_v52, 7 }
  0xce   : > { %v4269_v54 = vsel %vm1147_vm4, %v1880_v25, %v1882_v4  ;;  %v5098_v38 = vrot.slane %v3744_v9, 7  ;;  %v926_v23 = vshll.u32 %v4219_v21, 16  ;;  %v2669_v9 = vpack.c.bf16 %v4000_v26, %v4000_v26 }
  0xcf   : > { %5094 = vst [vmem:[#allocation31_spill] sm:$0xff] %v4263_v60  ;;  %v4276_v35 = vsel %vm591_vm1, %v5097_v28, %v5096_v5  ;;  %v5099_v12 = vmov %v5096_v5  ;;  %v5102_v5 = vrot.slane %v3736_v44, 7  ;;  %v5108_v60 = vld [vmem:[#allocation33_spill] sm:$0xff]  ;;  %v5112_v44 = vpack.c.bf16 %v3981_v15, %v3978_v11 }
  0xd0   : > { %v4283_v0 = vsel %vm591_vm1, %v5099_v12, %v5098_v38  ;;  %v5103_v28 = vmov %v5098_v38  ;;  %v5105_v12 = vrot.slane %v3930_v63, 1  ;;  %v2667_v3 = vpack.c.bf16 %v5108_v60, %v5073_v43  ;;  %v5111_v43 = vld [vmem:[#allocation30_spill] sm:$0xff] }
  0xd1   : > { %5100 = vst [vmem:[#allocation29_spill] sm:$0xff] %v4283_v0  ;;  %v4288_v25 = vpack.c.bf16 %v4283_v0, %v4276_v35  ;;  %v4299_v52 = vsel %vm591_vm1, %v5103_v28, %v5102_v5  ;;  %v4318_v63 = vsel %vm1147_vm4, %v2605_v61, %v4178_v17  ;;  %v834_v5 = vsel %vm806_vm3, %v829_v49, %v4253_v31 }
  0xd2   : > { %5104 = vst [vmem:[#allocation22_spill] sm:$0xff] %v4299_v52  ;;  %v4304_v38 = vsel %vm1147_vm4, %v5105_v12, %v2605_v61  ;;  %v2680_v12 = vrot.slane %v2667_v3, 1  ;;  %v2595_v19 = vpack.c.bf16 %v5111_v43, %v5108_v60  ;;  %v924_v61 = vor.u32 %v922_v57, %v920_v37  ;;  %3073 = vmatmul.msk.bf16.gmra.mxu3 %vm629_vm2, %v4100_v47 }
  0xd3   : > { %5101 = vst [vmem:[#allocation8_spill] sm:$0xff] %v4288_v25  ;;  %v4308_v25 = vsel %vm1147_vm4, %v2677_v34, %v4151_v1  ;;  %v5110_v34 = vrot.slane %v5076_v48, 7  ;;  %v4335_v49 = vsel %vm1147_vm4, %v4102_v2, %v4249_v36  ;;  %v5114_v60 = vpack.c.bf16 %v4000_v26, %v3997_v50  ;;  %3083 = vmatmul.msk.bf16.gmra.mxu1 %vm629_vm2, %v834_v5 }
  0xd4   : > { %5106 = vst [vmem:[#allocation24_spill] sm:$0xff] %v4304_v38  ;;  %v4339_v3 = vsel %vm1147_vm4, %v4151_v1, %v2680_v12  ;;  %v1941_v2 = vpack.c.bf16 %v3978_v11, %v5083_v53  ;;  %v1869_v57 = vpack.c.bf16 %v3978_v11, %v3978_v11  ;;  %3088 = vmatmul.msk.bf16.gmra.mxu2 %vm629_vm2, %v4335_v49  ;;  %v3366_v1 = vmov 0.0|0.0  }
  0xd5   : > { %5107 = vst [vmem:[#allocation35_spill] sm:$0xff] %v4308_v25  ;;  %v798_v28 = vsel %vm591_vm1, %v5110_v34, 0.0  ;;  %v2015_v25 = vrot.slane %v5112_v44, 1  ;;  %v2609_v34 = vrot.slane %v2595_v19, 1  ;;  %v2742_v15 = vrot.slane %v5114_v60, 1 }
  0xd6   : > { %5109 = vst [vmem:[#allocation33_spill] sm:$0xff] %v4318_v63  ;;  %v928_v63 = vrot.slane %v926_v23, 1  ;;  %v990_v37 = vpack.c.bf16 %v798_v28, %v4192_v46  ;;  %v4354_v23 = vrot.slane %v3366_v1, 1  ;;  %v2668_v47 = vpack.c.bf16 %v3997_v50, %v5111_v43 }
  0xd7   : > { %5113 = vst [vmem:[#allocation30_spill] sm:$0xff] %v4339_v3  ;;  %v4358_v26 = vsel %vm1147_vm4, %v4178_v17, %v2609_v34  ;;  %v2596_v44 = vpack.c.bf16 %v3997_v50, %v3997_v50  ;;  %v2684_v53 = vrot.slane %v2669_v9, 1  ;;  %v5116_v19 = vrot.slane %v4069_v58, 7 }
  0xd8   : > { %5115 = vst [vmem:[#allocation36_spill] sm:$0xff] %v4358_v26  ;;  %v5117_v11 = vrot.slane %v4073_v13, 7  ;;  %v1955_v1 = vrot.slane %v1941_v2, 1  ;;  %v1884_v3 = vrot.slane %v1869_v57, 1  ;;  %v929_v38 = vsel %vm806_vm3, %v924_v61, %v928_v63 }
  0xd9   : > { %v835_v17 = vshrl.u32 %v4145_v14, 16  ;;  %v2682_v26 = vrot.slane %v2668_v47, 1  ;;  %v2611_v0 = vrot.slane %v2596_v44, 1  ;;  %v995_v43 = vshll.u32 %v990_v37, 16 }
  0xda   : > { %v4369_v60 = vsel %vm591_vm1, %v5117_v11, %v5116_v19  ;;  %v4374_v52 = vsel %vm1147_vm4, %v1953_v16, %v1955_v1  ;;  %v4377_v50 = vsel %vm1147_vm4, %v1882_v4, %v2015_v25  ;;  %v4380_v58 = vsel %vm1147_vm4, %v1955_v1, %v1957_v55  ;;  %3079 = vmatmul.msk.bf16.gmra.mxu0 %vm629_vm2, %v929_v38 }
  0xdb   : > { %v4383_v13 = vsel %vm1147_vm4, %v1882_v4, %v1884_v3  ;;  %v4387_v9 = vsel %vm1147_vm4, %v2015_v25, %v4354_v23  ;;  %v4390_v14 = vsel %vm1147_vm4, %v2680_v12, %v2682_v26  ;;  %v4393_v61 = vsel %vm1147_vm4, %v2609_v34, %v2742_v15 }
  0xdc   : > { %v4396_v16 = vsel %vm1147_vm4, %v2609_v34, %v2611_v0  ;;  %v4399_v2 = vsel %vm1147_vm4, %v2682_v26, %v2684_v53  ;;  %v4403_v4 = vsel %vm1147_vm4, %v2742_v15, %v4354_v23  ;;  %v1138_v25 = vpack.c.bf16 %v4173_v41, %v4369_v60 }
  0xdd   : > { %5118 = vst [vmem:[#allocation37_spill] sm:$0xff] %v4403_v4  ;;  %v837_v55 = vor.u32 %v835_v17, %v4253_v31  ;;  %v997_v12 = vrot.slane %v995_v43, 1  ;;  %v899_v3 = vpack.c.bf16 %v798_v28, %v798_v28  ;;  %v1100_v0 = vmul.f32 %v3949_v40, %v5076_v48  ;;  %v3121_v17 = vld [vmem:[%s4942_s3 + $0x1a] sm:$0x3] }
  0xde   : > { %v4409_v57 = vrot.slane %v1138_v25, 1  ;;  %v930_v26 = vshrl.u32 %v4219_v21, 16  ;;  %v803_v38 = vpack.c.bf16 %v4192_v46, %v4192_v46  ;;  %v3111_v21 = vld [vmem:[%s4942_s3 + $0x1e] sm:$0x3]  ;;  %v5119_v44 = vrot.slane %v4012_v33, 7 }
  0xdf   : > { %v998_v34 = vsel %vm806_vm3, %v837_v55, %v997_v12  ;;  %v934_v15 = vshll.u32 %v899_v3, 16  ;;  %v1122_v28 = vrot.slane %v1100_v0, 7  ;;  %v999_v46 = vshrl.u32 %v990_v37, 16  ;;  %v3116_v33 = vld [vmem:[%s4942_s3 + $0x14] sm:$0x3] }
  0xe0   : > { %v1154_v31 = vsel %vm1147_vm4, %v4249_v36, %v4409_v57  ;;  %v932_v48 = vor.u32 %v930_v26, %v928_v63  ;;  %v839_v47 = vshll.u32 %v803_v38, 16  ;;  %v3126_v63 = vld [vmem:[%s4942_s3 + $0x20] sm:$0x3]  ;;  %v5120_v43 = vmov 0   ;;  %v5121_v38 = vld [vmem:[#allocation27_spill] sm:$0xff] }
  0xe1   : > { %v936_v40 = vrot.slane %v934_v15, 1  ;;  %v1123_v36 = vsel %vm591_vm1, %v5119_v44, %v1122_v28  ;;  %v1784_v19 = vsel %vm642_vm0, %v3126_v63, 0  ;;  %v1001_v37 = vor.u32 %v999_v46, %v997_v12 }
  0xe2   : > { %3074 = vmatmul.msk.bf16.gmra.mxu3 %vm629_vm2, %v834_v5  ;;  %v1502_v5 = vsel %vm642_vm0, %v3111_v21, 0  ;;  %1793 = vmatpush.bf16.msrb.mxu2 %v1784_v19  ;;  %v841_v11 = vrot.slane %v839_v47, 1  ;;  %v1139_v1 = vpack.c.bf16 %v1123_v36, %v1123_v36  ;;  %v4443_v25 = vrot.slane %v5120_v43, 1 }
  0xe3   : > { %3084 = vmatmul.msk.bf16.gmra.mxu1 %vm629_vm2, %v998_v34  ;;  %1511 = vmatpush.bf16.msrb.mxu3 %v1502_v5  ;;  %v937_v53 = vsel %vm806_vm3, %v932_v48, %v936_v40  ;;  %v1631_v3 = vsel %vm642_vm0, %v3116_v33, 0  ;;  %v1726_v0 = vsel %vm642_vm0, %v3121_v17, 0  ;;  %v1209_v48 = vpack.c.bf16 %v4049_v6, %v5121_v38  ;;  %v5122_v5 = vld [vmem:[#allocation14_spill] sm:$0xff]  ;;  %v5125_v33 = vld [vmem:[#allocation20_spill] sm:$0xff]  ;;  %v5126_v17 = vld [vmem:[#allocation19_spill] sm:$0xff] }
  0xe4   : > { %3089 = vmatmul.msk.bf16.gmra.mxu2 %vm629_vm2, %v1154_v31  ;;  %1640 = vmatpush.bf16.msrb.mxu0 %v1631_v3  ;;  %v1155_v34 = vrot.slane %v1139_v1, 1  ;;  %v842_v26 = vsel %vm806_vm3, %v837_v55, %v841_v11  ;;  %v1006_v15 = vsel %vm806_vm3, %v1001_v37, %v4443_v25  ;;  %v1210_v40 = vpack.c.bf16 %v4185_v24, %v4054_v30 }
  0xe5   : > { %1735 = vmatpush.bf16.msrb.mxu1 %v1726_v0  ;;  %v1221_v55 = vrot.slane %v1209_v48, 1  ;;  %v1379_v47 = vpack.c.bf16 %v5122_v5, %v5038_v62  ;;  %v1211_v24 = vpack.c.bf16 %v4369_v60, %v4166_v29  ;;  %v1134_v46 = vsel %vm591_vm1, %v1122_v28, 0.0 }
  0xe6   : > { %v1156_v12 = vsel %vm1147_vm4, %v4409_v57, %v1155_v34  ;;  %v1222_v21 = vrot.slane %v1210_v40, 1  ;;  %v1282_v11 = vpack.c.bf16 %v1134_v46, %v1123_v36  ;;  %v5127_v37 = vpack.c.bf16 %v3731_v59, %v5126_v17 }
  0xe8   : > { %v1223_v44 = vsel %vm1147_vm4, %v1221_v55, %v1222_v21  ;;  %v1287_v29 = vrot.slane %v1282_v11, 1 }
  0xea   : > { %3080 = vmatmul.msk.bf16.gmra.mxu0 %vm629_vm2, %v937_v53  ;;  %v5123_v53 = vld [vmem:[#allocation15_spill] sm:$0xff] }
  0xeb   : > { %v5124_v6 = vpack.c.bf16 %v5123_v53, %v5122_v5 }
  0xf2   : > { %3075 = vmatmul.msk.bf16.gmra.mxu3 %vm629_vm2, %v842_v26  ;;  %v1288_v26 = vsel %vm1147_vm4, %v4409_v57, %v1287_v29  ;;  %v3131_v57 = vld [vmem:[%s4942_s3 + $0x16] sm:$0x3] }
  0xf3   : > { %3085 = vmatmul.msk.bf16.gmra.mxu1 %vm629_vm2, %v1006_v15  ;;  %v1212_v15 = vpack.c.bf16 %v1123_v36, %v4173_v41  ;;  %v5129_v41 = vpack.c.bf16 %v4120_v8, %v3802_v42 }
  0xf4   : > { %3090 = vmatmul.msk.bf16.gmra.mxu2 %vm629_vm2, %v1156_v12 }
  0xf5   : > { %v1226_v59 = vrot.slane %v1212_v15, 1 }
  0xfa   : > { %3097 = vmatmul.msk.bf16.vlgmr.msra.gmra.mxu0 %vm629_vm2, %v4335_v49  ;;  %v1224_v49 = vrot.slane %v1211_v24, 1  ;;  %v5131_v24 = vld [vmem:[#allocation16_spill] sm:$0xff] }
  0xfc   : > { %v1225_v1 = vsel %vm1147_vm4, %v1222_v21, %v1224_v49  ;;  %v5128_v21 = vld [vmem:[#allocation11_spill] sm:$0xff]  ;;  %v1227_v53 = vsel %vm1147_vm4, %v1224_v49, %v1226_v59  ;;  %v1552_v49 = vrot.slane %v5131_v24, 7 }
  0xfd   : > { %v1549_v5 = vrot.slane %v5128_v21, 7 }
  0xff   : > { %v1573_v36 = vsel %vm591_vm1, 0.0, %v1549_v5 }
 0x100   : > { %v1575_v8 = vpack.c.bf16 %v1573_v36, %v5038_v62 }
 0x102   : > { %3092 = vmatmul.msk.bf16.vlgmr.msra.gmra.mxu3 %vm629_vm2, %v1223_v44  ;;  %v1583_v24 = vshrl.u32 %v1575_v8, 16 }
 0x103   : > { %3102 = vmatmul.msk.bf16.vlgmr.msra.gmra.mxu1 %vm629_vm2, %v1379_v47 }
 0x104   : > { %3107 = vmatmul.msk.bf16.vlgmr.msra.gmra.mxu2 %vm629_vm2, %v5124_v6  ;;  %v5130_v6 = vld [vmem:[#allocation12_spill] sm:$0xff] }
 0x107   : > { %v655_v30 = vpop.f32.mrf.mxu0 }
 0x10a   : > { %3098 = vmatmul.msk.bf16.gmra.mxu0 %vm629_vm2, %v1154_v31 }
 0x10f   : > { %v657_v63 = vpop.f32.mrf.mxu0  ;;  %v704_v19 = vpop.f32.mrf.mxu1 }
 0x112   : > { %3093 = vmatmul.msk.bf16.gmra.mxu3 %vm629_vm2, %v1225_v1 }
 0x113   : > { %3103 = vmatmul.msk.bf16.gmra.mxu1 %vm629_vm2, %v5125_v33 }
 0x114   : > { %3108 = vmatmul.msk.bf16.gmra.mxu2 %vm629_vm2, %v5127_v37 }
 0x115   : > { %v660_v60 = vpop.f32.mrf.mxu3 }
 0x116   : > { %v705_v31 = vadd.f32 %v704_v19, %v660_v60  ;;  %v742_v43 = vpop.f32.mrf.mxu2 }
 0x117   : > { %v699_v28 = vpop.f32.mrf.mxu0  ;;  %v706_v3 = vpop.f32.mrf.mxu1 }
 0x118   : > { %v4482_v0 = vadd.f32 %v742_v43, %v705_v31  ;;  %v700_v34 = vadd.f32 %v699_v28, %v655_v30  ;;  %v1550_v30 = vrot.slane %v5130_v6, 7  ;;  %v1213_v28 = vpack.c.bf16 %v1134_v46, %v1134_v46 }
 0x11a   : > { %3099 = vmatmul.msk.bf16.gmra.mxu0 %vm629_vm2, %v1288_v26  ;;  %v1551_v31 = vsel %vm591_vm1, %v1549_v5, %v1550_v30  ;;  %v1553_v43 = vsel %vm591_vm1, %v1550_v30, %v1552_v49  ;;  %v5132_v26 = vld [vmem:[#allocation13_spill] sm:$0xff]  ;;  %v1228_v46 = vrot.slane %v1213_v28, 1 }
 0x11b   : > { %v1554_v15 = vrot.slane %v5132_v26, 7  ;;  %v5134_v26 = vld [vmem:[#allocation34_spill] sm:$0xff] }
 0x11d   : > { %v662_v12 = vpop.f32.mrf.mxu3  ;;  %v1555_v28 = vsel %vm591_vm1, %v1552_v49, %v1554_v15 }
 0x11e   : > { %v707_v38 = vadd.f32 %v706_v3, %v662_v12  ;;  %v744_v48 = vpop.f32.mrf.mxu2  ;;  %v1290_v3 = vsel %vm1147_vm4, %v1287_v29, %v4354_v23  ;;  %v5133_v12 = vld [vmem:[#allocation18_spill] sm:$0xff] }
 0x11f   : > { %v701_v40 = vpop.f32.mrf.mxu0  ;;  %v709_v55 = vpop.f32.mrf.mxu1  ;;  %v3141_v23 = vld [vmem:[%s4942_s3 + $0x22] sm:$0x3] }
 0x120   : > { %v4489_v47 = vadd.f32 %v744_v48, %v707_v38  ;;  %v702_v44 = vadd.f32 %v701_v40, %v657_v63  ;;  %v1899_v63 = vsel %vm642_vm0, %v3131_v57, 0  ;;  %v1556_v38 = vrot.slane %v5133_v12, 7 }
 0x121   : > { %1908 = vmatpush.bf16.msra.mxu3 %v1899_v63  ;;  %v1576_v48 = vpack.c.bf16 %v1553_v43, %v1551_v31  ;;  %v1585_v40 = vshll.u32 %v1575_v8, 16 }
 0x122   : > { %3094 = vmatmul.msk.bf16.gmra.mxu3 %vm629_vm2, %v1227_v53  ;;  %v2025_v53 = vsel %vm642_vm0, %v3141_v23, 0 }
 0x123   : > { %3104 = vmatmul.msk.bf16.gmra.mxu1 %vm629_vm2, %v4113_v32  ;;  %v1587_v63 = vrot.slane %v1585_v40, 1 }
 0x124   : > { %3109 = vmatmul.msk.bf16.gmra.mxu2 %vm629_vm2, %v5129_v41  ;;  %2034 = vmatpush.bf16.msra.mxu1 %v2025_v53 }
 0x125   : > { %v665_v19 = vpop.f32.mrf.mxu3 }
 0x126   : > { %v710_v11 = vadd.f32 %v709_v55, %v665_v19  ;;  %v747_v1 = vpop.f32.mrf.mxu2  ;;  %v3136_v55 = vld [vmem:[%s4942_s3 + $0x1c] sm:$0x3]  ;;  %v1590_v19 = vshll.u32 %v1576_v48, 16 }
 0x127   : > { %v711_v17 = vpop.f32.mrf.mxu1  ;;  %v737_v42 = vpop.f32.mrf.mxu0  ;;  %v1972_v5 = vsel %vm642_vm0, %v3136_v55, 0 }
 0x128   : > { %v4507_v37 = vadd.f32 %v747_v1, %v710_v11  ;;  %v4509_v60 = vadd.f32 %v737_v42, %v700_v34  ;;  %v3146_v34 = vld [vmem:[%s4942_s3 + $0x24] sm:$0x3]  ;;  %1981 = vmatpush.bf16.msra.mxu0 %v1972_v5  ;;  %v1670_v11 = vpack.c.bf16 %v1551_v31, %v1573_v36  ;;  %v5135_v36 = vpack.c.bf16 %v4195_v20, %v4125_v56 }
 0x129   : > { %v2125_v21 = vsel %vm642_vm0, %v3146_v34, 0  ;;  %v1592_v8 = vrot.slane %v1590_v19, 1  ;;  %v1671_v31 = vpack.c.bf16 %v1555_v28, %v1553_v43  ;;  %v1594_v56 = vshrl.u32 %v1576_v48, 16  ;;  %v5137_v19 = vld [vmem:[#allocation17_spill] sm:$0xff] }
 0x12a   : > { %3100 = vmatmul.msk.bf16.gmra.mxu0 %vm629_vm2, %v1290_v3  ;;  %2134 = vmatpush.bf16.msra.mxu2 %v2125_v21  ;;  %v1229_v3 = vsel %vm1147_vm4, %v1226_v59, %v1228_v46  ;;  %v1680_v49 = vshll.u32 %v1670_v11, 16 }
 0x12b   : > { %v1685_v5 = vshll.u32 %v1671_v31, 16  ;;  %v1689_v12 = vshrl.u32 %v1671_v31, 16 }
 0x12c   : > { %v1682_v21 = vrot.slane %v1680_v49, 1 }
 0x12d   : > { %v667_v29 = vpop.f32.mrf.mxu3  ;;  %v1687_v43 = vrot.slane %v1685_v5, 1 }
 0x12e   : > { %v712_v41 = vadd.f32 %v711_v17, %v667_v29  ;;  %v749_v57 = vpop.f32.mrf.mxu2  ;;  %v1557_v17 = vsel %vm591_vm1, %v1554_v15, %v1556_v38  ;;  %v1678_v29 = vshrl.u32 %v1670_v11, 16 }
 0x12f   : > { %v714_v6 = vpop.f32.mrf.mxu1  ;;  %v739_v30 = vpop.f32.mrf.mxu0  ;;  %v1577_v40 = vpack.c.bf16 %v1557_v17, %v1555_v28  ;;  %v1560_v28 = vrot.slane %v5137_v19, 7 }
 0x130   : > { %v4530_v1 = vadd.f32 %v749_v57, %v712_v41  ;;  %v4532_v42 = vadd.f32 %v739_v30, %v702_v44  ;;  %v1588_v44 = vor.u32 %v1587_v63, %v1583_v24  ;;  %v1683_v57 = vor.u32 %v1682_v21, %v1678_v29  ;;  %v5136_v30 = vld [vmem:[#allocation21_spill] sm:$0xff] }
 0x131   : > { %v1598_v41 = vshll.u32 %v1577_v40, 16  ;;  %v1558_v24 = vrot.slane %v5136_v30, 7  ;;  %v1596_v63 = vor.u32 %v1594_v56, %v1592_v8  ;;  %v1602_v30 = vshrl.u32 %v1577_v40, 16 }
 0x132   : > { %3095 = vmatmul.msk.bf16.gmra.mxu3 %vm629_vm2, %v1229_v3  ;;  %v1593_v46 = vsel %vm806_vm3, %v1588_v44, %v1592_v8 }
 0x133   : > { %3105 = vmatmul.msk.bf16.gmra.mxu1 %vm629_vm2, %v5134_v26  ;;  %v1561_v8 = vsel %vm591_vm1, %v1558_v24, %v1560_v28 }
 0x134   : > { %3110 = vmatmul.msk.bf16.gmra.mxu2 %vm629_vm2, %v5135_v36 }
 0x135   : > { %v670_v59 = vpop.f32.mrf.mxu3 }
 0x136   : > { %v715_v34 = vadd.f32 %v714_v6, %v670_v59  ;;  %v752_v55 = vpop.f32.mrf.mxu2  ;;  %v1600_v6 = vrot.slane %v1598_v41, 1  ;;  %v1688_v59 = vsel %vm806_vm3, %v1683_v57, %v1687_v43 }
 0x137   : > { %v716_v23 = vpop.f32.mrf.mxu1  ;;  %v962_v15 = vpop.f32.mrf.mxu0 }
 0x138   : > { %v4547_v53 = vadd.f32 %v752_v55, %v715_v34  ;;  %v1601_v48 = vsel %vm806_vm3, %v1596_v63, %v1600_v6  ;;  %v1559_v55 = vsel %vm591_vm1, %v1556_v38, %v1558_v24 }
 0x13a   : > { %3117 = vmatmul.msk.bf16.vlgmr.msrb.gmra.mxu0 %vm629_vm2, %v1593_v46  ;;  %v1578_v46 = vpack.c.bf16 %v1561_v8, %v1559_v55 }
 0x13c   : > { %v1606_v24 = vshll.u32 %v1578_v46, 16 }
 0x13d   : > { %v672_v3 = vpop.f32.mrf.mxu3 }
 0x13e   : > { %v717_v36 = vadd.f32 %v716_v23, %v672_v3  ;;  %v754_v44 = vpop.f32.mrf.mxu2  ;;  %v1672_v23 = vpack.c.bf16 %v1559_v55, %v1557_v17  ;;  %v5138_v3 = vld [vmem:[#allocation28_spill] sm:$0xff] }
 0x13f   : > { %v964_v11 = vpop.f32.mrf.mxu0  ;;  %v1025_v49 = vpop.f32.mrf.mxu1 }
 0x140   : > { %v4553_v34 = vadd.f32 %v754_v44, %v717_v36  ;;  %v1693_v57 = vshll.u32 %v1672_v23, 16  ;;  %v1562_v36 = vrot.slane %v5138_v3, 7  ;;  %v1604_v44 = vor.u32 %v1602_v30, %v1600_v6 }
 0x141   : > { %v1697_v30 = vshrl.u32 %v1672_v23, 16 }
 0x142   : > { %3112 = vmatmul.msk.bf16.vlgmr.msrb.gmra.mxu3 %vm629_vm2, %v5125_v33  ;;  %v1691_v33 = vor.u32 %v1689_v12, %v1687_v43  ;;  %v1695_v19 = vrot.slane %v1693_v57, 1  ;;  %v1563_v43 = vsel %vm591_vm1, %v1560_v28, %v1562_v36 }
 0x143   : > { %3122 = vmatmul.msk.bf16.vlgmr.msrb.gmra.mxu1 %vm629_vm2, %v1688_v59  ;;  %v1608_v59 = vrot.slane %v1606_v24, 1 }
 0x144   : > { %3127 = vmatmul.msk.bf16.vlgmr.msrb.gmra.mxu2 %vm629_vm2, %v1601_v48  ;;  %v1696_v40 = vsel %vm806_vm3, %v1691_v33, %v1695_v19  ;;  %v1699_v3 = vor.u32 %v1697_v30, %v1695_v19 }
 0x145   : > { %v867_v29 = vpop.f32.mrf.mxu3 }
 0x146   : > { %v887_v21 = vadd.f32 %v867_v29, %v4509_v60  ;;  %v1181_v5 = vpop.f32.mrf.mxu2 }
 0x147   : > { %v967_v56 = vpop.f32.mrf.mxu0  ;;  %v1027_v41 = vpop.f32.mrf.mxu1 }
 0x148   : > { %v982_v38 = vadd.f32 %v962_v15, %v887_v21 }
 0x14a   : > { %v1045_v63 = vadd.f32 %v1025_v49, %v982_v38  ;;  %3118 = vmatmul.msk.bf16.gmra.mxu0 %vm629_vm2, %v1601_v48  ;;  %v1609_v49 = vsel %vm806_vm3, %v1604_v44, %v1608_v59  ;;  %v1574_v48 = vsel %vm591_vm1, %v1562_v36, 0.0 }
 0x14c   : > { %v4567_v17 = vadd.f32 %v1181_v5, %v1045_v63  ;;  %v1765_v5 = vpack.c.bf16 %v1574_v48, %v1563_v43  ;;  %v1610_v63 = vshrl.u32 %v1578_v46, 16 }
 0x14d   : > { %v869_v60 = vpop.f32.mrf.mxu3 }
 0x14e   : > { %v888_v55 = vadd.f32 %v869_v60, %v4532_v42  ;;  %v1183_v29 = vpop.f32.mrf.mxu2  ;;  %v1673_v42 = vpack.c.bf16 %v1563_v43, %v1561_v8  ;;  %v1769_v33 = vshll.u32 %v1765_v5, 16  ;;  %v1579_v8 = vpack.c.bf16 %v1563_v43, %v1563_v43  ;;  %v3151_v43 = vld [vmem:[%s4942_s3 + $0x2a] sm:$0x3] }
 0x14f   : > { %v969_v31 = vpop.f32.mrf.mxu0  ;;  %v1612_v60 = vor.u32 %v1610_v63, %v1608_v59  ;;  %v1674_v59 = vpack.c.bf16 %v1574_v48, %v1574_v48  ;;  %v1773_v63 = vshrl.u32 %v1765_v5, 16 }
 0x150   : > { %v1030_v4 = vpop.f32.mrf.mxu1  ;;  %v983_v15 = vadd.f32 %v964_v11, %v888_v55  ;;  %v1701_v24 = vshll.u32 %v1673_v42, 16  ;;  %v1771_v55 = vrot.slane %v1769_v33, 1  ;;  %v1614_v46 = vshll.u32 %v1579_v8, 16 }
 0x152   : > { %v1046_v21 = vadd.f32 %v1027_v41, %v983_v15  ;;  %3113 = vmatmul.msk.bf16.gmra.mxu3 %vm629_vm2, %v4113_v32  ;;  %v1703_v36 = vrot.slane %v1701_v24, 1  ;;  %v1616_v19 = vrot.slane %v1614_v46, 1  ;;  %v1705_v24 = vshrl.u32 %v1673_v42, 16  ;;  %v3161_v42 = vld [vmem:[%s4942_s3 + $0x26] sm:$0x3] }
 0x153   : > { %3123 = vmatmul.msk.bf16.gmra.mxu1 %vm629_vm2, %v1696_v40 }
 0x154   : > { %3128 = vmatmul.msk.bf16.gmra.mxu2 %vm629_vm2, %v1609_v49  ;;  %v4578_v6 = vadd.f32 %v1183_v29, %v1046_v21  ;;  %v1617_v30 = vsel %vm806_vm3, %v1612_v60, %v1616_v19  ;;  %v5139_v19 = vpack.c.bf16 %v4085_v22, %v4195_v20 }
 0x155   : > { %v872_v12 = vpop.f32.mrf.mxu3 }
 0x156   : > { %v889_v11 = vadd.f32 %v872_v12, %v4482_v0 }
 0x157   : > { %v1186_v57 = vpop.f32.mrf.mxu2  ;;  %v972_v38 = vpop.f32.mrf.mxu0 }
 0x158   : > { %v1032_v28 = vpop.f32.mrf.mxu1  ;;  %v984_v41 = vadd.f32 %v967_v56, %v889_v11  ;;  %v1704_v56 = vsel %vm806_vm3, %v1699_v3, %v1703_v36 }
 0x15a   : > { %v1047_v32 = vadd.f32 %v1030_v4, %v984_v41  ;;  %3119 = vmatmul.msk.bf16.gmra.mxu0 %vm629_vm2, %v1609_v49  ;;  %v1772_v4 = vsel %vm806_vm3, %v1612_v60, %v1771_v55  ;;  %v1709_v41 = vshll.u32 %v1674_v59, 16  ;;  %v3156_v60 = vld [vmem:[%s4942_s3 + $0x30] sm:$0x3] }
 0x15c   : > { %v4582_v44 = vadd.f32 %v1186_v57, %v1047_v32  ;;  %v1707_v32 = vor.u32 %v1705_v24, %v1703_v36  ;;  %v1711_v3 = vrot.slane %v1709_v41, 1  ;;  %v2229_v36 = vsel %vm642_vm0, %v3156_v60, 0 }
 0x15d   : > { %v874_v29 = vpop.f32.mrf.mxu3  ;;  %2238 = vmatpush.bf16.msrb.mxu0 %v2229_v36 }
 0x15e   : > { %v890_v0 = vadd.f32 %v874_v29, %v4489_v47  ;;  %v1775_v29 = vor.u32 %v1773_v63, %v1771_v55  ;;  %v1712_v46 = vsel %vm806_vm3, %v1707_v32, %v1711_v3 }
 0x15f   : > { %v1188_v40 = vpop.f32.mrf.mxu2  ;;  %v974_v15 = vpop.f32.mrf.mxu0 }
 0x160   : > { %v1035_v23 = vpop.f32.mrf.mxu1  ;;  %v985_v21 = vadd.f32 %v969_v31, %v890_v0  ;;  %v2183_v31 = vsel %vm642_vm0, %v3151_v43, 0  ;;  %v2358_v0 = vsel %vm642_vm0, %v3161_v42, 0 }
 0x161   : > { %2192 = vmatpush.bf16.msrb.mxu3 %v2183_v31  ;;  %2367 = vmatpush.bf16.msrb.mxu1 %v2358_v0 }
 0x162   : > { %v1048_v49 = vadd.f32 %v1032_v28, %v985_v21  ;;  %3114 = vmatmul.msk.bf16.gmra.mxu3 %vm629_vm2, %v5134_v26 }
 0x163   : > { %3124 = vmatmul.msk.bf16.gmra.mxu1 %vm629_vm2, %v1704_v56 }
 0x164   : > { %3129 = vmatmul.msk.bf16.gmra.mxu2 %vm629_vm2, %v1772_v4  ;;  %v4591_v47 = vadd.f32 %v1188_v40, %v1048_v49  ;;  %v1776_v4 = vsel %vm806_vm3, %v1775_v29, %v4443_v25 }
 0x165   : > { %v877_v12 = vpop.f32.mrf.mxu3 }
 0x166   : > { %v891_v11 = vadd.f32 %v877_v12, %v4507_v37  ;;  %v3166_v37 = vld [vmem:[%s4942_s3 + $0x2c] sm:$0x3] }
 0x167   : > { %v1191_v57 = vpop.f32.mrf.mxu2  ;;  %v977_v26 = vpop.f32.mrf.mxu0 }
 0x168   : > { %v1037_v28 = vpop.f32.mrf.mxu1  ;;  %v986_v48 = vadd.f32 %v972_v38, %v891_v11  ;;  %v2453_v38 = vsel %vm642_vm0, %v3166_v37, 0 }
 0x169   : > { %2462 = vmatpush.bf16.msrb.mxu2 %v2453_v38 }
 0x16a   : > { %v1049_v33 = vadd.f32 %v1035_v23, %v986_v48  ;;  %3120 = vmatmul.msk.bf16.gmra.mxu0 %vm629_vm2, %v1617_v30 }
 0x16c   : > { %v4600_v8 = vadd.f32 %v1191_v57, %v1049_v33  ;;  %v5140_v33 = vld [vmem:[#allocation26_spill] sm:$0xff] }
 0x16d   : > { %v879_v5 = vpop.f32.mrf.mxu3 }
 0x16e   : > { %v892_v55 = vadd.f32 %v879_v5, %v4530_v1 }
 0x16f   : > { %v1193_v40 = vpop.f32.mrf.mxu2  ;;  %v979_v23 = vpop.f32.mrf.mxu0 }
 0x170   : > { %v1040_v56 = vpop.f32.mrf.mxu1  ;;  %v987_v21 = vadd.f32 %v974_v15, %v892_v55 }
 0x172   : > { %v1050_v49 = vadd.f32 %v1037_v28, %v987_v21  ;;  %3115 = vmatmul.msk.bf16.gmra.mxu3 %vm629_vm2, %v5139_v19  ;;  %v5142_v19 = vld [vmem:[#allocation2_spill] sm:$0xff] }
 0x173   : > { %3125 = vmatmul.msk.bf16.gmra.mxu1 %vm629_vm2, %v1712_v46 }
 0x174   : > { %3130 = vmatmul.msk.bf16.gmra.mxu2 %vm629_vm2, %v1776_v4  ;;  %v4624_v1 = vadd.f32 %v1193_v40, %v1050_v49 }
 0x175   : > { %v882_v59 = vpop.f32.mrf.mxu3 }
 0x176   : > { %v893_v43 = vadd.f32 %v882_v59, %v4547_v53  ;;  %v2106_v53 = vpack.c.bf16 %v5093_v10, %v5038_v62  ;;  %v2276_v59 = vrot.slane %v5142_v19, 7 }
 0x177   : > { %v1196_v12 = vpop.f32.mrf.mxu2  ;;  %v1309_v31 = vpop.f32.mrf.mxu0 }
 0x178   : > { %v1042_v15 = vpop.f32.mrf.mxu1  ;;  %v988_v11 = vadd.f32 %v977_v26, %v893_v43  ;;  %v5141_v26 = vld [vmem:[#allocation25_spill] sm:$0xff] }
 0x17a   : > { %v1051_v57 = vadd.f32 %v1040_v56, %v988_v11  ;;  %3137 = vmatmul.msk.bf16.vlgmr.msra.gmra.mxu0 %vm629_vm2, %v4198_v39 }
 0x17c   : > { %v4629_v22 = vadd.f32 %v1196_v12, %v1051_v57 }
 0x17d   : > { %v884_v20 = vpop.f32.mrf.mxu3 }
 0x17e   : > { %v894_v28 = vadd.f32 %v884_v20, %v4553_v34 }
 0x17f   : > { %v1198_v30 = vpop.f32.mrf.mxu2  ;;  %v1311_v24 = vpop.f32.mrf.mxu0 }
 0x180   : > { %v1409_v41 = vpop.f32.mrf.mxu1  ;;  %v989_v48 = vadd.f32 %v979_v23, %v894_v28  ;;  %v5143_v28 = vld [vmem:[#allocation4_spill] sm:$0xff] }
 0x182   : > { %v1052_v63 = vadd.f32 %v1042_v15, %v989_v48  ;;  %3132 = vmatmul.msk.bf16.vlgmr.msra.gmra.mxu3 %vm629_vm2, %v5140_v33 }
 0x183   : > { %3142 = vmatmul.msk.bf16.vlgmr.msra.gmra.mxu1 %vm629_vm2, %v5141_v26 }
 0x184   : > { %3147 = vmatmul.msk.bf16.vlgmr.msra.gmra.mxu2 %vm629_vm2, %v2106_v53  ;;  %v4639_v39 = vadd.f32 %v1198_v30, %v1052_v63  ;;  %v2277_v30 = vrot.slane %v5143_v28, 7  ;;  %v5145_v63 = vld [vmem:[#allocation5_spill] sm:$0xff] }
 0x185   : > { %v1254_v32 = vpop.f32.mrf.mxu3  ;;  %v2281_v33 = vrot.slane %v5145_v63, 7 }
 0x186   : > { %v1274_v34 = vadd.f32 %v1254_v32, %v4567_v17  ;;  %v2278_v32 = vsel %vm591_vm1, %v2276_v59, %v2277_v30 }
 0x187   : > { %v1467_v3 = vpop.f32.mrf.mxu2  ;;  %v1314_v29 = vpop.f32.mrf.mxu0 }
 0x188   : > { %v1411_v37 = vpop.f32.mrf.mxu1  ;;  %v1329_v60 = vadd.f32 %v1309_v31, %v1274_v34  ;;  %v2300_v31 = vsel %vm591_vm1, 0.0, %v2276_v59 }
 0x189   : > { %v2302_v53 = vpack.c.bf16 %v2300_v31, %v5038_v62  ;;  %v3171_v62 = vld [vmem:[%s4942_s3 + $0x32] sm:$0x3] }
 0x18a   : > { %v1429_v42 = vadd.f32 %v1409_v41, %v1329_v60  ;;  %3138 = vmatmul.msk.bf16.gmra.mxu0 %vm629_vm2, %v4266_v45 }
 0x18c   : > { %v4644_v5 = vadd.f32 %v1467_v3, %v1429_v42  ;;  %v2310_v3 = vshrl.u32 %v2302_v53, 16 }
 0x18d   : > { %v1256_v38 = vpop.f32.mrf.mxu3 }
 0x18e   : > { %v1275_v36 = vadd.f32 %v1256_v38, %v4578_v6 }
 0x18f   : > { %v1469_v0 = vpop.f32.mrf.mxu2  ;;  %v1316_v55 = vpop.f32.mrf.mxu0 }
 0x190   : > { %v1414_v40 = vpop.f32.mrf.mxu1  ;;  %v1330_v23 = vadd.f32 %v1311_v24, %v1275_v36  ;;  %v5144_v24 = vld [vmem:[#allocation7_spill] sm:$0xff] }
 0x191   : > { %v2279_v41 = vrot.slane %v5144_v24, 7 }
 0x192   : > { %v1430_v56 = vadd.f32 %v1411_v37, %v1330_v23  ;;  %3133 = vmatmul.msk.bf16.gmra.mxu3 %vm629_vm2, %v5141_v26 }
 0x193   : > { %3143 = vmatmul.msk.bf16.gmra.mxu1 %vm629_vm2, %v4269_v54  ;;  %v2280_v34 = vsel %vm591_vm1, %v2277_v30, %v2279_v41  ;;  %v2282_v60 = vsel %vm591_vm1, %v2279_v41, %v2281_v33 }
 0x194   : > { %3148 = vmatmul.msk.bf16.gmra.mxu2 %vm629_vm2, %v4257_v27  ;;  %v4653_v45 = vadd.f32 %v1469_v0, %v1430_v56  ;;  %v2303_v37 = vpack.c.bf16 %v2280_v34, %v2278_v32  ;;  %v2398_v36 = vpack.c.bf16 %v2282_v60, %v2280_v34  ;;  %v2511_v0 = vsel %vm642_vm0, %v3171_v62, 0 }
 0x195   : > { %v1259_v17 = vpop.f32.mrf.mxu3  ;;  %2520 = vmatpush.bf16.msra.mxu3 %v2511_v0 }
 0x196   : > { %v1276_v46 = vadd.f32 %v1259_v17, %v4582_v44  ;;  %v2317_v56 = vshll.u32 %v2303_v37, 16 }
 0x197   : > { %v1472_v6 = vpop.f32.mrf.mxu2  ;;  %v1319_v21 = vpop.f32.mrf.mxu0 }
 0x198   : > { %v1416_v4 = vpop.f32.mrf.mxu1  ;;  %v1331_v49 = vadd.f32 %v1314_v29, %v1276_v46  ;;  %v2319_v19 = vrot.slane %v2317_v56, 1 }
 0x19a   : > { %v1431_v43 = vadd.f32 %v1414_v40, %v1331_v49  ;;  %3139 = vmatmul.msk.bf16.gmra.mxu0 %vm629_vm2, %v4374_v52 }
 0x19c   : > { %v4659_v12 = vadd.f32 %v1472_v6, %v1431_v43 }
 0x19d   : > { %v1261_v15 = vpop.f32.mrf.mxu3 }
 0x19e   : > { %v1277_v11 = vadd.f32 %v1261_v15, %v4591_v47  ;;  %v5146_v47 = vld [vmem:[#allocation31_spill] sm:$0xff] }
 0x19f   : > { %v1474_v57 = vpop.f32.mrf.mxu2  ;;  %v1321_v20 = vpop.f32.mrf.mxu0 }
 0x1a0   : > { %v1419_v44 = vpop.f32.mrf.mxu1  ;;  %v1332_v48 = vadd.f32 %v1316_v55, %v1277_v11 }
 0x1a2   : > { %v1432_v52 = vadd.f32 %v1416_v4, %v1332_v48  ;;  %3134 = vmatmul.msk.bf16.gmra.mxu3 %vm629_vm2, %v4269_v54  ;;  %v2312_v54 = vshll.u32 %v2302_v53, 16  ;;  %v2412_v4 = vshll.u32 %v2398_v36, 16 }
 0x1a3   : > { %3144 = vmatmul.msk.bf16.gmra.mxu1 %vm629_vm2, %v4377_v50  ;;  %v2397_v50 = vpack.c.bf16 %v2278_v32, %v2300_v31  ;;  %v5147_v32 = vld [vmem:[#allocation3_spill] sm:$0xff] }
 0x1a4   : > { %3149 = vmatmul.msk.bf16.gmra.mxu2 %vm629_vm2, %v5146_v47  ;;  %v4673_v26 = vadd.f32 %v1474_v57, %v1432_v52  ;;  %v2314_v23 = vrot.slane %v2312_v54, 1  ;;  %v3186_v57 = vld [vmem:[%s4942_s3 + $0x34] sm:$0x3]  ;;  %v2285_v34 = vrot.slane %v5147_v32, 7 }
 0x1a5   : > { %v1264_v29 = vpop.f32.mrf.mxu3  ;;  %v2405_v17 = vshrl.u32 %v2397_v50, 16  ;;  %v2407_v46 = vshll.u32 %v2397_v50, 16  ;;  %v2752_v30 = vsel %vm642_vm0, %v3186_v57, 0  ;;  %v5149_v50 = vld [vmem:[#allocation8_spill] sm:$0xff] }
 0x1a6   : > { %v1278_v42 = vadd.f32 %v1264_v29, %v4600_v8  ;;  %v2315_v49 = vor.u32 %v2314_v23, %v2310_v3  ;;  %v2414_v8 = vrot.slane %v2412_v4, 1  ;;  %2761 = vmatpush.bf16.msra.mxu2 %v2752_v30  ;;  %v5148_v3 = vld [vmem:[#allocation6_spill] sm:$0xff] }
 0x1a7   : > { %v1477_v38 = vpop.f32.mrf.mxu2  ;;  %v1324_v55 = vpop.f32.mrf.mxu0  ;;  %v2409_v59 = vrot.slane %v2407_v46, 1  ;;  %v2283_v62 = vrot.slane %v5148_v3, 7  ;;  %v5151_v30 = vld [vmem:[#allocation10_spill] sm:$0xff] }
 0x1a8   : > { %v1421_v40 = vpop.f32.mrf.mxu1  ;;  %v1333_v6 = vadd.f32 %v1319_v21, %v1278_v42  ;;  %v2320_v15 = vsel %vm806_vm3, %v2315_v49, %v2319_v19  ;;  %v3176_v21 = vld [vmem:[%s4942_s3 + $0x28] sm:$0x3] }
 0x1a9   : > { %v2410_v31 = vor.u32 %v2409_v59, %v2405_v17  ;;  %v2626_v24 = vsel %vm642_vm0, %v3176_v21, 0  ;;  %v2284_v42 = vsel %vm591_vm1, %v2281_v33, %v2283_v62  ;;  %v2286_v0 = vsel %vm591_vm1, %v2283_v62, %v2285_v34 }
 0x1aa   : > { %v1433_v43 = vadd.f32 %v1419_v44, %v1333_v6  ;;  %3140 = vmatmul.msk.bf16.gmra.mxu0 %vm629_vm2, %v4380_v58  ;;  %v3181_v44 = vld [vmem:[%s4942_s3 + $0x2e] sm:$0x3]  ;;  %v2304_v56 = vpack.c.bf16 %v2284_v42, %v2282_v60 }
 0x1ab   : > { %v2415_v58 = vsel %vm806_vm3, %v2410_v31, %v2414_v8  ;;  %v2699_v41 = vsel %vm642_vm0, %v3181_v44, 0  ;;  %2635 = vmatpush.bf16.msra.mxu0 %v2626_v24  ;;  %v2287_v24 = vrot.slane %v5151_v30, 7 }
 0x1ac   : > { %v4686_v11 = vadd.f32 %v1477_v38, %v1433_v43  ;;  %2708 = vmatpush.bf16.msra.mxu1 %v2699_v41  ;;  %v2321_v38 = vshrl.u32 %v2303_v37, 16  ;;  %v2325_v4 = vshll.u32 %v2304_v56, 16  ;;  %v2329_v32 = vshrl.u32 %v2304_v56, 16 }
 0x1ad   : > { %v1266_v28 = vpop.f32.mrf.mxu3 }
 0x1ae   : > { %v1279_v48 = vadd.f32 %v1266_v28, %v4624_v1  ;;  %v2327_v31 = vrot.slane %v2325_v4, 1 }
 0x1af   : > { %v1479_v53 = vpop.f32.mrf.mxu2  ;;  %v1326_v63 = vpop.f32.mrf.mxu0 }
 0x1b0   : > { %v1424_v52 = vpop.f32.mrf.mxu1  ;;  %v1334_v29 = vadd.f32 %v1321_v20, %v1279_v48  ;;  %v2399_v20 = vpack.c.bf16 %v2286_v0, %v2284_v42 }
 0x1b2   : > { %v1434_v54 = vadd.f32 %v1421_v40, %v1334_v29  ;;  %3135 = vmatmul.msk.bf16.gmra.mxu3 %vm629_vm2, %v4383_v13  ;;  %v2416_v40 = vshrl.u32 %v2398_v36, 16  ;;  %v2420_v59 = vshll.u32 %v2399_v20, 16 }
 0x1b3   : > { %3145 = vmatmul.msk.bf16.gmra.mxu1 %vm629_vm2, %v4387_v9  ;;  %v2323_v9 = vor.u32 %v2321_v38, %v2319_v19 }
 0x1b4   : > { %3150 = vmatmul.msk.bf16.gmra.mxu2 %vm629_vm2, %v5149_v50  ;;  %v4710_v1 = vadd.f32 %v1479_v53, %v1434_v54  ;;  %v2418_v49 = vor.u32 %v2416_v40, %v2414_v8  ;;  %v2422_v57 = vrot.slane %v2420_v59, 1  ;;  %v2424_v54 = vshrl.u32 %v2399_v20, 16 }
 0x1b5   : > { %v1269_v23 = vpop.f32.mrf.mxu3  ;;  %v4718_v37 = vsel %vm806_vm3, %v2323_v9, %v2327_v31 }
 0x1b6   : > { %v1280_v17 = vadd.f32 %v1269_v23, %v4629_v22  ;;  %v2423_v60 = vsel %vm806_vm3, %v2418_v49, %v2422_v57  ;;  %v2331_v23 = vor.u32 %v2329_v32, %v2327_v31  ;;  %v2426_v40 = vor.u32 %v2424_v54, %v2422_v57  ;;  %v5154_v57 = vld [vmem:[#allocation23_spill] sm:$0xff] }
 0x1b7   : > { %v1482_v13 = vpop.f32.mrf.mxu2  ;;  %v1642_v6 = vpop.f32.mrf.mxu0 }
 0x1b8   : > { %v1426_v46 = vpop.f32.mrf.mxu1  ;;  %v1335_v43 = vadd.f32 %v1324_v55, %v1280_v17  ;;  %v5150_v55 = vld [vmem:[#allocation9_spill] sm:$0xff] }
 0x1b9   : > { %v2289_v28 = vrot.slane %v5150_v55, 7 }
 0x1ba   : > { %v1435_v33 = vadd.f32 %v1424_v52, %v1335_v43  ;;  %3157 = vmatmul.msk.bf16.vlgmr.msrb.gmra.mxu0 %vm629_vm2, %v4257_v27  ;;  %v5152_v27 = vld [vmem:[#allocation32_spill] sm:$0xff] }
 0x1bb   : > { %v5153_v53 = vpack.c.bf16 %v5152_v27, %v5093_v10  ;;  %v4736_v3 = vsel %vm591_vm1, %v2287_v24, %v2289_v28 }
 0x1bc   : > { %v4721_v22 = vadd.f32 %v1482_v13, %v1435_v33  ;;  %v5155_v33 = vpack.c.bf16 %v4240_v51, %v5154_v57 }
 0x1bd   : > { %v1271_v36 = vpop.f32.mrf.mxu3 }
 0x1be   : > { %v1281_v19 = vadd.f32 %v1271_v36, %v4639_v39  ;;  %v2288_v39 = vsel %vm591_vm1, %v2285_v34, %v2287_v24 }
 0x1bf   : > { %v1484_v21 = vpop.f32.mrf.mxu2  ;;  %v1644_v8 = vpop.f32.mrf.mxu0  ;;  %v2400_v29 = vpack.c.bf16 %v4736_v3, %v2288_v39 }
 0x1c0   : > { %v1737_v44 = vpop.f32.mrf.mxu1  ;;  %v1336_v41 = vadd.f32 %v1326_v63, %v1281_v19  ;;  %v2305_v63 = vpack.c.bf16 %v2288_v39, %v2286_v0  ;;  %v4761_v19 = vsel %vm591_vm1, %v2289_v28, 0.0 }
 0x1c1   : > { %v2428_v17 = vshll.u32 %v2400_v29, 16  ;;  %v2401_v51 = vpack.c.bf16 %v4761_v19, %v4761_v19 }
 0x1c2   : > { %v1436_v48 = vadd.f32 %v1426_v46, %v1336_v41  ;;  %3152 = vmatmul.msk.bf16.vlgmr.msrb.gmra.mxu3 %vm629_vm2, %v5153_v53  ;;  %v2337_v36 = vshrl.u32 %v2305_v63, 16 }
 0x1c3   : > { %3162 = vmatmul.msk.bf16.vlgmr.msrb.gmra.mxu1 %vm629_vm2, %v2320_v15  ;;  %v2430_v56 = vrot.slane %v2428_v17, 1  ;;  %v2436_v27 = vshll.u32 %v2401_v51, 16 }
 0x1c4   : > { %3167 = vmatmul.msk.bf16.vlgmr.msrb.gmra.mxu2 %vm629_vm2, %v2415_v58  ;;  %v4732_v52 = vadd.f32 %v1484_v21, %v1436_v48  ;;  %v2333_v58 = vshll.u32 %v2305_v63, 16 }
 0x1c5   : > { %v1513_v62 = vpop.f32.mrf.mxu3  ;;  %v2431_v20 = vsel %vm806_vm3, %v2426_v40, %v2430_v56  ;;  %v2438_v32 = vrot.slane %v2436_v27, 1 }
 0x1c6   : > { %v1533_v10 = vadd.f32 %v1513_v62, %v4644_v5  ;;  %v2335_v34 = vrot.slane %v2333_v58, 1  ;;  %v5156_v58 = vpack.c.bf16 %v4276_v35, %v4247_v7 }
 0x1c7   : > { %v1795_v42 = vpop.f32.mrf.mxu2  ;;  %v1647_v38 = vpop.f32.mrf.mxu0 }
 0x1c8   : > { %v1739_v15 = vpop.f32.mrf.mxu1  ;;  %v1662_v13 = vadd.f32 %v1642_v6, %v1533_v10  ;;  %v4743_v0 = vsel %vm806_vm3, %v2331_v23, %v2335_v34  ;;  %v4766_v30 = vor.u32 %v2337_v36, %v2335_v34 }
 0x1ca   : > { %v1757_v46 = vadd.f32 %v1737_v44, %v1662_v13  ;;  %3158 = vmatmul.msk.bf16.gmra.mxu0 %vm629_vm2, %v5146_v47 }
 0x1cc   : > { %v4746_v5 = vadd.f32 %v1795_v42, %v1757_v46 }
 0x1cd   : > { %v1515_v9 = vpop.f32.mrf.mxu3 }
 0x1ce   : > { %v1534_v4 = vadd.f32 %v1515_v9, %v4653_v45  ;;  %v2306_v45 = vpack.c.bf16 %v4736_v3, %v4736_v3  ;;  %v5157_v9 = vld [vmem:[#allocation22_spill] sm:$0xff] }
 0x1cf   : > { %v1797_v49 = vpop.f32.mrf.mxu2  ;;  %v1649_v59 = vpop.f32.mrf.mxu0  ;;  %v5158_v7 = vpack.c.bf16 %v4090_v18, %v5157_v9 }
 0x1d0   : > { %v1742_v43 = vpop.f32.mrf.mxu1  ;;  %v1663_v6 = vadd.f32 %v1644_v8, %v1534_v4  ;;  %v2432_v8 = vshrl.u32 %v2400_v29, 16 }
 0x1d2   : > { %v1758_v31 = vadd.f32 %v1739_v15, %v1663_v6  ;;  %3153 = vmatmul.msk.bf16.gmra.mxu3 %vm629_vm2, %v5155_v33  ;;  %v2434_v48 = vor.u32 %v2432_v8, %v2430_v56 }
 0x1d3   : > { %3163 = vmatmul.msk.bf16.gmra.mxu1 %vm629_vm2, %v4718_v37 }
 0x1d4   : > { %3168 = vmatmul.msk.bf16.gmra.mxu2 %vm629_vm2, %v2423_v60  ;;  %v4756_v47 = vadd.f32 %v1797_v49, %v1758_v31  ;;  %v2341_v60 = vshll.u32 %v2306_v45, 16  ;;  %v5159_v31 = vld [vmem:[#allocation29_spill] sm:$0xff] }
 0x1d5   : > { %v1518_v21 = vpop.f32.mrf.mxu3  ;;  %v5160_v57 = vpack.c.bf16 %v5157_v9, %v5159_v31 }
 0x1d6   : > { %v1535_v44 = vadd.f32 %v1518_v21, %v4659_v12  ;;  %v2343_v39 = vrot.slane %v2341_v60, 1  ;;  %v2439_v12 = vsel %vm806_vm3, %v2434_v48, %v2438_v32  ;;  %v5163_v32 = vld [vmem:[#allocation33_spill] sm:$0xff] }
 0x1d7   : > { %v1800_v55 = vpop.f32.mrf.mxu2  ;;  %v1652_v24 = vpop.f32.mrf.mxu0 }
 0x1d8   : > { %v1744_v41 = vpop.f32.mrf.mxu1  ;;  %v1664_v53 = vadd.f32 %v1647_v38, %v1535_v44  ;;  %v2344_v62 = vsel %vm806_vm3, %v4766_v30, %v2343_v39  ;;  %v5161_v44 = vld [vmem:[#allocation24_spill] sm:$0xff] }
 0x1da   : > { %v1759_v28 = vadd.f32 %v1742_v43, %v1664_v53  ;;  %3159 = vmatmul.msk.bf16.gmra.mxu0 %vm629_vm2, %v5149_v50 }
 0x1dc   : > { %v4773_v63 = vadd.f32 %v1800_v55, %v1759_v28 }
 0x1dd   : > { %v1520_v29 = vpop.f32.mrf.mxu3 }
 0x1de   : > { %v1536_v54 = vadd.f32 %v1520_v29, %v4673_v26 }
 0x1df   : > { %v1802_v10 = vpop.f32.mrf.mxu2  ;;  %v1654_v42 = vpop.f32.mrf.mxu0 }
 0x1e0   : > { %v1747_v15 = vpop.f32.mrf.mxu1  ;;  %v1665_v38 = vadd.f32 %v1649_v59, %v1536_v54 }
 0x1e2   : > { %v1760_v23 = vadd.f32 %v1744_v41, %v1665_v38  ;;  %3154 = vmatmul.msk.bf16.gmra.mxu3 %vm629_vm2, %v5156_v58 }
 0x1e3   : > { %3164 = vmatmul.msk.bf16.gmra.mxu1 %vm629_vm2, %v4743_v0 }
 0x1e4   : > { %3169 = vmatmul.msk.bf16.gmra.mxu2 %vm629_vm2, %v2431_v20  ;;  %v4783_v50 = vadd.f32 %v1802_v10, %v1760_v23 }
 0x1e5   : > { %v1523_v40 = vpop.f32.mrf.mxu3 }
 0x1e6   : > { %v1537_v26 = vadd.f32 %v1523_v40, %v4686_v11 }
 0x1e7   : > { %v1805_v17 = vpop.f32.mrf.mxu2  ;;  %v1657_v13 = vpop.f32.mrf.mxu0 }
 0x1e8   : > { %v1749_v34 = vpop.f32.mrf.mxu1  ;;  %v1666_v56 = vadd.f32 %v1652_v24, %v1537_v26 }
 0x1ea   : > { %v1761_v46 = vadd.f32 %v1747_v15, %v1666_v56  ;;  %3160 = vmatmul.msk.bf16.gmra.mxu0 %vm629_vm2, %v5158_v7  ;;  %v5165_v56 = vld [vmem:[#allocation36_spill] sm:$0xff] }
 0x1ec   : > { %v4790_v35 = vadd.f32 %v1805_v17, %v1761_v46 }
 0x1ed   : > { %v1525_v4 = vpop.f32.mrf.mxu3 }
 0x1ee   : > { %v1538_v20 = vadd.f32 %v1525_v4, %v4710_v1 }
 0x1ef   : > { %v1807_v49 = vpop.f32.mrf.mxu2  ;;  %v1659_v59 = vpop.f32.mrf.mxu0 }
 0x1f0   : > { %v1752_v43 = vpop.f32.mrf.mxu1  ;;  %v1667_v6 = vadd.f32 %v1654_v42, %v1538_v20 }
 0x1f2   : > { %v1762_v11 = vadd.f32 %v1749_v34, %v1667_v6  ;;  %3155 = vmatmul.msk.bf16.gmra.mxu3 %vm629_vm2, %v5160_v57  ;;  %v5164_v34 = vld [vmem:[#allocation30_spill] sm:$0xff] }
 0x1f3   : > { %3165 = vmatmul.msk.bf16.gmra.mxu1 %vm629_vm2, %v2344_v62  ;;  %v2492_v62 = vpack.c.bf16 %v4761_v19, %v4736_v3 }
 0x1f4   : > { %3170 = vmatmul.msk.bf16.gmra.mxu2 %vm629_vm2, %v2439_v12  ;;  %v4799_v18 = vadd.f32 %v1807_v49, %v1762_v11 }
 0x1f5   : > { %v1528_v33 = vpop.f32.mrf.mxu3  ;;  %v2496_v54 = vshll.u32 %v2492_v62, 16 }
 0x1f6   : > { %v1539_v45 = vadd.f32 %v1528_v33, %v4721_v22  ;;  %v5162_v22 = vld [vmem:[#allocation35_spill] sm:$0xff] }
 0x1f7   : > { %v1810_v1 = vpop.f32.mrf.mxu2  ;;  %v1983_v21 = vpop.f32.mrf.mxu0 }
 0x1f8   : > { %v1754_v36 = vpop.f32.mrf.mxu1  ;;  %v1668_v51 = vadd.f32 %v1657_v13, %v1539_v45 }
 0x1fa   : > { %v1763_v8 = vadd.f32 %v1752_v43, %v1668_v51  ;;  %3177 = vmatmul.msk.bf16.vlgmr.msra.gmra.mxu0 %vm629_vm2, %v5161_v44  ;;  %v2500_v51 = vshrl.u32 %v2492_v62, 16 }
 0x1fc   : > { %v4804_v55 = vadd.f32 %v1810_v1, %v1763_v8 }
 0x1fd   : > { %v1530_v60 = vpop.f32.mrf.mxu3 }
 0x1fe   : > { %v1540_v24 = vadd.f32 %v1530_v60, %v4732_v52 }
 0x1ff   : > { %v1812_v41 = vpop.f32.mrf.mxu2  ;;  %v1985_v48 = vpop.f32.mrf.mxu0 }
 0x200   : > { %v2036_v27 = vpop.f32.mrf.mxu1  ;;  %v1669_v53 = vadd.f32 %v1659_v59, %v1540_v24 }
 0x202   : > { %v1764_v39 = vadd.f32 %v1754_v36, %v1669_v53  ;;  %3172 = vmatmul.msk.bf16.vlgmr.msra.gmra.mxu3 %vm629_vm2, %v4718_v37  ;;  %v2498_v37 = vrot.slane %v2496_v54, 1 }
 0x203   : > { %3182 = vmatmul.msk.bf16.vlgmr.msra.gmra.mxu1 %vm629_vm2, %v5162_v22  ;;  %v5166_v22 = vld [vmem:[#allocation37_spill] sm:$0xff] }
 0x204   : > { %3187 = vmatmul.msk.bf16.vlgmr.msra.gmra.mxu2 %vm629_vm2, %v5163_v32  ;;  %v4813_v28 = vadd.f32 %v1812_v41, %v1764_v39  ;;  %v2499_v23 = vsel %vm806_vm3, %v4766_v30, %v2498_v37  ;;  %v2502_v60 = vor.u32 %v2500_v51, %v2498_v37 }
 0x205   : > { %v1910_v52 = vpop.f32.mrf.mxu3 }
 0x206   : > { %v1930_v12 = vadd.f32 %v1910_v52, %v4746_v5 }
 0x207   : > { %v2136_v29 = vpop.f32.mrf.mxu2  ;;  %v1988_v10 = vpop.f32.mrf.mxu0 }
 0x208   : > { %v2038_v42 = vpop.f32.mrf.mxu1  ;;  %v2003_v15 = vadd.f32 %v1983_v21, %v1930_v12 }
 0x20a   : > { %v2056_v38 = vadd.f32 %v2036_v27, %v2003_v15  ;;  %3178 = vmatmul.msk.bf16.gmra.mxu0 %vm629_vm2, %v5163_v32 }
 0x20c   : > { %v4822_v58 = vadd.f32 %v2136_v29, %v2056_v38 }
 0x20d   : > { %v1912_v40 = vpop.f32.mrf.mxu3 }
 0x20e   : > { %v1931_v3 = vadd.f32 %v1912_v40, %v4756_v47 }
 0x20f   : > { %v2138_v19 = vpop.f32.mrf.mxu2  ;;  %v1990_v5 = vpop.f32.mrf.mxu0 }
 0x210   : > { %v2041_v26 = vpop.f32.mrf.mxu1  ;;  %v2004_v17 = vadd.f32 %v1985_v48, %v1931_v3 }
 0x212   : > { %v2057_v13 = vadd.f32 %v2038_v42, %v2004_v17  ;;  %3173 = vmatmul.msk.bf16.gmra.mxu3 %vm629_vm2, %v4743_v0 }
 0x213   : > { %3183 = vmatmul.msk.bf16.gmra.mxu1 %vm629_vm2, %v5164_v34 }
 0x214   : > { %3188 = vmatmul.msk.bf16.gmra.mxu2 %vm629_vm2, %v5165_v56  ;;  %v4831_v30 = vadd.f32 %v2138_v19, %v2057_v13 }
 0x215   : > { %v1915_v46 = vpop.f32.mrf.mxu3 }
 0x216   : > { %v1932_v9 = vadd.f32 %v1915_v46, %v4773_v63 }
 0x217   : > { %v2141_v47 = vpop.f32.mrf.mxu2  ;;  %v1993_v7 = vpop.f32.mrf.mxu0 }
 0x218   : > { %v2043_v4 = vpop.f32.mrf.mxu1  ;;  %v2005_v20 = vadd.f32 %v1988_v10, %v1932_v9 }
 0x21a   : > { %v2058_v49 = vadd.f32 %v2041_v26, %v2005_v20  ;;  %3179 = vmatmul.msk.bf16.gmra.mxu0 %vm629_vm2, %v5165_v56 }
 0x21c   : > { %v4836_v0 = vadd.f32 %v2141_v47, %v2058_v49 }
 0x21d   : > { %v1917_v59 = vpop.f32.mrf.mxu3 }
 0x21e   : > { %v1933_v43 = vadd.f32 %v1917_v59, %v4783_v50 }
 0x21f   : > { %v2143_v6 = vpop.f32.mrf.mxu2  ;;  %v1995_v11 = vpop.f32.mrf.mxu0 }
 0x220   : > { %v2046_v31 = vpop.f32.mrf.mxu1  ;;  %v2006_v57 = vadd.f32 %v1990_v5, %v1933_v43 }
 0x222   : > { %v2059_v33 = vadd.f32 %v2043_v4, %v2006_v57  ;;  %3174 = vmatmul.msk.bf16.gmra.mxu3 %vm629_vm2, %v2499_v23 }
 0x223   : > { %3184 = vmatmul.msk.bf16.gmra.mxu1 %vm629_vm2, %v4390_v14 }
 0x224   : > { %3189 = vmatmul.msk.bf16.gmra.mxu2 %vm629_vm2, %v4393_v61  ;;  %v4844_v63 = vadd.f32 %v2143_v6, %v2059_v33 }
 0x225   : > { %v1920_v45 = vpop.f32.mrf.mxu3 }
 0x226   : > { %v1934_v1 = vadd.f32 %v1920_v45, %v4790_v35  ;;  %v2503_v35 = vsel %vm806_vm3, %v2502_v60, %v4443_v25 }
 0x227   : > { %v2146_v36 = vpop.f32.mrf.mxu2  ;;  %v1998_v50 = vpop.f32.mrf.mxu0 }
 0x228   : > { %v2048_v21 = vpop.f32.mrf.mxu1  ;;  %v2007_v8 = vadd.f32 %v1993_v7, %v1934_v1 }
 0x22a   : > { %v2060_v44 = vadd.f32 %v2046_v31, %v2007_v8  ;;  %3180 = vmatmul.msk.bf16.gmra.mxu0 %vm629_vm2, %v4396_v16 }
 0x22c   : > { %v2160_v24 = vadd.f32 %v2146_v36, %v2060_v44 }
 0x22d   : > { %v1922_v14 = vpop.f32.mrf.mxu3 }
 0x22e   : > { %v1935_v41 = vadd.f32 %v1922_v14, %v4799_v18 }
 0x22f   : > { %v2148_v61 = vpop.f32.mrf.mxu2  ;;  %v2000_v48 = vpop.f32.mrf.mxu0 }
 0x230   : > { %v2051_v27 = vpop.f32.mrf.mxu1  ;;  %v2008_v53 = vadd.f32 %v1995_v11, %v1935_v41 }
 0x232   : > { %v2061_v39 = vadd.f32 %v2048_v21, %v2008_v53  ;;  %3175 = vmatmul.msk.bf16.gmra.mxu3 %vm629_vm2, %v2503_v35 }
 0x233   : > { %3185 = vmatmul.msk.bf16.gmra.mxu1 %vm629_vm2, %v4399_v2 }
 0x234   : > { %3190 = vmatmul.msk.bf16.gmra.mxu2 %vm629_vm2, %v5166_v22  ;;  %v4857_v16 = vadd.f32 %v2148_v61, %v2061_v39 }
 0x235   : > { %v1925_v32 = vpop.f32.mrf.mxu3 }
 0x236   : > { %v1936_v18 = vadd.f32 %v1925_v32, %v4804_v55 }
 0x237   : > { %v2151_v62 = vpop.f32.mrf.mxu2  ;;  %v2240_v12 = vpop.f32.mrf.mxu0 }
 0x238   : > { %v2053_v52 = vpop.f32.mrf.mxu1  ;;  %v2009_v29 = vadd.f32 %v1998_v50, %v1936_v18 }
 0x23a   : > { %v2062_v25 = vadd.f32 %v2051_v27, %v2009_v29 }
 0x23c   : > { %v4860_v54 = vadd.f32 %v2151_v62, %v2062_v25 }
 0x23d   : > { %v1927_v10 = vpop.f32.mrf.mxu3 }
 0x23e   : > { %v1937_v42 = vadd.f32 %v1927_v10, %v4813_v28 }
 0x23f   : > { %v2153_v15 = vpop.f32.mrf.mxu2  ;;  %v2242_v2 = vpop.f32.mrf.mxu0 }
 0x240   : > { %v2369_v37 = vpop.f32.mrf.mxu1  ;;  %v2010_v38 = vadd.f32 %v2000_v48, %v1937_v42 }
 0x242   : > { %v2063_v23 = vadd.f32 %v2053_v52, %v2010_v38 }
 0x244   : > { %v4863_v40 = vadd.f32 %v2153_v15, %v2063_v23 }
 0x245   : > { %v2194_v3 = vpop.f32.mrf.mxu3 }
 0x246   : > { %v2214_v55 = vadd.f32 %v2194_v3, %v4822_v58 }
 0x247   : > { %v2464_v19 = vpop.f32.mrf.mxu2  ;;  %v2245_v5 = vpop.f32.mrf.mxu0 }
 0x248   : > { %v2371_v26 = vpop.f32.mrf.mxu1  ;;  %v2260_v17 = vadd.f32 %v2240_v12, %v2214_v55 }
 0x24a   : > { %v2389_v13 = vadd.f32 %v2369_v37, %v2260_v17 }
 0x24c   : > { %v2484_v34 = vadd.f32 %v2464_v19, %v2389_v13 }
 0x24d   : > { %v2196_v56 = vpop.f32.mrf.mxu3 }
 0x24e   : > { %v2215_v39 = vadd.f32 %v2196_v56, %v4831_v30 }
 0x24f   : > { %v2466_v46 = vpop.f32.mrf.mxu2  ;;  %v2247_v9 = vpop.f32.mrf.mxu0 }
 0x250   : > { %v2374_v28 = vpop.f32.mrf.mxu1  ;;  %v2261_v32 = vadd.f32 %v2242_v2, %v2215_v39 }
 0x252   : > { %v2390_v29 = vadd.f32 %v2371_v26, %v2261_v32 }
 0x254   : > { %v2485_v10 = vadd.f32 %v2466_v46, %v2390_v29 }
 0x255   : > { %v2199_v47 = vpop.f32.mrf.mxu3 }
 0x256   : > { %v2216_v7 = vadd.f32 %v2199_v47, %v4836_v0 }
 0x257   : > { %v2469_v4 = vpop.f32.mrf.mxu2  ;;  %v2250_v20 = vpop.f32.mrf.mxu0 }
 0x258   : > { %v2376_v49 = vpop.f32.mrf.mxu1  ;;  %v2262_v59 = vadd.f32 %v2245_v5, %v2216_v7 }
 0x25a   : > { %v2391_v43 = vadd.f32 %v2374_v28, %v2262_v59 }
 0x25c   : > { %v2486_v6 = vadd.f32 %v2469_v4, %v2391_v43 }
 0x25d   : > { %v2201_v58 = vpop.f32.mrf.mxu3 }
 0x25e   : > { %v2217_v55 = vadd.f32 %v2201_v58, %v4844_v63 }
 0x25f   : > { %v2471_v11 = vpop.f32.mrf.mxu2  ;;  %v4867_v31 = vpop.f32.mrf.mxu0 }
 0x260   : > { %v2379_v57 = vpop.f32.mrf.mxu1  ;;  %v2263_v2 = vadd.f32 %v2247_v9, %v2217_v55 }
 0x262   : > { %v2392_v7 = vadd.f32 %v2376_v49, %v2263_v2 }
 0x264   : > { %v2487_v43 = vadd.f32 %v2471_v11, %v2392_v7 }
 0x265   : > { %v2204_v33 = vpop.f32.mrf.mxu3 }
 0x266   : > { %v2218_v45 = vadd.f32 %v2204_v33, %v2160_v24 }
 0x267   : > { %v2474_v1 = vpop.f32.mrf.mxu2  ;;  %v4869_v36 = vpop.f32.mrf.mxu0 }
 0x268   : > { %v4871_v50 = vpop.f32.mrf.mxu1  ;;  %v2264_v21 = vadd.f32 %v2250_v20, %v2218_v45 }
 0x26a   : > { %v2393_v0 = vadd.f32 %v2379_v57, %v2264_v21 }
 0x26c   : > { %v4873_v51 = vadd.f32 %v2474_v1, %v2393_v0 }
 0x26d   : > { %v2206_v8 = vpop.f32.mrf.mxu3 }
 0x26e   : > { %v2219_v0 = vadd.f32 %v2206_v8, %v4857_v16 }
 0x26f   : > { %v4875_v44 = vpop.f32.mrf.mxu2  ;;  %v4877_v60 = vpop.f32.mrf.mxu0 }
 0x270   : > { %v4879_v14 = vpop.f32.mrf.mxu1 }
 0x275   : > { %v4881_v41 = vpop.f32.mrf.mxu3 }
 0x276   : > { %v2220_v16 = vadd.f32 %v4881_v41, %v4860_v54 }
 0x277   : > { %v4883_v61 = vpop.f32.mrf.mxu2  ;;  %v2637_v48 = vpop.f32.mrf.mxu0 }
 0x278   : > { %v4885_v24 = vpop.f32.mrf.mxu1 }
 0x27d   : > { %v4887_v27 = vpop.f32.mrf.mxu3 }
 0x27e   : > { %v2221_v54 = vadd.f32 %v4887_v27, %v4863_v40 }
 0x27f   : > { %v4889_v35 = vpop.f32.mrf.mxu2  ;;  %v2639_v22 = vpop.f32.mrf.mxu0 }
 0x280   : > { %v2710_v53 = vpop.f32.mrf.mxu1 }
 0x285   : > { %v2522_v18 = vpop.f32.mrf.mxu3 }
 0x286   : > { %v2542_v62 = vadd.f32 %v2522_v18, %v2484_v34 }
 0x287   : > { %v2763_v52 = vpop.f32.mrf.mxu2  ;;  %v2642_v15 = vpop.f32.mrf.mxu0 }
 0x288   : > { %v2712_v12 = vpop.f32.mrf.mxu1  ;;  %v2657_v25 = vadd.f32 %v2637_v48, %v2542_v62 }
 0x28a   : > { %v2730_v42 = vadd.f32 %v2710_v53, %v2657_v25 }
 0x28c   : > { %v2783_v30 = vadd.f32 %v2763_v52, %v2730_v42 }
 0x28d   : > { %v2524_v37 = vpop.f32.mrf.mxu3 }
 0x28e   : > { %v2543_v38 = vadd.f32 %v2524_v37, %v2485_v10  ;;  %v2821_v13 = vmul.f32 %v2783_v30, %v2783_v30  ;;  %v2266_v37 = vadd.f32 %v4869_v36, %v2220_v16  ;;  %v2267_v36 = vadd.f32 %v4877_v60, %v2221_v54 }
 0x28f   : > { %v2765_v23 = vpop.f32.mrf.mxu2  ;;  %v2644_v63 = vpop.f32.mrf.mxu0 }
 0x290   : > { %v2715_v3 = vpop.f32.mrf.mxu1  ;;  %v2658_v19 = vadd.f32 %v2639_v22, %v2543_v38  ;;  %v2265_v22 = vadd.f32 %v4867_v31, %v2219_v0 }
 0x292   : > { %v2731_v5 = vadd.f32 %v2712_v12, %v2658_v19  ;;  %v2394_v25 = vadd.f32 %v4871_v50, %v2265_v22  ;;  %v2395_v50 = vadd.f32 %v4879_v14, %v2266_v37  ;;  %v2396_v14 = vadd.f32 %v4885_v24, %v2267_v36 }
 0x294   : > { %v2784_v17 = vadd.f32 %v2765_v23, %v2731_v5  ;;  %v2489_v31 = vadd.f32 %v4875_v44, %v2394_v25  ;;  %v2490_v44 = vadd.f32 %v4883_v61, %v2395_v50 }
 0x295   : > { %v2527_v26 = vpop.f32.mrf.mxu3 }
 0x296   : > { %v3246_v34 = vpack.c.bf16 %v2784_v17, %v2783_v30  ;;  %v2807_v56 = vadd.f32 %v2784_v17, %v2783_v30  ;;  %v2822_v46 = vmul.f32 %v2784_v17, %v2784_v17  ;;  %v2544_v28 = vadd.f32 %v2527_v26, %v2486_v6 }
 0x297   : > { %v2768_v47 = vpop.f32.mrf.mxu2  ;;  %v2647_v53 = vpop.f32.mrf.mxu0 }
 0x298   : > { %3247 = vst [vmem:[%s4898_s18] sm:$0xff] %v3246_v34   ;;  %v2829_v4 = vadd.f32 %v2822_v46, %v2821_v13  ;;  %v2659_v9 = vadd.f32 %v2642_v15, %v2544_v28  ;;  %v2717_v20 = vpop.f32.mrf.mxu1 }
 0x29a   : > { %v2732_v59 = vadd.f32 %v2715_v3, %v2659_v9 }
 0x29c   : > { %v2785_v58 = vadd.f32 %v2768_v47, %v2732_v59 }
 0x29d   : > { %v2529_v57 = vpop.f32.mrf.mxu3 }
 0x29e   : > { %v2808_v33 = vadd.f32 %v2807_v56, %v2785_v58  ;;  %v2823_v45 = vmul.f32 %v2785_v58, %v2785_v58  ;;  %v2545_v1 = vadd.f32 %v2529_v57, %v2487_v43 }
 0x29f   : > { %v2770_v21 = vpop.f32.mrf.mxu2  ;;  %v2649_v15 = vpop.f32.mrf.mxu0 }
 0x2a0   : > { %v2830_v48 = vadd.f32 %v2829_v4, %v2823_v45  ;;  %v2660_v6 = vadd.f32 %v2644_v63, %v2545_v1  ;;  %v2720_v49 = vpop.f32.mrf.mxu1  ;;  %v2491_v4 = vadd.f32 %v4889_v35, %v2396_v14 }
 0x2a2   : > { %v2733_v39 = vadd.f32 %v2717_v20, %v2660_v6 }
 0x2a4   : > { %v2786_v32 = vadd.f32 %v2770_v21, %v2733_v39 }
 0x2a5   : > { %v2532_v18 = vpop.f32.mrf.mxu3 }
 0x2a6   : > { %v3251_v62 = vpack.c.bf16 %v2786_v32, %v2785_v58  ;;  %v2809_v11 = vadd.f32 %v2808_v33, %v2786_v32  ;;  %v2824_v52 = vmul.f32 %v2786_v32, %v2786_v32  ;;  %v2546_v12 = vadd.f32 %v2532_v18, %v4873_v51 }
 0x2a7   : > { %v2773_v29 = vpop.f32.mrf.mxu2  ;;  %v2652_v13 = vpop.f32.mrf.mxu0 }
 0x2a8   : > { %3272 = vst [vmem:[%s4898_s18 + $0x8] sm:$0xff] %v3251_v62   ;;  %v2831_v8 = vadd.f32 %v2830_v48, %v2824_v52  ;;  %v2661_v10 = vadd.f32 %v2647_v53, %v2546_v12  ;;  %v2722_v23 = vpop.f32.mrf.mxu1 }
 0x2aa   : > { %v2734_v42 = vadd.f32 %v2720_v49, %v2661_v10 }
 0x2ac   : > { %v2787_v38 = vadd.f32 %v2773_v29, %v2734_v42 }
 0x2ad   : > { %v2534_v3 = vpop.f32.mrf.mxu3 }
 0x2ae   : > { %v2810_v55 = vadd.f32 %v2809_v11, %v2787_v38  ;;  %v2825_v51 = vmul.f32 %v2787_v38, %v2787_v38  ;;  %v2547_v19 = vadd.f32 %v2534_v3, %v2489_v31 }
 0x2af   : > { %v2775_v30 = vpop.f32.mrf.mxu2  ;;  %v2654_v43 = vpop.f32.mrf.mxu0 }
 0x2b0   : > { %v2832_v41 = vadd.f32 %v2831_v8, %v2825_v51  ;;  %v2662_v5 = vadd.f32 %v2649_v15, %v2547_v19  ;;  %v2725_v47 = vpop.f32.mrf.mxu1 }
 0x2b2   : > { %v2735_v2 = vadd.f32 %v2722_v23, %v2662_v5 }
 0x2b4   : > { %v2788_v17 = vadd.f32 %v2775_v30, %v2735_v2 }
 0x2b5   : > { %v2537_v26 = vpop.f32.mrf.mxu3 }
 0x2b6   : > { %v3256_v34 = vpack.c.bf16 %v2788_v17, %v2787_v38  ;;  %v2811_v56 = vadd.f32 %v2810_v55, %v2788_v17  ;;  %v2826_v46 = vmul.f32 %v2788_v17, %v2788_v17  ;;  %v2548_v28 = vadd.f32 %v2537_v26, %v2490_v44 }
 0x2b7   : > { %v2778_v27 = vpop.f32.mrf.mxu2 }
 0x2b8   : > { %3273 = vst [vmem:[%s4898_s18 + $0x10] sm:$0xff] %v3256_v34   ;;  %v2833_v63 = vadd.f32 %v2832_v41, %v2826_v46  ;;  %v2663_v40 = vadd.f32 %v2652_v13, %v2548_v28  ;;  %v2727_v33 = vpop.f32.mrf.mxu1 }
 0x2ba   : > { %v2736_v7 = vadd.f32 %v2725_v47, %v2663_v40 }
 0x2bc   : > { %v2789_v61 = vadd.f32 %v2778_v27, %v2736_v7 }
 0x2bd   : > { %v2539_v60 = vpop.f32.mrf.mxu3 }
 0x2be   : > { %v2812_v9 = vadd.f32 %v2811_v56, %v2789_v61  ;;  %v2827_v20 = vmul.f32 %v2789_v61, %v2789_v61  ;;  %v2549_v59 = vadd.f32 %v2539_v60, %v2491_v4 }
 0x2bf   : > { %v2780_v45 = vpop.f32.mrf.mxu2 }
 0x2c0   : > { %v2834_v58 = vadd.f32 %v2833_v63, %v2827_v20  ;;  %v2664_v57 = vadd.f32 %v2654_v43, %v2549_v59 }
 0x2c2   : > { %v2737_v24 = vadd.f32 %v2727_v33, %v2664_v57 }
 0x2c4   : > { %v2790_v1 = vadd.f32 %v2780_v45, %v2737_v24 }
 0x2c6   : > { %v3261_v21 = vpack.c.bf16 %v2790_v1, %v2789_v61  ;;  %v2813_v0 = vadd.f32 %v2812_v9, %v2790_v1  ;;  %v2828_v48 = vmul.f32 %v2790_v1, %v2790_v1 }
 0x2c8   : > { %3274 = vst [vmem:[%s4898_s18 + $0x18] sm:$0xff] %v3261_v21   ;;  %v2814_v35 = vrot.slane %v2813_v0, 4  ;;  %v2835_v6 = vadd.f32 %v2834_v58, %v2828_v48 }
 0x2ca   : > { %v2815_v53 = vadd.f32 %v2814_v35, %v2813_v0  ;;  %v2836_v39 = vrot.slane %v2835_v6, 4 }
 0x2cc   : > { %v2816_v49 = vrot.slane %v2815_v53, 2  ;;  %v2837_v22 = vadd.f32 %v2836_v39, %v2835_v6 }
 0x2ce   : > { %v2817_v32 = vadd.f32 %v2816_v49, %v2815_v53  ;;  %v2838_v18 = vrot.slane %v2837_v22, 2 }
 0x2d0   : > { %v2818_v62 = vrot.slane %v2817_v32, 1  ;;  %v2839_v11 = vadd.f32 %v2838_v18, %v2837_v22 }
 0x2d2   : > { %v2819_v52 = vadd.f32 %v2818_v62, %v2817_v32  ;;  %v2840_v12 = vrot.slane %v2839_v11, 1 }
 0x2d4   : > { %2820 = vst [vmem:[%s445_s23] sm:$0x1] %v2819_v52  ;;  %v2841_v29 = vadd.f32 %v2840_v12, %v2839_v11 }
 0x2d6   : > { %2842 = vst [vmem:[%s445_s23 + $0x1] sm:$0x1] %v2841_v29 }
 0x2d7 PF: > { %s18_s28 = sadd.s32 1, %s3362_s28   ;;  %s5167_s24 = smov %s3354_s26 }
 0x2d8   : > { %p15_p11 = scmp.ge.s32.totalorder %s18_s28, 18   ;;  %s5168_s25 = smov %s3358_s27 }
 0x2d9   : > { %s5169_s26 = smov %s5172_s29  ;;  %s5170_s27 = smov %s5176_s30 }
 0x2da   :  { %17 = sbr.rel (!%p15_p11) target bundleno = 3 (0x3), region = 118 }

// kernel: residual_block_3d.4
= control target key start
LH: loop header
LB: loop body
LE: loop exit
PB: predicated region body
PF: predicated region fallthrough
CT: control target
= control target key end

     0   :  { %s6387_s30 = smov 0   ;;  %s6389_s10 = smov 0   ;;  %s8590_s0 = inlined_call_operand.vmem [shape: bf16[2,8,64,128], index: 0, kind: input, shape index: {}, may-alias: {0,1,2}]   ;;  %s8591_s1 = inlined_call_operand.vmem [shape: bf16[2,8,64,128], index: 1, kind: input, shape index: {}, may-alias: {0,1,2}]   ;;  %s8592_s2 = inlined_call_operand.vmem [shape: bf16[2,8,64,128], index: 2, kind: input, shape index: {}, may-alias: {0,1,2}]   ;;  %s8593_s3 = inlined_call_operand.vmem [shape: bf16[27,128,128], index: 3, kind: input, shape index: {}]   ;;  %s8594_s4 = inlined_call_operand.vmem [shape: f32[1,128], index: 4, kind: input, shape index: {}]   ;;  %s8595_s5 = inlined_call_operand.vmem [shape: f32[1,128], index: 5, kind: input, shape index: {}]   ;;  %s8596_s6 = inlined_call_operand.vmem [shape: f32[64,1], index: 6, kind: input, shape index: {}]   ;;  %s8597_s7 = inlined_call_operand.vmem [shape: f32[64,1], index: 7, kind: input, shape index: {}]   ;;  %s8598_s8 = inlined_call_operand.vmem [shape: bf16[2,8,64,128], index: 8, kind: output, shape index: {0}]   ;;  %s8599_s9 = inlined_call_operand.vmem [shape: f32[2,8,2,128], index: 9, kind: output, shape index: {1}]  }
   0x1   :  { %8671 = sst [smem:[#allocation41_spill]] %s8596_s6  ;;  %s6391_s11 = smov 0  }
   0x2   :  { %s6393_s12 = smov 0   ;;  %s6395_s13 = smov 0  }
   0x3 LB: > { %s29_s14 = sadd.s32 1, %s6323_s11  ;;  %s32_s15 = sadd.s32 1, %s6327_s12  ;;  %s6331_s13 = sphi %s6395_s13, %s20_s13   ;;  %s6327_s12 = sphi %s6393_s12, %s8883_s12   ;;  %s6323_s11 = sphi %s6391_s11, %s8882_s11   ;;  %s6319_s10 = sphi %s6389_s10, %s8881_s10   ;;  %s6315_s30 = sphi %s6387_s30, %s8880_s30  }
   0x4   : > { %p30_p0 = scmp.ge.s32.totalorder %s29_s14, 8  ;;  %p4583_p1 = scmp.ge.s32.totalorder %s6331_s13, 1 }
   0x5   : > { %p368_p2 = scmp.lt.s32.totalorder %s6331_s13, 17 }
   0x6   : > { %s8885_s14 = smov (%p30_p0, %s29_s14), 0  ;;  %s8887_s15 = smov (!%p30_p0, %s32_s15), %s6327_s12 }
   0x7   : > { %p369_p3 = pnand %p4583_p1, %p368_p2  ;;  %p34_p4 = scmp.ge.s32.totalorder %s8887_s15, 2 }
   0x9   : > { %s8889_s15 = smov (%p34_p4, %s8887_s15), 0  ;;  %372 = sbr.rel (%p369_p3) target bundleno = 742 (0x2e6), region = 52 }
   0xe   : > { %s8672_s6 = sld [smem:[#allocation41_spill]]  ;;  %v8601_v3 = vmov 0   ;;  %v5931_v7 = vld [vmem:[%s8593_s3 + $0x38] sm:$0xff]  ;;  %v660_v8 = vld [vmem:[%s8597_s7] sm:$0xff]  ;;  %v662_v12 = vld [vmem:[%s8597_s7 + $0x10] sm:$0xff]  ;;  %s468_s20 = sadd.s32 1, %s6315_s30 }
   0xf   : > { %6290 = vset.pattern.permute.xlu2 %v8601_v3  ;;  %6289 = vset.pattern.permute.xlu1 %v8601_v3  ;;  %v663_v11 = vld [vmem:[%s8597_s7 + $0x18] sm:$0xff]  ;;  %v661_v13 = vld [vmem:[%s8597_s7 + $0x8] sm:$0xff]  ;;  %v666_v14 = vld [vmem:[%s8597_s7 + $0x30] sm:$0xff]  ;;  %p469_p5 = scmp.lt.s32.totalorder %s468_s20, 7  ;;  %p447_p6 = scmp.lt.s32.totalorder %s6319_s10, 1  ;;  %vm724_vm0 = vcmask 1040384  }
  0x10   : > { %6288 = vset.pattern.permute.xlu0 %v8601_v3  ;;  %917 = vmatpush.bf16.msra.mxu1 %v5931_v7  ;;  %v665_v15 = vld [vmem:[%s8597_s7 + $0x28] sm:$0xff]  ;;  %v664_v16 = vld [vmem:[%s8597_s7 + $0x20] sm:$0xff]  ;;  %v667_v17 = vld [vmem:[%s8597_s7 + $0x38] sm:$0xff]  ;;  %p461_p7 = scmp.lt.s32.totalorder %s6315_s30, 7  ;;  %p500_p10 = scmp.gt.s32.totalorder %s6315_s30, 0  ;;  %vm6334_vm2 = vmmov 1  }
  0x11   : > { %s8891_s20 = smov (!%p469_p5, %s468_s20), 7  ;;  %s8893_s10 = smov (!%p447_p6, %s6319_s10), 1  ;;  %v6514_v20 = vld [vmem:[%s8594_s4] ss:$0 sm:$0xff]  ;;  %v5930_v23 = vld [vmem:[%s8593_s3 + $0x30] sm:$0xff]  ;;  %v5929_v27 = vld [vmem:[%s8593_s3 + $0x28] sm:$0xff] }
  0x12   : > { %s6484_s23 = scalar_select %p461_p7, %s6315_s30, 7  ;;  %v6525_v24 = vld [vmem:[%s8595_s5] ss:$0 sm:$0xff]  ;;  %v5939_v32 = vld [vmem:[%s8593_s3 + $0xf8] sm:$0xff]  ;;  %v5938_v40 = vld [vmem:[%s8593_s3 + $0xf0] sm:$0xff]  ;;  %vm1606_vm6 = vcmask 1046528  }
  0x13   : > { %s8895_s20 = smov (!%p469_p5, %s8891_s20), 7  ;;  %s6487_s24 = sshll.u32 %s8893_s10, 6  ;;  %v5947_v33 = vld [vmem:[%s8593_s3 + $0x1b8] sm:$0xff]  ;;  %840 = vmatpush.bf16.msra.mxu0 %v5939_v32  ;;  %6220 = vmatpush.bf16.msra.mxu3 %v5939_v32  ;;  %v5928_v39 = vld [vmem:[%s8593_s3 + $0x20] sm:$0xff]  ;;  %v5946_v41 = vld [vmem:[%s8593_s3 + $0x1b0] sm:$0xff] }
  0x14   : > { %v656_v0 = vld [vmem:[%s8672_s6 + $0x20] sm:$0xff]  ;;  %v654_v1 = vld [vmem:[%s8672_s6 + $0x10] sm:$0xff]  ;;  %v657_v4 = vld [vmem:[%s8672_s6 + $0x28] sm:$0xff]  ;;  %s4593_s25 = sshll.u32 %s6484_s23, 3  ;;  %s4599_s26 = sshll.u32 %s8895_s20, 3  ;;  %918 = vmatpush.bf16.msra.mxu1 %v5930_v23  ;;  %1012 = vmatpush.bf16.msra.mxu2 %v5947_v33 }
  0x15   : > { %v652_v2 = vld [vmem:[%s8672_s6] sm:$0xff]  ;;  %690 = vperm.xlu2 %6290, %v656_v0   ;;  %680 = vperm.xlu1 %6289, %v654_v1   ;;  %v655_v5 = vld [vmem:[%s8672_s6 + $0x18] sm:$0xff]  ;;  %v653_v6 = vld [vmem:[%s8672_s6 + $0x8] sm:$0xff]  ;;  %s6491_s27 = sadd.s32 %s4593_s25, %s6487_s24  ;;  %s477_s28 = sadd.s32 %s4599_s26, %s6487_s24  ;;  %vm1105_vm5 = vsmask.f32 7424 }
  0x16   : > { %670 = vperm.xlu0 %6288, %v652_v2   ;;  %v659_v9 = vld [vmem:[%s8672_s6 + $0x38] sm:$0xff]  ;;  %v658_v10 = vld [vmem:[%s8672_s6 + $0x30] sm:$0xff]  ;;  %s8600_s29 = sshll.u32 %s6491_s27, 2  ;;  %s4601_s16 = sshll.u32 %s477_s28, 2  ;;  %v5937_v49 = vld [vmem:[%s8593_s3 + $0xe8] sm:$0xff] }
  0x17   : > { %s6500_s19 = scalar_lea.vmem %s8591_s1, %s8600_s29  ;;  %s6505_s6 = scalar_lea.vmem %s8592_s2, %s4601_s16  ;;  %v5927_v44 = vld [vmem:[%s8593_s3 + $0x18] sm:$0xff]  ;;  %841 = vmatpush.bf16.msra.mxu0 %v5938_v40  ;;  %6221 = vmatpush.bf16.msra.mxu3 %v5938_v40  ;;  %v5945_v50 = vld [vmem:[%s8593_s3 + $0x1a8] sm:$0xff]  ;;  %v5926_v55 = vld [vmem:[%s8593_s3 + $0x10] sm:$0xff] }
  0x18   : > { %s504_s20 = scalar_select %p461_p7, 1, 0  ;;  %v6212_v18 = vld [vmem:[%s6500_s19 + $0x10] sm:$0xff]   ;;  %919 = vmatpush.bf16.msra.mxu1 %v5929_v27  ;;  %1013 = vmatpush.bf16.msra.mxu2 %v5946_v41  ;;  %v6571_v46 = vld [vmem:[%s6505_s6] sm:$0xff]   ;;  %v5925_v61 = vld [vmem:[%s8593_s3 + $0x8] sm:$0xff] }
  0x19   : > { %v6215_v19 = vld [vmem:[%s6505_s6 + $0x10] sm:$0xff]   ;;  %v6166_v21 = vunpack.c.l.bf16 %v6212_v18  ;;  %s6517_s28 = sadd.s32 4294967295, %s6315_s30  ;;  %v6167_v31 = vunpack.c.h.bf16 %v6212_v18  ;;  %v6574_v47 = vld [vmem:[%s6500_s19] sm:$0xff]   ;;  %v6174_v48 = vunpack.c.l.bf16 %v6571_v46  ;;  %v6214_v62 = vld [vmem:[%s6505_s6 + $0x8] sm:$0xff]   ;;  %s8879_s21 = sshll.u32 %s6491_s27, 2 }
  0x1a   : > { %v6182_v22 = vunpack.c.l.bf16 %v6215_v19  ;;  %s505_s22 = scvt.s32.f32 %s504_s20  ;;  %p445_p8 = scmp.gt.s32.totalorder %s6517_s28, 0  ;;  %v6183_v35 = vunpack.c.h.bf16 %v6215_v19  ;;  %v6158_v52 = vunpack.c.l.bf16 %v6574_v47  ;;  %v5936_v57 = vld [vmem:[%s8593_s3 + $0xe0] sm:$0xff]  ;;  %v6211_v0 = vld [vmem:[%s6500_s19 + $0x8] sm:$0xff]   ;;  %v6179_v1 = vunpack.c.h.bf16 %v6214_v62  ;;  %v6216_v32 = vld [vmem:[%s6505_s6 + $0x18] sm:$0xff]  }
  0x1b   : > { %v583_v25 = vmul.f32 %v6514_v20, %v6166_v21  ;;  %p4585_p9 = scmp.lt.s32.totalorder %s6517_s28, 7  ;;  %v584_v37 = vmul.f32 %v6514_v20, %v6167_v31  ;;  %v619_v53 = vmul.f32 %v6514_v20, %v6174_v48  ;;  %842 = vmatpush.bf16.msra.mxu0 %v5937_v49  ;;  %6222 = vmatpush.bf16.msra.mxu3 %v5937_v49  ;;  %v5944_v58 = vld [vmem:[%s8593_s3 + $0x1a0] sm:$0xff]  ;;  %v6163_v2 = vunpack.c.h.bf16 %v6211_v0  ;;  %v5941_v40 = vld [vmem:[%s8593_s3 + $0x188] sm:$0xff]  ;;  %vm6836_vm1 = vmneg %vm724_vm0  ;;  %s8563_s25 = scalar_lea.vmem %s8598_s8, %s8879_s21 }
  0x1c   : > { %v623_v26 = vmul.f32 %v6514_v20, %v6182_v22  ;;  %v6544_v34 = vstv %s505_s22  ;;  %s446_s20 = scalar_select %p445_p8, %s6517_s28, 0  ;;  %v624_v38 = vmul.f32 %v6514_v20, %v6183_v35  ;;  %920 = vmatpush.bf16.msra.mxu1 %v5928_v39  ;;  %v579_v54 = vmul.f32 %v6514_v20, %v6158_v52  ;;  %1014 = vmatpush.bf16.msra.mxu2 %v5945_v50  ;;  %v5924_v18 = vld [vmem:[%s8593_s3] sm:$0xff]  ;;  %v5933_v39 = vld [vmem:[%s8593_s3 + $0xc8] sm:$0xff]  ;;  %vm6882_vm3 = vmpackc.low %vm6836_vm1, %vm6334_vm2 }
  0x1d   : > { %695 = vperm.xlu2 %6290, %v657_v4   ;;  %685 = vperm.xlu1 %6289, %v655_v5   ;;  %v6534_v28 = vadd.f32 %v6525_v24, %v583_v25  ;;  %v6562_v42 = vadd.f32 %v6525_v24, %v584_v37  ;;  %v627_v56 = vadd.f32 %v6525_v24, %v619_v53  ;;  %v6178_v4 = vunpack.c.l.bf16 %v6214_v62  ;;  %v5934_v25 = vld [vmem:[%s8593_s3 + $0xd0] sm:$0xff]  ;;  %s6678_s6 = scalar_select %p500_p10, 1, 0  ;;  %vm7000_vm4 = vmpackc.low %vm6334_vm2, %vm6836_vm1 }
  0x1e   : > { %675 = vperm.xlu0 %6288, %v653_v6   ;;  %v631_v29 = vadd.f32 %v6525_v24, %v623_v26  ;;  %v632_v43 = vadd.f32 %v6525_v24, %v624_v38  ;;  %s8897_s20 = smov (!%p4585_p9, %s446_s20), 7  ;;  %v6601_v59 = vadd.f32 %v6525_v24, %v579_v54  ;;  %v622_v5 = vmul.f32 %v6514_v20, %v6179_v1  ;;  %v5942_v26 = vld [vmem:[%s8593_s3 + $0x190] sm:$0xff]  ;;  %v5932_v54 = vld [vmem:[%s8593_s3 + $0xc0] sm:$0xff]  ;;  %vm7528_vm7 = vmpackc.low %vm724_vm0, %vm6334_vm2  ;;  %s4605_s27 = sshll.u32 %s8893_s10, 3 }
  0x1f   : > { %s4590_s28 = sshll.u32 %s8897_s20, 3  ;;  %v635_v60 = vmax.f32 %v627_v56, 0.0  ;;  %843 = vmatpush.bf16.msra.mxu0 %v5936_v57  ;;  %6223 = vmatpush.bf16.msra.mxu3 %v5936_v57  ;;  %v582_v6 = vmul.f32 %v6514_v20, %v6163_v2  ;;  %v6162_v7 = vunpack.c.l.bf16 %v6211_v0  ;;  %v6159_v48 = vunpack.c.h.bf16 %v6574_v47  ;;  %v5958_v3 = vld [vmem:[%s8593_s3 + $0x110] sm:$0xff] }
  0x20   : > { %v639_v30 = vmax.f32 %v631_v29, 0.0  ;;  %v640_v45 = vmax.f32 %v632_v43, 0.0  ;;  %921 = vmatpush.bf16.msra.mxu1 %v5927_v44  ;;  %s453_s26 = sadd.s32 %s6487_s24, %s4590_s28  ;;  %1015 = vmatpush.bf16.msra.mxu2 %v5944_v58  ;;  %v6186_v44 = vunpack.c.l.bf16 %v6216_v32  ;;  %v6175_v49 = vunpack.c.h.bf16 %v6571_v46  ;;  %v5940_v46 = vld [vmem:[%s8593_s3 + $0x180] sm:$0xff] }
  0x21   : > { %s4592_s17 = sshll.u32 %s453_s26, 2  ;;  %v6608_v63 = vmul.f32 %v6544_v34, %v635_v60  ;;  %v580_v57 = vmul.f32 %v6514_v20, %v6159_v48  ;;  %v5963_v60 = vld [vmem:[%s8593_s3 + $0x138] sm:$0xff]  ;;  %s497_s26 = sadd.s32 %s4605_s27, %s6484_s23 }
  0x22   : > { %v6548_v36 = vmul.f32 %v6544_v34, %v639_v30  ;;  %v6584_v51 = vmul.f32 %v6544_v34, %v640_v45  ;;  %s6615_s18 = scalar_lea.vmem %s8590_s0, %s4592_s17  ;;  %v625_v53 = vmul.f32 %v6514_v20, %v6186_v44  ;;  %v620_v58 = vmul.f32 %v6514_v20, %v6175_v49  ;;  %s502_s17 = scvt.s32.f32 %s6678_s6 }
  0x23   : > { %8675 = vst [vmem:[#allocation4_spill] sm:$0xff] %v6608_v63  ;;  %v6654_v30 = vld [vmem:[%s6615_s18] sm:$0xff]   ;;  %v6208_v37 = vld [vmem:[%s6615_s18 + $0x8] sm:$0xff]   ;;  %v6701_v1 = vld [vmem:[%s6615_s18 + $0x18] sm:$0xff]   ;;  %v6704_v2 = vadd.f32 %v6525_v24, %v580_v57  ;;  %s4606_s22 = sshll.u32 %s497_s26, 1 }
  0x24   : > { %8673 = vst [vmem:[#allocation2_spill] sm:$0xff] %v6548_v36  ;;  %922 = vmatpush.bf16.msra.mxu1 %v5926_v55  ;;  %v6142_v41 = vunpack.c.l.bf16 %v6654_v30  ;;  %v6147_v45 = vunpack.c.h.bf16 %v6208_v37  ;;  %v6146_v56 = vunpack.c.l.bf16 %v6208_v37  ;;  %s499_s29 = scalar_lea.vmem %s8599_s9, %s4606_s22 }
  0x25   : > { %1499 = vperm.xlu2 %6290, %v660_v8   ;;  %705 = vperm.xlu1 %6289, %v659_v9   ;;  %8674 = vst [vmem:[#allocation3_spill] sm:$0xff] %v6584_v51  ;;  %v621_v8 = vmul.f32 %v6514_v20, %v6178_v4  ;;  %v5935_v9 = vld [vmem:[%s8593_s3 + $0xd8] sm:$0xff]  ;;  %v628_v4 = vadd.f32 %v6525_v24, %v620_v58 }
  0x26   : > { %700 = vperm.xlu0 %6288, %v658_v10   ;;  %v5943_v10 = vld [vmem:[%s8593_s3 + $0x198] sm:$0xff]  ;;  %844 = vmatpush.bf16.msra.mxu0 %v5935_v9  ;;  %v527_v55 = vmul.f32 %v6514_v20, %v6142_v41  ;;  %v530_v0 = vmul.f32 %v6514_v20, %v6147_v45 }
  0x27   : > { %6224 = vmatpush.bf16.msra.mxu3 %v5935_v9  ;;  %1016 = vmatpush.bf16.msra.mxu2 %v5943_v10  ;;  %v529_v10 = vmul.f32 %v6514_v20, %v6146_v56 }
  0x28   : > { %923 = vmatpush.bf16.msra.mxu1 %v5925_v61  ;;  %v633_v61 = vadd.f32 %v6525_v24, %v625_v53  ;;  %v538_v9 = vadd.f32 %v6525_v24, %v527_v55  ;;  %v6771_v55 = vmax.f32 %v6562_v42, 0.0 }
  0x2a   : > { %845 = vmatpush.bf16.msra.mxu0 %v5934_v25  ;;  %8682 = vst [vmem:[#allocation11_spill] sm:$0xff] %v6771_v55 }
  0x2b   : > { %6225 = vmatpush.bf16.msra.mxu3 %v5934_v25  ;;  %1017 = vmatpush.bf16.msra.mxu2 %v5942_v26  ;;  %v6733_v26 = vstv %s502_s17 }
  0x2c   : > { %924 = vmatpush.bf16.msra.mxu1 %v5924_v18  ;;  %v5979_v18 = vld [vmem:[%s8593_s3 + $0xb8] sm:$0xff] }
  0x2d   : > { %1514 = vperm.xlu2 %6290, %v663_v11   ;;  %1509 = vperm.xlu1 %6289, %v662_v12   ;;  %v6209_v11 = vld [vmem:[%s6615_s18 + $0x10] sm:$0xff]   ;;  %v630_v12 = vadd.f32 %v6525_v24, %v622_v5 }
  0x2e   : > { %1504 = vperm.xlu0 %6288, %v661_v13   ;;  %v6628_v13 = vld [vmem:[%s6500_s19 + $0x18] sm:$0xff]   ;;  %v6150_v21 = vunpack.c.l.bf16 %v6209_v11  ;;  %v6151_v35 = vunpack.c.h.bf16 %v6209_v11  ;;  %846 = vmatpush.bf16.msra.mxu0 %v5933_v39  ;;  %v636_v11 = vmax.f32 %v628_v4, 0.0 }
  0x2f   : > { %v6170_v19 = vunpack.c.l.bf16 %v6628_v13  ;;  %6226 = vmatpush.bf16.msra.mxu3 %v5933_v39  ;;  %1018 = vmatpush.bf16.msra.mxu2 %v5941_v40  ;;  %v6171_v62 = vunpack.c.h.bf16 %v6628_v13  ;;  %v540_v39 = vadd.f32 %v6525_v24, %v529_v10  ;;  %v546_v40 = vmax.f32 %v538_v9, 0.0 }
  0x30   : > { %v531_v33 = vmul.f32 %v6514_v20, %v6150_v21  ;;  %v532_v52 = vmul.f32 %v6514_v20, %v6151_v35  ;;  %v541_v21 = vadd.f32 %v6525_v24, %v530_v0  ;;  %v6731_v25 = vmul.f32 %v6544_v34, %v636_v11 }
  0x31   : > { %v585_v31 = vmul.f32 %v6514_v20, %v6170_v19  ;;  %v5954_v19 = vld [vmem:[%s8593_s3 + $0x70] sm:$0xff]  ;;  %v548_v56 = vmax.f32 %v540_v39, 0.0 }
  0x32   : > { %v542_v50 = vadd.f32 %v6525_v24, %v531_v33  ;;  %847 = vmatpush.bf16.msra.mxu0 %v5932_v54  ;;  %8679 = vst [vmem:[#allocation8_spill] sm:$0xff] %v6731_v25  ;;  %v549_v48 = vmax.f32 %v541_v21, 0.0 }
  0x33   : > { %v6672_v43 = vadd.f32 %v6525_v24, %v585_v31  ;;  %6227 = vmatpush.bf16.msra.mxu3 %v5932_v54  ;;  %1019 = vmatpush.bf16.msra.mxu2 %v5940_v46  ;;  %v6736_v31 = vmax.f32 %v6601_v59, 0.0  ;;  %v5961_v59 = vld [vmem:[%s8593_s3 + $0x128] sm:$0xff]  ;;  %v6155_v54 = vunpack.c.h.bf16 %v6701_v1  ;;  %v6818_v10 = vmul.f32 %v6733_v26, %v548_v56 }
  0x34   : > { %v550_v5 = vmax.f32 %v542_v50, 0.0  ;;  %v5953_v46 = vld [vmem:[%s8593_s3 + $0x68] sm:$0xff] }
  0x35   : > { %1529 = vperm.xlu2 %6290, %v666_v14   ;;  %1524 = vperm.xlu1 %6289, %v665_v15   ;;  %v6631_v14 = vadd.f32 %v6525_v24, %v582_v6  ;;  %v581_v15 = vmul.f32 %v6514_v20, %v6162_v7  ;;  %v641_v6 = vmax.f32 %v633_v61, 0.0  ;;  %v5955_v7 = vld [vmem:[%s8593_s3 + $0x78] sm:$0xff]  ;;  %8680 = vst [vmem:[#allocation9_spill] sm:$0xff] %v6736_v31 }
  0x36   : > { %1519 = vperm.xlu0 %6288, %v664_v16   ;;  %v629_v16 = vadd.f32 %v6525_v24, %v621_v8  ;;  %1341 = vmatpush.bf16.msrb.mxu0 %v5963_v60  ;;  %v543_v8 = vadd.f32 %v6525_v24, %v532_v52  ;;  %v6743_v35 = vmul.f32 %v6733_v26, %v550_v5  ;;  %v6763_v52 = vmax.f32 %v6534_v28, 0.0 }
  0x37   : > { %v6640_v22 = vadd.f32 %v6525_v24, %v581_v15  ;;  %v6716_v13 = vmul.f32 %v6544_v34, %v641_v6  ;;  %v586_v15 = vmul.f32 %v6514_v20, %v6171_v62  ;;  %1194 = vmatpush.bf16.msrb.mxu3 %v5955_v7  ;;  %1668 = vmatpush.bf16.msrb.mxu2 %v5979_v18  ;;  %v6780_v60 = vmax.f32 %v6631_v14, 0.0  ;;  %v5952_v7 = vld [vmem:[%s8593_s3 + $0x60] sm:$0xff] }
  0x38   : > { %v637_v23 = vmax.f32 %v629_v16, 0.0  ;;  %v6187_v16 = vunpack.c.h.bf16 %v6216_v32  ;;  %v551_v37 = vmax.f32 %v543_v8, 0.0  ;;  %8681 = vst [vmem:[#allocation10_spill] sm:$0xff] %v6763_v52  ;;  %v6777_v28 = vmul.f32 %v6733_v26, %v546_v40  ;;  %v5971_v40 = vld [vmem:[%s8593_s3 + $0x1f8] sm:$0xff] }
  0x39   : > { %8678 = vst [vmem:[#allocation7_spill] sm:$0xff] %v6716_v13  ;;  %v6739_v32 = vadd.f32 %v6525_v24, %v586_v15  ;;  %v6784_v62 = vmul.f32 %v6733_v26, %v549_v48  ;;  %v6787_v42 = vmax.f32 %v6640_v22, 0.0  ;;  %v534_v6 = vmul.f32 %v6514_v20, %v6155_v54  ;;  %v5960_v22 = vld [vmem:[%s8593_s3 + $0x120] sm:$0xff]  ;;  %v5959_v48 = vld [vmem:[%s8593_s3 + $0x118] sm:$0xff]  ;;  %1460 = vmatpush.bf16.msrb.mxu1 %v5971_v40 }
  0x3a   : > { %v6662_v38 = vmul.f32 %v6544_v34, %v637_v23  ;;  %v6143_v23 = vunpack.c.h.bf16 %v6654_v30  ;;  %v626_v33 = vmul.f32 %v6514_v20, %v6187_v16  ;;  %v6774_v58 = vmul.f32 %v6733_v26, %v551_v37  ;;  %8683 = vst [vmem:[#allocation12_spill] sm:$0xff] %v6780_v60 }
  0x3b   : > { %1195 = vmatpush.bf16.msrb.mxu3 %v5954_v19  ;;  %8684 = vst [vmem:[#allocation13_spill] sm:$0xff] %v6787_v42  ;;  %v6901_v40 = vmax.f32 %v6704_v2, 0.0 }
  0x3c   : > { %8677 = vst [vmem:[#allocation6_spill] sm:$0xff] %v6662_v38  ;;  %v528_v49 = vmul.f32 %v6514_v20, %v6143_v23  ;;  %v634_v50 = vadd.f32 %v6525_v24, %v626_v33 }
  0x3d   : > { %8697 = vst [vmem:[#allocation22_spill] sm:$0xff] %v6901_v40 }
  0x3e   : > { %1534 = vperm.xlu0 %6288, %v667_v17   ;;  %v638_v17 = vmax.f32 %v630_v12, 0.0  ;;  %v6154_v12 = vunpack.c.l.bf16 %v6701_v1  ;;  %v642_v57 = vmax.f32 %v634_v50, 0.0  ;;  %v539_v0 = vadd.f32 %v6525_v24, %v528_v49  ;;  %v5977_v50 = vld [vmem:[%s8593_s3 + $0xa8] sm:$0xff] }
  0x3f   : > { %1196 = vmatpush.bf16.msrb.mxu3 %v5953_v46  ;;  %v5951_v46 = vld [vmem:[%s8593_s3 + $0x58] sm:$0xff] }
  0x40   : > { %v6651_v29 = vmul.f32 %v6544_v34, %v638_v17  ;;  %v5962_v17 = vld [vmem:[%s8593_s3 + $0x130] sm:$0xff]  ;;  %v533_v45 = vmul.f32 %v6514_v20, %v6154_v12  ;;  %v6791_v1 = vmul.f32 %v6544_v34, %v642_v57  ;;  %v547_v23 = vmax.f32 %v539_v0, 0.0 }
  0x41   : > { %1342 = vmatpush.bf16.msrb.mxu0 %v5962_v17  ;;  %v8693_v0 = vmov 0 }
  0x42   : > { %8676 = vst [vmem:[#allocation5_spill] sm:$0xff] %v6651_v29  ;;  %v544_v61 = vadd.f32 %v6525_v24, %v533_v45  ;;  %v5978_v45 = vld [vmem:[%s8593_s3 + $0xb0] sm:$0xff]  ;;  %v8694_v0 = vsel %vm6882_vm3, 4294967295, %v8693_v0 }
  0x43   : > { %8685 = vst [vmem:[#allocation14_spill] sm:$0xff] %v6791_v1  ;;  %1197 = vmatpush.bf16.msrb.mxu3 %v5952_v7  ;;  %1669 = vmatpush.bf16.msrb.mxu2 %v5978_v45 }
  0x44   : > { %v552_v17 = vmax.f32 %v544_v61, 0.0  ;;  %8695 = vst [vmem:[#allocation20_spill] sm:$0xff] %v8694_v0 }
  0x45   : > { %1343 = vmatpush.bf16.msrb.mxu0 %v5961_v59  ;;  %v545_v59 = vadd.f32 %v6525_v24, %v534_v6  ;;  %v6887_v6 = vmax.f32 %v6672_v43, 0.0 }
  0x47   : > { %8696 = vst [vmem:[#allocation21_spill] sm:$0xff] %v6887_v6  ;;  %1198 = vmatpush.bf16.msrb.mxu3 %v5951_v46  ;;  %v553_v45 = vmax.f32 %v545_v59, 0.0  ;;  %v5970_v59 = vld [vmem:[%s8593_s3 + $0x1f0] sm:$0xff]  ;;  %1670 = vmatpush.bf16.msrb.mxu2 %v5977_v50 }
  0x48   : > { %1461 = vmatpush.bf16.msrb.mxu1 %v5970_v59 }
  0x49   : > { %1344 = vmatpush.bf16.msrb.mxu0 %v5960_v22  ;;  %v8602_v22 = vmov 0.0   ;;  %v6958_v33 = vmul.f32 %v6733_v26, %v553_v45  ;;  %v5949_v45 = vld [vmem:[%s8593_s3 + $0x48] sm:$0xff] }
  0x4d   : > { %1345 = vmatpush.bf16.msrb.mxu0 %v5959_v48 }
  0x51   : > { %1346 = vmatpush.bf16.msrb.mxu0 %v5958_v3 }
  0x6f   : > { %v6648_v27 = vpop.permute.xlu2 %690 }
  0x70   : > { %v6795_v4 = vmul.f32 %v6648_v27, %v6743_v35  ;;  %v6808_v34 = vmul.f32 %v6648_v27, %v6763_v52  ;;  %v6812_v8 = vmul.f32 %v6648_v27, %v6548_v36 }
  0x72   : > { %8686 = vst [vmem:[#allocation15_spill] sm:$0xff] %v6808_v34 }
  0x73   : > { %8687 = vst [vmem:[#allocation16_spill] sm:$0xff] %v6812_v8 }
  0x77   : > { %v6689_v47 = vpop.permute.xlu2 %695 }
  0x78   : > { %v6843_v37 = vmul.f32 %v6689_v47, %v6774_v58  ;;  %v6862_v54 = vmul.f32 %v6689_v47, %v6771_v55 }
  0x7a   : > { %8691 = vst [vmem:[#allocation18_spill] sm:$0xff] %v6862_v54 }
  0x7f   : > { %v6745_v30 = vpop.permute.xlu2 %1499 }
  0x80   : > { %v6753_v41 = vmul.f32 %v6745_v30, %v6736_v31  ;;  %v6757_v44 = vmul.f32 %v6745_v30, %v6608_v63  ;;  %v6871_v56 = vmul.f32 %v6745_v30, %v6777_v28 }
  0x82   : > { %8692 = vst [vmem:[#allocation19_spill] sm:$0xff] %v6871_v56  ;;  %v8605_v43 = vrot.slane %v6753_v41, 7 }
  0x87   : > { %v6814_v9 = vpop.permute.xlu2 %1514  ;;  %v681_v15 = vpop.permute.xlu1 %680 }
  0x88   : > { %v6822_v11 = vmul.f32 %v6814_v9, %v6780_v60  ;;  %v6826_v12 = vmul.f32 %v6814_v9, %v6651_v29  ;;  %v671_v16 = vpop.permute.xlu0 %670  ;;  %v6829_v27 = vmul.f32 %v681_v15, %v6787_v42  ;;  %v6832_v18 = vmul.f32 %v681_v15, %v6662_v38 }
  0x89   : > { %v708_v19 = vmul.f32 %v671_v16, %v6777_v28  ;;  %v6846_v39 = vmul.f32 %v671_v16, %v6736_v31  ;;  %v6874_v57 = vmul.f32 %v681_v15, %v6818_v10  ;;  %v6877_v61 = vmul.f32 %v671_v16, %v6608_v63 }
  0x8a   : > { %8688 = vst [vmem:[#allocation17_spill] sm:$0xff] %v6826_v12  ;;  %v6893_v15 = vmul.f32 %v6733_v26, %v552_v17  ;;  %v6896_v16 = vmul.f32 %v6733_v26, %v547_v23  ;;  %v6909_v23 = vmul.f32 %v6689_v47, %v6584_v51  ;;  %v5950_v47 = vld [vmem:[%s8593_s3 + $0x50] sm:$0xff]  ;;  %v6952_v17 = vsel %vm724_vm0, 0.0, %v8605_v43 }
  0x8b   : > { %v6864_v24 = vrot.slane %v708_v19, 7  ;;  %v8608_v19 = vrot.slane %v6843_v37, 7  ;;  %v6974_v26 = vmax.f32 %v6739_v32, 0.0  ;;  %1199 = vmatpush.bf16.msrb.mxu3 %v5950_v47  ;;  %v6985_v59 = vrot.slane %v6846_v39, 7 }
  0x8c   : > { %8698 = vst [vmem:[#allocation23_spill] sm:$0xff] %v6909_v23  ;;  %v8706_v32 = vmov 0.0   ;;  %v8711_v39 = vrot.slane %v6795_v4, 7  ;;  %v1058_v34 = vrot.slane %v6896_v16, 7 }
  0x8d   : > { %v4693_v7 = vpack.c.bf16 %v6864_v24, %v8602_v22  ;;  %v5957_v22 = vld [vmem:[%s8593_s3 + $0x108] sm:$0xff]  ;;  %8702 = vst [vmem:[#allocation25_spill] sm:$0xff] %v6974_v26  ;;  %v6993_v47 = vpack.c.bf16 %v6952_v17, %v8706_v32 }
  0x8e   : > { %8705 = vst [vmem:[#allocation27_spill] sm:$0xff] %v6985_v59  ;;  %1347 = vmatpush.bf16.msrb.mxu0 %v5957_v22  ;;  %v7034_v22 = vmul.f32 %v6814_v9, %v6784_v62 }
  0x8f   : > { %4694 = vmatmul.msk.bf16.vlgmr.msra.gmra.mxu1 %vm6882_vm3, %v4693_v7  ;;  %v6914_v46 = vpop.permute.xlu2 %1529  ;;  %v686_v14 = vpop.permute.xlu1 %685  ;;  %8707 = vst [vmem:[#allocation28_spill] sm:$0xff] %v6993_v47  ;;  %1200 = vmatpush.bf16.msrb.mxu3 %v5949_v45  ;;  %v5987_v47 = vld [vmem:[%s8593_s3 + $0x178] sm:$0xff] }
  0x90   : > { %v6930_v49 = vmul.f32 %v6914_v46, %v6887_v6  ;;  %v6934_v2 = vmul.f32 %v6914_v46, %v6716_v13  ;;  %v676_v53 = vpop.permute.xlu0 %675  ;;  %v6937_v20 = vmul.f32 %v686_v14, %v6784_v62  ;;  %v6940_v30 = vmul.f32 %v686_v14, %v6780_v60 }
  0x91   : > { %v6943_v5 = vmul.f32 %v686_v14, %v6651_v29  ;;  %v709_v7 = vmul.f32 %v676_v53, %v6896_v16  ;;  %v6955_v48 = vmul.f32 %v676_v53, %v6901_v40  ;;  %v8700_v14 = vrot.slane %v6795_v4, 7 }
  0x92   : > { %v8701_v29 = vrot.slane %v6757_v44, 7  ;;  %v8614_v63 = vrot.slane %v6937_v20, 7 }
  0x93   : > { %8699 = vst [vmem:[#allocation24_spill] sm:$0xff] %v6943_v5  ;;  %v6965_v3 = vsel %vm724_vm0, %v8700_v14, %v8608_v19  ;;  %v726_v60 = vrot.slane %v709_v7, 7  ;;  %v8703_v14 = vrot.slane %v6871_v56, 7  ;;  %v6989_v7 = vmul.f32 %v676_v53, %v6731_v25 }
  0x94   : > { %v6970_v43 = vsel %vm724_vm0, 0.0, %v8701_v29  ;;  %v7009_v53 = vsel %vm724_vm0, %v8614_v63, %v8711_v39  ;;  %v8712_v29 = vrot.slane %v6874_v57, 7  ;;  %v8714_v0 = vrot.slane %v6955_v48, 7 }
  0x95   : > { %v6982_v50 = vsel %vm724_vm0, 0.0, %v8703_v14  ;;  %v727_v19 = vsel %vm724_vm0, %v6864_v24, %v726_v60  ;;  %v8708_v14 = vmov 0  ;;  %v7018_v21 = vpack.c.bf16 %v6970_v43, %v8706_v32 }
  0x96   : > { %8704 = vst [vmem:[#allocation26_spill] sm:$0xff] %v6982_v50  ;;  %v8709_v14 = vsel %vm7000_vm4, 4294967295, %v8708_v14  ;;  %v7014_v31 = vsel %vm724_vm0, %v726_v60, %v8712_v29  ;;  %v7024_v4 = vsel %vm724_vm0, %v6985_v59, %v8714_v0  ;;  %v4657_v8 = vpack.c.bf16 %v727_v19, %v6864_v24  ;;  %v5956_v60 = vld [vmem:[%s8593_s3 + $0x100] sm:$0xff] }
  0x97   : > { %8710 = vst [vmem:[#allocation29_spill] sm:$0xff] %v8709_v14  ;;  %v773_v39 = vpack.c.bf16 %v6965_v3, %v7009_v53  ;;  %v752_v63 = vpack.c.bf16 %v7014_v31, %v727_v19  ;;  %v5948_v24 = vld [vmem:[%s8593_s3 + $0x40] sm:$0xff]  ;;  %v7044_v0 = vpack.c.bf16 %v6982_v50, %v8706_v32  ;;  %v706_v9 = vpop.permute.xlu1 %705  ;;  %v8717_v19 = vrot.slane %v6777_v28, 7  ;;  %1348 = vmatpush.bf16.msrb.mxu0 %v5956_v60 }
  0x98   : > { %8713 = vst [vmem:[#allocation30_spill] sm:$0xff] %v7018_v21  ;;  %v701_v56 = vpop.permute.xlu0 %700  ;;  %4658 = vmatmul.msk.bf16.vlgmr.msra.gmra.mxu0 %vm7000_vm4, %v4657_v8  ;;  %v7055_v29 = vmul.f32 %v706_v9, %v6958_v33  ;;  %v7058_v59 = vmul.f32 %v706_v9, %v6974_v26  ;;  %v7061_v54 = vmul.f32 %v706_v9, %v6791_v1  ;;  %v5969_v8 = vld [vmem:[%s8593_s3 + $0x1e8] sm:$0xff]  ;;  %v5976_v9 = vld [vmem:[%s8593_s3 + $0xa0] sm:$0xff]  ;;  %v8730_v21 = vrot.slane %v6818_v10, 7 }
  0x99   : > { %8715 = vst [vmem:[#allocation31_spill] sm:$0xff] %v7024_v4  ;;  %858 = vmatmul.bf16.vlgmr.msra.gmra.mxu3 %v773_v39  ;;  %v1081_v45 = vsel %vm724_vm0, 0.0, %v8717_v19  ;;  %v714_v52 = vmul.f32 %v701_v56, %v6893_v15  ;;  %1020 = vmatmul.bf16.vlgmr.msra.gmra.mxu2 %v752_v63  ;;  %v7070_v19 = vmul.f32 %v6914_v46, %v6893_v15  ;;  %v5995_v4 = vld [vmem:[%s8593_s3 + $0x238] sm:$0xff]  ;;  %v5968_v39 = vld [vmem:[%s8593_s3 + $0x1e0] sm:$0xff] }
  0x9a   : > { %8716 = vst [vmem:[#allocation32_spill] sm:$0xff] %v7044_v0  ;;  %v7073_v14 = vmul.f32 %v701_v56, %v6887_v6  ;;  %v7076_v23 = vmul.f32 %v701_v56, %v6716_v13  ;;  %1462 = vmatpush.bf16.msrb.mxu1 %v5969_v8  ;;  %1201 = vmatpush.bf16.msrb.mxu3 %v5948_v24  ;;  %v5975_v24 = vld [vmem:[%s8593_s3 + $0x98] sm:$0xff]  ;;  %v7101_v56 = vrot.slane %v6877_v61, 7  ;;  %v8720_v13 = vrot.slane %v6777_v28, 7 }
  0x9b   : > { %8718 = vst [vmem:[#allocation33_spill] sm:$0xff] %v7061_v54  ;;  %v736_v6 = vrot.slane %v714_v52, 7  ;;  %1671 = vmatpush.bf16.msrb.mxu2 %v5976_v9  ;;  %v7091_v50 = vpack.c.bf16 %v1081_v45, %v8706_v32  ;;  %1904 = vmatpush.bf16.msra.mxu0 %v5995_v4  ;;  %v8719_v9 = vrot.slane %v6818_v10, 7  ;;  %v8721_v0 = vrot.slane %v6937_v20, 7 }
  0x9c   : > { %v1059_v32 = vsel %vm724_vm0, %v8720_v13, %v1058_v34  ;;  %v5994_v13 = vld [vmem:[%s8593_s3 + $0x230] sm:$0xff]  ;;  %v8723_v61 = vrot.slane %v6843_v37, 7  ;;  %v8724_v52 = vrot.slane %v6829_v27, 7  ;;  %v8725_v37 = vrot.slane %v6955_v48, 7 }
  0x9d   : > { %v1061_v60 = vsel %vm724_vm0, %v1058_v34, %v8719_v9  ;;  %v8722_v9 = vrot.slane %v6874_v57, 7  ;;  %v1109_v57 = vshll.u32 %v7091_v50, 16  ;;  %v7161_v12 = vpack.c.bf16 %v1059_v32, %v1081_v45 }
  0x9e   : > { %v7134_v20 = vpack.c.bf16 %v1061_v60, %v1059_v32  ;;  %1463 = vmatpush.bf16.msrb.mxu1 %v5968_v39  ;;  %1793 = vmatpush.bf16.msra.mxu3 %v5987_v47  ;;  %v1107_v47 = vshrl.u32 %v7091_v50, 16  ;;  %v5966_v50 = vld [vmem:[%s8593_s3 + $0x1d0] sm:$0xff] }
  0x9f   : > { %930 = vmatmul.bf16.gmra.mxu1 %v752_v63  ;;  %v731_v4 = vsel %vm724_vm0, %v8722_v9, %v8721_v0  ;;  %v7127_v28 = vpop.permute.xlu1 %1509  ;;  %v7132_v63 = vsel %vm724_vm0, %v8723_v61, %v736_v6  ;;  %1672 = vmatpush.bf16.msrb.mxu2 %v5975_v24  ;;  %v5967_v0 = vld [vmem:[%s8593_s3 + $0x1d8] sm:$0xff]  ;;  %v5974_v9 = vld [vmem:[%s8593_s3 + $0x90] sm:$0xff]  ;;  %v7148_v61 = vsel %vm724_vm0, %v8725_v37, %v8724_v52  ;;  %v8728_v24 = vrot.slane %v7055_v29, 7 }
  0xa0   : > { %v1505_v34 = vpop.permute.xlu0 %1504  ;;  %8726 = vst [vmem:[#allocation34_spill] sm:$0xff] %v7148_v61  ;;  %v2742_v8 = vmul.f32 %v7127_v28, %v6787_v42  ;;  %v7154_v39 = vmul.f32 %v7127_v28, %v6662_v38  ;;  %v772_v37 = vpack.c.bf16 %v731_v4, %v7014_v31  ;;  %v8729_v42 = vrot.slane %v6784_v62, 7  ;;  %1905 = vmatpush.bf16.msra.mxu0 %v5994_v13 }
  0xa1   : > { %v7159_v46 = vsel %vm724_vm0, %v736_v6, %v8728_v24  ;;  %v2741_v48 = vmul.f32 %v1505_v34, %v6901_v40  ;;  %v3941_v52 = vmul.f32 %v1505_v34, %v6731_v25  ;;  %v7173_v32 = vpack.c.bf16 %v7009_v53, %v731_v4 }
  0xa2   : > { %8727 = vst [vmem:[#allocation35_spill] sm:$0xff] %v7154_v39  ;;  %v1063_v38 = vsel %vm724_vm0, %v8730_v21, %v8729_v42  ;;  %v2759_v5 = vrot.slane %v2742_v8, 7  ;;  %v8644_v6 = vrot.slane %v7154_v39, 7  ;;  %v774_v31 = vpack.c.bf16 %v7159_v46, %v7132_v63  ;;  %1464 = vmatpush.bf16.msrb.mxu1 %v5967_v0 }
  0xa3   : > { %v2757_v45 = vrot.slane %v2741_v48, 7  ;;  %v3957_v24 = vrot.slane %v3941_v52, 7  ;;  %v1114_v25 = vshll.u32 %v7134_v20, 16  ;;  %1673 = vmatpush.bf16.msrb.mxu2 %v5974_v9  ;;  %v8731_v42 = vrot.slane %v6822_v11, 7 }
  0xa4   : > { %v1111_v8 = vrot.slane %v1109_v57, 1  ;;  %v7184_v13 = vpack.c.bf16 %v1063_v38, %v1061_v60  ;;  %v1256_v53 = vshll.u32 %v7161_v12, 16  ;;  %v8732_v4 = vrot.slane %v6753_v41, 7 }
  0xa5   : > { %v7182_v21 = vsel %vm724_vm0, %v2759_v5, %v8731_v42  ;;  %v7196_v0 = vsel %vm724_vm0, %v2757_v45, %v2759_v5  ;;  %v8733_v9 = vrot.slane %v6757_v44, 7  ;;  %v7206_v60 = vsel %vm724_vm0, %v3957_v24, %v8644_v6 }
  0xa6   : > { %v7193_v48 = vsel %vm724_vm0, %v8732_v4, %v2757_v45  ;;  %v7218_v42 = vmul.f32 %v1505_v34, %v6896_v16  ;;  %v1254_v44 = vshrl.u32 %v7161_v12, 16  ;;  %1465 = vmatpush.bf16.msrb.mxu1 %v5966_v50  ;;  %v8734_v16 = vrot.slane %v6743_v35, 7 }
  0xa7   : > { %v7201_v57 = vsel %vm724_vm0, %v8733_v9, %v3957_v24  ;;  %v2783_v52 = vpack.c.bf16 %v7196_v0, %v7193_v48  ;;  %v1525_v4 = vpop.permute.xlu1 %1524  ;;  %v8735_v34 = vrot.slane %v6784_v62, 7  ;;  %v1258_v50 = vrot.slane %v1256_v53, 1  ;;  %v5993_v62 = vld [vmem:[%s8593_s3 + $0x228] sm:$0xff] }
  0xa8   : > { %v1520_v9 = vpop.permute.xlu0 %1519  ;;  %853 = vmatmul.bf16.gmra.mxu0 %v772_v37  ;;  %v5965_v37 = vld [vmem:[%s8593_s3 + $0x1c8] sm:$0xff]  ;;  %v7238_v6 = vmul.f32 %v1525_v4, %v6771_v55  ;;  %v3945_v12 = vmul.f32 %v1525_v4, %v6584_v51  ;;  %v1261_v45 = vshll.u32 %v7184_v13, 16  ;;  %v1112_v41 = vor.u32 %v1111_v8, %v1107_v47 }
  0xa9   : > { %863 = vmatmul.bf16.gmra.mxu3 %v774_v31  ;;  %1025 = vmatmul.bf16.gmra.mxu2 %v7173_v32  ;;  %v1065_v24 = vsel %vm724_vm0, %v8735_v34, %v8734_v16  ;;  %v5986_v31 = vld [vmem:[%s8593_s3 + $0x170] sm:$0xff]  ;;  %v5973_v16 = vld [vmem:[%s8593_s3 + $0x88] sm:$0xff]  ;;  %v7250_v34 = vmul.f32 %v7127_v28, %v6818_v10  ;;  %v7253_v5 = vmul.f32 %v1520_v9, %v6548_v36  ;;  %v1116_v51 = vrot.slane %v1114_v25, 1 }
  0xaa   : > { %1794 = vmatpush.bf16.msra.mxu3 %v5986_v31  ;;  %v1554_v53 = vrot.slane %v7218_v42, 7  ;;  %v8653_v55 = vrot.slane %v7238_v6, 7  ;;  %v3965_v40 = vrot.slane %v3945_v12, 7  ;;  %v7257_v39 = vpack.c.bf16 %v1065_v24, %v1063_v38  ;;  %1906 = vmatpush.bf16.msra.mxu0 %v5993_v62  ;;  %v5964_v38 = vld [vmem:[%s8593_s3 + $0x1c0] sm:$0xff] }
  0xab   : > { %8736 = vst [vmem:[#allocation36_spill] sm:$0xff] %v7253_v5  ;;  %1674 = vmatpush.bf16.msrb.mxu2 %v5973_v16  ;;  %v8652_v10 = vrot.slane %v7253_v5, 7  ;;  %v8737_v28 = vrot.slane %v7055_v29, 7  ;;  %v7268_v25 = vpack.c.bf16 %v7132_v63, %v6965_v3  ;;  %1466 = vmatpush.bf16.msrb.mxu1 %v5965_v37  ;;  %v8738_v47 = vrot.slane %v6930_v49, 7 }
  0xac   : > { %v8739_v29 = vrot.slane %v6934_v2, 7  ;;  %v1259_v42 = vor.u32 %v1258_v50, %v1254_v44  ;;  %v1263_v3 = vrot.slane %v1261_v45, 1  ;;  %v1556_v63 = vrot.slane %v7250_v34, 7  ;;  %v5985_v44 = vld [vmem:[%s8593_s3 + $0x168] sm:$0xff]  ;;  %v5992_v45 = vld [vmem:[%s8593_s3 + $0x220] sm:$0xff] }
  0xad   : > { %v7264_v36 = vpack.c.bf16 %v8737_v28, %v7159_v46  ;;  %v7278_v8 = vsel %vm724_vm0, %v8653_v55, %v8738_v47  ;;  %v7289_v37 = vsel %vm724_vm0, %v8652_v10, %v3965_v40  ;;  %v1117_v31 = vsel %vm1105_vm5, %v1112_v41, %v1116_v51  ;;  %v8744_v28 = vld [vmem:[#allocation19_spill] sm:$0xff] }
  0xae   : > { %v7283_v46 = vsel %vm724_vm0, %v3965_v40, %v8739_v29  ;;  %8741 = vst [vmem:[#allocation38_spill] sm:$0xff] %v7289_v37  ;;  %v8742_v12 = vrot.slane %v6774_v58, 7  ;;  %v8743_v62 = vrot.slane %v6743_v35, 7  ;;  %v5972_v40 = vld [vmem:[%s8593_s3 + $0x80] sm:$0xff]  ;;  %v1118_v50 = vshrl.u32 %v7134_v20, 16  ;;  %1795 = vmatpush.bf16.msra.mxu3 %v5985_v44  ;;  %1907 = vmatpush.bf16.msra.mxu0 %v5992_v45 }
  0xaf   : > { %8740 = vst [vmem:[#allocation37_spill] sm:$0xff] %v7283_v46  ;;  %935 = vmatmul.bf16.gmra.mxu1 %v7173_v32  ;;  %v1541_v32 = vmul.f32 %v1520_v9, %v6743_v35  ;;  %v1122_v34 = vshll.u32 %v7257_v39, 16  ;;  %v8745_v47 = vrot.slane %v8744_v28, 7  ;;  %v8746_v35 = vpack.c.bf16 %v7193_v48, %v6952_v17  ;;  %v8747_v28 = vld [vmem:[#allocation10_spill] sm:$0xff]  ;;  %1675 = vmatpush.bf16.msrb.mxu2 %v5972_v40 }
  0xb0   : > { %v1067_v16 = vsel %vm724_vm0, %v8743_v62, %v8742_v12  ;;  %v1535_v41 = vpop.permute.xlu0 %1534  ;;  %v7315_v12 = vrot.slane %v2783_v52, 1  ;;  %1467 = vmatpush.bf16.msrb.mxu1 %v5964_v38  ;;  %v1542_v55 = vmul.f32 %v1525_v4, %v6774_v58  ;;  %v7327_v46 = vmul.f32 %v1520_v9, %v8747_v28 }
  0xb1   : > { %v7313_v29 = vsel %vm724_vm0, %v8745_v47, %v1554_v53  ;;  %v1544_v62 = vmul.f32 %v1535_v41, %v6958_v33  ;;  %v2747_v10 = vmul.f32 %v1535_v41, %v6974_v26  ;;  %v3947_v54 = vmul.f32 %v1535_v41, %v6791_v1 }
  0xb2   : > { %v7323_v20 = vrot.slane %v8746_v35, 1  ;;  %v1264_v52 = vsel %vm1105_vm5, %v1259_v42, %v1263_v3  ;;  %v7330_v5 = vpack.c.bf16 %v1067_v16, %v1065_v24  ;;  %v1560_v38 = vrot.slane %v1541_v32, 7 }
  0xb3   : > { %v1566_v47 = vrot.slane %v1544_v62, 7  ;;  %v2769_v37 = vrot.slane %v2747_v10, 7  ;;  %v3969_v26 = vrot.slane %v3947_v54, 7  ;;  %v1120_v41 = vor.u32 %v1118_v50, %v1116_v51 }
  0xb4   : > { %v7332_v17 = vrot.slane %v1122_v34, 1  ;;  %v1265_v48 = vshrl.u32 %v7184_v13, 16  ;;  %v8748_v4 = vrot.slane %v7070_v19, 7  ;;  %v8749_v10 = vrot.slane %v6930_v49, 7 }
  0xb5   : > { %v7341_v42 = vsel %vm724_vm0, %v1566_v47, 0.0  ;;  %v7349_v24 = vsel %vm724_vm0, %v2769_v37, 0.0  ;;  %v8750_v44 = vrot.slane %v6893_v15, 7  ;;  %v8751_v45 = vrot.slane %v6774_v58, 7 }
  0xb6   : > { %v7338_v9 = vsel %vm724_vm0, %v8748_v4, %v1566_v47  ;;  %v7346_v54 = vsel %vm724_vm0, %v8749_v10, %v2769_v37  ;;  %v1557_v49 = vsel %vm724_vm0, %v1554_v53, %v1556_v63  ;;  %v1562_v32 = vrot.slane %v1542_v55, 7  ;;  %v5984_v10 = vld [vmem:[%s8593_s3 + $0x160] sm:$0xff] }
  0xb7   : > { %v1830_v51 = vpack.c.bf16 %v7341_v42, %v7338_v9  ;;  %v1069_v40 = vsel %vm724_vm0, %v8751_v45, %v8750_v44  ;;  %v8752_v50 = vrot.slane %v6934_v2, 7  ;;  %v7367_v34 = vsel %vm724_vm0, %v3969_v26, 0.0  ;;  %v5991_v44 = vld [vmem:[%s8593_s3 + $0x218] sm:$0xff]  ;;  %1796 = vmatpush.bf16.msra.mxu3 %v5984_v10 }
  0xb8   : > { %v1269_v62 = vshll.u32 %v7330_v5, 16  ;;  %v8753_v35 = vpack.c.bf16 %v7182_v21, %v7196_v0  ;;  %v8754_v58 = vpack.c.bf16 %v7206_v60, %v7201_v57  ;;  %1349 = vmatmul.bf16.vlgmr.msrb.gmra.mxu0 %v1264_v52  ;;  %v7384_v4 = vpack.c.bf16 %v1069_v40, %v1067_v16 }
  0xb9   : > { %v7364_v37 = vsel %vm724_vm0, %v8752_v50, %v3969_v26  ;;  %1202 = vmatmul.bf16.vlgmr.msrb.gmra.mxu3 %v1117_v31  ;;  %1030 = vmatmul.bf16.gmra.mxu2 %v7268_v25  ;;  %v1267_v26 = vor.u32 %v1265_v48, %v1263_v3  ;;  %v1580_v0 = vpack.c.bf16 %v1557_v49, %v7313_v29  ;;  %v6011_v31 = vld [vmem:[%s8593_s3 + $0x338] sm:$0xff]  ;;  %v8755_v52 = vrot.slane %v7034_v22, 7 }
  0xba   : > { %v7373_v47 = vrot.slane %v8753_v35, 1  ;;  %v7378_v53 = vrot.slane %v8754_v58, 1  ;;  %v7401_v16 = vsel %vm1105_vm5, %v1120_v41, %v7332_v17  ;;  %v8756_v48 = vrot.slane %v6958_v33, 7  ;;  %1908 = vmatpush.bf16.msra.mxu0 %v5991_v44  ;;  %2158 = vmatpush.bf16.msra.mxu2 %v6011_v31 }
  0xbb   : > { %v1559_v3 = vsel %vm724_vm0, %v1556_v63, %v8755_v52  ;;  %v8757_v45 = vrot.slane %v6893_v15, 7  ;;  %v8758_v35 = vmov %v8755_v52  ;;  %v7413_v13 = vrot.slane %v1269_v62, 1 }
  0xbc   : > { %v1561_v58 = vsel %vm724_vm0, %v8758_v35, %v1560_v38  ;;  %v1706_v2 = vpack.c.bf16 %v1559_v3, %v1557_v49  ;;  %v1563_v41 = vsel %vm724_vm0, %v1560_v38, %v1562_v32  ;;  %v8759_v52 = vrot.slane %v7070_v19, 7 }
  0xbd   : > { %v7408_v50 = vsel %vm724_vm0, %v8757_v45, %v8756_v48  ;;  %v1581_v63 = vpack.c.bf16 %v1561_v58, %v1559_v3  ;;  %v8760_v48 = vld [vmem:[#allocation26_spill] sm:$0xff]  ;;  %v1583_v49 = vpack.c.bf16 %v7338_v9, %v7338_v9  ;;  %v7425_v62 = vrot.slane %v1580_v0, 1 }
  0xbe   : > { %v1565_v55 = vsel %vm724_vm0, %v1562_v32, %v8759_v52  ;;  %v1705_v45 = vpack.c.bf16 %v7313_v29, %v8760_v48  ;;  %v7421_v22 = vrot.slane %v1706_v2, 1  ;;  %v1707_v44 = vpack.c.bf16 %v1563_v41, %v1561_v58  ;;  %v5983_v2 = vld [vmem:[%s8593_s3 + $0x158] sm:$0xff] }
  0xbf   : > { %v1582_v15 = vpack.c.bf16 %v1565_v55, %v1563_v41  ;;  %v1610_v10 = vrot.slane %v1581_v63, 1  ;;  %v1708_v38 = vpack.c.bf16 %v7338_v9, %v1565_v55  ;;  %v1614_v35 = vrot.slane %v1583_v49, 1  ;;  %940 = vmatmul.bf16.gmra.mxu1 %v7268_v25  ;;  %v5990_v9 = vld [vmem:[%s8593_s3 + $0x210] sm:$0xff]  ;;  %1797 = vmatpush.bf16.msra.mxu3 %v5983_v2 }
  0xc0   : > { %v1732_v19 = vrot.slane %v1705_v45, 1  ;;  %v1850_v32 = vrot.slane %v1830_v51, 1  ;;  %v1709_v31 = vpack.c.bf16 %v7341_v42, %v7341_v42  ;;  %v1272_v29 = vsel %vm1105_vm5, %v1267_v26, %v7413_v13  ;;  %v6003_v51 = vld [vmem:[%s8593_s3 + $0x278] sm:$0xff]  ;;  %v6010_v55 = vld [vmem:[%s8593_s3 + $0x330] sm:$0xff]  ;;  %1909 = vmatpush.bf16.msra.mxu0 %v5990_v9 }
  0xc1   : > { %v1612_v3 = vrot.slane %v1582_v15, 1  ;;  %v7444_v42 = vsel %vm1606_vm6, %v7425_v62, %v1610_v10  ;;  %v7446_v25 = vrot.slane %v1707_v44, 1  ;;  %v1737_v63 = vrot.slane %v1708_v38, 1  ;;  %2052 = vmatpush.bf16.msra.mxu1 %v6003_v51  ;;  %2159 = vmatpush.bf16.msra.mxu2 %v6010_v55 }
  0xc2   : > { %v7456_v0 = vsel %vm1606_vm6, %v1732_v19, %v7421_v22  ;;  %v2911_v41 = vpack.c.bf16 %v7349_v24, %v7349_v24  ;;  %v1126_v52 = vshrl.u32 %v7257_v39, 16  ;;  %v7465_v15 = vpack.c.bf16 %v7408_v50, %v1069_v40 }
  0xc3   : > { %v7452_v26 = vsel %vm1606_vm6, %v1610_v10, %v1612_v3  ;;  %v7459_v58 = vsel %vm1606_vm6, %v1612_v3, %v1614_v35  ;;  %v7468_v48 = vsel %vm1606_vm6, %v1612_v3, %v1850_v32  ;;  %v1130_v45 = vshll.u32 %v7384_v4, 16  ;;  %v8761_v10 = vld [vmem:[#allocation31_spill] sm:$0xff] }
  0xc4   : > { %v7473_v49 = vsel %vm1606_vm6, %v7446_v25, %v1737_v63  ;;  %v7477_v44 = vpack.c.bf16 %v7148_v61, %v8761_v10  ;;  %v8762_v39 = vrot.slane %v6940_v30, 7  ;;  %v8763_v40 = vrot.slane %v6829_v27, 7  ;;  %v8764_v35 = vld [vmem:[#allocation15_spill] sm:$0xff] }
  0xc5   : > { %v1273_v3 = vshrl.u32 %v7330_v5, 16  ;;  %v8765_v2 = vrot.slane %v8764_v35, 7  ;;  %v1739_v55 = vrot.slane %v1709_v31, 1  ;;  %v6336_v1 = vmov 0.0|0.0  }
  0xc6   : > { %v7484_v38 = vsel %vm724_vm0, %v8763_v40, %v8762_v39  ;;  %v8766_v9 = vmov %v8762_v39  ;;  %v7496_v28 = vrot.slane %v6336_v1, 1  ;;  %v8768_v39 = vld [vmem:[#allocation18_spill] sm:$0xff]  ;;  %v1277_v30 = vshll.u32 %v7465_v15, 16 }
  0xc7   : > { %v7494_v51 = vsel %vm724_vm0, %v8766_v9, %v8765_v2  ;;  %v8769_v5 = vrot.slane %v8768_v39, 7  ;;  %v8770_v40 = vmov %v8765_v2  ;;  %v8771_v31 = vrot.slane %v7073_v14, 7 }
  0xc8   : > { %v7500_v27 = vpack.c.bf16 %v7494_v51, %v7484_v38  ;;  %v7537_v39 = vsel %vm1606_vm6, %v1850_v32, %v7496_v28  ;;  %v7559_v32 = vsel %vm1606_vm6, %v7323_v20, %v7373_v47  ;;  %v8783_v2 = vrot.slane %v7327_v46, 7  ;;  %1354 = vmatmul.bf16.gmra.mxu0 %v1272_v29  ;;  %v6009_v29 = vld [vmem:[%s8593_s3 + $0x328] sm:$0xff] }
  0xc9   : > { %v7507_v19 = vsel %vm724_vm0, %v8770_v40, %v8769_v5  ;;  %v8772_v1 = vmov %v8769_v5  ;;  %v8775_v61 = vmov %v8771_v31  ;;  %v7533_v40 = vsel %vm1606_vm6, %v1737_v63, %v1739_v55  ;;  %8782 = vst [vmem:[#allocation15_spill] sm:$0xff] %v7559_v32  ;;  %1207 = vmatmul.bf16.gmra.mxu3 %v7401_v16  ;;  %4745 = vmatmul.msk.bf16.gmra.mxu2 %vm7528_vm7, %v7264_v36 }
  0xca   : > { %8767 = vst [vmem:[#allocation19_spill] sm:$0xff] %v7500_v27  ;;  %v7517_v9 = vsel %vm724_vm0, %v8772_v1, %v8771_v31  ;;  %v8774_v27 = vrot.slane %v7058_v59, 7  ;;  %v8779_v1 = vld [vmem:[#allocation28_spill] sm:$0xff]  ;;  %v8784_v14 = vrot.slane %v6822_v11, 7  ;;  %v8785_v59 = vpack.c.bf16 %v7201_v57, %v6970_v43  ;;  %2160 = vmatpush.bf16.msra.mxu2 %v6009_v29  ;;  %v5981_v29 = vld [vmem:[%s8593_s3 + $0x148] sm:$0xff] }
  0xcb   : > { %8773 = vst [vmem:[#allocation26_spill] sm:$0xff] %v7517_v9  ;;  %v7541_v31 = vpack.c.bf16 %v7517_v9, %v7507_v19  ;;  %v8780_v63 = vrot.slane %v8779_v1, 1  ;;  %v1128_v1 = vor.u32 %v1126_v52, %v7332_v17  ;;  %v8786_v20 = vrot.slane %v7238_v6, 7  ;;  %v5982_v57 = vld [vmem:[%s8593_s3 + $0x150] sm:$0xff] }
  0xcc   : > { %v7524_v35 = vsel %vm724_vm0, %v8775_v61, %v8774_v27  ;;  %v8778_v61 = vmov %v8774_v27  ;;  %v2764_v9 = vsel %vm724_vm0, %v8784_v14, %v8783_v2  ;;  %v8787_v32 = vmov %v8783_v2  ;;  %v6002_v6 = vld [vmem:[%s8593_s3 + $0x270] sm:$0xff]  ;;  %1798 = vmatpush.bf16.msra.mxu3 %v5982_v57 }
  0xcd   : > { %v7548_v27 = vpack.c.bf16 %v8778_v61, %v7524_v35  ;;  %v7554_v55 = vsel %vm1606_vm6, %v8780_v63, %v7315_v12  ;;  %v7569_v61 = vrot.slane %v8785_v59, 1  ;;  %v2784_v63 = vpack.c.bf16 %v2764_v9, %v7182_v21  ;;  %v5989_v21 = vld [vmem:[%s8593_s3 + $0x208] sm:$0xff]  ;;  %2053 = vmatpush.bf16.msra.mxu1 %v6002_v6 }
  0xce   : > { %8781 = vst [vmem:[#allocation31_spill] sm:$0xff] %v7554_v55  ;;  %v2766_v11 = vsel %vm724_vm0, %v8787_v32, %v8786_v20  ;;  %v2941_v55 = vrot.slane %v2911_v41, 1  ;;  %v7582_v43 = vrot.slane %v1130_v45, 1  ;;  %v4111_v36 = vpack.c.bf16 %v7367_v34, %v7367_v34  ;;  %1910 = vmatpush.bf16.msra.mxu0 %v5989_v21 }
  0xcf   : > { %v2909_v46 = vpack.c.bf16 %v2766_v11, %v2764_v9  ;;  %v2785_v17 = vpack.c.bf16 %v7278_v8, %v2766_v11  ;;  %v2812_v41 = vrot.slane %v2784_v63, 1  ;;  %v2910_v52 = vpack.c.bf16 %v7346_v54, %v7278_v8  ;;  %1468 = vmatmul.bf16.vlgmr.msrb.gmra.mxu1 %v7401_v16 }
  0xd0   : > { %v2786_v45 = vpack.c.bf16 %v7346_v54, %v7346_v54  ;;  %v1275_v2 = vor.u32 %v1273_v3, %v7413_v13  ;;  %v7604_v14 = vrot.slane %v1277_v30, 1  ;;  %v8788_v8 = vrot.slane %v6989_v7, 7  ;;  %v6001_v7 = vld [vmem:[%s8593_s3 + $0x268] sm:$0xff]  ;;  %1799 = vmatpush.bf16.msra.mxu3 %v5981_v29 }
  0xd1   : > { %v2937_v9 = vrot.slane %v2909_v46, 1  ;;  %v2814_v32 = vrot.slane %v2785_v17, 1  ;;  %v7608_v59 = vsel %vm1606_vm6, %v7315_v12, %v2812_v41  ;;  %v2939_v63 = vrot.slane %v2910_v52, 1  ;;  %v8795_v52 = vld [vmem:[#allocation24_spill] sm:$0xff]  ;;  %2054 = vmatpush.bf16.msra.mxu1 %v6001_v7  ;;  %v8827_v7 = vld [vmem:[#allocation38_spill] sm:$0xff] }
  0xd2   : > { %v2816_v20 = vrot.slane %v2786_v45, 1  ;;  %v7614_v11 = vsel %vm724_vm0, %v7101_v56, %v8788_v8  ;;  %v8790_v13 = vpack.c.bf16 %v7349_v24, %v7346_v54  ;;  %v7621_v30 = vsel %vm1105_vm5, %v1128_v1, %v7582_v43 }
  0xd3   : > { %8789 = vst [vmem:[#allocation18_spill] sm:$0xff] %v7614_v11  ;;  %v7625_v12 = vsel %vm1606_vm6, %v7373_v47, %v2937_v9  ;;  %v7628_v57 = vsel %vm1606_vm6, %v2812_v41, %v2814_v32  ;;  %v7631_v21 = vsel %vm1606_vm6, %v2937_v9, %v2939_v63  ;;  %v7637_v54 = vsel %vm1606_vm6, %v2939_v63, %v2941_v55  ;;  %v5988_v55 = vld [vmem:[%s8593_s3 + $0x200] sm:$0xff]  ;;  %v8798_v63 = vld [vmem:[#allocation16_spill] sm:$0xff] }
  0xd4   : > { %v3051_v3 = vrot.slane %v8790_v13, 1  ;;  %v7634_v6 = vsel %vm1606_vm6, %v2814_v32, %v2816_v20  ;;  %v8791_v24 = vrot.slane %v6832_v18, 7  ;;  %v8792_v1 = vmov %v8788_v8  ;;  %v6008_v41 = vld [vmem:[%s8593_s3 + $0x320] sm:$0xff]  ;;  %1911 = vmatpush.bf16.msra.mxu0 %v5988_v55 }
  0xd5   : > { %v4141_v47 = vrot.slane %v4111_v36, 1  ;;  %v1280_v17 = vsel %vm1105_vm5, %v1275_v2, %v7604_v14  ;;  %v8796_v45 = vrot.slane %v8795_v52, 7  ;;  %v8799_v20 = vrot.slane %v8798_v63, 7  ;;  %v5980_v63 = vld [vmem:[%s8593_s3 + $0x140] sm:$0xff]  ;;  %2161 = vmatpush.bf16.msra.mxu2 %v6008_v41 }
  0xd6   : > { %v7644_v46 = vsel %vm724_vm0, %v8792_v1, %v8791_v24  ;;  %v8797_v2 = vmov %v8791_v24  ;;  %v8802_v24 = vld [vmem:[#allocation23_spill] sm:$0xff]  ;;  %v8809_v52 = vpack.c.bf16 %v7367_v34, %v7364_v37  ;;  %v8811_v34 = vrot.slane %v6958_v33, 7  ;;  %1800 = vmatpush.bf16.msra.mxu3 %v5980_v63 }
  0xd7   : > { %8793 = vst [vmem:[#allocation28_spill] sm:$0xff] %v7644_v46  ;;  %v7660_v36 = vpack.c.bf16 %v7644_v46, %v7614_v11  ;;  %v7672_v9 = vsel %vm724_vm0, %v8797_v2, %v8796_v45  ;;  %v8800_v8 = vmov %v8796_v45  ;;  %v8803_v1 = vrot.slane %v8802_v24, 7 }
  0xd8   : > { %v7679_v13 = vsel %vm724_vm0, %v8800_v8, %v8799_v20  ;;  %v8804_v16 = vmov %v8799_v20  ;;  %v4251_v2 = vrot.slane %v8809_v52, 1  ;;  %v1082_v29 = vsel %vm724_vm0, %v8811_v34, 0.0  ;;  %v8812_v8 = vld [vmem:[#allocation33_spill] sm:$0xff]  ;;  %v8815_v52 = vld [vmem:[#allocation30_spill] sm:$0xff]  ;;  %1359 = vmatmul.bf16.gmra.mxu0 %v1280_v17 }
  0xd9   : > { %8794 = vst [vmem:[#allocation39_spill] sm:$0xff] %v7660_v36  ;;  %v7686_v11 = vsel %vm724_vm0, %v8804_v16, %v8803_v1  ;;  %v8806_v36 = vrot.slane %v7076_v23, 7  ;;  %v8807_v18 = vmov %v8803_v1  ;;  %v7703_v16 = vpack.c.bf16 %v7679_v13, %v7672_v9  ;;  %v8820_v23 = vld [vmem:[#allocation17_spill] sm:$0xff]  ;;  %1212 = vmatmul.bf16.gmra.mxu3 %v7621_v30 }
  0xda   : > { %8801 = vst [vmem:[#allocation24_spill] sm:$0xff] %v7679_v13  ;;  %v8813_v24 = vrot.slane %v8812_v8, 7  ;;  %v7730_v33 = vsel %vm1606_vm6, %v2814_v32, %v3051_v3  ;;  %v8824_v13 = vld [vmem:[#allocation36_spill] sm:$0xff] }
  0xdb   : > { %8805 = vst [vmem:[#allocation16_spill] sm:$0xff] %v7686_v11  ;;  %v7693_v45 = vsel %vm724_vm0, %v8807_v18, %v8806_v36  ;;  %v8814_v1 = vmov %v8806_v36 }
  0xdc   : > { %8808 = vst [vmem:[#allocation23_spill] sm:$0xff] %v7693_v45  ;;  %v7707_v20 = vpack.c.bf16 %v7693_v45, %v7686_v11  ;;  %v7721_v18 = vsel %vm724_vm0, %v8814_v1, %v8813_v24  ;;  %v8818_v41 = vmov %v8813_v24  ;;  %v8821_v24 = vrot.slane %v8820_v23, 7  ;;  %v8822_v1 = vld [vmem:[#allocation35_spill] sm:$0xff]  ;;  %v8828_v45 = vld [vmem:[#allocation37_spill] sm:$0xff] }
  0xdd   : > { %v7737_v34 = vpack.c.bf16 %v8818_v41, %v7721_v18  ;;  %v8823_v55 = vrot.slane %v8822_v1, 7  ;;  %v3985_v46 = vpack.c.bf16 %v8828_v45, %v8827_v7  ;;  %v4110_v8 = vpack.c.bf16 %v7364_v37, %v8828_v45  ;;  %v8830_v45 = vld [vmem:[#allocation32_spill] sm:$0xff] }
  0xde   : > { %8810 = vst [vmem:[#allocation40_spill] sm:$0xff] %v7707_v20  ;;  %v8816_v20 = vrot.slane %v8815_v52, 1  ;;  %v7756_v41 = vsel %vm1606_vm6, %v3051_v3, %v7496_v28  ;;  %v3986_v23 = vpack.c.bf16 %v7364_v37, %v7364_v37  ;;  %v7763_v1 = vsel %vm1606_vm6, %v4251_v2, %v7496_v28 }
  0xdf   : > { %8819 = vst [vmem:[#allocation30_spill] sm:$0xff] %v7737_v34  ;;  %v3962_v52 = vsel %vm724_vm0, %v8823_v55, %v8821_v24  ;;  %v8831_v63 = vrot.slane %v8830_v45, 1  ;;  %1473 = vmatmul.bf16.gmra.mxu1 %v7621_v30 }
  0xe0   : > { %v7727_v36 = vsel %vm1606_vm6, %v8816_v20, %v7378_v53  ;;  %v8825_v20 = vrot.slane %v8824_v13, 7  ;;  %v4108_v11 = vpack.c.bf16 %v3962_v52, %v7206_v60  ;;  %v4139_v60 = vrot.slane %v4110_v8, 1  ;;  %8829 = vst [vmem:[#allocation17_spill] sm:$0xff] %v7763_v1 }
  0xe1   : > { %8817 = vst [vmem:[#allocation33_spill] sm:$0xff] %v7727_v36  ;;  %v8826_v36 = vmov %v8821_v24  ;;  %v4014_v24 = vrot.slane %v3985_v46, 1  ;;  %v1235_v46 = vpack.c.bf16 %v1082_v29, %v1082_v29 }
  0xe2   : > { %v3964_v32 = vsel %vm724_vm0, %v8826_v36, %v8825_v20  ;;  %v4135_v36 = vrot.slane %v4108_v11, 1  ;;  %v1609_v20 = vsel %vm1606_vm6, %v8831_v63, %v7425_v62  ;;  %v7771_v37 = vsel %vm1606_vm6, %v4139_v60, %v4141_v47  ;;  %v6000_v47 = vld [vmem:[%s8593_s3 + $0x260] sm:$0xff] }
  0xe3   : > { %v3984_v55 = vpack.c.bf16 %v3964_v32, %v3962_v52  ;;  %v4109_v13 = vpack.c.bf16 %v8827_v7, %v3964_v32  ;;  %v4016_v52 = vrot.slane %v3986_v23, 1  ;;  %v7778_v28 = vsel %vm1606_vm6, %v4014_v24, %v4251_v2  ;;  %1676 = vmatmul.bf16.vlgmr.msrb.gmra.mxu2 %v1609_v20  ;;  %v6027_v7 = vld [vmem:[%s8593_s3 + $0x2b8] sm:$0xff]  ;;  %2055 = vmatpush.bf16.msra.mxu1 %v6000_v47  ;;  %v5996_v47 = vld [vmem:[%s8593_s3 + $0x240] sm:$0xff] }
  0xe4   : > { %v7775_v11 = vsel %vm1606_vm6, %v7569_v61, %v4135_v36  ;;  %8832 = vst [vmem:[#allocation35_spill] sm:$0xff] %v7778_v28  ;;  %v1087_v62 = vpack.c.bf16 %v7408_v50, %v7408_v50  ;;  %v6007_v61 = vld [vmem:[%s8593_s3 + $0x318] sm:$0xff]  ;;  %2442 = vmatpush.bf16.msrb.mxu0 %v6027_v7  ;;  %v1285_v45 = vshll.u32 %v1235_v46, 16  ;;  %v6025_v46 = vld [vmem:[%s8593_s3 + $0x2a8] sm:$0xff] }
  0xe5   : > { %v4012_v3 = vrot.slane %v3984_v55, 1  ;;  %v4137_v34 = vrot.slane %v4109_v13, 1  ;;  %v7805_v55 = vsel %vm1606_vm6, %v4014_v24, %v4016_v52  ;;  %2162 = vmatpush.bf16.msra.mxu2 %v6007_v61  ;;  %v1134_v13 = vshrl.u32 %v7384_v4, 16  ;;  %v6005_v61 = vld [vmem:[%s8593_s3 + $0x308] sm:$0xff] }
  0xe6   : > { %v1138_v23 = vshll.u32 %v1087_v62, 16  ;;  %v1378_v4 = vpack.c.bf16 %v1082_v29, %v7408_v50  ;;  %v1287_v20 = vrot.slane %v1285_v45, 1  ;;  %v6018_v62 = vld [vmem:[%s8593_s3 + $0x3f0] sm:$0xff]  ;;  %v6004_v45 = vld [vmem:[%s8593_s3 + $0x300] sm:$0xff] }
  0xe7   : > { %v7793_v17 = vsel %vm1606_vm6, %v7378_v53, %v4012_v3  ;;  %v7796_v2 = vsel %vm1606_vm6, %v4135_v36, %v4137_v34  ;;  %v7799_v32 = vsel %vm1606_vm6, %v4012_v3, %v4014_v24  ;;  %v7802_v8 = vsel %vm1606_vm6, %v4137_v34, %v4139_v60  ;;  %v5999_v36 = vld [vmem:[%s8593_s3 + $0x258] sm:$0xff]  ;;  %v6026_v24 = vld [vmem:[%s8593_s3 + $0x2b0] sm:$0xff] }
  0xe8   : > { %v1281_v53 = vshrl.u32 %v7465_v15, 16  ;;  %v6019_v34 = vld [vmem:[%s8593_s3 + $0x3f8] sm:$0xff]  ;;  %v6006_v15 = vld [vmem:[%s8593_s3 + $0x310] sm:$0xff]  ;;  %v1136_v30 = vor.u32 %v1134_v13, %v7582_v43  ;;  %v1140_v60 = vrot.slane %v1138_v23, 1  ;;  %2056 = vmatpush.bf16.msra.mxu1 %v5999_v36  ;;  %2443 = vmatpush.bf16.msrb.mxu0 %v6026_v24  ;;  %v1398_v52 = vshll.u32 %v1378_v4, 16  ;;  %v6017_v13 = vld [vmem:[%s8593_s3 + $0x3e8] sm:$0xff] }
  0xe9   : > { %2261 = vmatpush.bf16.msrb.mxu3 %v6019_v34  ;;  %v5998_v3 = vld [vmem:[%s8593_s3 + $0x250] sm:$0xff]  ;;  %2163 = vmatpush.bf16.msra.mxu2 %v6006_v15  ;;  %v6024_v23 = vld [vmem:[%s8593_s3 + $0x2a0] sm:$0xff]  ;;  %v8833_v34 = vmov 0  }
  0xea   : > { %v1283_v63 = vor.u32 %v1281_v53, %v7604_v14  ;;  %v1141_v50 = vsel %vm1105_vm5, %v1136_v30, %v1140_v60  ;;  %v1400_v43 = vrot.slane %v1398_v52, 1  ;;  %v5997_v14 = vld [vmem:[%s8593_s3 + $0x248] sm:$0xff]  ;;  %v1402_v53 = vshrl.u32 %v1378_v4, 16  ;;  %v6016_v15 = vld [vmem:[%s8593_s3 + $0x3e0] sm:$0xff]  ;;  %v6023_v4 = vld [vmem:[%s8593_s3 + $0x298] sm:$0xff] }
  0xeb   : > { %1217 = vmatmul.bf16.gmra.mxu3 %v1141_v50  ;;  %v7859_v24 = vrot.slane %v8833_v34, 1  ;;  %v6022_v60 = vld [vmem:[%s8593_s3 + $0x290] sm:$0xff]  ;;  %v6021_v50 = vld [vmem:[%s8593_s3 + $0x288] sm:$0xff] }
  0xec   : > { %v1288_v29 = vsel %vm1105_vm5, %v1283_v63, %v1287_v20  ;;  %2057 = vmatpush.bf16.msra.mxu1 %v5998_v3  ;;  %v1401_v7 = vsel %vm1105_vm5, %v1136_v30, %v1400_v43  ;;  %2444 = vmatpush.bf16.msrb.mxu0 %v6025_v46  ;;  %v1404_v36 = vor.u32 %v1402_v53, %v1400_v43  ;;  %v6015_v30 = vld [vmem:[%s8593_s3 + $0x3d8] sm:$0xff]  ;;  %v6042_v20 = vld [vmem:[%s8593_s3 + $0x430] sm:$0xff]  ;;  %v8834_v43 = vmov 0.0   ;;  %v6020_v46 = vld [vmem:[%s8593_s3 + $0x280] sm:$0xff] }
  0xed   : > { %1364 = vmatmul.bf16.gmra.mxu0 %v1288_v29  ;;  %2262 = vmatpush.bf16.msrb.mxu3 %v6018_v62  ;;  %v6035_v63 = vld [vmem:[%s8593_s3 + $0x378] sm:$0xff]  ;;  %v1736_v3 = vsel %vm1606_vm6, %v7421_v22, %v7446_v25  ;;  %v6014_v52 = vld [vmem:[%s8593_s3 + $0x3d0] sm:$0xff]  ;;  %v8835_v22 = vld [vmem:[#allocation27_spill] sm:$0xff] }
  0xee   : > { %2164 = vmatpush.bf16.msra.mxu2 %v6005_v61  ;;  %v5084_v25 = vpack.c.bf16 %v8835_v22, %v8834_v43  ;;  %v6013_v62 = vld [vmem:[%s8593_s3 + $0x3c8] sm:$0xff]  ;;  %v8839_v53 = vld [vmem:[#allocation22_spill] sm:$0xff] }
  0xef   : > { %1478 = vmatmul.bf16.gmra.mxu1 %v1401_v7  ;;  %v6033_v34 = vld [vmem:[%s8593_s3 + $0x368] sm:$0xff] }
  0xf0   : > { %2058 = vmatpush.bf16.msra.mxu1 %v5997_v14  ;;  %2445 = vmatpush.bf16.msrb.mxu0 %v6024_v23  ;;  %v6103_v14 = vld [vmem:[%s8593_s3 + $0x598] sm:$0xff] }
  0xf1   : > { %2263 = vmatpush.bf16.msrb.mxu3 %v6017_v13  ;;  %v8838_v13 = vld [vmem:[#allocation13_spill] sm:$0xff] }
  0xf2   : > { %2165 = vmatpush.bf16.msra.mxu2 %v6004_v45  ;;  %v2309_v23 = vrot.slane %v8838_v13, 7  ;;  %v2307_v45 = vrot.slane %v8839_v53, 7 }
  0xf3   : > { %1681 = vmatmul.bf16.gmra.mxu2 %v7444_v42 }
  0xf4   : > { %2059 = vmatpush.bf16.msra.mxu1 %v5996_v47  ;;  %2446 = vmatpush.bf16.msrb.mxu0 %v6023_v4  ;;  %v8837_v47 = vld [vmem:[#allocation9_spill] sm:$0xff]  ;;  %v6012_v4 = vld [vmem:[%s8593_s3 + $0x3c0] sm:$0xff] }
  0xf5   : > { %2264 = vmatpush.bf16.msrb.mxu3 %v6016_v15  ;;  %v2306_v61 = vrot.slane %v8837_v47, 7  ;;  %v6040_v15 = vld [vmem:[%s8593_s3 + $0x420] sm:$0xff]  ;;  %v6039_v47 = vld [vmem:[%s8593_s3 + $0x418] sm:$0xff] }
  0xf8   : > { %2447 = vmatpush.bf16.msrb.mxu0 %v6022_v60  ;;  %2589 = vmatpush.bf16.msrb.mxu1 %v6035_v63  ;;  %v2308_v60 = vsel %vm724_vm0, %v2306_v61, %v2307_v45  ;;  %v2310_v63 = vsel %vm724_vm0, %v2307_v45, %v2309_v23  ;;  %v6051_v45 = vld [vmem:[%s8593_s3 + $0x2f8] sm:$0xff] }
  0xf9   : > { %2265 = vmatpush.bf16.msrb.mxu3 %v6015_v30 }
  0xfb   : > { %1801 = vmatmul.bf16.vlgmr.msra.gmra.mxu3 %v7456_v0  ;;  %v1409_v0 = vsel %vm1105_vm5, %v1404_v36, %v7859_v24 }
  0xfc   : > { %2448 = vmatpush.bf16.msrb.mxu0 %v6021_v50 }
  0xfd   : > { %1912 = vmatmul.bf16.vlgmr.msra.gmra.mxu0 %v7444_v42  ;;  %v6043_v42 = vld [vmem:[%s8593_s3 + $0x438] sm:$0xff]  ;;  %2266 = vmatpush.bf16.msrb.mxu3 %v6014_v52 }
  0xfe   : > { %2703 = vmatpush.bf16.msrb.mxu2 %v6043_v42  ;;  %v8840_v42 = vpack.c.bf16 %v8761_v10, %v8835_v22 }
  0xff   : > { %1483 = vmatmul.bf16.gmra.mxu1 %v1409_v0 }
 0x100   : > { %2449 = vmatpush.bf16.msrb.mxu0 %v6020_v46  ;;  %v6032_v46 = vld [vmem:[%s8593_s3 + $0x360] sm:$0xff] }
 0x101   : > { %2267 = vmatpush.bf16.msrb.mxu3 %v6013_v62 }
 0x102   : > { %2704 = vmatpush.bf16.msrb.mxu2 %v6042_v20  ;;  %v2330_v20 = vsel %vm724_vm0, 0.0, %v2306_v61 }
 0x103   : > { %1686 = vmatmul.bf16.gmra.mxu2 %v7452_v26  ;;  %v7938_v52 = vpack.c.bf16 %v2308_v60, %v2330_v20 }
 0x105   : > { %2268 = vmatpush.bf16.msrb.mxu3 %v6012_v4 }
 0x109   : > { %2870 = vmatpush.bf16.msra.mxu3 %v6051_v45 }
 0x10b   : > { %1806 = vmatmul.bf16.gmra.mxu3 %v1736_v3  ;;  %v6059_v3 = vld [vmem:[%s8593_s3 + $0x3b8] sm:$0xff] }
 0x10c   : > { %v926_v29 = vpop.f32.mrf.mxu1  ;;  %2995 = vmatpush.bf16.msra.mxu0 %v6059_v3  ;;  %v8843_v3 = vld [vmem:[#allocation12_spill] sm:$0xff] }
 0x10d   : > { %1917 = vmatmul.bf16.gmra.mxu0 %v7452_v26  ;;  %v6034_v26 = vld [vmem:[%s8593_s3 + $0x370] sm:$0xff] }
 0x10e   : > { %2590 = vmatpush.bf16.msrb.mxu1 %v6034_v26 }
 0x10f   : > { %5085 = vmatmul.msk.bf16.vlgmr.msra.gmra.mxu1 %vm6882_vm3, %v5084_v25 }
 0x112   : > { %2591 = vmatpush.bf16.msrb.mxu1 %v6033_v34 }
 0x113   : > { %1691 = vmatmul.bf16.gmra.mxu2 %v7459_v58  ;;  %v6041_v58 = vld [vmem:[%s8593_s3 + $0x428] sm:$0xff] }
 0x114   : > { %2705 = vmatpush.bf16.msrb.mxu2 %v6041_v58  ;;  %v928_v7 = vpop.f32.mrf.mxu1 }
 0x115   : > { %v849_v36 = vpop.f32.mrf.mxu0 }
 0x116   : > { %v927_v0 = vadd.f32 %v926_v29, %v849_v36  ;;  %v6058_v36 = vld [vmem:[%s8593_s3 + $0x3b0] sm:$0xff]  ;;  %2592 = vmatpush.bf16.msrb.mxu1 %v6032_v46  ;;  %v8844_v46 = vld [vmem:[#allocation34_spill] sm:$0xff] }
 0x117   : > { %2996 = vmatpush.bf16.msra.mxu0 %v6058_v36 }
 0x118   : > { %2706 = vmatpush.bf16.msrb.mxu2 %v6040_v15  ;;  %v6031_v15 = vld [vmem:[%s8593_s3 + $0x358] sm:$0xff] }
 0x11a   : > { %2593 = vmatpush.bf16.msrb.mxu1 %v6031_v15 }
 0x11b   : > { %1811 = vmatmul.bf16.gmra.mxu3 %v7473_v49  ;;  %v2332_v49 = vpack.c.bf16 %v2330_v20, %v8834_v43 }
 0x11c   : > { %v859_v10 = vpop.f32.mrf.mxu3  ;;  %v1021_v50 = vpop.f32.mrf.mxu2  ;;  %2707 = vmatpush.bf16.msrb.mxu2 %v6039_v47  ;;  %v8845_v47 = vpack.c.bf16 %v7484_v38, %v8844_v46  ;;  %v6057_v38 = vld [vmem:[%s8593_s3 + $0x3a8] sm:$0xff]  ;;  %v2504_v46 = vshll.u32 %v7938_v52, 16 }
 0x11d   : > { %1922 = vmatmul.bf16.gmra.mxu0 %v7468_v48  ;;  %v2333_v48 = vpack.c.bf16 %v2310_v63, %v2308_v60  ;;  %v931_v29 = vpop.f32.mrf.mxu1  ;;  %v2355_v22 = vshrl.u32 %v2332_v49, 16  ;;  %v2357_v25 = vshll.u32 %v2332_v49, 16  ;;  %v7940_v58 = vadd.f32 %v1021_v50, %v927_v0  ;;  %v851_v62 = vpop.f32.mrf.mxu0  ;;  %v8842_v60 = vld [vmem:[#allocation10_spill] sm:$0xff] }
 0x11e   : > { %v929_v61 = vadd.f32 %v928_v7, %v851_v62  ;;  %v8670_v20 = vrot.slane %v8842_v60, 7  ;;  %v2311_v49 = vrot.slane %v8843_v3, 7  ;;  %2997 = vmatpush.bf16.msra.mxu0 %v6057_v38 }
 0x11f   : > { %v2362_v26 = vshll.u32 %v2333_v48, 16  ;;  %v2359_v13 = vrot.slane %v2357_v25, 1  ;;  %2065 = vmatmul.bf16.gmra.mxu1 %v7477_v44  ;;  %v6030_v25 = vld [vmem:[%s8593_s3 + $0x350] sm:$0xff]  ;;  %v2366_v45 = vshrl.u32 %v2333_v48, 16 }
 0x120   : > { %2594 = vmatpush.bf16.msrb.mxu1 %v6030_v25  ;;  %v6028_v25 = vld [vmem:[%s8593_s3 + $0x340] sm:$0xff] }
 0x121   : > { %v2364_v53 = vrot.slane %v2362_v26, 1  ;;  %v2360_v34 = vor.u32 %v2359_v13, %v2355_v22  ;;  %v6038_v26 = vld [vmem:[%s8593_s3 + $0x410] sm:$0xff]  ;;  %v7980_v13 = vsel %vm724_vm0, %v2311_v49, %v8670_v20 }
 0x122   : > { %2708 = vmatpush.bf16.msrb.mxu2 %v6038_v26  ;;  %v2502_v26 = vshrl.u32 %v7938_v52, 16 }
 0x123   : > { %5137 = vmatmul.msk.bf16.vlgmr.msra.gmra.mxu2 %vm7000_vm4, %v8840_v42  ;;  %v7959_v7 = vsel %vm1105_vm5, %v2360_v34, %v2364_v53  ;;  %v2368_v15 = vor.u32 %v2366_v45, %v2364_v53  ;;  %v6049_v45 = vld [vmem:[%s8593_s3 + $0x2e8] sm:$0xff] }
 0x124   : > { %v861_v4 = vpop.f32.mrf.mxu3  ;;  %v1023_v0 = vpop.f32.mrf.mxu2 }
 0x125   : > { %v933_v42 = vpop.f32.mrf.mxu1  ;;  %v7963_v50 = vadd.f32 %v1023_v0, %v929_v61  ;;  %v854_v22 = vpop.f32.mrf.mxu0  ;;  %v2312_v61 = vsel %vm724_vm0, %v2309_v23, %v2311_v49 }
 0x126   : > { %v932_v62 = vadd.f32 %v931_v29, %v854_v22  ;;  %v6029_v29 = vld [vmem:[%s8593_s3 + $0x348] sm:$0xff]  ;;  %v7992_v23 = vpack.c.bf16 %v2312_v61, %v2310_v63 }
 0x127   : > { %2595 = vmatpush.bf16.msrb.mxu1 %v6029_v29  ;;  %v6037_v63 = vld [vmem:[%s8593_s3 + $0x408] sm:$0xff]  ;;  %v6056_v29 = vld [vmem:[%s8593_s3 + $0x3a0] sm:$0xff] }
 0x128   : > { %2709 = vmatpush.bf16.msrb.mxu2 %v6037_v63  ;;  %2998 = vmatpush.bf16.msra.mxu0 %v6056_v29 }
 0x12b   : > { %1816 = vmatmul.bf16.gmra.mxu3 %v7533_v40  ;;  %v6050_v40 = vld [vmem:[%s8593_s3 + $0x2f0] sm:$0xff]  ;;  %2596 = vmatpush.bf16.msrb.mxu1 %v6028_v25  ;;  %v6036_v25 = vld [vmem:[%s8593_s3 + $0x400] sm:$0xff] }
 0x12c   : > { %v864_v36 = vpop.f32.mrf.mxu3  ;;  %2871 = vmatpush.bf16.msra.mxu3 %v6050_v40  ;;  %v1026_v48 = vpop.f32.mrf.mxu2  ;;  %2710 = vmatpush.bf16.msrb.mxu2 %v6036_v25 }
 0x12d   : > { %1927 = vmatmul.bf16.gmra.mxu0 %v7537_v39  ;;  %v2334_v39 = vpack.c.bf16 %v7980_v13, %v2312_v61  ;;  %v936_v34 = vpop.f32.mrf.mxu1  ;;  %v7994_v3 = vadd.f32 %v1026_v48, %v932_v62  ;;  %v856_v22 = vpop.f32.mrf.mxu0  ;;  %v2509_v62 = vshll.u32 %v7992_v23, 16  ;;  %v8846_v61 = vld [vmem:[#allocation19_spill] sm:$0xff] }
 0x12e   : > { %v937_v49 = vadd.f32 %v936_v34, %v859_v10  ;;  %v2506_v10 = vrot.slane %v2504_v46, 1  ;;  %v8847_v34 = vld [vmem:[#allocation11_spill] sm:$0xff] }
 0x12f   : > { %v2370_v0 = vshll.u32 %v2334_v39, 16  ;;  %2070 = vmatmul.bf16.gmra.mxu1 %v8846_v61  ;;  %v2511_v52 = vrot.slane %v2509_v62, 1 }
 0x130   : > { %2872 = vmatpush.bf16.msra.mxu3 %v6049_v45 }
 0x131   : > { %v2372_v53 = vrot.slane %v2370_v0, 1  ;;  %v2315_v0 = vrot.slane %v8847_v34, 7 }
 0x133   : > { %2171 = vmatmul.bf16.gmra.mxu2 %v8845_v47  ;;  %v934_v47 = vadd.f32 %v933_v42, %v856_v22  ;;  %v8013_v40 = vsel %vm1105_vm5, %v2368_v15, %v2372_v53  ;;  %v2507_v42 = vor.u32 %v2506_v10, %v2502_v26  ;;  %v8848_v22 = vld [vmem:[#allocation21_spill] sm:$0xff]  ;;  %v8849_v26 = vrot.slane %v8842_v60, 7 }
 0x134   : > { %v866_v38 = vpop.f32.mrf.mxu3  ;;  %v2317_v63 = vrot.slane %v8848_v22, 7  ;;  %v1028_v46 = vpop.f32.mrf.mxu2 }
 0x135   : > { %v8016_v48 = vsel %vm1105_vm5, %v2507_v42, %v2511_v52  ;;  %v938_v20 = vpop.f32.mrf.mxu1  ;;  %v8020_v28 = vadd.f32 %v1028_v46, %v934_v47  ;;  %v1350_v15 = vpop.f32.mrf.mxu0  ;;  %v2316_v62 = vsel %vm724_vm0, %v8849_v26, %v2315_v0  ;;  %v2374_v47 = vshrl.u32 %v2334_v39, 16  ;;  %v6075_v46 = vld [vmem:[%s8593_s3 + $0x4b8] sm:$0xff] }
 0x136   : > { %v939_v1 = vadd.f32 %v938_v20, %v861_v4  ;;  %v8031_v10 = vsel %vm724_vm0, %v2315_v0, %v2317_v63  ;;  %v8850_v4 = vpack.c.bf16 %v7507_v19, %v7494_v51  ;;  %v2481_v25 = vpack.c.bf16 %v2316_v62, %v7980_v13  ;;  %3252 = vmatpush.bf16.msra.mxu2 %v6075_v46 }
 0x137   : > { %v2335_v20 = vpack.c.bf16 %v8031_v10, %v2316_v62  ;;  %v2376_v45 = vor.u32 %v2374_v47, %v2372_v53  ;;  %v2513_v53 = vshrl.u32 %v7992_v23, 16  ;;  %v8851_v62 = vld [vmem:[#allocation25_spill] sm:$0xff] }
 0x139   : > { %v2378_v29 = vshll.u32 %v2335_v20, 16 }
 0x13b   : > { %2269 = vmatmul.bf16.vlgmr.msrb.gmra.mxu3 %v7477_v44  ;;  %v6048_v44 = vld [vmem:[%s8593_s3 + $0x2e0] sm:$0xff]  ;;  %v2380_v22 = vrot.slane %v2378_v29, 1 }
 0x13c   : > { %v1203_v60 = vpop.f32.mrf.mxu3  ;;  %2873 = vmatpush.bf16.msra.mxu3 %v6048_v44  ;;  %v1031_v39 = vpop.f32.mrf.mxu2  ;;  %v2319_v44 = vrot.slane %v8851_v62, 7 }
 0x13d   : > { %2450 = vmatmul.bf16.vlgmr.msrb.gmra.mxu0 %v7959_v7  ;;  %v6055_v7 = vld [vmem:[%s8593_s3 + $0x398] sm:$0xff]  ;;  %v1223_v42 = vadd.f32 %v1203_v60, %v7940_v58  ;;  %v941_v19 = vpop.f32.mrf.mxu1  ;;  %v8044_v51 = vadd.f32 %v1031_v39, %v937_v49  ;;  %v1352_v0 = vpop.f32.mrf.mxu0  ;;  %v8053_v47 = vsel %vm1105_vm5, %v2376_v45, %v2380_v22  ;;  %v2517_v58 = vshll.u32 %v2481_v25, 16  ;;  %v6054_v49 = vld [vmem:[%s8593_s3 + $0x390] sm:$0xff] }
 0x13e   : > { %2999 = vmatpush.bf16.msra.mxu0 %v6055_v7  ;;  %v942_v34 = vadd.f32 %v941_v19, %v864_v36  ;;  %v6047_v36 = vld [vmem:[%s8593_s3 + $0x2d8] sm:$0xff]  ;;  %v6074_v19 = vld [vmem:[%s8593_s3 + $0x4b0] sm:$0xff] }
 0x13f   : > { %v1370_v26 = vadd.f32 %v1350_v15, %v1223_v42  ;;  %2075 = vmatmul.bf16.gmra.mxu1 %v7541_v31  ;;  %v2519_v13 = vrot.slane %v2517_v58, 1  ;;  %3253 = vmatpush.bf16.msra.mxu2 %v6074_v19 }
 0x140   : > { %2874 = vmatpush.bf16.msra.mxu3 %v6047_v36  ;;  %v6046_v36 = vld [vmem:[%s8593_s3 + $0x2d0] sm:$0xff] }
 0x142   : > { %3000 = vmatpush.bf16.msra.mxu0 %v6054_v49 }
 0x143   : > { %2176 = vmatmul.bf16.gmra.mxu2 %v8850_v4  ;;  %v2515_v4 = vor.u32 %v2513_v53, %v2511_v52  ;;  %v6067_v52 = vld [vmem:[%s8593_s3 + $0x478] sm:$0xff] }
 0x144   : > { %v1205_v23 = vpop.f32.mrf.mxu3  ;;  %v1033_v7 = vpop.f32.mrf.mxu2  ;;  %3104 = vmatpush.bf16.msra.mxu1 %v6067_v52  ;;  %2875 = vmatpush.bf16.msra.mxu3 %v6046_v36 }
 0x145   : > { %v8062_v15 = vsel %vm1105_vm5, %v2515_v4, %v2519_v13  ;;  %v1224_v60 = vadd.f32 %v1205_v23, %v7963_v50  ;;  %v943_v45 = vpop.f32.mrf.mxu1  ;;  %v8066_v29 = vadd.f32 %v1033_v7, %v939_v1  ;;  %v1355_v42 = vpop.f32.mrf.mxu0  ;;  %v2320_v1 = vsel %vm724_vm0, %v2317_v63, %v2319_v44 }
 0x146   : > { %v944_v39 = vadd.f32 %v943_v45, %v866_v38  ;;  %v2382_v50 = vshrl.u32 %v2335_v20, 16  ;;  %v8852_v38 = vld [vmem:[#allocation26_spill] sm:$0xff]  ;;  %v2336_v58 = vpack.c.bf16 %v2320_v1, %v2320_v1  ;;  %v6066_v45 = vld [vmem:[%s8593_s3 + $0x470] sm:$0xff]  ;;  %v2482_v52 = vpack.c.bf16 %v2320_v1, %v8031_v10 }
 0x147   : > { %v1371_v46 = vadd.f32 %v1352_v0, %v1224_v60  ;;  %v8853_v53 = vpack.c.bf16 %v7524_v35, %v8852_v38  ;;  %v6053_v0 = vld [vmem:[%s8593_s3 + $0x388] sm:$0xff]  ;;  %v6052_v38 = vld [vmem:[%s8593_s3 + $0x380] sm:$0xff] }
 0x148   : > { %v2386_v4 = vshll.u32 %v2336_v58, 16  ;;  %3001 = vmatpush.bf16.msra.mxu0 %v6053_v0  ;;  %3105 = vmatpush.bf16.msra.mxu1 %v6066_v45 }
 0x14a   : > { %v2388_v60 = vrot.slane %v2386_v4, 1 }
 0x14b   : > { %2274 = vmatmul.bf16.gmra.mxu3 %v8846_v61  ;;  %v2384_v61 = vor.u32 %v2382_v50, %v2380_v22  ;;  %v6073_v22 = vld [vmem:[%s8593_s3 + $0x4a8] sm:$0xff]  ;;  %v2521_v50 = vshrl.u32 %v2481_v25, 16 }
 0x14c   : > { %v1208_v49 = vpop.f32.mrf.mxu3  ;;  %v1036_v63 = vpop.f32.mrf.mxu2  ;;  %3254 = vmatpush.bf16.msra.mxu2 %v6073_v22  ;;  %3002 = vmatpush.bf16.msra.mxu0 %v6052_v38  ;;  %v6071_v38 = vld [vmem:[%s8593_s3 + $0x498] sm:$0xff] }
 0x14d   : > { %2455 = vmatmul.bf16.gmra.mxu0 %v8013_v40  ;;  %v1225_v20 = vadd.f32 %v1208_v49, %v7994_v3  ;;  %v1469_v23 = vpop.f32.mrf.mxu1  ;;  %v8087_v35 = vadd.f32 %v1036_v63, %v942_v34  ;;  %v1357_v7 = vpop.f32.mrf.mxu0  ;;  %v8098_v3 = vsel %vm1105_vm5, %v2384_v61, %v2388_v60  ;;  %v2525_v34 = vshll.u32 %v2482_v52, 16  ;;  %v6065_v63 = vld [vmem:[%s8593_s3 + $0x468] sm:$0xff] }
 0x14e   : > { %v1489_v62 = vadd.f32 %v1469_v23, %v1370_v26  ;;  %v6045_v26 = vld [vmem:[%s8593_s3 + $0x2c8] sm:$0xff]  ;;  %v2331_v23 = vsel %vm724_vm0, %v2319_v44, 0.0  ;;  %3106 = vmatpush.bf16.msra.mxu1 %v6065_v63 }
 0x14f   : > { %v1372_v19 = vadd.f32 %v1355_v42, %v1225_v20  ;;  %2597 = vmatmul.bf16.vlgmr.msrb.gmra.mxu1 %v8016_v48  ;;  %v2527_v10 = vrot.slane %v2525_v34, 1  ;;  %2876 = vmatpush.bf16.msra.mxu3 %v6045_v26  ;;  %v6044_v20 = vld [vmem:[%s8593_s3 + $0x2c0] sm:$0xff]  ;;  %v8122_v60 = vpack.c.bf16 %v2331_v23, %v2320_v1 }
 0x150   : > { %v6064_v26 = vld [vmem:[%s8593_s3 + $0x460] sm:$0xff] }
 0x152   : > { %3107 = vmatpush.bf16.msra.mxu1 %v6064_v26  ;;  %v6060_v26 = vld [vmem:[%s8593_s3 + $0x440] sm:$0xff] }
 0x153   : > { %2181 = vmatmul.bf16.gmra.mxu2 %v8853_v53  ;;  %v2523_v53 = vor.u32 %v2521_v50, %v2519_v13  ;;  %v6072_v13 = vld [vmem:[%s8593_s3 + $0x4a0] sm:$0xff]  ;;  %2877 = vmatpush.bf16.msra.mxu3 %v6044_v20 }
 0x154   : > { %v1210_v25 = vpop.f32.mrf.mxu3  ;;  %v1038_v42 = vpop.f32.mrf.mxu2  ;;  %3255 = vmatpush.bf16.msra.mxu2 %v6072_v13 }
 0x155   : > { %v8107_v48 = vsel %vm1105_vm5, %v2523_v53, %v2527_v10  ;;  %v1226_v58 = vadd.f32 %v1210_v25, %v8020_v28  ;;  %v1471_v36 = vpop.f32.mrf.mxu1  ;;  %v8110_v0 = vadd.f32 %v1038_v42, %v944_v39  ;;  %v1360_v4 = vpop.f32.mrf.mxu0  ;;  %v2645_v39 = vshll.u32 %v8122_v60, 16 }
 0x156   : > { %v1490_v49 = vadd.f32 %v1471_v36, %v1371_v46  ;;  %v6091_v46 = vld [vmem:[%s8593_s3 + $0x638] sm:$0xff]  ;;  %v2483_v53 = vpack.c.bf16 %v2331_v23, %v2331_v23 }
 0x157   : > { %v1373_v28 = vadd.f32 %v1357_v7, %v1226_v58  ;;  %v8131_v45 = vrot.slane %v2645_v39, 1  ;;  %3461 = vmatpush.bf16.msrb.mxu0 %v6091_v46  ;;  %v6063_v58 = vld [vmem:[%s8593_s3 + $0x458] sm:$0xff]  ;;  %v6062_v39 = vld [vmem:[%s8593_s3 + $0x450] sm:$0xff] }
 0x158   : > { %3256 = vmatpush.bf16.msra.mxu2 %v6071_v38  ;;  %v2533_v42 = vshll.u32 %v2483_v53, 16  ;;  %3108 = vmatpush.bf16.msra.mxu1 %v6063_v58  ;;  %v6070_v46 = vld [vmem:[%s8593_s3 + $0x490] sm:$0xff]  ;;  %v6069_v38 = vld [vmem:[%s8593_s3 + $0x488] sm:$0xff]  ;;  %v6068_v58 = vld [vmem:[%s8593_s3 + $0x480] sm:$0xff] }
 0x15b   : > { %2279 = vmatmul.bf16.gmra.mxu3 %v7541_v31  ;;  %v8136_v31 = vsel %vm1105_vm5, %v2384_v61, %v8131_v45 }
 0x15c   : > { %v1213_v44 = vpop.f32.mrf.mxu3  ;;  %3257 = vmatpush.bf16.msra.mxu2 %v6070_v46  ;;  %3109 = vmatpush.bf16.msra.mxu1 %v6062_v39 }
 0x15d   : > { %2460 = vmatmul.bf16.gmra.mxu0 %v8053_v47  ;;  %v1227_v1 = vadd.f32 %v1213_v44, %v8044_v51  ;;  %v1474_v22 = vpop.f32.mrf.mxu1  ;;  %v1362_v34 = vpop.f32.mrf.mxu0  ;;  %v2529_v51 = vshrl.u32 %v2482_v52, 16  ;;  %v2535_v52 = vrot.slane %v2533_v42, 1 }
 0x15f   : > { %v1374_v25 = vadd.f32 %v1360_v4, %v1227_v1  ;;  %2602 = vmatmul.bf16.gmra.mxu1 %v8062_v15  ;;  %v2531_v61 = vor.u32 %v2529_v51, %v2527_v10 }
 0x160   : > { %3258 = vmatpush.bf16.msra.mxu2 %v6069_v38  ;;  %v6099_v38 = vld [vmem:[%s8593_s3 + $0x4f8] sm:$0xff] }
 0x161   : > { %v8157_v10 = vsel %vm1105_vm5, %v2531_v61, %v2535_v52 }
 0x163   : > { %2711 = vmatmul.bf16.vlgmr.msrb.gmra.mxu2 %v8013_v40  ;;  %v1491_v40 = vadd.f32 %v1474_v22, %v1372_v19  ;;  %v6090_v19 = vld [vmem:[%s8593_s3 + $0x630] sm:$0xff] }
 0x164   : > { %3462 = vmatpush.bf16.msrb.mxu0 %v6090_v19  ;;  %v1215_v15 = vpop.f32.mrf.mxu3  ;;  %3259 = vmatpush.bf16.msra.mxu2 %v6068_v58  ;;  %v6098_v58 = vld [vmem:[%s8593_s3 + $0x4f0] sm:$0xff] }
 0x165   : > { %v1228_v36 = vadd.f32 %v1215_v15, %v8066_v29  ;;  %v1476_v63 = vpop.f32.mrf.mxu1  ;;  %v6061_v29 = vld [vmem:[%s8593_s3 + $0x448] sm:$0xff] }
 0x166   : > { %v1677_v7 = vpop.f32.mrf.mxu2  ;;  %v1492_v20 = vadd.f32 %v1476_v63, %v1373_v28  ;;  %v6089_v28 = vld [vmem:[%s8593_s3 + $0x628] sm:$0xff]  ;;  %3110 = vmatpush.bf16.msra.mxu1 %v6061_v29 }
 0x167   : > { %v8138_v50 = vadd.f32 %v1677_v7, %v1489_v62  ;;  %v6083_v62 = vld [vmem:[%s8593_s3 + $0x578] sm:$0xff]  ;;  %v1375_v44 = vadd.f32 %v1362_v34, %v1228_v36  ;;  %v8854_v15 = vld [vmem:[#allocation31_spill] sm:$0xff] }
 0x168   : > { %3358 = vmatpush.bf16.msrb.mxu3 %v6083_v62  ;;  %3463 = vmatpush.bf16.msrb.mxu0 %v6089_v28  ;;  %v8855_v36 = vld [vmem:[#allocation15_spill] sm:$0xff] }
 0x16a   : > { %v1365_v23 = vpop.f32.mrf.mxu0  ;;  %3111 = vmatpush.bf16.msra.mxu1 %v6060_v26 }
 0x16b   : > { %5188 = vmatmul.msk.bf16.gmra.mxu3 %vm7528_vm7, %v7548_v27 }
 0x16d   : > { %2465 = vmatmul.bf16.gmra.mxu0 %v8098_v3 }
 0x16e   : > { %v1679_v4 = vpop.f32.mrf.mxu2  ;;  %v1218_v1 = vpop.f32.mrf.mxu3  ;;  %3642 = vmatpush.bf16.msrb.mxu1 %v6099_v38  ;;  %v6095_v38 = vld [vmem:[%s8593_s3 + $0x4d8] sm:$0xff] }
 0x16f   : > { %v8160_v13 = vadd.f32 %v1679_v4, %v1490_v49  ;;  %v6082_v49 = vld [vmem:[%s8593_s3 + $0x570] sm:$0xff]  ;;  %v1229_v27 = vadd.f32 %v1218_v1, %v8087_v35  ;;  %2607 = vmatmul.bf16.gmra.mxu1 %v8107_v48  ;;  %v6081_v35 = vld [vmem:[%s8593_s3 + $0x568] sm:$0xff]  ;;  %v6087_v4 = vld [vmem:[%s8593_s3 + $0x618] sm:$0xff] }
 0x170   : > { %3359 = vmatpush.bf16.msrb.mxu3 %v6082_v49  ;;  %v2649_v49 = vshrl.u32 %v8122_v60, 16  ;;  %v6079_v1 = vld [vmem:[%s8593_s3 + $0x558] sm:$0xff] }
 0x171   : > { %v1376_v53 = vadd.f32 %v1365_v23, %v1229_v27 }
 0x172   : > { %v1367_v34 = vpop.f32.mrf.mxu0  ;;  %v2651_v27 = vor.u32 %v2649_v49, %v8131_v45  ;;  %3643 = vmatpush.bf16.msrb.mxu1 %v6098_v58 }
 0x173   : > { %2716 = vmatmul.bf16.gmra.mxu2 %v8053_v47  ;;  %v1479_v47 = vpop.f32.mrf.mxu1 }
 0x174   : > { %v1493_v22 = vadd.f32 %v1479_v47, %v1374_v25  ;;  %3360 = vmatpush.bf16.msrb.mxu3 %v6081_v35  ;;  %v2652_v45 = vsel %vm1105_vm5, %v2651_v27, %v7859_v24 }
 0x176   : > { %v1682_v3 = vpop.f32.mrf.mxu2  ;;  %v1220_v51 = vpop.f32.mrf.mxu3 }
 0x177   : > { %v8183_v7 = vadd.f32 %v1682_v3, %v1491_v40  ;;  %v6088_v40 = vld [vmem:[%s8593_s3 + $0x620] sm:$0xff]  ;;  %v1230_v25 = vadd.f32 %v1220_v51, %v8110_v0 }
 0x178   : > { %3464 = vmatpush.bf16.msrb.mxu0 %v6088_v40  ;;  %v6080_v0 = vld [vmem:[%s8593_s3 + $0x560] sm:$0xff]  ;;  %v6085_v40 = vld [vmem:[%s8593_s3 + $0x608] sm:$0xff] }
 0x179   : > { %v1377_v52 = vadd.f32 %v1367_v34, %v1230_v25  ;;  %3361 = vmatpush.bf16.msrb.mxu3 %v6080_v0 }
 0x17a   : > { %v1913_v19 = vpop.f32.mrf.mxu0 }
 0x17b   : > { %v1481_v42 = vpop.f32.mrf.mxu1  ;;  %2878 = vmatmul.bf16.vlgmr.msra.gmra.mxu3 %v8854_v15 }
 0x17c   : > { %v1494_v48 = vadd.f32 %v1481_v42, %v1375_v44  ;;  %3465 = vmatpush.bf16.msrb.mxu0 %v6087_v4 }
 0x17d   : > { %3003 = vmatmul.bf16.vlgmr.msra.gmra.mxu0 %v8855_v36  ;;  %3362 = vmatpush.bf16.msrb.mxu3 %v6079_v1  ;;  %v6084_v36 = vld [vmem:[%s8593_s3 + $0x600] sm:$0xff] }
 0x17e   : > { %v1684_v61 = vpop.f32.mrf.mxu2  ;;  %v1802_v63 = vpop.f32.mrf.mxu3 }
 0x17f   : > { %v8199_v62 = vadd.f32 %v1684_v61, %v1492_v20  ;;  %v1822_v23 = vadd.f32 %v1802_v63, %v8138_v50  ;;  %2612 = vmatmul.bf16.gmra.mxu1 %v8157_v10  ;;  %v6086_v50 = vld [vmem:[%s8593_s3 + $0x610] sm:$0xff] }
 0x180   : > { %3466 = vmatpush.bf16.msrb.mxu0 %v6086_v50 }
 0x181   : > { %v1933_v28 = vadd.f32 %v1913_v19, %v1822_v23 }
 0x182   : > { %v1915_v29 = vpop.f32.mrf.mxu0 }
 0x183   : > { %2721 = vmatmul.bf16.gmra.mxu2 %v8136_v31  ;;  %v1484_v39 = vpop.f32.mrf.mxu1  ;;  %v6107_v31 = vld [vmem:[%s8593_s3 + $0x5b8] sm:$0xff] }
 0x184   : > { %v1495_v44 = vadd.f32 %v1484_v39, %v1376_v53  ;;  %3789 = vmatpush.bf16.msrb.mxu2 %v6107_v31  ;;  %v6106_v53 = vld [vmem:[%s8593_s3 + $0x5b0] sm:$0xff]  ;;  %3467 = vmatpush.bf16.msrb.mxu0 %v6085_v40  ;;  %v6076_v31 = vld [vmem:[%s8593_s3 + $0x540] sm:$0xff] }
 0x186   : > { %v1687_v20 = vpop.f32.mrf.mxu2  ;;  %v1804_v3 = vpop.f32.mrf.mxu3 }
 0x187   : > { %v8214_v46 = vadd.f32 %v1687_v20, %v1493_v22  ;;  %v1823_v60 = vadd.f32 %v1804_v3, %v8160_v13  ;;  %v6078_v13 = vld [vmem:[%s8593_s3 + $0x550] sm:$0xff] }
 0x188   : > { %3790 = vmatpush.bf16.msrb.mxu2 %v6106_v53  ;;  %3363 = vmatpush.bf16.msrb.mxu3 %v6078_v13 }
 0x189   : > { %v1934_v35 = vadd.f32 %v1915_v29, %v1823_v60  ;;  %3468 = vmatpush.bf16.msrb.mxu0 %v6084_v36  ;;  %v6104_v29 = vld [vmem:[%s8593_s3 + $0x5a0] sm:$0xff]  ;;  %v6093_v36 = vld [vmem:[%s8593_s3 + $0x4c8] sm:$0xff] }
 0x18a   : > { %v1918_v26 = vpop.f32.mrf.mxu0 }
 0x18b   : > { %v1486_v22 = vpop.f32.mrf.mxu1  ;;  %2883 = vmatmul.bf16.gmra.mxu3 %v7608_v59 }
 0x18c   : > { %v1496_v10 = vadd.f32 %v1486_v22, %v1377_v52  ;;  %v6105_v52 = vld [vmem:[%s8593_s3 + $0x5a8] sm:$0xff] }
 0x18d   : > { %3008 = vmatmul.bf16.gmra.mxu0 %v7625_v12  ;;  %3791 = vmatpush.bf16.msrb.mxu2 %v6105_v52  ;;  %v8858_v52 = vld [vmem:[#allocation8_spill] sm:$0xff] }
 0x18e   : > { %v1689_v47 = vpop.f32.mrf.mxu2  ;;  %v1807_v51 = vpop.f32.mrf.mxu3 }
 0x18f   : > { %v8229_v34 = vadd.f32 %v1689_v47, %v1494_v48  ;;  %v1824_v61 = vadd.f32 %v1807_v51, %v8183_v7  ;;  %3112 = vmatmul.bf16.vlgmr.msra.gmra.mxu1 %v7608_v59  ;;  %v6077_v7 = vld [vmem:[%s8593_s3 + $0x548] sm:$0xff] }
 0x190   : > { %3364 = vmatpush.bf16.msrb.mxu3 %v6077_v7  ;;  %v8859_v7 = vld [vmem:[#allocation39_spill] sm:$0xff] }
 0x191   : > { %v1935_v15 = vadd.f32 %v1918_v26, %v1824_v61  ;;  %3792 = vmatpush.bf16.msrb.mxu2 %v6104_v29  ;;  %v6122_v26 = vld [vmem:[%s8593_s3 + $0x530] sm:$0xff] }
 0x192   : > { %v1920_v12 = vpop.f32.mrf.mxu0  ;;  %v6102_v61 = vld [vmem:[%s8593_s3 + $0x590] sm:$0xff] }
 0x193   : > { %2726 = vmatmul.bf16.gmra.mxu2 %v2652_v45  ;;  %v2061_v42 = vpop.f32.mrf.mxu1 }
 0x194   : > { %v2081_v19 = vadd.f32 %v2061_v42, %v1933_v28  ;;  %3365 = vmatpush.bf16.msrb.mxu3 %v6076_v31  ;;  %v6123_v28 = vld [vmem:[%s8593_s3 + $0x538] sm:$0xff]  ;;  %v6092_v31 = vld [vmem:[%s8593_s3 + $0x4c0] sm:$0xff] }
 0x195   : > { %4070 = vmatpush.bf16.msra.mxu0 %v6123_v28  ;;  %3793 = vmatpush.bf16.msrb.mxu2 %v6103_v14 }
 0x196   : > { %v1692_v25 = vpop.f32.mrf.mxu2  ;;  %v1809_v0 = vpop.f32.mrf.mxu3 }
 0x197   : > { %v8248_v48 = vadd.f32 %v1692_v25, %v1495_v44  ;;  %v1825_v63 = vadd.f32 %v1809_v0, %v8199_v62  ;;  %v6097_v44 = vld [vmem:[%s8593_s3 + $0x4e8] sm:$0xff]  ;;  %v5527_v62 = vpack.c.bf16 %v7101_v56, %v8834_v43  ;;  %v6094_v25 = vld [vmem:[%s8593_s3 + $0x4d0] sm:$0xff] }
 0x198   : > { %3644 = vmatpush.bf16.msrb.mxu1 %v6097_v44  ;;  %v6114_v0 = vld [vmem:[%s8593_s3 + $0x670] sm:$0xff] }
 0x199   : > { %v1936_v49 = vadd.f32 %v1920_v12, %v1825_v63  ;;  %4071 = vmatpush.bf16.msra.mxu0 %v6122_v26  ;;  %3794 = vmatpush.bf16.msrb.mxu2 %v6102_v61 }
 0x19a   : > { %v1923_v39 = vpop.f32.mrf.mxu0 }
 0x19b   : > { %v2063_v20 = vpop.f32.mrf.mxu1  ;;  %2888 = vmatmul.bf16.gmra.mxu3 %v7628_v57 }
 0x19c   : > { %v2082_v59 = vadd.f32 %v2063_v20, %v1934_v35 }
 0x19d   : > { %3013 = vmatmul.bf16.gmra.mxu0 %v7631_v21  ;;  %v6096_v21 = vld [vmem:[%s8593_s3 + $0x4e0] sm:$0xff] }
 0x19e   : > { %v1694_v4 = vpop.f32.mrf.mxu2  ;;  %v1812_v1 = vpop.f32.mrf.mxu3  ;;  %3645 = vmatpush.bf16.msrb.mxu1 %v6096_v21 }
 0x19f   : > { %v8264_v23 = vadd.f32 %v1694_v4, %v1496_v10  ;;  %v1826_v50 = vadd.f32 %v1812_v1, %v8214_v46  ;;  %3117 = vmatmul.bf16.gmra.mxu1 %v7628_v57  ;;  %v6115_v46 = vld [vmem:[%s8593_s3 + $0x678] sm:$0xff] }
 0x1a0   : > { %3903 = vmatpush.bf16.msra.mxu3 %v6115_v46  ;;  %v8860_v46 = vld [vmem:[#allocation5_spill] sm:$0xff] }
 0x1a1   : > { %v1937_v10 = vadd.f32 %v1923_v39, %v1826_v50 }
 0x1a2   : > { %v1925_v22 = vpop.f32.mrf.mxu0  ;;  %3646 = vmatpush.bf16.msrb.mxu1 %v6095_v38 }
 0x1a3   : > { %5528 = vmatmul.msk.bf16.vlgmr.msra.gmra.mxu2 %vm6882_vm3, %v5527_v62  ;;  %v2066_v3 = vpop.f32.mrf.mxu1 }
 0x1a4   : > { %v2083_v60 = vadd.f32 %v2066_v3, %v1935_v15  ;;  %v3507_v15 = vrot.slane %v8858_v52, 7  ;;  %3904 = vmatpush.bf16.msra.mxu3 %v6114_v0  ;;  %v6120_v3 = vld [vmem:[%s8593_s3 + $0x520] sm:$0xff] }
 0x1a6   : > { %v2167_v27 = vpop.f32.mrf.mxu2  ;;  %v1814_v53 = vpop.f32.mrf.mxu3  ;;  %3647 = vmatpush.bf16.msrb.mxu1 %v6094_v25  ;;  %v6100_v25 = vld [vmem:[%s8593_s3 + $0x580] sm:$0xff] }
 0x1a7   : > { %v8285_v47 = vadd.f32 %v2167_v27, %v2081_v19  ;;  %v1827_v45 = vadd.f32 %v1814_v53, %v8229_v34  ;;  %v8856_v19 = vld [vmem:[#allocation4_spill] sm:$0xff]  ;;  %v8857_v34 = vld [vmem:[#allocation6_spill] sm:$0xff]  ;;  %v6113_v27 = vld [vmem:[%s8593_s3 + $0x668] sm:$0xff] }
 0x1a8   : > { %v3506_v12 = vrot.slane %v8856_v19, 7  ;;  %v3509_v58 = vrot.slane %v8857_v34, 7  ;;  %3905 = vmatpush.bf16.msra.mxu3 %v6113_v27 }
 0x1a9   : > { %v1938_v42 = vadd.f32 %v1925_v22, %v1827_v45 }
 0x1aa   : > { %v1928_v51 = vpop.f32.mrf.mxu0  ;;  %3648 = vmatpush.bf16.msrb.mxu1 %v6093_v36  ;;  %v3508_v62 = vsel %vm724_vm0, %v3506_v12, %v3507_v15  ;;  %v3510_v28 = vsel %vm724_vm0, %v3507_v15, %v3509_v58  ;;  %v6112_v36 = vld [vmem:[%s8593_s3 + $0x660] sm:$0xff] }
 0x1ab   : > { %v2068_v35 = vpop.f32.mrf.mxu1  ;;  %2893 = vmatmul.bf16.gmra.mxu3 %v7634_v6  ;;  %v6121_v6 = vld [vmem:[%s8593_s3 + $0x528] sm:$0xff]  ;;  %v3533_v50 = vpack.c.bf16 %v3510_v28, %v3508_v62 }
 0x1ac   : > { %v2084_v40 = vadd.f32 %v2068_v35, %v1936_v49  ;;  %4072 = vmatpush.bf16.msra.mxu0 %v6121_v6  ;;  %v6101_v49 = vld [vmem:[%s8593_s3 + $0x588] sm:$0xff]  ;;  %3906 = vmatpush.bf16.msra.mxu3 %v6112_v36  ;;  %v6110_v36 = vld [vmem:[%s8593_s3 + $0x650] sm:$0xff] }
 0x1ad   : > { %3018 = vmatmul.bf16.gmra.mxu0 %v7637_v54  ;;  %v3530_v54 = vsel %vm724_vm0, 0.0, %v3506_v12  ;;  %3795 = vmatpush.bf16.msrb.mxu2 %v6101_v49  ;;  %v3562_v21 = vshll.u32 %v3533_v50, 16  ;;  %v8861_v12 = vld [vmem:[#allocation18_spill] sm:$0xff]  ;;  %v8378_v49 = vld [vmem:[%s8593_s3 + $0x6b8] sm:$0xff] }
 0x1ae   : > { %v2169_v57 = vpop.f32.mrf.mxu2  ;;  %v1817_v4 = vpop.f32.mrf.mxu3  ;;  %v3532_v1 = vpack.c.bf16 %v3530_v54, %v8834_v43  ;;  %3649 = vmatpush.bf16.msrb.mxu1 %v6092_v31  ;;  %v8862_v34 = vpack.c.bf16 %v8861_v12, %v7101_v56  ;;  %v6119_v56 = vld [vmem:[%s8593_s3 + $0x518] sm:$0xff] }
 0x1af   : > { %v8304_v13 = vadd.f32 %v2169_v57, %v2082_v59  ;;  %v1828_v63 = vadd.f32 %v1817_v4, %v8248_v48  ;;  %3122 = vmatmul.bf16.gmra.mxu1 %v7730_v33  ;;  %v3511_v33 = vrot.slane %v8860_v46, 7 }
 0x1b0   : > { %v3557_v22 = vshll.u32 %v3532_v1, 16  ;;  %4073 = vmatpush.bf16.msra.mxu0 %v6120_v3  ;;  %v3566_v3 = vshrl.u32 %v3533_v50, 16 }
 0x1b1   : > { %v1939_v48 = vadd.f32 %v1928_v51, %v1828_v63  ;;  %3796 = vmatpush.bf16.msrb.mxu2 %v6100_v25 }
 0x1b2   : > { %v1930_v29 = vpop.f32.mrf.mxu0  ;;  %v3559_v14 = vrot.slane %v3557_v22, 1 }
 0x1b3   : > { %3265 = vmatmul.bf16.gmra.mxu2 %v8859_v7  ;;  %v2071_v59 = vpop.f32.mrf.mxu1 }
 0x1b4   : > { %v2085_v44 = vadd.f32 %v2071_v59, %v1937_v10  ;;  %v3564_v10 = vrot.slane %v3562_v21, 1  ;;  %4074 = vmatpush.bf16.msra.mxu0 %v6119_v56  ;;  %v6117_v56 = vld [vmem:[%s8593_s3 + $0x508] sm:$0xff] }
 0x1b5   : > { %4304 = vmatpush.bf16.msra.mxu2 %v8378_v49 }
 0x1b6   : > { %v2172_v20 = vpop.f32.mrf.mxu2  ;;  %v1819_v43 = vpop.f32.mrf.mxu3 }
 0x1b7   : > { %v8329_v39 = vadd.f32 %v2172_v20, %v2083_v60  ;;  %v3555_v60 = vshrl.u32 %v3532_v1, 16  ;;  %v1829_v26 = vadd.f32 %v1819_v43, %v8264_v23  ;;  %v3512_v23 = vsel %vm724_vm0, %v3509_v58, %v3511_v33 }
 0x1b8   : > { %v3680_v15 = vpack.c.bf16 %v3512_v23, %v3510_v28 }
 0x1b9   : > { %v3560_v45 = vor.u32 %v3559_v14, %v3555_v60  ;;  %v1940_v61 = vadd.f32 %v1930_v29, %v1829_v26  ;;  %v3568_v60 = vor.u32 %v3566_v3, %v3564_v10 }
 0x1ba   : > { %v2451_v51 = vpop.f32.mrf.mxu0 }
 0x1bb   : > { %v2073_v53 = vpop.f32.mrf.mxu1  ;;  %v8355_v19 = vsel %vm1105_vm5, %v3560_v45, %v3564_v10  ;;  %5580 = vmatmul.msk.bf16.vlgmr.msrb.gmra.mxu3 %vm7000_vm4, %v8862_v34  ;;  %v6131_v10 = vld [vmem:[%s8593_s3 + $0x5f8] sm:$0xff]  ;;  %v8867_v34 = vld [vmem:[#allocation7_spill] sm:$0xff] }
 0x1bc   : > { %v2086_v35 = vadd.f32 %v2073_v53, %v1938_v42  ;;  %v8863_v42 = vld [vmem:[#allocation2_spill] sm:$0xff]  ;;  %6228 = vmatpush.bf16.msra.mxu1 %v6131_v10 }
 0x1bd   : > { %3469 = vmatmul.bf16.vlgmr.msrb.gmra.mxu0 %v8859_v7  ;;  %v3513_v52 = vrot.slane %v8863_v42, 7  ;;  %v3709_v7 = vshll.u32 %v3680_v15, 16 }
 0x1be   : > { %v2174_v38 = vpop.f32.mrf.mxu2  ;;  %v2270_v6 = vpop.f32.mrf.mxu3 }
 0x1bf   : > { %v8349_v57 = vadd.f32 %v2174_v38, %v2084_v40  ;;  %v3679_v40 = vpack.c.bf16 %v3508_v62, %v3530_v54  ;;  %v2290_v54 = vadd.f32 %v2270_v6, %v8285_v47  ;;  %v3711_v31 = vrot.slane %v3709_v7, 1  ;;  %3127 = vmatmul.bf16.gmra.mxu1 %v7756_v41  ;;  %v6111_v47 = vld [vmem:[%s8593_s3 + $0x658] sm:$0xff]  ;;  %v8864_v41 = vld [vmem:[#allocation3_spill] sm:$0xff] }
 0x1c0   : > { %v3514_v62 = vsel %vm724_vm0, %v3511_v33, %v3513_v52  ;;  %3907 = vmatpush.bf16.msra.mxu3 %v6111_v47  ;;  %v3515_v14 = vrot.slane %v8864_v41, 7 }
 0x1c1   : > { %v3702_v30 = vshrl.u32 %v3679_v40, 16  ;;  %v3704_v0 = vshll.u32 %v3679_v40, 16  ;;  %v2471_v28 = vadd.f32 %v2451_v51, %v2290_v54  ;;  %v3534_v27 = vpack.c.bf16 %v3514_v62, %v3512_v23  ;;  %v8405_v51 = vld [vmem:[%s8593_s3 + $0x6b0] sm:$0xff] }
 0x1c2   : > { %v2453_v29 = vpop.f32.mrf.mxu0  ;;  %4305 = vmatpush.bf16.msra.mxu2 %v8405_v51  ;;  %v3517_v23 = vrot.slane %v8867_v34, 7  ;;  %v8868_v40 = vld [vmem:[#allocation40_spill] sm:$0xff] }
 0x1c3   : > { %3270 = vmatmul.bf16.gmra.mxu2 %v7703_v16  ;;  %v2076_v4 = vpop.f32.mrf.mxu1  ;;  %v3706_v63 = vrot.slane %v3704_v0, 1  ;;  %v3570_v22 = vshll.u32 %v3534_v27, 16 }
 0x1c4   : > { %v2087_v59 = vadd.f32 %v2076_v4, %v1939_v48  ;;  %3908 = vmatpush.bf16.msra.mxu3 %v6110_v36  ;;  %v6130_v4 = vld [vmem:[%s8593_s3 + $0x5f0] sm:$0xff] }
 0x1c5   : > { %v3707_v1 = vor.u32 %v3706_v63, %v3702_v30  ;;  %v3572_v50 = vrot.slane %v3570_v22, 1  ;;  %v8430_v63 = vld [vmem:[%s8593_s3 + $0x6a8] sm:$0xff]  ;;  %6229 = vmatpush.bf16.msra.mxu1 %v6130_v4 }
 0x1c6   : > { %v2177_v58 = vpop.f32.mrf.mxu2  ;;  %v2272_v21 = vpop.f32.mrf.mxu3  ;;  %4306 = vmatpush.bf16.msra.mxu2 %v8430_v63 }
 0x1c7   : > { %v8373_v20 = vadd.f32 %v2177_v58, %v2085_v44  ;;  %v6118_v44 = vld [vmem:[%s8593_s3 + $0x510] sm:$0xff]  ;;  %v8390_v48 = vsel %vm1105_vm5, %v3707_v1, %v3711_v31  ;;  %v2291_v46 = vadd.f32 %v2272_v21, %v8304_v13  ;;  %v8395_v26 = vsel %vm1105_vm5, %v3568_v60, %v3572_v50  ;;  %v6116_v1 = vld [vmem:[%s8593_s3 + $0x500] sm:$0xff] }
 0x1c8   : > { %4075 = vmatpush.bf16.msra.mxu0 %v6118_v44  ;;  %v8865_v13 = vld [vmem:[#allocation28_spill] sm:$0xff]  ;;  %v8869_v44 = vld [vmem:[#allocation14_spill] sm:$0xff] }
 0x1c9   : > { %v2472_v25 = vadd.f32 %v2453_v29, %v2291_v46  ;;  %v8866_v12 = vpack.c.bf16 %v7672_v9, %v8865_v13  ;;  %v3518_v29 = vsel %vm724_vm0, %v3515_v14, %v3517_v23 }
 0x1ca   : > { %v2456_v45 = vpop.f32.mrf.mxu0 }
 0x1cb   : > { %v2078_v33 = vpop.f32.mrf.mxu1  ;;  %3371 = vmatmul.bf16.gmra.mxu3 %v8866_v12  ;;  %v8870_v12 = vld [vmem:[#allocation16_spill] sm:$0xff] }
 0x1cc   : > { %v2088_v53 = vadd.f32 %v2078_v33, %v1940_v61  ;;  %v3713_v61 = vshrl.u32 %v3680_v15, 16  ;;  %4076 = vmatpush.bf16.msra.mxu0 %v6117_v56 }
 0x1cd   : > { %3474 = vmatmul.bf16.gmra.mxu0 %v7703_v16 }
 0x1ce   : > { %v2179_v43 = vpop.f32.mrf.mxu2  ;;  %v2275_v9 = vpop.f32.mrf.mxu3  ;;  %v3715_v30 = vor.u32 %v3713_v61, %v3711_v31 }
 0x1cf   : > { %v8397_v38 = vadd.f32 %v2179_v43, %v2086_v35  ;;  %v3516_v35 = vsel %vm724_vm0, %v3513_v52, %v3515_v14  ;;  %v2292_v52 = vadd.f32 %v2275_v9, %v8329_v39  ;;  %v3574_v39 = vshrl.u32 %v3534_v27, 16  ;;  %3650 = vmatmul.bf16.vlgmr.msrb.gmra.mxu1 %v8355_v19 }
 0x1d0   : > { %v3681_v42 = vpack.c.bf16 %v3516_v35, %v3514_v62  ;;  %v3535_v62 = vpack.c.bf16 %v3518_v29, %v3516_v35  ;;  %v3519_v27 = vrot.slane %v8869_v44, 7  ;;  %4077 = vmatpush.bf16.msra.mxu0 %v6116_v1  ;;  %v8871_v35 = vld [vmem:[#allocation24_spill] sm:$0xff]  ;;  %v6125_v44 = vld [vmem:[%s8593_s3 + $0x5c8] sm:$0xff] }
 0x1d1   : > { %v2473_v31 = vadd.f32 %v2456_v45, %v2292_v52  ;;  %v3576_v3 = vor.u32 %v3574_v39, %v3572_v50  ;;  %v6129_v50 = vld [vmem:[%s8593_s3 + $0x5e8] sm:$0xff]  ;;  %v6136_v45 = vld [vmem:[%s8593_s3 + $0x6a0] sm:$0xff]  ;;  %v8872_v61 = vpack.c.bf16 %v8870_v12, %v8871_v35 }
 0x1d2   : > { %v3717_v0 = vshll.u32 %v3681_v42, 16  ;;  %v2458_v58 = vpop.f32.mrf.mxu0  ;;  %v3578_v47 = vshll.u32 %v3535_v62, 16  ;;  %6230 = vmatpush.bf16.msra.mxu1 %v6129_v50  ;;  %4307 = vmatpush.bf16.msra.mxu2 %v6136_v45 }
 0x1d3   : > { %3275 = vmatmul.bf16.gmra.mxu2 %v8868_v40  ;;  %v2598_v15 = vpop.f32.mrf.mxu1 }
 0x1d4   : > { %v2618_v7 = vadd.f32 %v2598_v15, %v2471_v28  ;;  %v3719_v54 = vrot.slane %v3717_v0, 1  ;;  %v6109_v28 = vld [vmem:[%s8593_s3 + $0x648] sm:$0xff]  ;;  %v3580_v19 = vrot.slane %v3578_v47, 1  ;;  %4195 = vmatpush.bf16.msrb.mxu0 %v6131_v10  ;;  %v8463_v10 = vsel %vm724_vm0, %v3517_v23, %v3519_v27 }
 0x1d5   : > { %3909 = vmatpush.bf16.msra.mxu3 %v6109_v28  ;;  %v3682_v13 = vpack.c.bf16 %v8463_v10, %v3518_v29  ;;  %v3582_v15 = vshrl.u32 %v3535_v62, 16 }
 0x1d6   : > { %v2182_v16 = vpop.f32.mrf.mxu2  ;;  %v2277_v60 = vpop.f32.mrf.mxu3  ;;  %v8447_v14 = vsel %vm1105_vm5, %v3576_v3, %v3580_v19 }
 0x1d7   : > { %v8422_v6 = vadd.f32 %v2182_v16, %v2087_v59  ;;  %v8435_v59 = vsel %vm1105_vm5, %v3715_v30, %v3719_v54  ;;  %v2293_v21 = vadd.f32 %v2277_v60, %v8349_v57  ;;  %v6108_v57 = vld [vmem:[%s8593_s3 + $0x640] sm:$0xff]  ;;  %v3725_v36 = vshll.u32 %v3682_v13, 16 }
 0x1d8   : > { %4196 = vmatpush.bf16.msrb.mxu0 %v6130_v4  ;;  %v6127_v4 = vld [vmem:[%s8593_s3 + $0x5d8] sm:$0xff]  ;;  %v3729_v60 = vshrl.u32 %v3682_v13, 16 }
 0x1d9   : > { %3910 = vmatpush.bf16.msra.mxu3 %v6108_v57  ;;  %v3727_v23 = vrot.slane %v3725_v36, 1 }
 0x1da   : > { %v2461_v33 = vpop.f32.mrf.mxu0 }
 0x1db   : > { %v2600_v41 = vpop.f32.mrf.mxu1  ;;  %3376 = vmatmul.bf16.gmra.mxu3 %v8872_v61  ;;  %v6133_v61 = vld [vmem:[%s8593_s3 + $0x688] sm:$0xff] }
 0x1dc   : > { %v2619_v46 = vadd.f32 %v2600_v41, %v2472_v25  ;;  %v2474_v25 = vadd.f32 %v2458_v58, %v2293_v21  ;;  %4197 = vmatpush.bf16.msrb.mxu0 %v6129_v50  ;;  %v8873_v41 = vld [vmem:[#allocation23_spill] sm:$0xff]  ;;  %v3731_v50 = vor.u32 %v3729_v60, %v3727_v23 }
 0x1dd   : > { %3479 = vmatmul.bf16.gmra.mxu0 %v8868_v40  ;;  %6236 = vmatpush.bf16.msrb.mxu3 %v8378_v49  ;;  %v6135_v49 = vld [vmem:[%s8593_s3 + $0x698] sm:$0xff] }
 0x1de   : > { %v2184_v22 = vpop.f32.mrf.mxu2  ;;  %4308 = vmatpush.bf16.msra.mxu2 %v6135_v49 }
 0x1df   : > { %v8449_v43 = vadd.f32 %v2184_v22, %v2088_v53  ;;  %v3721_v53 = vshrl.u32 %v3681_v42, 16  ;;  %v2280_v42 = vpop.f32.mrf.mxu3  ;;  %3655 = vmatmul.bf16.gmra.mxu1 %v8395_v26 }
 0x1e0   : > { %v2294_v56 = vadd.f32 %v2280_v42, %v8373_v20  ;;  %v3536_v20 = vpack.c.bf16 %v8463_v10, %v8463_v10 }
 0x1e1   : > { %v3723_v34 = vor.u32 %v3721_v53, %v3719_v54  ;;  %6237 = vmatpush.bf16.msrb.mxu3 %v8405_v51 }
 0x1e2   : > { %v2463_v52 = vpop.f32.mrf.mxu0  ;;  %v2475_v58 = vadd.f32 %v2461_v33, %v2294_v56  ;;  %v3586_v54 = vshll.u32 %v3536_v20, 16  ;;  %v8875_v33 = vld [vmem:[#allocation30_spill] sm:$0xff]  ;;  %v8876_v20 = vld [vmem:[#allocation33_spill] sm:$0xff] }
 0x1e3   : > { %3797 = vmatmul.bf16.vlgmr.msrb.gmra.mxu2 %v8390_v48  ;;  %v2603_v30 = vpop.f32.mrf.mxu1  ;;  %v8474_v0 = vsel %vm1105_vm5, %v3723_v34, %v3727_v23  ;;  %v6128_v48 = vld [vmem:[%s8593_s3 + $0x5e0] sm:$0xff] }
 0x1e4   : > { %v2620_v40 = vadd.f32 %v2603_v30, %v2473_v31  ;;  %6231 = vmatpush.bf16.msra.mxu1 %v6128_v48  ;;  %4198 = vmatpush.bf16.msrb.mxu0 %v6128_v48  ;;  %v3588_v29 = vrot.slane %v3586_v54, 1 }
 0x1e5   : > { %6238 = vmatpush.bf16.msrb.mxu3 %v8430_v63  ;;  %v6134_v63 = vld [vmem:[%s8593_s3 + $0x690] sm:$0xff] }
 0x1e6   : > { %v2712_v9 = vpop.f32.mrf.mxu2  ;;  %4309 = vmatpush.bf16.msra.mxu2 %v6134_v63 }
 0x1e7   : > { %v8476_v16 = vadd.f32 %v2712_v9, %v2618_v7  ;;  %v8488_v7 = vor.u32 %v3582_v15, %v3580_v19  ;;  %v2282_v31 = vpop.f32.mrf.mxu3  ;;  %v6126_v19 = vld [vmem:[%s8593_s3 + $0x5d0] sm:$0xff] }
 0x1e8   : > { %v2295_v51 = vadd.f32 %v2282_v31, %v8397_v38  ;;  %6232 = vmatpush.bf16.msra.mxu1 %v6127_v4  ;;  %4199 = vmatpush.bf16.msrb.mxu0 %v6127_v4  ;;  %v3531_v38 = vsel %vm724_vm0, %v3519_v27, 0.0 }
 0x1e9   : > { %v8496_v62 = vsel %vm1105_vm5, %v8488_v7, %v3588_v29  ;;  %v3683_v21 = vpack.c.bf16 %v3531_v38, %v3531_v38  ;;  %6239 = vmatpush.bf16.msrb.mxu3 %v6136_v45 }
 0x1ea   : > { %v2466_v47 = vpop.f32.mrf.mxu0  ;;  %v2476_v22 = vadd.f32 %v2463_v52, %v2295_v51  ;;  %4310 = vmatpush.bf16.msra.mxu2 %v6133_v61  ;;  %v3826_v52 = vpack.c.bf16 %v3531_v38, %v8463_v10 }
 0x1eb   : > { %v2605_v28 = vpop.f32.mrf.mxu1  ;;  %v3733_v57 = vshll.u32 %v3683_v21, 16 }
 0x1ec   : > { %v2621_v3 = vadd.f32 %v2605_v28, %v2474_v25  ;;  %6233 = vmatpush.bf16.msra.mxu1 %v6126_v19  ;;  %4200 = vmatpush.bf16.msrb.mxu0 %v6126_v19 }
 0x1ed   : > { %5631 = vmatmul.msk.bf16.gmra.mxu0 %vm7528_vm7, %v8875_v33  ;;  %v3735_v27 = vrot.slane %v3733_v57, 1  ;;  %6240 = vmatpush.bf16.msrb.mxu3 %v6135_v49  ;;  %v3845_v49 = vshll.u32 %v3826_v52, 16 }
 0x1ee   : > { %v2714_v39 = vpop.f32.mrf.mxu2 }
 0x1ef   : > { %v8499_v1 = vadd.f32 %v2714_v39, %v2619_v46  ;;  %v8874_v46 = vpack.c.bf16 %v7721_v18, %v8873_v41  ;;  %v2285_v45 = vpop.f32.mrf.mxu3  ;;  %v3736_v5 = vsel %vm1105_vm5, %v3731_v50, %v3735_v27  ;;  %3660 = vmatmul.bf16.gmra.mxu1 %v8447_v14 }
 0x1f0   : > { %v2296_v18 = vadd.f32 %v2285_v45, %v8422_v6  ;;  %6234 = vmatpush.bf16.msra.mxu1 %v6125_v44  ;;  %4201 = vmatpush.bf16.msrb.mxu0 %v6125_v44 }
 0x1f1   : > { %3381 = vmatmul.bf16.gmra.mxu3 %v8874_v46 }
 0x1f2   : > { %v2468_v35 = vpop.f32.mrf.mxu0  ;;  %v2477_v34 = vadd.f32 %v2466_v47, %v2296_v18  ;;  %6241 = vmatpush.bf16.msrb.mxu3 %v6134_v63 }
 0x1f3   : > { %3802 = vmatmul.bf16.gmra.mxu2 %v8435_v59  ;;  %v2608_v25 = vpop.f32.mrf.mxu1  ;;  %v6124_v59 = vld [vmem:[%s8593_s3 + $0x5c0] sm:$0xff] }
 0x1f4   : > { %v2622_v12 = vadd.f32 %v2608_v25, %v2475_v58  ;;  %6235 = vmatpush.bf16.msra.mxu1 %v6124_v59  ;;  %4202 = vmatpush.bf16.msrb.mxu0 %v6124_v59 }
 0x1f6   : > { %v2717_v53 = vpop.f32.mrf.mxu2  ;;  %6242 = vmatpush.bf16.msrb.mxu3 %v6133_v61 }
 0x1f7   : > { %v2734_v13 = vadd.f32 %v2717_v53, %v2620_v40  ;;  %v2287_v6 = vpop.f32.mrf.mxu3  ;;  %v6132_v40 = vld [vmem:[%s8593_s3 + $0x680] sm:$0xff] }
 0x1f8   : > { %v2297_v36 = vadd.f32 %v2287_v6, %v8449_v43  ;;  %4311 = vmatpush.bf16.msra.mxu2 %v6132_v40  ;;  %v3847_v43 = vrot.slane %v3845_v49, 1 }
 0x1fa   : > { %v3004_v30 = vpop.f32.mrf.mxu0  ;;  %v2478_v48 = vadd.f32 %v2468_v35, %v2297_v36  ;;  %6243 = vmatpush.bf16.msrb.mxu3 %v6132_v40  ;;  %v3848_v58 = vsel %vm1105_vm5, %v8488_v7, %v3847_v43  ;;  %v3849_v35 = vshrl.u32 %v3826_v52, 16 }
 0x1fb   : > { %v2610_v42 = vpop.f32.mrf.mxu1 }
 0x1fc   : > { %v2623_v9 = vadd.f32 %v2610_v42, %v2476_v22  ;;  %v3851_v61 = vor.u32 %v3849_v35, %v3847_v43 }
 0x1fd   : > { %4078 = vmatmul.bf16.vlgmr.msra.gmra.mxu0 %v8876_v20 }
 0x1fe   : > { %v2719_v23 = vpop.f32.mrf.mxu2 }
 0x1ff   : > { %v2735_v56 = vadd.f32 %v2719_v23, %v2621_v3  ;;  %v2879_v15 = vpop.f32.mrf.mxu3  ;;  %3665 = vmatmul.bf16.gmra.mxu1 %v8496_v62 }
 0x200   : > { %v2899_v4 = vadd.f32 %v2879_v15, %v8476_v16 }
 0x201   : > { %3911 = vmatmul.bf16.vlgmr.msra.gmra.mxu3 %v8395_v26 }
 0x202   : > { %v3006_v51 = vpop.f32.mrf.mxu0  ;;  %v3024_v39 = vadd.f32 %v3004_v30, %v2899_v4 }
 0x203   : > { %3807 = vmatmul.bf16.gmra.mxu2 %v8474_v0  ;;  %v2613_v29 = vpop.f32.mrf.mxu1 }
 0x204   : > { %v2624_v31 = vadd.f32 %v2613_v29, %v2477_v34 }
 0x206   : > { %v2722_v54 = vpop.f32.mrf.mxu2 }
 0x207   : > { %v2736_v10 = vadd.f32 %v2722_v54, %v2622_v12  ;;  %v2881_v26 = vpop.f32.mrf.mxu3 }
 0x208   : > { %v2900_v3 = vadd.f32 %v2881_v26, %v8499_v1 }
 0x20a   : > { %v3009_v63 = vpop.f32.mrf.mxu0  ;;  %v3025_v38 = vadd.f32 %v3006_v51, %v2900_v3  ;;  %v8878_v51 = vld [vmem:[#allocation35_spill] sm:$0xff] }
 0x20b   : > { %v2615_v0 = vpop.f32.mrf.mxu1 }
 0x20c   : > { %v2625_v19 = vadd.f32 %v2615_v0, %v2478_v48 }
 0x20d   : > { %4083 = vmatmul.bf16.gmra.mxu0 %v7793_v17 }
 0x20e   : > { %v2724_v28 = vpop.f32.mrf.mxu2 }
 0x20f   : > { %v2737_v47 = vadd.f32 %v2724_v28, %v2623_v9  ;;  %v2884_v16 = vpop.f32.mrf.mxu3  ;;  %4208 = vmatmul.bf16.vlgmr.msra.gmra.mxu1 %v7796_v2 }
 0x210   : > { %v2901_v60 = vadd.f32 %v2884_v16, %v2734_v13 }
 0x211   : > { %3916 = vmatmul.bf16.gmra.mxu3 %v8447_v14 }
 0x212   : > { %v3011_v41 = vpop.f32.mrf.mxu0  ;;  %v3026_v46 = vadd.f32 %v3009_v63, %v2901_v60 }
 0x213   : > { %3812 = vmatmul.bf16.gmra.mxu2 %v3736_v5  ;;  %v3113_v22 = vpop.f32.mrf.mxu1 }
 0x214   : > { %v3133_v62 = vadd.f32 %v3113_v22, %v3024_v39 }
 0x216   : > { %v2727_v7 = vpop.f32.mrf.mxu2 }
 0x217   : > { %v2738_v21 = vadd.f32 %v2727_v7, %v2624_v31  ;;  %v2886_v1 = vpop.f32.mrf.mxu3 }
 0x218   : > { %v2902_v50 = vadd.f32 %v2886_v1, %v2735_v56 }
 0x21a   : > { %v3014_v14 = vpop.f32.mrf.mxu0  ;;  %v3027_v45 = vadd.f32 %v3011_v41, %v2902_v50 }
 0x21b   : > { %v3115_v57 = vpop.f32.mrf.mxu1 }
 0x21c   : > { %v3134_v27 = vadd.f32 %v3115_v57, %v3025_v38 }
 0x21d   : > { %4088 = vmatmul.bf16.gmra.mxu0 %v7799_v32 }
 0x21e   : > { %v2729_v33 = vpop.f32.mrf.mxu2 }
 0x21f   : > { %v2739_v44 = vadd.f32 %v2729_v33, %v2625_v19  ;;  %v2889_v18 = vpop.f32.mrf.mxu3  ;;  %4213 = vmatmul.bf16.gmra.mxu1 %v7802_v8 }
 0x220   : > { %v2903_v53 = vadd.f32 %v2889_v18, %v2736_v10 }
 0x221   : > { %3921 = vmatmul.bf16.gmra.mxu3 %v3848_v58 }
 0x222   : > { %v3016_v2 = vpop.f32.mrf.mxu0  ;;  %v3028_v59 = vadd.f32 %v3014_v14, %v2903_v53 }
 0x223   : > { %4312 = vmatmul.bf16.vlgmr.msra.gmra.mxu2 %v7793_v17  ;;  %v3118_v5 = vpop.f32.mrf.mxu1  ;;  %v3852_v17 = vsel %vm1105_vm5, %v3851_v61, %v7859_v24 }
 0x224   : > { %v3135_v12 = vadd.f32 %v3118_v5, %v3026_v46 }
 0x226   : > { %v3261_v25 = vpop.f32.mrf.mxu2 }
 0x227   : > { %v3281_v13 = vadd.f32 %v3261_v25, %v3133_v62  ;;  %v2891_v34 = vpop.f32.mrf.mxu3 }
 0x228   : > { %v2904_v6 = vadd.f32 %v2891_v34, %v2737_v47 }
 0x22a   : > { %v3019_v9 = vpop.f32.mrf.mxu0  ;;  %v3029_v30 = vadd.f32 %v3016_v2, %v2904_v6 }
 0x22b   : > { %v3120_v23 = vpop.f32.mrf.mxu1 }
 0x22c   : > { %v3136_v56 = vadd.f32 %v3120_v23, %v3027_v45 }
 0x22d   : > { %4093 = vmatmul.bf16.gmra.mxu0 %v7805_v55 }
 0x22e   : > { %v3263_v36 = vpop.f32.mrf.mxu2 }
 0x22f   : > { %v3282_v42 = vadd.f32 %v3263_v36, %v3134_v27  ;;  %v2894_v40 = vpop.f32.mrf.mxu3  ;;  %4218 = vmatmul.bf16.gmra.mxu1 %v7771_v37 }
 0x230   : > { %v2905_v52 = vadd.f32 %v2894_v40, %v2738_v21 }
 0x231   : > { %3926 = vmatmul.bf16.gmra.mxu3 %v3852_v17 }
 0x232   : > { %v3021_v43 = vpop.f32.mrf.mxu0  ;;  %v3030_v15 = vadd.f32 %v3019_v9, %v2905_v52 }
 0x233   : > { %4317 = vmatmul.bf16.gmra.mxu2 %v7799_v32  ;;  %v3123_v48 = vpop.f32.mrf.mxu1  ;;  %v8877_v32 = vld [vmem:[#allocation17_spill] sm:$0xff] }
 0x234   : > { %v3137_v20 = vadd.f32 %v3123_v48, %v3028_v59 }
 0x236   : > { %v3266_v8 = vpop.f32.mrf.mxu2 }
 0x237   : > { %v3283_v49 = vadd.f32 %v3266_v8, %v3135_v12  ;;  %v2896_v58 = vpop.f32.mrf.mxu3 }
 0x238   : > { %v2906_v54 = vadd.f32 %v2896_v58, %v2739_v44 }
 0x23a   : > { %v3470_v31 = vpop.f32.mrf.mxu0  ;;  %v3031_v55 = vadd.f32 %v3021_v43, %v2906_v54 }
 0x23b   : > { %v3125_v24 = vpop.f32.mrf.mxu1 }
 0x23c   : > { %v3138_v10 = vadd.f32 %v3125_v24, %v3029_v30 }
 0x23d   : > { %4203 = vmatmul.bf16.vlgmr.msrb.gmra.mxu0 %v7775_v11 }
 0x23e   : > { %v3268_v4 = vpop.f32.mrf.mxu2 }
 0x23f   : > { %v3284_v29 = vadd.f32 %v3268_v4, %v3136_v56  ;;  %v3367_v39 = vpop.f32.mrf.mxu3 }
 0x240   : > { %v3387_v28 = vadd.f32 %v3367_v39, %v3281_v13 }
 0x241   : > { %4327 = vmatmul.bf16.vlgmr.msrb.gmra.mxu3 %v8877_v32 }
 0x242   : > { %v3472_v47 = vpop.f32.mrf.mxu0  ;;  %v3490_v19 = vadd.f32 %v3470_v31, %v3387_v28 }
 0x243   : > { %4322 = vmatmul.bf16.gmra.mxu2 %v8878_v51  ;;  %v3128_v3 = vpop.f32.mrf.mxu1 }
 0x244   : > { %v3139_v37 = vadd.f32 %v3128_v3, %v3030_v15 }
 0x246   : > { %v3271_v26 = vpop.f32.mrf.mxu2 }
 0x247   : > { %v3285_v0 = vadd.f32 %v3271_v26, %v3137_v20  ;;  %v3369_v63 = vpop.f32.mrf.mxu3 }
 0x248   : > { %v3388_v16 = vadd.f32 %v3369_v63, %v3282_v42 }
 0x24a   : > { %v3475_v21 = vpop.f32.mrf.mxu0  ;;  %v3491_v11 = vadd.f32 %v3472_v47, %v3388_v16 }
 0x24b   : > { %v3130_v7 = vpop.f32.mrf.mxu1 }
 0x24c   : > { %v3140_v22 = vadd.f32 %v3130_v7, %v3031_v55 }
 0x24e   : > { %v3273_v38 = vpop.f32.mrf.mxu2 }
 0x24f   : > { %v3286_v60 = vadd.f32 %v3273_v38, %v3138_v10  ;;  %v3372_v62 = vpop.f32.mrf.mxu3 }
 0x250   : > { %v3389_v46 = vadd.f32 %v3372_v62, %v3283_v49 }
 0x252   : > { %v3477_v57 = vpop.f32.mrf.mxu0  ;;  %v3492_v44 = vadd.f32 %v3475_v21, %v3389_v46 }
 0x253   : > { %v3651_v1 = vpop.f32.mrf.mxu1 }
 0x254   : > { %v3671_v50 = vadd.f32 %v3651_v1, %v3490_v19 }
 0x256   : > { %v3276_v41 = vpop.f32.mrf.mxu2 }
 0x257   : > { %v3287_v33 = vadd.f32 %v3276_v41, %v3139_v37  ;;  %v3374_v27 = vpop.f32.mrf.mxu3 }
 0x258   : > { %v3390_v45 = vadd.f32 %v3374_v27, %v3284_v29 }
 0x25a   : > { %v3480_v5 = vpop.f32.mrf.mxu0  ;;  %v3493_v13 = vadd.f32 %v3477_v57, %v3390_v45 }
 0x25b   : > { %v3653_v18 = vpop.f32.mrf.mxu1 }
 0x25c   : > { %v3672_v25 = vadd.f32 %v3653_v18, %v3491_v11 }
 0x25e   : > { %v3278_v14 = vpop.f32.mrf.mxu2 }
 0x25f   : > { %v3288_v53 = vadd.f32 %v3278_v14, %v3140_v22  ;;  %v3377_v12 = vpop.f32.mrf.mxu3 }
 0x260   : > { %v3391_v2 = vadd.f32 %v3377_v12, %v3285_v0 }
 0x262   : > { %v3482_v6 = vpop.f32.mrf.mxu0  ;;  %v3494_v36 = vadd.f32 %v3480_v5, %v3391_v2 }
 0x263   : > { %v3656_v59 = vpop.f32.mrf.mxu1 }
 0x264   : > { %v3673_v34 = vadd.f32 %v3656_v59, %v3492_v44 }
 0x266   : > { %v3798_v35 = vpop.f32.mrf.mxu2 }
 0x267   : > { %v3818_v61 = vadd.f32 %v3798_v35, %v3671_v50  ;;  %v3379_v23 = vpop.f32.mrf.mxu3 }
 0x268   : > { %v3392_v42 = vadd.f32 %v3379_v23, %v3286_v60 }
 0x26a   : > { %v3485_v30 = vpop.f32.mrf.mxu0  ;;  %v3495_v40 = vadd.f32 %v3482_v6, %v3392_v42 }
 0x26b   : > { %v3658_v9 = vpop.f32.mrf.mxu1 }
 0x26c   : > { %v3674_v44 = vadd.f32 %v3658_v9, %v3493_v13 }
 0x26e   : > { %v3800_v56 = vpop.f32.mrf.mxu2 }
 0x26f   : > { %v8556_v17 = vadd.f32 %v3800_v56, %v3672_v25 }
 0x272   : > { %v3487_v15 = vpop.f32.mrf.mxu0 }
 0x273   : > { %v3661_v49 = vpop.f32.mrf.mxu1 }
 0x274   : > { %v3382_v52 = vpop.f32.mrf.mxu3  ;;  %v3675_v43 = vadd.f32 %v3661_v49, %v3494_v36 }
 0x275   : > { %v3393_v8 = vadd.f32 %v3382_v52, %v3287_v33 }
 0x276   : > { %v3803_v48 = vpop.f32.mrf.mxu2 }
 0x277   : > { %v3820_v20 = vadd.f32 %v3803_v48, %v3673_v34  ;;  %v3496_v58 = vadd.f32 %v3485_v30, %v3393_v8 }
 0x27a   : > { %v4079_v10 = vpop.f32.mrf.mxu0 }
 0x27b   : > { %v3663_v29 = vpop.f32.mrf.mxu1 }
 0x27c   : > { %v3384_v54 = vpop.f32.mrf.mxu3  ;;  %v3676_v9 = vadd.f32 %v3663_v29, %v3495_v40 }
 0x27d   : > { %v3394_v4 = vadd.f32 %v3384_v54, %v3288_v53 }
 0x27e   : > { %v3805_v24 = vpop.f32.mrf.mxu2 }
 0x27f   : > { %v3497_v31 = vadd.f32 %v3487_v15, %v3394_v4  ;;  %v3821_v27 = vadd.f32 %v3805_v24, %v3674_v44 }
 0x282   : > { %v4081_v26 = vpop.f32.mrf.mxu0 }
 0x283   : > { %v3666_v51 = vpop.f32.mrf.mxu1 }
 0x284   : > { %v3912_v55 = vpop.f32.mrf.mxu3  ;;  %v3677_v6 = vadd.f32 %v3666_v51, %v3496_v58 }
 0x285   : > { %v3932_v60 = vadd.f32 %v3912_v55, %v3818_v61 }
 0x286   : > { %v3808_v32 = vpop.f32.mrf.mxu2 }
 0x287   : > { %v3822_v39 = vadd.f32 %v3808_v32, %v3675_v43  ;;  %v4099_v11 = vadd.f32 %v4079_v10, %v3932_v60 }
 0x28a   : > { %v4084_v37 = vpop.f32.mrf.mxu0 }
 0x28b   : > { %v3668_v0 = vpop.f32.mrf.mxu1 }
 0x28c   : > { %v3914_v28 = vpop.f32.mrf.mxu3  ;;  %v3678_v36 = vadd.f32 %v3668_v0, %v3497_v31 }
 0x28d   : > { %v3933_v48 = vadd.f32 %v3914_v28, %v8556_v17 }
 0x28e   : > { %v3810_v3 = vpop.f32.mrf.mxu2 }
 0x28f   : > { %v3823_v49 = vadd.f32 %v3810_v3, %v3676_v9  ;;  %v4100_v10 = vadd.f32 %v4081_v26, %v3933_v48 }
 0x292   : > { %v4086_v63 = vpop.f32.mrf.mxu0 }
 0x293   : > { %v4209_v38 = vpop.f32.mrf.mxu1 }
 0x294   : > { %v3917_v47 = vpop.f32.mrf.mxu3 }
 0x295   : > { %v3934_v14 = vadd.f32 %v3917_v47, %v3820_v20 }
 0x296   : > { %v3813_v19 = vpop.f32.mrf.mxu2 }
 0x297   : > { %v4101_v12 = vadd.f32 %v4084_v37, %v3934_v14  ;;  %v3824_v30 = vadd.f32 %v3813_v19, %v3677_v6 }
 0x299   : > { %v4226_v35 = vadd.f32 %v4209_v38, %v4101_v12 }
 0x29a   : > { %v4089_v22 = vpop.f32.mrf.mxu0 }
 0x29b   : > { %v4211_v21 = vpop.f32.mrf.mxu1 }
 0x29c   : > { %v3919_v16 = vpop.f32.mrf.mxu3 }
 0x29d   : > { %v3935_v45 = vadd.f32 %v3919_v16, %v3821_v27 }
 0x29e   : > { %v3815_v7 = vpop.f32.mrf.mxu2 }
 0x29f   : > { %v4102_v2 = vadd.f32 %v4086_v63, %v3935_v45  ;;  %v3825_v52 = vadd.f32 %v3815_v7, %v3678_v36 }
 0x2a1   : > { %v4227_v59 = vadd.f32 %v4211_v21, %v4102_v2 }
 0x2a2   : > { %v4091_v46 = vpop.f32.mrf.mxu0 }
 0x2a3   : > { %v4214_v1 = vpop.f32.mrf.mxu1 }
 0x2a4   : > { %v3922_v62 = vpop.f32.mrf.mxu3 }
 0x2a5   : > { %v3936_v20 = vadd.f32 %v3922_v62, %v3822_v39 }
 0x2a6   : > { %v4313_v41 = vpop.f32.mrf.mxu2 }
 0x2a7   : > { %v4103_v31 = vadd.f32 %v4089_v22, %v3936_v20 }
 0x2a9   : > { %v4228_v28 = vadd.f32 %v4214_v1, %v4103_v31 }
 0x2aa   : > { %v4094_v57 = vpop.f32.mrf.mxu0 }
 0x2ab   : > { %v4216_v53 = vpop.f32.mrf.mxu1 }
 0x2ac   : > { %v3924_v33 = vpop.f32.mrf.mxu3 }
 0x2ad   : > { %v3937_v54 = vadd.f32 %v3924_v33, %v3823_v49 }
 0x2ae   : > { %v4315_v50 = vpop.f32.mrf.mxu2 }
 0x2af   : > { %v4104_v0 = vadd.f32 %v4091_v46, %v3937_v54 }
 0x2b1   : > { %v4229_v16 = vadd.f32 %v4216_v53, %v4104_v0 }
 0x2b2   : > { %v4096_v5 = vpop.f32.mrf.mxu0 }
 0x2b3   : > { %v4219_v13 = vpop.f32.mrf.mxu1 }
 0x2b4   : > { %v3927_v18 = vpop.f32.mrf.mxu3 }
 0x2b5   : > { %v3938_v43 = vadd.f32 %v3927_v18, %v3824_v30 }
 0x2b6   : > { %v4318_v25 = vpop.f32.mrf.mxu2 }
 0x2b7   : > { %v4335_v23 = vadd.f32 %v4318_v25, %v4226_v35  ;;  %v4105_v55 = vadd.f32 %v4094_v57, %v3938_v43 }
 0x2b9   : > { %v4230_v39 = vadd.f32 %v4219_v13, %v4105_v55  ;;  %v4373_v7 = vmul.f32 %v4335_v23, %v4335_v23 }
 0x2ba   : > { %v4204_v56 = vpop.f32.mrf.mxu0 }
 0x2bb   : > { %v4224_v58 = vadd.f32 %v4204_v56, %v4099_v11  ;;  %v4221_v37 = vpop.f32.mrf.mxu1 }
 0x2bc   : > { %v3929_v61 = vpop.f32.mrf.mxu3 }
 0x2bd   : > { %v3939_v15 = vadd.f32 %v3929_v61, %v3825_v52  ;;  %v4333_v40 = vadd.f32 %v4313_v41, %v4224_v58 }
 0x2be   : > { %v4320_v34 = vpop.f32.mrf.mxu2 }
 0x2bf   : > { %v4336_v42 = vadd.f32 %v4320_v34, %v4227_v59  ;;  %v4106_v32 = vadd.f32 %v4096_v5, %v3939_v15  ;;  %v4371_v47 = vmul.f32 %v4333_v40, %v4333_v40 }
 0x2c1   : > { %v6196_v8 = vpack.c.bf16 %v4336_v42, %v4335_v23  ;;  %v4231_v3 = vadd.f32 %v4221_v37, %v4106_v32  ;;  %v4374_v1 = vmul.f32 %v4336_v42, %v4336_v42 }
 0x2c2   : > { %v4206_v51 = vpop.f32.mrf.mxu0 }
 0x2c3   : > { %6217 = vst [vmem:[%s8563_s25 + $0x8] sm:$0xff] %v6196_v8   ;;  %v4225_v29 = vadd.f32 %v4206_v51, %v4100_v10 }
 0x2c4   : > { %v4328_v4 = vpop.f32.mrf.mxu3 }
 0x2c5   : > { %v4334_v17 = vadd.f32 %v4315_v50, %v4225_v29  ;;  %v4339_v26 = vadd.f32 %v4328_v4, %v4230_v39 }
 0x2c6   : > { %v4323_v24 = vpop.f32.mrf.mxu2 }
 0x2c7   : > { %v6191_v19 = vpack.c.bf16 %v4334_v17, %v4333_v40  ;;  %v4357_v63 = vadd.f32 %v4334_v17, %v4333_v40  ;;  %v4372_v38 = vmul.f32 %v4334_v17, %v4334_v17  ;;  %v4337_v22 = vadd.f32 %v4323_v24, %v4228_v28 }
 0x2c8   : > { %v4377_v5 = vmul.f32 %v4339_v26, %v4339_v26 }
 0x2c9   : > { %6192 = vst [vmem:[%s8563_s25] sm:$0xff] %v6191_v19   ;;  %v4358_v21 = vadd.f32 %v4357_v63, %v4335_v23  ;;  %v4379_v11 = vadd.f32 %v4372_v38, %v4371_v47  ;;  %v4375_v27 = vmul.f32 %v4337_v22, %v4337_v22 }
 0x2cb   : > { %v4380_v33 = vadd.f32 %v4379_v11, %v4373_v7  ;;  %v4359_v50 = vadd.f32 %v4358_v21, %v4336_v42 }
 0x2cc   : > { %v4330_v60 = vpop.f32.mrf.mxu3 }
 0x2cd   : > { %v4340_v41 = vadd.f32 %v4330_v60, %v4231_v3  ;;  %v4360_v14 = vadd.f32 %v4359_v50, %v4337_v22  ;;  %v4381_v45 = vadd.f32 %v4380_v33, %v4374_v1 }
 0x2ce   : > { %v4325_v62 = vpop.f32.mrf.mxu2 }
 0x2cf   : > { %v4338_v46 = vadd.f32 %v4325_v62, %v4229_v16  ;;  %v6206_v57 = vpack.c.bf16 %v4340_v41, %v4339_v26  ;;  %v4382_v25 = vadd.f32 %v4381_v45, %v4375_v27  ;;  %v4378_v59 = vmul.f32 %v4340_v41, %v4340_v41 }
 0x2d1   : > { %v6201_v44 = vpack.c.bf16 %v4338_v46, %v4337_v22  ;;  %6219 = vst [vmem:[%s8563_s25 + $0x18] sm:$0xff] %v6206_v57   ;;  %v4361_v18 = vadd.f32 %v4360_v14, %v4338_v46  ;;  %v4376_v53 = vmul.f32 %v4338_v46, %v4338_v46 }
 0x2d3   : > { %6218 = vst [vmem:[%s8563_s25 + $0x10] sm:$0xff] %v6201_v44   ;;  %v4383_v12 = vadd.f32 %v4382_v25, %v4376_v53  ;;  %v4362_v2 = vadd.f32 %v4361_v18, %v4339_v26 }
 0x2d5   : > { %v4363_v35 = vadd.f32 %v4362_v2, %v4340_v41  ;;  %v4384_v61 = vadd.f32 %v4383_v12, %v4377_v5 }
 0x2d7   : > { %v4364_v34 = vrot.slane %v4363_v35, 4  ;;  %v4385_v6 = vadd.f32 %v4384_v61, %v4378_v59 }
 0x2d9   : > { %v4365_v36 = vadd.f32 %v4364_v34, %v4363_v35  ;;  %v4386_v23 = vrot.slane %v4385_v6, 4 }
 0x2db   : > { %v4366_v42 = vrot.slane %v4365_v36, 2  ;;  %v4387_v56 = vadd.f32 %v4386_v23, %v4385_v6 }
 0x2dd   : > { %v4367_v13 = vadd.f32 %v4366_v42, %v4365_v36  ;;  %v4388_v9 = vrot.slane %v4387_v56, 2 }
 0x2df   : > { %v4368_v30 = vrot.slane %v4367_v13, 1  ;;  %v4389_v52 = vadd.f32 %v4388_v9, %v4387_v56 }
 0x2e1   : > { %v4369_v8 = vadd.f32 %v4368_v30, %v4367_v13  ;;  %v4390_v48 = vrot.slane %v4389_v52, 1 }
 0x2e3   : > { %4370 = vst [vmem:[%s499_s29] sm:$0x1] %v4369_v8  ;;  %v4391_v49 = vadd.f32 %v4390_v48, %v4389_v52 }
 0x2e5   : > { %4392 = vst [vmem:[%s499_s29 + $0x1] sm:$0x1] %v4391_v49 }
 0x2e6 PF: > { %s20_s13 = sadd.s32 1, %s6331_s13   ;;  %s8880_s30 = smov %s6323_s11 }
 0x2e7   : > { %p17_p11 = scmp.ge.s32.totalorder %s20_s13, 18   ;;  %s8881_s10 = smov %s6327_s12 }
 0x2e8   : > { %s8882_s11 = smov %s8885_s14  ;;  %s8883_s12 = smov %s8889_s15 }
 0x2e9   :  { %19 = sbr.rel (!%p17_p11) target bundleno = 3 (0x3), region = 126 }

</bundles_post_ra>
